<compile_context>
chip_gen: v7x
topology: tpu7x:2x2x1
jax: 0.10.0
libtpu: 0.0.40
codegen_flags: <defaults>
</compile_context>

<pallas_src>
import numpy as np
import jax
import jax.numpy as jnp
from jax.experimental import pallas as pl
from jax.experimental.pallas import tpu as pltpu


# ----------------------- synthetic cfg (small shapes) -----------------------
class cfg:
    input_body_shape = (256, 192)      # (H, W) of the body crop
    output_hm_shape = (8, 8, 6)        # (D, H, W)  -> input feature map 8x6
    output_hand_hm_shape = (8, 8, 8)   # (D, H, W)  -> RoIAlign output 8x8


FEAT_DIM = 64
UPSCALE = 4
BN_EPS = 1e-5
ROI_MAX_GRID = 8                       # static cap for adaptive sampling grid

# ---- static geometry ----
H0, W0 = cfg.output_hm_shape[1], cfg.output_hm_shape[2]             # 8, 6
HP0, WP0 = H0 + 2, W0 + 2                                           # 10, 8 (padded coarse)
NPIX0 = HP0 * WP0                                                   # 80
H1, W1 = 2 * H0, 2 * W0                                             # 16, 12
HP1, WP1 = H1 + 2, W1 + 2                                           # 18, 14 (padded fine)
NPIX1 = HP1 * WP1                                                   # 252
SLAB1 = 256                                                         # per-image slab (252 used)
H2, W2 = 2 * H1, 2 * W1                                             # 32, 24 (final feat map)
PH, PW = cfg.output_hand_hm_shape[1], cfg.output_hand_hm_shape[2]   # 8, 8
PP = PH * PW                                                        # 64 pooled bins per RoI
C0 = FEAT_DIM                                                       # 64
C1 = FEAT_DIM // 2                                                  # 32
C2 = FEAT_DIM // 4                                                  # 16
CO = FEAT_DIM                                                       # 64
G0 = 16                                                             # guard rows stage-1 buffer (>= WP0+1)
G1 = 16                                                             # guard rows stage-2 buffer (>= WP1+1)

# ConvTranspose2d(k=4,s=2,p=1) sub-pixel taps: for output parity p along an axis,
# (input offset d, kernel index k).
_TAPS = {0: ((0, 1), (-1, 3)), 1: ((0, 2), (1, 0))}
_PARITIES = ((0, 0), (0, 1), (1, 0), (1, 1))
_TAPS3x3 = tuple((dy, dx) for dy in (-1, 0, 1) for dx in (-1, 0, 1))


# ---- constant parity scatter matrices: coarse padded grid -> fine padded grid -------
def _build_parity_scatter():
    m = np.zeros((4, SLAB1, NPIX0), np.float32)
    for q, (py, px) in enumerate(_PARITIES):
        for y in range(H0):
            for x in range(W0):
                src = (y + 1) * WP0 + (x + 1)                      # padded coarse row
                dst = (2 * y + py + 1) * WP1 + (2 * x + px + 1)    # padded fine row
                m[q, dst, src] = 1.0
    return jnp.asarray(m, dtype=jnp.bfloat16)


_PSCAT = _build_parity_scatter()                                   # (4, 256, 80), 0/1


# ----------------------------- fused Pallas kernel ---------------------------
def _hand_roi_kernel(xin_ref, w1_ref, b1_ref, pscat_ref, w2_ref, b2_ref,
                     wroi_ref, wc_ref, bc_ref, o_ref,
                     y1_ref, b_ref, y2_ref):
    n_img = wroi_ref.shape[0]
    m0 = n_img * NPIX0
    m1 = n_img * SLAB1

    # ---- deconv stage 1: 9 shifted tap matmuls (ConvT k4 s2 p1 + BN + ReLU) ----
    acc1 = jnp.zeros((m0, 4 * C1), jnp.float32)
    for t, (dy, dx) in enumerate(_TAPS3x3):
        off = dy * WP0 + dx
        xt = xin_ref[G0 + off:G0 + off + m0, :]                    # (m0, 64)
        wt = w1_ref[t * C0:(t + 1) * C0, :]                        # (64, 128)
        acc1 = acc1 + jnp.dot(xt, wt, preferred_element_type=jnp.float32)
    y1_ref[...] = jnp.maximum(acc1 + b1_ref[...], 0.0).astype(y1_ref.dtype)

    # ---- sub-pixel parity interleave (constant 0/1 scatter matmuls) ----
    b_ref[...] = jnp.zeros_like(b_ref)
    for n in range(n_img):
        slab = jnp.zeros((SLAB1, C1), jnp.float32)
        for q in range(4):
            y1q = y1_ref[n * NPIX0:(n + 1) * NPIX0, q * C1:(q + 1) * C1]   # (80, 32)
            slab = slab + jnp.dot(pscat_ref[q], y1q,
                                  preferred_element_type=jnp.float32)
        b_ref[G1 + n * SLAB1:G1 + (n + 1) * SLAB1, :] = slab.astype(b_ref.dtype)

    # ---- deconv stage 2: 9 shifted tap matmuls (+ BN + ReLU) ----
    acc2 = jnp.zeros((m1, 4 * C2), jnp.float32)
    for t, (dy, dx) in enumerate(_TAPS3x3):
        off = dy * WP1 + dx
        bt = b_ref[G1 + off:G1 + off + m1, :]                      # (m1, 32)
        wt = w2_ref[t * C1:(t + 1) * C1, :]                        # (32, 64)
        acc2 = acc2 + jnp.dot(bt, wt, preferred_element_type=jnp.float32)
    y2_ref[...] = jnp.maximum(acc2 + b2_ref[...], 0.0).astype(y2_ref.dtype)

    # ---- RoIAlign sampling (per image x parity matmuls) + final 1x1 conv + bias ----
    wc = wc_ref[...]                                               # (16, 64) bf16
    bc = bc_ref[...]                                               # (1, 64)  f32
    for n in range(n_img):
        samp = jnp.zeros((2 * PP, C2), jnp.float32)
        for q in range(4):
            wq = wroi_ref[n, q]                                    # (128, 256) bf16
            fq = y2_ref[n * SLAB1:(n + 1) * SLAB1, q * C2:(q + 1) * C2]  # (256, 16)
            samp = samp + jnp.dot(wq, fq, preferred_element_type=jnp.float32)
        res = jnp.dot(samp.astype(wc.dtype), wc,
                      preferred_element_type=jnp.float32) + bc     # (128, 64)
        o_ref[n * PP:(n + 1) * PP, :] = res[:PP, :]                        # lhand_n
        o_ref[(n_img + n) * PP:(n_img + n + 1) * PP, :] = res[PP:, :]      # rhand_n


# ------------------------- XLA-side param / operand packing ------------------
def fold_bn(gamma, beta, mean, var):
    scale = gamma * jax.lax.rsqrt(var + BN_EPS)
    bias = beta - mean * scale
    return scale, bias


def _pack_deconv_weight(w_pt, bn_scale):
    """PyTorch ConvTranspose2d weight (Cin,Cout,4,4) -> (9*Cin, 4*Cout); 4 sub-pixel
    parities packed along columns, BN scale folded in."""
    Cin, Cout = w_pt.shape[0], w_pt.shape[1]
    w = jnp.zeros((9 * Cin, 4 * Cout), jnp.float32)
    for q, (py, px) in enumerate(_PARITIES):
        for (dy, ky) in _TAPS[py]:
            for (dx, kx) in _TAPS[px]:
                t = (dy + 1) * 3 + (dx + 1)
                w = w.at[t * Cin:(t + 1) * Cin, q * Cout:(q + 1) * Cout].set(
                    w_pt[:, :, ky, kx])
    return w * jnp.tile(bn_scale, 4)[None, :]


def _pack_input(img_feat_nchw):
    """NCHW -> guarded, zero-padded, flattened (2*G0 + N*NPIX0, C0) f32."""
    x = jnp.transpose(img_feat_nchw, (0, 2, 3, 1))                 # NHWC
    xp = jnp.pad(x, ((0, 0), (1, 1), (1, 1), (0, 0)))              # (N, 10, 8, 64)
    xflat = xp.reshape(-1, C0)
    return jnp.pad(xflat, ((G0, G0), (0, 0))).astype(jnp.float32)


def _roi_axis_weights(start, end, size, pooled):
    """Separable per-axis RoIAlign weights (R, pooled, size); avg pooling,
    sampling_ratio=0 (adaptive, capped), aligned=False."""
    length = jnp.maximum(end - start, 1.0)
    bin_sz = length / pooled
    grid = jnp.clip(jnp.ceil(bin_sz), 1.0, float(ROI_MAX_GRID))
    g = jnp.arange(ROI_MAX_GRID, dtype=jnp.float32)
    p = jnp.arange(pooled, dtype=jnp.float32)
    coord = (start[:, None, None] + p[None, :, None] * bin_sz[:, None, None]
             + (g[None, None, :] + 0.5) * bin_sz[:, None, None] / grid[:, None, None])
    gmask = (g[None, None, :] < grid[:, None, None]).astype(jnp.float32)
    valid = ((coord >= -1.0) & (coord <= float(size))).astype(jnp.float32)
    c = jnp.clip(coord, 0.0, float(size - 1))
    lo = jnp.floor(c)
    frac = c - lo
    j = jnp.arange(size, dtype=jnp.float32)
    w = (jnp.where(j[None, None, None, :] == lo[..., None], 1.0 - frac[..., None], 0.0)
         + jnp.where(j[None, None, None, :] == lo[..., None] + 1.0, frac[..., None], 0.0))
    w = w * (valid * gmask)[..., None]
    return w.sum(axis=2) / grid[:, None, None]


def _pack_roi_weights(lhand_bbox, rhand_bbox):
    """Per-image, per-output-parity packed sampling weights (N, 4, 2*PP, SLAB1) bf16,
    with torch.flip(lhand, [3]) folded into the bin order."""
    n_img = lhand_bbox.shape[0]
    bbox = jnp.concatenate([lhand_bbox, rhand_bbox], axis=0)       # (2N, 4): x1,y1,x2,y2
    sy = cfg.output_hm_shape[1] * UPSCALE / cfg.input_body_shape[0]
    sx = cfg.output_hm_shape[2] * UPSCALE / cfg.input_body_shape[1]
    ay = _roi_axis_weights(bbox[:, 1] * sy, bbox[:, 3] * sy, H2, PH)   # (2N, PH, 32)
    ax = _roi_axis_weights(bbox[:, 0] * sx, bbox[:, 2] * sx, W2, PW)   # (2N, PW, 24)
    ax = ax.at[:n_img].set(ax[:n_img, ::-1, :])                    # fold lhand flip
    wpar = []
    for (ry, rx) in _PARITIES:
        ayp = jnp.zeros((2 * n_img, PH, HP1), jnp.float32)
        ayp = ayp.at[:, :, 1:1 + H1].set(ay[:, :, ry::2])
        axp = jnp.zeros((2 * n_img, PW, WP1), jnp.float32)
        axp = axp.at[:, :, 1:1 + W1].set(ax[:, :, rx::2])
        w = jnp.einsum('rph,rqw->rpqhw', ayp, axp).reshape(2 * n_img, PP, NPIX1)
        wpar.append(jnp.pad(w, ((0, 0), (0, 0), (0, SLAB1 - NPIX1))))
    w = jnp.stack(wpar, axis=1)                                    # (2N, 4, PP, 256)
    w = w.reshape(2, n_img, 4, PP, SLAB1)                          # (side, img, par, ...)
    w = jnp.transpose(w, (1, 2, 0, 3, 4)).reshape(n_img, 4, 2 * PP, SLAB1)
    return w.astype(jnp.bfloat16)


# ----------------------------- parameter init --------------------------------
def init_params(key):
    C = FEAT_DIM
    k = jax.random.split(key, 12)
    p = {}
    p["deconv1_w"] = 0.05 * jax.random.normal(k[0], (C, C // 2, 4, 4), jnp.float32)
    p["bn1_gamma"] = 1.0 + 0.05 * jax.random.normal(k[1], (C // 2,), jnp.float32)
    p["bn1_beta"] = 0.05 * jax.random.normal(k[2], (C // 2,), jnp.float32)
    p["bn1_mean"] = 0.05 * jax.random.normal(k[3], (C // 2,), jnp.float32)
    p["bn1_var"] = 0.5 + jnp.abs(0.1 * jax.random.normal(k[4], (C // 2,), jnp.float32))
    p["deconv2_w"] = 0.05 * jax.random.normal(k[5], (C // 2, C // 4, 4, 4), jnp.float32)
    p["bn2_gamma"] = 1.0 + 0.05 * jax.random.normal(k[6], (C // 4,), jnp.float32)
    p["bn2_beta"] = 0.05 * jax.random.normal(k[7], (C // 4,), jnp.float32)
    p["bn2_mean"] = 0.05 * jax.random.normal(k[8], (C // 4,), jnp.float32)
    p["bn2_var"] = 0.5 + jnp.abs(0.1 * jax.random.normal(k[9], (C // 4,), jnp.float32))
    p["conv_w"] = 0.05 * jax.random.normal(k[10], (C, C // 4, 1, 1), jnp.float32)
    p["conv_b"] = 0.05 * jax.random.normal(k[11], (C,), jnp.float32)
    return p


# ------------------------------- forward --------------------------------------
@jax.jit
def hand_roi_forward(params, img_feat_nchw, lhand_bbox, rhand_bbox):
    n_img = img_feat_nchw.shape[0]
    assert (cfg.output_hm_shape[1] * UPSCALE, cfg.output_hm_shape[2] * UPSCALE) == (H2, W2)

    # ---- fold BN + pack weights (tiny XLA ops on params) ----
    s1, b1 = fold_bn(params["bn1_gamma"], params["bn1_beta"],
                     params["bn1_mean"], params["bn1_var"])
    s2, b2 = fold_bn(params["bn2_gamma"], params["bn2_beta"],
                     params["bn2_mean"], params["bn2_var"])
    w1p = _pack_deconv_weight(params["deconv1_w"], s1)             # (576, 128) f32
    w2p = _pack_deconv_weight(params["deconv2_w"], s2)             # (288, 64)  f32
    b1p = jnp.tile(b1, 4).reshape(1, 4 * C1).astype(jnp.float32)
    b2p = jnp.tile(b2, 4).reshape(1, 4 * C2).astype(jnp.float32)
    wc = params["conv_w"][:, :, 0, 0].T.astype(jnp.bfloat16)       # (16, 64)
    bc = params["conv_b"].reshape(1, CO).astype(jnp.float32)

    # ---- pack kernel operands ----
    xin = _pack_input(img_feat_nchw)                               # (2*G0 + N*80, 64)
    wroi = _pack_roi_weights(lhand_bbox, rhand_bbox)               # (N, 4, 128, 256) bf16

    r0 = 2 * G0 + n_img * NPIX0
    r1 = 2 * G1 + n_img * SLAB1
    out = pl.pallas_call(
        _hand_roi_kernel,
        out_shape=jax.ShapeDtypeStruct((2 * n_img * PP, CO), jnp.float32),
        grid=(1,),
        in_specs=[
            pl.BlockSpec((r0, C0), lambda i: (0, 0)),                       # xin
            pl.BlockSpec((9 * C0, 4 * C1), lambda i: (0, 0)),               # w1
            pl.BlockSpec((1, 4 * C1), lambda i: (0, 0)),                    # b1
            pl.BlockSpec((4, SLAB1, NPIX0), lambda i: (0, 0, 0)),           # pscat
            pl.BlockSpec((9 * C1, 4 * C2), lambda i: (0, 0)),               # w2
            pl.BlockSpec((1, 4 * C2), lambda i: (0, 0)),                    # b2
            pl.BlockSpec((n_img, 4, 2 * PP, SLAB1), lambda i: (0, 0, 0, 0)),  # wroi
            pl.BlockSpec((C2, CO), lambda i: (0, 0)),                       # wc
            pl.BlockSpec((1, CO), lambda i: (0, 0)),                        # bc
        ],
        out_specs=pl.BlockSpec((2 * n_img * PP, CO), lambda i: (0, 0)),
        scratch_shapes=[
            pltpu.VMEM((n_img * NPIX0, 4 * C1), jnp.bfloat16),   # y1 (parity-packed)
            pltpu.VMEM((r1, C1), jnp.float32),                   # guarded stage-2 input
            pltpu.VMEM((n_img * SLAB1, 4 * C2), jnp.bfloat16),   # y2 (parity-packed)
        ],
        compiler_params=pltpu.CompilerParams(dimension_semantics=("arbitrary",)),
    )(xin, w1p, b1p, _PSCAT, w2p, b2p, wroi, wc, bc)

    out = out.reshape(2 * n_img, PH, PW, CO)
    return jnp.transpose(out, (0, 3, 1, 2))                        # NCHW like PyTorch


# --------------------------------- main ---------------------------------------
if __name__ == "__main__":
    key = jax.random.PRNGKey(0)
    kp, kf, kb = jax.random.split(key, 3)
    params = init_params(kp)

    N = 2
    img_feat = jax.random.normal(kf, (N, FEAT_DIM, H0, W0), jnp.float32)

    kb1, kb2, kb3, kb4 = jax.random.split(kb, 4)
    # bboxes (x1, y1, x2, y2) in input_body_shape coordinates
    bx1 = jax.random.uniform(kb1, (2 * N,), minval=10.0, maxval=80.0)
    by1 = jax.random.uniform(kb2, (2 * N,), minval=10.0, maxval=120.0)
    bx2 = bx1 + jax.random.uniform(kb3, (2 * N,), minval=30.0, maxval=100.0)
    by2 = by1 + jax.random.uniform(kb4, (2 * N,), minval=30.0, maxval=120.0)
    bboxes = jnp.stack([bx1, by1, bx2, by2], axis=1).astype(jnp.float32)
    lhand_bbox, rhand_bbox = bboxes[:N], bboxes[N:]

    out = hand_roi_forward(params, img_feat, lhand_bbox, rhand_bbox)
    out = jax.block_until_ready(out)
    assert out.shape == (2 * N, FEAT_DIM, PH, PW)
    assert bool(jnp.all(jnp.isfinite(out)))
    print("KERNEL_OK")
</pallas_src>

<mosaic_0001>
module attributes {stable_mosaic.version = 11 : i64} {
  func.func @_hand_roi_kernel(%arg0: i32, %arg1: memref<192x64xf32, #tpu.memory_space<vmem>>, %arg2: memref<576x128xf32, #tpu.memory_space<vmem>>, %arg3: memref<1x128xf32, #tpu.memory_space<vmem>>, %arg4: memref<4x256x80xbf16, #tpu.memory_space<vmem>>, %arg5: memref<288x64xf32, #tpu.memory_space<vmem>>, %arg6: memref<1x64xf32, #tpu.memory_space<vmem>>, %arg7: memref<2x4x128x256xbf16, #tpu.memory_space<vmem>>, %arg8: memref<16x64xbf16, #tpu.memory_space<vmem>>, %arg9: memref<1x64xf32, #tpu.memory_space<vmem>>, %arg10: memref<256x64xf32, #tpu.memory_space<vmem>>, %arg11: memref<160x128xbf16, #tpu.memory_space<vmem>>, %arg12: memref<544x32xf32, #tpu.memory_space<vmem>>, %arg13: memref<512x64xbf16, #tpu.memory_space<vmem>>) attributes {dimension_semantics = [#tpu.dimension_semantics<arbitrary>], iteration_bounds = array<i64: 1>, scalar_prefetch = 0 : i64, scratch_operands = 3 : i64, tpu.core_type = #tpu.core_type<tc>, window_params = [{pipeline_mode = #tpu.pipeline_mode<synchronous>, transform_indices = @transform_0, window_bounds = array<i64: 192, 64>}, {pipeline_mode = #tpu.pipeline_mode<synchronous>, transform_indices = @transform_1, window_bounds = array<i64: 576, 128>}, {pipeline_mode = #tpu.pipeline_mode<synchronous>, transform_indices = @transform_2, window_bounds = array<i64: 1, 128>}, {pipeline_mode = #tpu.pipeline_mode<synchronous>, transform_indices = @transform_3, window_bounds = array<i64: 4, 256, 80>}, {pipeline_mode = #tpu.pipeline_mode<synchronous>, transform_indices = @transform_4, window_bounds = array<i64: 288, 64>}, {pipeline_mode = #tpu.pipeline_mode<synchronous>, transform_indices = @transform_5, window_bounds = array<i64: 1, 64>}, {pipeline_mode = #tpu.pipeline_mode<synchronous>, transform_indices = @transform_6, window_bounds = array<i64: 2, 4, 128, 256>}, {pipeline_mode = #tpu.pipeline_mode<synchronous>, transform_indices = @transform_7, window_bounds = array<i64: 16, 64>}, {pipeline_mode = #tpu.pipeline_mode<synchronous>, transform_indices = @transform_8, window_bounds = array<i64: 1, 64>}, {pipeline_mode = #tpu.pipeline_mode<synchronous>, transform_indices = @transform_9, window_bounds = array<i64: 256, 64>}]} {
    %cst = arith.constant 0.000000e+00 : f32
    %0 = vector.broadcast %cst : f32 to vector<160x128xf32>
    %c7 = arith.constant 7 : index
    %c0 = arith.constant 0 : index
    %1 = vector.load %arg1[%c7, %c0] : memref<192x64xf32, #tpu.memory_space<vmem>>, vector<160x64xf32>
    %c0_0 = arith.constant 0 : index
    %c0_1 = arith.constant 0 : index
    %2 = vector.load %arg2[%c0_0, %c0_1] : memref<576x128xf32, #tpu.memory_space<vmem>>, vector<64x128xf32>
    %cst_2 = arith.constant dense<0.000000e+00> : vector<160x128xf32>
    %3 = tpu.matmul %1, %2, %cst_2 {dimension_numbers = #tpu.dot_dimension_numbers<[1], [0], [0], [1], [0, 0, 1, 1], [], []>} : vector<160x64xf32>, vector<64x128xf32>, vector<160x128xf32> -> vector<160x128xf32>
    %4 = arith.addf %0, %3 : vector<160x128xf32>
    %c8 = arith.constant 8 : index
    %c0_3 = arith.constant 0 : index
    %5 = vector.load %arg1[%c8, %c0_3] : memref<192x64xf32, #tpu.memory_space<vmem>>, vector<160x64xf32>
    %c64 = arith.constant 64 : index
    %c0_4 = arith.constant 0 : index
    %6 = vector.load %arg2[%c64, %c0_4] : memref<576x128xf32, #tpu.memory_space<vmem>>, vector<64x128xf32>
    %cst_5 = arith.constant dense<0.000000e+00> : vector<160x128xf32>
    %7 = tpu.matmul %5, %6, %cst_5 {dimension_numbers = #tpu.dot_dimension_numbers<[1], [0], [0], [1], [0, 0, 1, 1], [], []>} : vector<160x64xf32>, vector<64x128xf32>, vector<160x128xf32> -> vector<160x128xf32>
    %8 = arith.addf %4, %7 : vector<160x128xf32>
    %c9 = arith.constant 9 : index
    %c0_6 = arith.constant 0 : index
    %9 = vector.load %arg1[%c9, %c0_6] : memref<192x64xf32, #tpu.memory_space<vmem>>, vector<160x64xf32>
    %c128 = arith.constant 128 : index
    %c0_7 = arith.constant 0 : index
    %10 = vector.load %arg2[%c128, %c0_7] : memref<576x128xf32, #tpu.memory_space<vmem>>, vector<64x128xf32>
    %cst_8 = arith.constant dense<0.000000e+00> : vector<160x128xf32>
    %11 = tpu.matmul %9, %10, %cst_8 {dimension_numbers = #tpu.dot_dimension_numbers<[1], [0], [0], [1], [0, 0, 1, 1], [], []>} : vector<160x64xf32>, vector<64x128xf32>, vector<160x128xf32> -> vector<160x128xf32>
    %12 = arith.addf %8, %11 : vector<160x128xf32>
    %c15 = arith.constant 15 : index
    %c0_9 = arith.constant 0 : index
    %13 = vector.load %arg1[%c15, %c0_9] : memref<192x64xf32, #tpu.memory_space<vmem>>, vector<160x64xf32>
    %c192 = arith.constant 192 : index
    %c0_10 = arith.constant 0 : index
    %14 = vector.load %arg2[%c192, %c0_10] : memref<576x128xf32, #tpu.memory_space<vmem>>, vector<64x128xf32>
    %cst_11 = arith.constant dense<0.000000e+00> : vector<160x128xf32>
    %15 = tpu.matmul %13, %14, %cst_11 {dimension_numbers = #tpu.dot_dimension_numbers<[1], [0], [0], [1], [0, 0, 1, 1], [], []>} : vector<160x64xf32>, vector<64x128xf32>, vector<160x128xf32> -> vector<160x128xf32>
    %16 = arith.addf %12, %15 : vector<160x128xf32>
    %c16 = arith.constant 16 : index
    %c0_12 = arith.constant 0 : index
    %17 = vector.load %arg1[%c16, %c0_12] : memref<192x64xf32, #tpu.memory_space<vmem>>, vector<160x64xf32>
    %c256 = arith.constant 256 : index
    %c0_13 = arith.constant 0 : index
    %18 = vector.load %arg2[%c256, %c0_13] : memref<576x128xf32, #tpu.memory_space<vmem>>, vector<64x128xf32>
    %cst_14 = arith.constant dense<0.000000e+00> : vector<160x128xf32>
    %19 = tpu.matmul %17, %18, %cst_14 {dimension_numbers = #tpu.dot_dimension_numbers<[1], [0], [0], [1], [0, 0, 1, 1], [], []>} : vector<160x64xf32>, vector<64x128xf32>, vector<160x128xf32> -> vector<160x128xf32>
    %20 = arith.addf %16, %19 : vector<160x128xf32>
    %c17 = arith.constant 17 : index
    %c0_15 = arith.constant 0 : index
    %21 = vector.load %arg1[%c17, %c0_15] : memref<192x64xf32, #tpu.memory_space<vmem>>, vector<160x64xf32>
    %c320 = arith.constant 320 : index
    %c0_16 = arith.constant 0 : index
    %22 = vector.load %arg2[%c320, %c0_16] : memref<576x128xf32, #tpu.memory_space<vmem>>, vector<64x128xf32>
    %cst_17 = arith.constant dense<0.000000e+00> : vector<160x128xf32>
    %23 = tpu.matmul %21, %22, %cst_17 {dimension_numbers = #tpu.dot_dimension_numbers<[1], [0], [0], [1], [0, 0, 1, 1], [], []>} : vector<160x64xf32>, vector<64x128xf32>, vector<160x128xf32> -> vector<160x128xf32>
    %24 = arith.addf %20, %23 : vector<160x128xf32>
    %c23 = arith.constant 23 : index
    %c0_18 = arith.constant 0 : index
    %25 = vector.load %arg1[%c23, %c0_18] : memref<192x64xf32, #tpu.memory_space<vmem>>, vector<160x64xf32>
    %c384 = arith.constant 384 : index
    %c0_19 = arith.constant 0 : index
    %26 = vector.load %arg2[%c384, %c0_19] : memref<576x128xf32, #tpu.memory_space<vmem>>, vector<64x128xf32>
    %cst_20 = arith.constant dense<0.000000e+00> : vector<160x128xf32>
    %27 = tpu.matmul %25, %26, %cst_20 {dimension_numbers = #tpu.dot_dimension_numbers<[1], [0], [0], [1], [0, 0, 1, 1], [], []>} : vector<160x64xf32>, vector<64x128xf32>, vector<160x128xf32> -> vector<160x128xf32>
    %28 = arith.addf %24, %27 : vector<160x128xf32>
    %c24 = arith.constant 24 : index
    %c0_21 = arith.constant 0 : index
    %29 = vector.load %arg1[%c24, %c0_21] : memref<192x64xf32, #tpu.memory_space<vmem>>, vector<160x64xf32>
    %c448 = arith.constant 448 : index
    %c0_22 = arith.constant 0 : index
    %30 = vector.load %arg2[%c448, %c0_22] : memref<576x128xf32, #tpu.memory_space<vmem>>, vector<64x128xf32>
    %cst_23 = arith.constant dense<0.000000e+00> : vector<160x128xf32>
    %31 = tpu.matmul %29, %30, %cst_23 {dimension_numbers = #tpu.dot_dimension_numbers<[1], [0], [0], [1], [0, 0, 1, 1], [], []>} : vector<160x64xf32>, vector<64x128xf32>, vector<160x128xf32> -> vector<160x128xf32>
    %32 = arith.addf %28, %31 : vector<160x128xf32>
    %c25 = arith.constant 25 : index
    %c0_24 = arith.constant 0 : index
    %33 = vector.load %arg1[%c25, %c0_24] : memref<192x64xf32, #tpu.memory_space<vmem>>, vector<160x64xf32>
    %c512 = arith.constant 512 : index
    %c0_25 = arith.constant 0 : index
    %34 = vector.load %arg2[%c512, %c0_25] : memref<576x128xf32, #tpu.memory_space<vmem>>, vector<64x128xf32>
    %cst_26 = arith.constant dense<0.000000e+00> : vector<160x128xf32>
    %35 = tpu.matmul %33, %34, %cst_26 {dimension_numbers = #tpu.dot_dimension_numbers<[1], [0], [0], [1], [0, 0, 1, 1], [], []>} : vector<160x64xf32>, vector<64x128xf32>, vector<160x128xf32> -> vector<160x128xf32>
    %36 = arith.addf %32, %35 : vector<160x128xf32>
    %c0_27 = arith.constant 0 : index
    %c0_28 = arith.constant 0 : index
    %37 = vector.load %arg3[%c0_27, %c0_28] : memref<1x128xf32, #tpu.memory_space<vmem>>, vector<1x128xf32>
    %38 = vector.broadcast %37 : vector<1x128xf32> to vector<160x128xf32>
    %39 = arith.addf %36, %38 : vector<160x128xf32>
    %cst_29 = arith.constant 0.000000e+00 : f32
    %40 = vector.broadcast %cst_29 : f32 to vector<160x128xf32>
    %41 = arith.maximumf %39, %40 : vector<160x128xf32>
    %42 = arith.truncf %41 : vector<160x128xf32> to vector<160x128xbf16>
    %c0_30 = arith.constant 0 : index
    %c0_31 = arith.constant 0 : index
    %43 = vector.load %arg11[%c0_30, %c0_31] : memref<160x128xbf16, #tpu.memory_space<vmem>>, vector<160x128xbf16>
    tpu.vector_store %arg11[%c0_30, %c0_31], %42 {strides = array<i32>} : memref<160x128xbf16, #tpu.memory_space<vmem>>, vector<160x128xbf16>,
    %cst_32 = arith.constant 0.000000e+00 : f32
    %44 = vector.broadcast %cst_32 : f32 to vector<544x32xf32>
    %c0_33 = arith.constant 0 : index
    %c0_34 = arith.constant 0 : index
    %45 = vector.load %arg12[%c0_33, %c0_34] : memref<544x32xf32, #tpu.memory_space<vmem>>, vector<544x32xf32>
    tpu.vector_store %arg12[%c0_33, %c0_34], %44 {strides = array<i32>} : memref<544x32xf32, #tpu.memory_space<vmem>>, vector<544x32xf32>,
    %cst_35 = arith.constant 0.000000e+00 : f32
    %46 = vector.broadcast %cst_35 : f32 to vector<256x32xf32>
    %c0_36 = arith.constant 0 : index
    %c0_37 = arith.constant 0 : index
    %47 = vector.load %arg11[%c0_36, %c0_37] : memref<160x128xbf16, #tpu.memory_space<vmem>>, vector<80x32xbf16>
    %c0_38 = arith.constant 0 : index
    %c0_39 = arith.constant 0 : index
    %c0_40 = arith.constant 0 : index
    %48 = vector.load %arg4[%c0_38, %c0_39, %c0_40] : memref<4x256x80xbf16, #tpu.memory_space<vmem>>, vector<1x256x80xbf16>
    %49 = vector.shape_cast %48 : vector<1x256x80xbf16> to vector<256x80xbf16>
    %cst_41 = arith.constant dense<0.000000e+00> : vector<256x32xf32>
    %50 = tpu.matmul %49, %47, %cst_41 {dimension_numbers = #tpu.dot_dimension_numbers<[1], [0], [0], [1], [0, 0, 1, 1], [], []>} : vector<256x80xbf16>, vector<80x32xbf16>, vector<256x32xf32> -> vector<256x32xf32>
    %51 = arith.addf %46, %50 : vector<256x32xf32>
    %c0_42 = arith.constant 0 : index
    %c32 = arith.constant 32 : index
    %52 = vector.load %arg11[%c0_42, %c32] : memref<160x128xbf16, #tpu.memory_space<vmem>>, vector<80x32xbf16>
    %c1 = arith.constant 1 : index
    %c0_43 = arith.constant 0 : index
    %c0_44 = arith.constant 0 : index
    %53 = vector.load %arg4[%c1, %c0_43, %c0_44] : memref<4x256x80xbf16, #tpu.memory_space<vmem>>, vector<1x256x80xbf16>
    %54 = vector.shape_cast %53 : vector<1x256x80xbf16> to vector<256x80xbf16>
    %cst_45 = arith.constant dense<0.000000e+00> : vector<256x32xf32>
    %55 = tpu.matmul %54, %52, %cst_45 {dimension_numbers = #tpu.dot_dimension_numbers<[1], [0], [0], [1], [0, 0, 1, 1], [], []>} : vector<256x80xbf16>, vector<80x32xbf16>, vector<256x32xf32> -> vector<256x32xf32>
    %56 = arith.addf %51, %55 : vector<256x32xf32>
    %c0_46 = arith.constant 0 : index
    %c64_47 = arith.constant 64 : index
    %57 = vector.load %arg11[%c0_46, %c64_47] : memref<160x128xbf16, #tpu.memory_space<vmem>>, vector<80x32xbf16>
    %c2 = arith.constant 2 : index
    %c0_48 = arith.constant 0 : index
    %c0_49 = arith.constant 0 : index
    %58 = vector.load %arg4[%c2, %c0_48, %c0_49] : memref<4x256x80xbf16, #tpu.memory_space<vmem>>, vector<1x256x80xbf16>
    %59 = vector.shape_cast %58 : vector<1x256x80xbf16> to vector<256x80xbf16>
    %cst_50 = arith.constant dense<0.000000e+00> : vector<256x32xf32>
    %60 = tpu.matmul %59, %57, %cst_50 {dimension_numbers = #tpu.dot_dimension_numbers<[1], [0], [0], [1], [0, 0, 1, 1], [], []>} : vector<256x80xbf16>, vector<80x32xbf16>, vector<256x32xf32> -> vector<256x32xf32>
    %61 = arith.addf %56, %60 : vector<256x32xf32>
    %c0_51 = arith.constant 0 : index
    %c96 = arith.constant 96 : index
    %62 = vector.load %arg11[%c0_51, %c96] : memref<160x128xbf16, #tpu.memory_space<vmem>>, vector<80x32xbf16>
    %c3 = arith.constant 3 : index
    %c0_52 = arith.constant 0 : index
    %c0_53 = arith.constant 0 : index
    %63 = vector.load %arg4[%c3, %c0_52, %c0_53] : memref<4x256x80xbf16, #tpu.memory_space<vmem>>, vector<1x256x80xbf16>
    %64 = vector.shape_cast %63 : vector<1x256x80xbf16> to vector<256x80xbf16>
    %cst_54 = arith.constant dense<0.000000e+00> : vector<256x32xf32>
    %65 = tpu.matmul %64, %62, %cst_54 {dimension_numbers = #tpu.dot_dimension_numbers<[1], [0], [0], [1], [0, 0, 1, 1], [], []>} : vector<256x80xbf16>, vector<80x32xbf16>, vector<256x32xf32> -> vector<256x32xf32>
    %66 = arith.addf %61, %65 : vector<256x32xf32>
    %c16_55 = arith.constant 16 : index
    %c0_56 = arith.constant 0 : index
    %67 = vector.load %arg12[%c16_55, %c0_56] : memref<544x32xf32, #tpu.memory_space<vmem>>, vector<256x32xf32>
    tpu.vector_store %arg12[%c16_55, %c0_56], %66 {strides = array<i32>} : memref<544x32xf32, #tpu.memory_space<vmem>>, vector<256x32xf32>,
    %cst_57 = arith.constant 0.000000e+00 : f32
    %68 = vector.broadcast %cst_57 : f32 to vector<256x32xf32>
    %c80 = arith.constant 80 : index
    %c0_58 = arith.constant 0 : index
    %69 = vector.load %arg11[%c80, %c0_58] : memref<160x128xbf16, #tpu.memory_space<vmem>>, vector<80x32xbf16>
    %c0_59 = arith.constant 0 : index
    %c0_60 = arith.constant 0 : index
    %c0_61 = arith.constant 0 : index
    %70 = vector.load %arg4[%c0_59, %c0_60, %c0_61] : memref<4x256x80xbf16, #tpu.memory_space<vmem>>, vector<1x256x80xbf16>
    %71 = vector.shape_cast %70 : vector<1x256x80xbf16> to vector<256x80xbf16>
    %cst_62 = arith.constant dense<0.000000e+00> : vector<256x32xf32>
    %72 = tpu.matmul %71, %69, %cst_62 {dimension_numbers = #tpu.dot_dimension_numbers<[1], [0], [0], [1], [0, 0, 1, 1], [], []>} : vector<256x80xbf16>, vector<80x32xbf16>, vector<256x32xf32> -> vector<256x32xf32>
    %73 = arith.addf %68, %72 : vector<256x32xf32>
    %c80_63 = arith.constant 80 : index
    %c32_64 = arith.constant 32 : index
    %74 = vector.load %arg11[%c80_63, %c32_64] : memref<160x128xbf16, #tpu.memory_space<vmem>>, vector<80x32xbf16>
    %c1_65 = arith.constant 1 : index
    %c0_66 = arith.constant 0 : index
    %c0_67 = arith.constant 0 : index
    %75 = vector.load %arg4[%c1_65, %c0_66, %c0_67] : memref<4x256x80xbf16, #tpu.memory_space<vmem>>, vector<1x256x80xbf16>
    %76 = vector.shape_cast %75 : vector<1x256x80xbf16> to vector<256x80xbf16>
    %cst_68 = arith.constant dense<0.000000e+00> : vector<256x32xf32>
    %77 = tpu.matmul %76, %74, %cst_68 {dimension_numbers = #tpu.dot_dimension_numbers<[1], [0], [0], [1], [0, 0, 1, 1], [], []>} : vector<256x80xbf16>, vector<80x32xbf16>, vector<256x32xf32> -> vector<256x32xf32>
    %78 = arith.addf %73, %77 : vector<256x32xf32>
    %c80_69 = arith.constant 80 : index
    %c64_70 = arith.constant 64 : index
    %79 = vector.load %arg11[%c80_69, %c64_70] : memref<160x128xbf16, #tpu.memory_space<vmem>>, vector<80x32xbf16>
    %c2_71 = arith.constant 2 : index
    %c0_72 = arith.constant 0 : index
    %c0_73 = arith.constant 0 : index
    %80 = vector.load %arg4[%c2_71, %c0_72, %c0_73] : memref<4x256x80xbf16, #tpu.memory_space<vmem>>, vector<1x256x80xbf16>
    %81 = vector.shape_cast %80 : vector<1x256x80xbf16> to vector<256x80xbf16>
    %cst_74 = arith.constant dense<0.000000e+00> : vector<256x32xf32>
    %82 = tpu.matmul %81, %79, %cst_74 {dimension_numbers = #tpu.dot_dimension_numbers<[1], [0], [0], [1], [0, 0, 1, 1], [], []>} : vector<256x80xbf16>, vector<80x32xbf16>, vector<256x32xf32> -> vector<256x32xf32>
    %83 = arith.addf %78, %82 : vector<256x32xf32>
    %c80_75 = arith.constant 80 : index
    %c96_76 = arith.constant 96 : index
    %84 = vector.load %arg11[%c80_75, %c96_76] : memref<160x128xbf16, #tpu.memory_space<vmem>>, vector<80x32xbf16>
    %c3_77 = arith.constant 3 : index
    %c0_78 = arith.constant 0 : index
    %c0_79 = arith.constant 0 : index
    %85 = vector.load %arg4[%c3_77, %c0_78, %c0_79] : memref<4x256x80xbf16, #tpu.memory_space<vmem>>, vector<1x256x80xbf16>
    %86 = vector.shape_cast %85 : vector<1x256x80xbf16> to vector<256x80xbf16>
    %cst_80 = arith.constant dense<0.000000e+00> : vector<256x32xf32>
    %87 = tpu.matmul %86, %84, %cst_80 {dimension_numbers = #tpu.dot_dimension_numbers<[1], [0], [0], [1], [0, 0, 1, 1], [], []>} : vector<256x80xbf16>, vector<80x32xbf16>, vector<256x32xf32> -> vector<256x32xf32>
    %88 = arith.addf %83, %87 : vector<256x32xf32>
    %c272 = arith.constant 272 : index
    %c0_81 = arith.constant 0 : index
    %89 = vector.load %arg12[%c272, %c0_81] : memref<544x32xf32, #tpu.memory_space<vmem>>, vector<256x32xf32>
    tpu.vector_store %arg12[%c272, %c0_81], %88 {strides = array<i32>} : memref<544x32xf32, #tpu.memory_space<vmem>>, vector<256x32xf32>,
    %cst_82 = arith.constant 0.000000e+00 : f32
    %90 = vector.broadcast %cst_82 : f32 to vector<512x64xf32>
    %c1_83 = arith.constant 1 : index
    %c0_84 = arith.constant 0 : index
    %91 = vector.load %arg12[%c1_83, %c0_84] : memref<544x32xf32, #tpu.memory_space<vmem>>, vector<512x32xf32>
    %c0_85 = arith.constant 0 : index
    %c0_86 = arith.constant 0 : index
    %92 = vector.load %arg5[%c0_85, %c0_86] : memref<288x64xf32, #tpu.memory_space<vmem>>, vector<32x64xf32>
    %cst_87 = arith.constant dense<0.000000e+00> : vector<512x64xf32>
    %93 = tpu.matmul %91, %92, %cst_87 {dimension_numbers = #tpu.dot_dimension_numbers<[1], [0], [0], [1], [0, 0, 1, 1], [], []>} : vector<512x32xf32>, vector<32x64xf32>, vector<512x64xf32> -> vector<512x64xf32>
    %94 = arith.addf %90, %93 : vector<512x64xf32>
    %c2_88 = arith.constant 2 : index
    %c0_89 = arith.constant 0 : index
    %95 = vector.load %arg12[%c2_88, %c0_89] : memref<544x32xf32, #tpu.memory_space<vmem>>, vector<512x32xf32>
    %c32_90 = arith.constant 32 : index
    %c0_91 = arith.constant 0 : index
    %96 = vector.load %arg5[%c32_90, %c0_91] : memref<288x64xf32, #tpu.memory_space<vmem>>, vector<32x64xf32>
    %cst_92 = arith.constant dense<0.000000e+00> : vector<512x64xf32>
    %97 = tpu.matmul %95, %96, %cst_92 {dimension_numbers = #tpu.dot_dimension_numbers<[1], [0], [0], [1], [0, 0, 1, 1], [], []>} : vector<512x32xf32>, vector<32x64xf32>, vector<512x64xf32> -> vector<512x64xf32>
    %98 = arith.addf %94, %97 : vector<512x64xf32>
    %c3_93 = arith.constant 3 : index
    %c0_94 = arith.constant 0 : index
    %99 = vector.load %arg12[%c3_93, %c0_94] : memref<544x32xf32, #tpu.memory_space<vmem>>, vector<512x32xf32>
    %c64_95 = arith.constant 64 : index
    %c0_96 = arith.constant 0 : index
    %100 = vector.load %arg5[%c64_95, %c0_96] : memref<288x64xf32, #tpu.memory_space<vmem>>, vector<32x64xf32>
    %cst_97 = arith.constant dense<0.000000e+00> : vector<512x64xf32>
    %101 = tpu.matmul %99, %100, %cst_97 {dimension_numbers = #tpu.dot_dimension_numbers<[1], [0], [0], [1], [0, 0, 1, 1], [], []>} : vector<512x32xf32>, vector<32x64xf32>, vector<512x64xf32> -> vector<512x64xf32>
    %102 = arith.addf %98, %101 : vector<512x64xf32>
    %c15_98 = arith.constant 15 : index
    %c0_99 = arith.constant 0 : index
    %103 = vector.load %arg12[%c15_98, %c0_99] : memref<544x32xf32, #tpu.memory_space<vmem>>, vector<512x32xf32>
    %c96_100 = arith.constant 96 : index
    %c0_101 = arith.constant 0 : index
    %104 = vector.load %arg5[%c96_100, %c0_101] : memref<288x64xf32, #tpu.memory_space<vmem>>, vector<32x64xf32>
    %cst_102 = arith.constant dense<0.000000e+00> : vector<512x64xf32>
    %105 = tpu.matmul %103, %104, %cst_102 {dimension_numbers = #tpu.dot_dimension_numbers<[1], [0], [0], [1], [0, 0, 1, 1], [], []>} : vector<512x32xf32>, vector<32x64xf32>, vector<512x64xf32> -> vector<512x64xf32>
    %106 = arith.addf %102, %105 : vector<512x64xf32>
    %c16_103 = arith.constant 16 : index
    %c0_104 = arith.constant 0 : index
    %107 = vector.load %arg12[%c16_103, %c0_104] : memref<544x32xf32, #tpu.memory_space<vmem>>, vector<512x32xf32>
    %c128_105 = arith.constant 128 : index
    %c0_106 = arith.constant 0 : index
    %108 = vector.load %arg5[%c128_105, %c0_106] : memref<288x64xf32, #tpu.memory_space<vmem>>, vector<32x64xf32>
    %cst_107 = arith.constant dense<0.000000e+00> : vector<512x64xf32>
    %109 = tpu.matmul %107, %108, %cst_107 {dimension_numbers = #tpu.dot_dimension_numbers<[1], [0], [0], [1], [0, 0, 1, 1], [], []>} : vector<512x32xf32>, vector<32x64xf32>, vector<512x64xf32> -> vector<512x64xf32>
    %110 = arith.addf %106, %109 : vector<512x64xf32>
    %c17_108 = arith.constant 17 : index
    %c0_109 = arith.constant 0 : index
    %111 = vector.load %arg12[%c17_108, %c0_109] : memref<544x32xf32, #tpu.memory_space<vmem>>, vector<512x32xf32>
    %c160 = arith.constant 160 : index
    %c0_110 = arith.constant 0 : index
    %112 = vector.load %arg5[%c160, %c0_110] : memref<288x64xf32, #tpu.memory_space<vmem>>, vector<32x64xf32>
    %cst_111 = arith.constant dense<0.000000e+00> : vector<512x64xf32>
    %113 = tpu.matmul %111, %112, %cst_111 {dimension_numbers = #tpu.dot_dimension_numbers<[1], [0], [0], [1], [0, 0, 1, 1], [], []>} : vector<512x32xf32>, vector<32x64xf32>, vector<512x64xf32> -> vector<512x64xf32>
    %114 = arith.addf %110, %113 : vector<512x64xf32>
    %c29 = arith.constant 29 : index
    %c0_112 = arith.constant 0 : index
    %115 = vector.load %arg12[%c29, %c0_112] : memref<544x32xf32, #tpu.memory_space<vmem>>, vector<512x32xf32>
    %c192_113 = arith.constant 192 : index
    %c0_114 = arith.constant 0 : index
    %116 = vector.load %arg5[%c192_113, %c0_114] : memref<288x64xf32, #tpu.memory_space<vmem>>, vector<32x64xf32>
    %cst_115 = arith.constant dense<0.000000e+00> : vector<512x64xf32>
    %117 = tpu.matmul %115, %116, %cst_115 {dimension_numbers = #tpu.dot_dimension_numbers<[1], [0], [0], [1], [0, 0, 1, 1], [], []>} : vector<512x32xf32>, vector<32x64xf32>, vector<512x64xf32> -> vector<512x64xf32>
    %118 = arith.addf %114, %117 : vector<512x64xf32>
    %c30 = arith.constant 30 : index
    %c0_116 = arith.constant 0 : index
    %119 = vector.load %arg12[%c30, %c0_116] : memref<544x32xf32, #tpu.memory_space<vmem>>, vector<512x32xf32>
    %c224 = arith.constant 224 : index
    %c0_117 = arith.constant 0 : index
    %120 = vector.load %arg5[%c224, %c0_117] : memref<288x64xf32, #tpu.memory_space<vmem>>, vector<32x64xf32>
    %cst_118 = arith.constant dense<0.000000e+00> : vector<512x64xf32>
    %121 = tpu.matmul %119, %120, %cst_118 {dimension_numbers = #tpu.dot_dimension_numbers<[1], [0], [0], [1], [0, 0, 1, 1], [], []>} : vector<512x32xf32>, vector<32x64xf32>, vector<512x64xf32> -> vector<512x64xf32>
    %122 = arith.addf %118, %121 : vector<512x64xf32>
    %c31 = arith.constant 31 : index
    %c0_119 = arith.constant 0 : index
    %123 = vector.load %arg12[%c31, %c0_119] : memref<544x32xf32, #tpu.memory_space<vmem>>, vector<512x32xf32>
    %c256_120 = arith.constant 256 : index
    %c0_121 = arith.constant 0 : index
    %124 = vector.load %arg5[%c256_120, %c0_121] : memref<288x64xf32, #tpu.memory_space<vmem>>, vector<32x64xf32>
    %cst_122 = arith.constant dense<0.000000e+00> : vector<512x64xf32>
    %125 = tpu.matmul %123, %124, %cst_122 {dimension_numbers = #tpu.dot_dimension_numbers<[1], [0], [0], [1], [0, 0, 1, 1], [], []>} : vector<512x32xf32>, vector<32x64xf32>, vector<512x64xf32> -> vector<512x64xf32>
    %126 = arith.addf %122, %125 : vector<512x64xf32>
    %c0_123 = arith.constant 0 : index
    %c0_124 = arith.constant 0 : index
    %127 = vector.load %arg6[%c0_123, %c0_124] : memref<1x64xf32, #tpu.memory_space<vmem>>, vector<1x64xf32>
    %128 = vector.broadcast %127 : vector<1x64xf32> to vector<512x64xf32>
    %129 = arith.addf %126, %128 : vector<512x64xf32>
    %cst_125 = arith.constant 0.000000e+00 : f32
    %130 = vector.broadcast %cst_125 : f32 to vector<512x64xf32>
    %131 = arith.maximumf %129, %130 : vector<512x64xf32>
    %132 = arith.truncf %131 : vector<512x64xf32> to vector<512x64xbf16>
    %c0_126 = arith.constant 0 : index
    %c0_127 = arith.constant 0 : index
    %133 = vector.load %arg13[%c0_126, %c0_127] : memref<512x64xbf16, #tpu.memory_space<vmem>>, vector<512x64xbf16>
    tpu.vector_store %arg13[%c0_126, %c0_127], %132 {strides = array<i32>} : memref<512x64xbf16, #tpu.memory_space<vmem>>, vector<512x64xbf16>,
    %c0_128 = arith.constant 0 : index
    %c0_129 = arith.constant 0 : index
    %134 = vector.load %arg8[%c0_128, %c0_129] : memref<16x64xbf16, #tpu.memory_space<vmem>>, vector<16x64xbf16>
    %c0_130 = arith.constant 0 : index
    %c0_131 = arith.constant 0 : index
    %135 = vector.load %arg9[%c0_130, %c0_131] : memref<1x64xf32, #tpu.memory_space<vmem>>, vector<1x64xf32>
    %cst_132 = arith.constant 0.000000e+00 : f32
    %136 = vector.broadcast %cst_132 : f32 to vector<128x16xf32>
    %c0_133 = arith.constant 0 : index
    %c0_134 = arith.constant 0 : index
    %c0_135 = arith.constant 0 : index
    %c0_136 = arith.constant 0 : index
    %137 = vector.load %arg7[%c0_133, %c0_134, %c0_135, %c0_136] : memref<2x4x128x256xbf16, #tpu.memory_space<vmem>>, vector<1x1x128x256xbf16>
    %138 = vector.shape_cast %137 : vector<1x1x128x256xbf16> to vector<128x256xbf16>
    %c0_137 = arith.constant 0 : index
    %c0_138 = arith.constant 0 : index
    %139 = vector.load %arg13[%c0_137, %c0_138] : memref<512x64xbf16, #tpu.memory_space<vmem>>, vector<256x16xbf16>
    %cst_139 = arith.constant dense<0.000000e+00> : vector<128x16xf32>
    %140 = tpu.matmul %138, %139, %cst_139 {dimension_numbers = #tpu.dot_dimension_numbers<[1], [0], [0], [1], [0, 0, 1, 1], [], []>} : vector<128x256xbf16>, vector<256x16xbf16>, vector<128x16xf32> -> vector<128x16xf32>
    %141 = arith.addf %136, %140 : vector<128x16xf32>
    %c0_140 = arith.constant 0 : index
    %c1_141 = arith.constant 1 : index
    %c0_142 = arith.constant 0 : index
    %c0_143 = arith.constant 0 : index
    %142 = vector.load %arg7[%c0_140, %c1_141, %c0_142, %c0_143] : memref<2x4x128x256xbf16, #tpu.memory_space<vmem>>, vector<1x1x128x256xbf16>
    %143 = vector.shape_cast %142 : vector<1x1x128x256xbf16> to vector<128x256xbf16>
    %c0_144 = arith.constant 0 : index
    %c16_145 = arith.constant 16 : index
    %144 = vector.load %arg13[%c0_144, %c16_145] : memref<512x64xbf16, #tpu.memory_space<vmem>>, vector<256x16xbf16>
    %cst_146 = arith.constant dense<0.000000e+00> : vector<128x16xf32>
    %145 = tpu.matmul %143, %144, %cst_146 {dimension_numbers = #tpu.dot_dimension_numbers<[1], [0], [0], [1], [0, 0, 1, 1], [], []>} : vector<128x256xbf16>, vector<256x16xbf16>, vector<128x16xf32> -> vector<128x16xf32>
    %146 = arith.addf %141, %145 : vector<128x16xf32>
    %c0_147 = arith.constant 0 : index
    %c2_148 = arith.constant 2 : index
    %c0_149 = arith.constant 0 : index
    %c0_150 = arith.constant 0 : index
    %147 = vector.load %arg7[%c0_147, %c2_148, %c0_149, %c0_150] : memref<2x4x128x256xbf16, #tpu.memory_space<vmem>>, vector<1x1x128x256xbf16>
    %148 = vector.shape_cast %147 : vector<1x1x128x256xbf16> to vector<128x256xbf16>
    %c0_151 = arith.constant 0 : index
    %c32_152 = arith.constant 32 : index
    %149 = vector.load %arg13[%c0_151, %c32_152] : memref<512x64xbf16, #tpu.memory_space<vmem>>, vector<256x16xbf16>
    %cst_153 = arith.constant dense<0.000000e+00> : vector<128x16xf32>
    %150 = tpu.matmul %148, %149, %cst_153 {dimension_numbers = #tpu.dot_dimension_numbers<[1], [0], [0], [1], [0, 0, 1, 1], [], []>} : vector<128x256xbf16>, vector<256x16xbf16>, vector<128x16xf32> -> vector<128x16xf32>
    %151 = arith.addf %146, %150 : vector<128x16xf32>
    %c0_154 = arith.constant 0 : index
    %c3_155 = arith.constant 3 : index
    %c0_156 = arith.constant 0 : index
    %c0_157 = arith.constant 0 : index
    %152 = vector.load %arg7[%c0_154, %c3_155, %c0_156, %c0_157] : memref<2x4x128x256xbf16, #tpu.memory_space<vmem>>, vector<1x1x128x256xbf16>
    %153 = vector.shape_cast %152 : vector<1x1x128x256xbf16> to vector<128x256xbf16>
    %c0_158 = arith.constant 0 : index
    %c48 = arith.constant 48 : index
    %154 = vector.load %arg13[%c0_158, %c48] : memref<512x64xbf16, #tpu.memory_space<vmem>>, vector<256x16xbf16>
    %cst_159 = arith.constant dense<0.000000e+00> : vector<128x16xf32>
    %155 = tpu.matmul %153, %154, %cst_159 {dimension_numbers = #tpu.dot_dimension_numbers<[1], [0], [0], [1], [0, 0, 1, 1], [], []>} : vector<128x256xbf16>, vector<256x16xbf16>, vector<128x16xf32> -> vector<128x16xf32>
    %156 = arith.addf %151, %155 : vector<128x16xf32>
    %157 = arith.truncf %156 : vector<128x16xf32> to vector<128x16xbf16>
    %cst_160 = arith.constant dense<0.000000e+00> : vector<128x64xf32>
    %158 = tpu.matmul %157, %134, %cst_160 {dimension_numbers = #tpu.dot_dimension_numbers<[1], [0], [0], [1], [0, 0, 1, 1], [], []>} : vector<128x16xbf16>, vector<16x64xbf16>, vector<128x64xf32> -> vector<128x64xf32>
    %159 = vector.broadcast %135 : vector<1x64xf32> to vector<128x64xf32>
    %160 = arith.addf %158, %159 : vector<128x64xf32>
    %161 = vector.extract_strided_slice %160 {offsets = [0, 0], sizes = [64, 64], strides = [1, 1]} : vector<128x64xf32> to vector<64x64xf32>
    %c0_161 = arith.constant 0 : index
    %c0_162 = arith.constant 0 : index
    %162 = vector.load %arg10[%c0_161, %c0_162] : memref<256x64xf32, #tpu.memory_space<vmem>>, vector<64x64xf32>
    tpu.vector_store %arg10[%c0_161, %c0_162], %161 {strides = array<i32>} : memref<256x64xf32, #tpu.memory_space<vmem>>, vector<64x64xf32>,
    %163 = vector.extract_strided_slice %160 {offsets = [64, 0], sizes = [64, 64], strides = [1, 1]} : vector<128x64xf32> to vector<64x64xf32>
    %c128_163 = arith.constant 128 : index
    %c0_164 = arith.constant 0 : index
    %164 = vector.load %arg10[%c128_163, %c0_164] : memref<256x64xf32, #tpu.memory_space<vmem>>, vector<64x64xf32>
    tpu.vector_store %arg10[%c128_163, %c0_164], %163 {strides = array<i32>} : memref<256x64xf32, #tpu.memory_space<vmem>>, vector<64x64xf32>,
    %cst_165 = arith.constant 0.000000e+00 : f32
    %165 = vector.broadcast %cst_165 : f32 to vector<128x16xf32>
    %c1_166 = arith.constant 1 : index
    %c0_167 = arith.constant 0 : index
    %c0_168 = arith.constant 0 : index
    %c0_169 = arith.constant 0 : index
    %166 = vector.load %arg7[%c1_166, %c0_167, %c0_168, %c0_169] : memref<2x4x128x256xbf16, #tpu.memory_space<vmem>>, vector<1x1x128x256xbf16>
    %167 = vector.shape_cast %166 : vector<1x1x128x256xbf16> to vector<128x256xbf16>
    %c256_170 = arith.constant 256 : index
    %c0_171 = arith.constant 0 : index
    %168 = vector.load %arg13[%c256_170, %c0_171] : memref<512x64xbf16, #tpu.memory_space<vmem>>, vector<256x16xbf16>
    %cst_172 = arith.constant dense<0.000000e+00> : vector<128x16xf32>
    %169 = tpu.matmul %167, %168, %cst_172 {dimension_numbers = #tpu.dot_dimension_numbers<[1], [0], [0], [1], [0, 0, 1, 1], [], []>} : vector<128x256xbf16>, vector<256x16xbf16>, vector<128x16xf32> -> vector<128x16xf32>
    %170 = arith.addf %165, %169 : vector<128x16xf32>
    %c1_173 = arith.constant 1 : index
    %c1_174 = arith.constant 1 : index
    %c0_175 = arith.constant 0 : index
    %c0_176 = arith.constant 0 : index
    %171 = vector.load %arg7[%c1_173, %c1_174, %c0_175, %c0_176] : memref<2x4x128x256xbf16, #tpu.memory_space<vmem>>, vector<1x1x128x256xbf16>
    %172 = vector.shape_cast %171 : vector<1x1x128x256xbf16> to vector<128x256xbf16>
    %c256_177 = arith.constant 256 : index
    %c16_178 = arith.constant 16 : index
    %173 = vector.load %arg13[%c256_177, %c16_178] : memref<512x64xbf16, #tpu.memory_space<vmem>>, vector<256x16xbf16>
    %cst_179 = arith.constant dense<0.000000e+00> : vector<128x16xf32>
    %174 = tpu.matmul %172, %173, %cst_179 {dimension_numbers = #tpu.dot_dimension_numbers<[1], [0], [0], [1], [0, 0, 1, 1], [], []>} : vector<128x256xbf16>, vector<256x16xbf16>, vector<128x16xf32> -> vector<128x16xf32>
    %175 = arith.addf %170, %174 : vector<128x16xf32>
    %c1_180 = arith.constant 1 : index
    %c2_181 = arith.constant 2 : index
    %c0_182 = arith.constant 0 : index
    %c0_183 = arith.constant 0 : index
    %176 = vector.load %arg7[%c1_180, %c2_181, %c0_182, %c0_183] : memref<2x4x128x256xbf16, #tpu.memory_space<vmem>>, vector<1x1x128x256xbf16>
    %177 = vector.shape_cast %176 : vector<1x1x128x256xbf16> to vector<128x256xbf16>
    %c256_184 = arith.constant 256 : index
    %c32_185 = arith.constant 32 : index
    %178 = vector.load %arg13[%c256_184, %c32_185] : memref<512x64xbf16, #tpu.memory_space<vmem>>, vector<256x16xbf16>
    %cst_186 = arith.constant dense<0.000000e+00> : vector<128x16xf32>
    %179 = tpu.matmul %177, %178, %cst_186 {dimension_numbers = #tpu.dot_dimension_numbers<[1], [0], [0], [1], [0, 0, 1, 1], [], []>} : vector<128x256xbf16>, vector<256x16xbf16>, vector<128x16xf32> -> vector<128x16xf32>
    %180 = arith.addf %175, %179 : vector<128x16xf32>
    %c1_187 = arith.constant 1 : index
    %c3_188 = arith.constant 3 : index
    %c0_189 = arith.constant 0 : index
    %c0_190 = arith.constant 0 : index
    %181 = vector.load %arg7[%c1_187, %c3_188, %c0_189, %c0_190] : memref<2x4x128x256xbf16, #tpu.memory_space<vmem>>, vector<1x1x128x256xbf16>
    %182 = vector.shape_cast %181 : vector<1x1x128x256xbf16> to vector<128x256xbf16>
    %c256_191 = arith.constant 256 : index
    %c48_192 = arith.constant 48 : index
    %183 = vector.load %arg13[%c256_191, %c48_192] : memref<512x64xbf16, #tpu.memory_space<vmem>>, vector<256x16xbf16>
    %cst_193 = arith.constant dense<0.000000e+00> : vector<128x16xf32>
    %184 = tpu.matmul %182, %183, %cst_193 {dimension_numbers = #tpu.dot_dimension_numbers<[1], [0], [0], [1], [0, 0, 1, 1], [], []>} : vector<128x256xbf16>, vector<256x16xbf16>, vector<128x16xf32> -> vector<128x16xf32>
    %185 = arith.addf %180, %184 : vector<128x16xf32>
    %186 = arith.truncf %185 : vector<128x16xf32> to vector<128x16xbf16>
    %cst_194 = arith.constant dense<0.000000e+00> : vector<128x64xf32>
    %187 = tpu.matmul %186, %134, %cst_194 {dimension_numbers = #tpu.dot_dimension_numbers<[1], [0], [0], [1], [0, 0, 1, 1], [], []>} : vector<128x16xbf16>, vector<16x64xbf16>, vector<128x64xf32> -> vector<128x64xf32>
    %188 = vector.broadcast %135 : vector<1x64xf32> to vector<128x64xf32>
    %189 = arith.addf %187, %188 : vector<128x64xf32>
    %190 = vector.extract_strided_slice %189 {offsets = [0, 0], sizes = [64, 64], strides = [1, 1]} : vector<128x64xf32> to vector<64x64xf32>
    %c64_195 = arith.constant 64 : index
    %c0_196 = arith.constant 0 : index
    %191 = vector.load %arg10[%c64_195, %c0_196] : memref<256x64xf32, #tpu.memory_space<vmem>>, vector<64x64xf32>
    tpu.vector_store %arg10[%c64_195, %c0_196], %190 {strides = array<i32>} : memref<256x64xf32, #tpu.memory_space<vmem>>, vector<64x64xf32>,
    %192 = vector.extract_strided_slice %189 {offsets = [64, 0], sizes = [64, 64], strides = [1, 1]} : vector<128x64xf32> to vector<64x64xf32>
    %c192_197 = arith.constant 192 : index
    %c0_198 = arith.constant 0 : index
    %193 = vector.load %arg10[%c192_197, %c0_198] : memref<256x64xf32, #tpu.memory_space<vmem>>, vector<64x64xf32>
    tpu.vector_store %arg10[%c192_197, %c0_198], %192 {strides = array<i32>} : memref<256x64xf32, #tpu.memory_space<vmem>>, vector<64x64xf32>,
    return
  }
  func.func @transform_0(%arg0: i32) -> (i32, i32) {
    %c0_i32 = arith.constant 0 : i32
    %c0_i32_0 = arith.constant 0 : i32
    %c0_i32_1 = arith.constant 0 : i32
    return %c0_i32, %c0_i32_0 : i32, i32
  }
  func.func @transform_1(%arg0: i32) -> (i32, i32) {
    %c0_i32 = arith.constant 0 : i32
    %c0_i32_0 = arith.constant 0 : i32
    %c0_i32_1 = arith.constant 0 : i32
    return %c0_i32, %c0_i32_0 : i32, i32
  }
  func.func @transform_2(%arg0: i32) -> (i32, i32) {
    %c0_i32 = arith.constant 0 : i32
    %c0_i32_0 = arith.constant 0 : i32
    %c0_i32_1 = arith.constant 0 : i32
    return %c0_i32, %c0_i32_0 : i32, i32
  }
  func.func @transform_3(%arg0: i32) -> (i32, i32, i32) {
    %c0_i32 = arith.constant 0 : i32
    %c0_i32_0 = arith.constant 0 : i32
    %c0_i32_1 = arith.constant 0 : i32
    %c0_i32_2 = arith.constant 0 : i32
    return %c0_i32, %c0_i32_0, %c0_i32_1 : i32, i32, i32
  }
  func.func @transform_4(%arg0: i32) -> (i32, i32) {
    %c0_i32 = arith.constant 0 : i32
    %c0_i32_0 = arith.constant 0 : i32
    %c0_i32_1 = arith.constant 0 : i32
    return %c0_i32, %c0_i32_0 : i32, i32
  }
  func.func @transform_5(%arg0: i32) -> (i32, i32) {
    %c0_i32 = arith.constant 0 : i32
    %c0_i32_0 = arith.constant 0 : i32
    %c0_i32_1 = arith.constant 0 : i32
    return %c0_i32, %c0_i32_0 : i32, i32
  }
  func.func @transform_6(%arg0: i32) -> (i32, i32, i32, i32) {
    %c0_i32 = arith.constant 0 : i32
    %c0_i32_0 = arith.constant 0 : i32
    %c0_i32_1 = arith.constant 0 : i32
    %c0_i32_2 = arith.constant 0 : i32
    %c0_i32_3 = arith.constant 0 : i32
    return %c0_i32, %c0_i32_0, %c0_i32_1, %c0_i32_2 : i32, i32, i32, i32
  }
  func.func @transform_7(%arg0: i32) -> (i32, i32) {
    %c0_i32 = arith.constant 0 : i32
    %c0_i32_0 = arith.constant 0 : i32
    %c0_i32_1 = arith.constant 0 : i32
    return %c0_i32, %c0_i32_0 : i32, i32
  }
  func.func @transform_8(%arg0: i32) -> (i32, i32) {
    %c0_i32 = arith.constant 0 : i32
    %c0_i32_0 = arith.constant 0 : i32
    %c0_i32_1 = arith.constant 0 : i32
    return %c0_i32, %c0_i32_0 : i32, i32
  }
  func.func @transform_9(%arg0: i32) -> (i32, i32) {
    %c0_i32 = arith.constant 0 : i32
    %c0_i32_0 = arith.constant 0 : i32
    %c0_i32_1 = arith.constant 0 : i32
    return %c0_i32, %c0_i32_0 : i32, i32
  }
}

</mosaic_0001>

<bundles_post_ra>
// kernel: tile.23
= control target key start
LH: loop header
LB: loop body
LE: loop exit
PB: predicated region body
PF: predicated region fallthrough
CT: control target
= control target key end

     0   :  { %s22_s0 = inlined_call_operand.vmem [shape: f32[32], index: 0, kind: input, shape index: {}]   ;;  %s23_s1 = inlined_call_operand.vmem [shape: f32[4,32], index: 1, kind: output, shape index: {}]  }
   0x1   :  { %v4_v0 = vld [vmem:[%s22_s0] ss:$0 sm:$0xff] }
   0x2   :  { %5 = vst [vmem:[%s23_s1] sm:$0xf] %v4_v0 }

// kernel: mul.65
= control target key start
LH: loop header
LB: loop body
LE: loop exit
PB: predicated region body
PF: predicated region fallthrough
CT: control target
= control target key end

     0   :  { %vm7_vm0 = vcmask 261120   ;;  %s37_s8 = smov 32   ;;  %s38_s9 = smov 64   ;;  %vm13_vm1 = vcmask 1048320   ;;  %vm19_vm2 = vcmask 785920   ;;  %vm25_vm3 = vcmask 523520   ;;  %s55_s0 = inlined_call_operand.vmem [shape: f32[4,32], index: 0, kind: input, shape index: {}]   ;;  %s56_s1 = inlined_call_operand.vmem [shape: f32[128], index: 1, kind: output, shape index: {}]  }
   0x1   :  { %v4_v0 = vld [vmem:[%s55_s0] sm:$0xf]  ;;  %s36_s0 = smov 96  }
   0x2   :  { %5 = vst [vmem:[#allocation1] sm:$0xf] %v4_v0 }
   0x9   :  { %v10_v1 = vld [vmem:[#allocation1 + $0x3] sm:$0x1]   ;;  %v22_v2 = vld [vmem:[#allocation1 + $0x1] sm:$0x1]   ;;  %v6_v3 = vld [vmem:[#allocation1] sm:$0x1]  }
   0xa   :  { %11 = vrot.lane.b32.xlu0 %v10_v1, %s36_s0  ;;  %23 = vrot.lane.b32.xlu1 %v22_v2, %s37_s8  ;;  %v16_v4 = vld [vmem:[#allocation1 + $0x2] sm:$0x1]   ;;  %8 = vst.msk [vmem:[#allocation0] sm:$0x1] %vm7_vm0, %v6_v3  }
   0xe   :  { %17 = vrot.lane.b32.xlu0 %v16_v4, %s38_s9 }
  0x7c   :  { %v12_v5 = vpop.permute.xlu0 %11   ;;  %v24_v6 = vpop.permute.xlu1 %23  }
  0x7d   :  { %14 = vst.msk [vmem:[#allocation0] sm:$0x1] %vm13_vm1, %v12_v5  }
  0x80   :  { %v18_v7 = vpop.permute.xlu0 %17  }
  0x81   :  { %20 = vst.msk [vmem:[#allocation0] sm:$0x1] %vm19_vm2, %v18_v7  }
  0x82   :  { %26 = vst.msk [vmem:[#allocation0] sm:$0x1] %vm25_vm3, %v24_v6  }
  0x89   :  { %v30_v8 = vld [vmem:[#allocation0] sm:$0x1] }
  0x8a   :  { %32 = vst [vmem:[%s56_s1] sm:$0x1] %v30_v8 }

// kernel: tile.28
= control target key start
LH: loop header
LB: loop body
LE: loop exit
PB: predicated region body
PF: predicated region fallthrough
CT: control target
= control target key end

     0   :  { %s22_s0 = inlined_call_operand.vmem [shape: f32[16], index: 0, kind: input, shape index: {}]   ;;  %s23_s1 = inlined_call_operand.vmem [shape: f32[4,16], index: 1, kind: output, shape index: {}]  }
   0x1   :  { %v4_v0 = vld [vmem:[%s22_s0] ss:$0 sm:$0xff] }
   0x2   :  { %5 = vst [vmem:[%s23_s1] sm:$0xf] %v4_v0 }

// kernel: mul.69
= control target key start
LH: loop header
LB: loop body
LE: loop exit
PB: predicated region body
PF: predicated region fallthrough
CT: control target
= control target key end

     0   :  { %vm7_vm0 = vcmask 130048   ;;  %s37_s8 = smov 16   ;;  %s38_s9 = smov 32   ;;  %vm13_vm1 = vcmask 523648   ;;  %vm19_vm2 = vcmask 392448   ;;  %vm25_vm3 = vcmask 261248   ;;  %s55_s0 = inlined_call_operand.vmem [shape: f32[4,16], index: 0, kind: input, shape index: {}]   ;;  %s56_s1 = inlined_call_operand.vmem [shape: f32[64], index: 1, kind: output, shape index: {}]  }
   0x1   :  { %v4_v0 = vld [vmem:[%s55_s0] sm:$0xf]  ;;  %s36_s0 = smov 48  }
   0x2   :  { %5 = vst [vmem:[#allocation1] sm:$0xf] %v4_v0 }
   0x9   :  { %v10_v1 = vld [vmem:[#allocation1 + $0x3] sm:$0x1]   ;;  %v22_v2 = vld [vmem:[#allocation1 + $0x1] sm:$0x1]   ;;  %v6_v3 = vld [vmem:[#allocation1] sm:$0x1]  }
   0xa   :  { %11 = vrot.lane.b32.xlu0 %v10_v1, %s36_s0  ;;  %23 = vrot.lane.b32.xlu1 %v22_v2, %s37_s8  ;;  %v16_v4 = vld [vmem:[#allocation1 + $0x2] sm:$0x1]   ;;  %8 = vst.msk [vmem:[#allocation0] sm:$0x1] %vm7_vm0, %v6_v3  }
   0xe   :  { %17 = vrot.lane.b32.xlu0 %v16_v4, %s38_s9 }
  0x7c   :  { %v12_v5 = vpop.permute.xlu0 %11   ;;  %v24_v6 = vpop.permute.xlu1 %23  }
  0x7d   :  { %14 = vst.msk [vmem:[#allocation0] sm:$0x1] %vm13_vm1, %v12_v5  }
  0x80   :  { %v18_v7 = vpop.permute.xlu0 %17  }
  0x81   :  { %20 = vst.msk [vmem:[#allocation0] sm:$0x1] %vm19_vm2, %v18_v7  }
  0x82   :  { %26 = vst.msk [vmem:[#allocation0] sm:$0x1] %vm25_vm3, %v24_v6  }
  0x89   :  { %v30_v8 = vld [vmem:[#allocation0] sm:$0x1] }
  0x8a   :  { %32 = vst [vmem:[%s56_s1] sm:$0x1] %v30_v8 }

// kernel: tile.34
= control target key start
LH: loop header
LB: loop body
LE: loop exit
PB: predicated region body
PF: predicated region fallthrough
CT: control target
= control target key end

     0   :  { %vm7_vm0 = vcmask 261120   ;;  %s37_s8 = smov 32   ;;  %s38_s9 = smov 64   ;;  %vm13_vm1 = vcmask 1048320   ;;  %vm19_vm2 = vcmask 785920   ;;  %vm25_vm3 = vcmask 523520   ;;  %s55_s0 = inlined_call_operand.vmem [shape: f32[4,32], index: 0, kind: input, shape index: {}]   ;;  %s56_s1 = inlined_call_operand.vmem [shape: f32[1,128], index: 1, kind: output, shape index: {}]  }
   0x1   :  { %v4_v0 = vld [vmem:[%s55_s0] sm:$0xf]  ;;  %s36_s0 = smov 96  }
   0x2   :  { %5 = vst [vmem:[#allocation1] sm:$0xf] %v4_v0 }
   0x9   :  { %v10_v1 = vld [vmem:[#allocation1 + $0x3] sm:$0x1]   ;;  %v22_v2 = vld [vmem:[#allocation1 + $0x1] sm:$0x1]   ;;  %v6_v3 = vld [vmem:[#allocation1] sm:$0x1]  }
   0xa   :  { %11 = vrot.lane.b32.xlu0 %v10_v1, %s36_s0  ;;  %23 = vrot.lane.b32.xlu1 %v22_v2, %s37_s8  ;;  %v16_v4 = vld [vmem:[#allocation1 + $0x2] sm:$0x1]   ;;  %8 = vst.msk [vmem:[#allocation0] sm:$0x1] %vm7_vm0, %v6_v3  }
   0xe   :  { %17 = vrot.lane.b32.xlu0 %v16_v4, %s38_s9 }
  0x7c   :  { %v12_v5 = vpop.permute.xlu0 %11   ;;  %v24_v6 = vpop.permute.xlu1 %23  }
  0x7d   :  { %14 = vst.msk [vmem:[#allocation0] sm:$0x1] %vm13_vm1, %v12_v5  }
  0x80   :  { %v18_v7 = vpop.permute.xlu0 %17  }
  0x81   :  { %20 = vst.msk [vmem:[#allocation0] sm:$0x1] %vm19_vm2, %v18_v7  }
  0x82   :  { %26 = vst.msk [vmem:[#allocation0] sm:$0x1] %vm25_vm3, %v24_v6  }
  0x89   :  { %v30_v8 = vld [vmem:[#allocation0] sm:$0x1] }
  0x8a   :  { %32 = vst [vmem:[%s56_s1] sm:$0x1] %v30_v8 }

// kernel: tile.39
= control target key start
LH: loop header
LB: loop body
LE: loop exit
PB: predicated region body
PF: predicated region fallthrough
CT: control target
= control target key end

     0   :  { %vm7_vm0 = vcmask 130048   ;;  %s37_s8 = smov 16   ;;  %s38_s9 = smov 32   ;;  %vm13_vm1 = vcmask 523648   ;;  %vm19_vm2 = vcmask 392448   ;;  %vm25_vm3 = vcmask 261248   ;;  %s55_s0 = inlined_call_operand.vmem [shape: f32[4,16], index: 0, kind: input, shape index: {}]   ;;  %s56_s1 = inlined_call_operand.vmem [shape: f32[1,64], index: 1, kind: output, shape index: {}]  }
   0x1   :  { %v4_v0 = vld [vmem:[%s55_s0] sm:$0xf]  ;;  %s36_s0 = smov 48  }
   0x2   :  { %5 = vst [vmem:[#allocation1] sm:$0xf] %v4_v0 }
   0x9   :  { %v10_v1 = vld [vmem:[#allocation1 + $0x3] sm:$0x1]   ;;  %v22_v2 = vld [vmem:[#allocation1 + $0x1] sm:$0x1]   ;;  %v6_v3 = vld [vmem:[#allocation1] sm:$0x1]  }
   0xa   :  { %11 = vrot.lane.b32.xlu0 %v10_v1, %s36_s0  ;;  %23 = vrot.lane.b32.xlu1 %v22_v2, %s37_s8  ;;  %v16_v4 = vld [vmem:[#allocation1 + $0x2] sm:$0x1]   ;;  %8 = vst.msk [vmem:[#allocation0] sm:$0x1] %vm7_vm0, %v6_v3  }
   0xe   :  { %17 = vrot.lane.b32.xlu0 %v16_v4, %s38_s9 }
  0x7c   :  { %v12_v5 = vpop.permute.xlu0 %11   ;;  %v24_v6 = vpop.permute.xlu1 %23  }
  0x7d   :  { %14 = vst.msk [vmem:[#allocation0] sm:$0x1] %vm13_vm1, %v12_v5  }
  0x80   :  { %v18_v7 = vpop.permute.xlu0 %17  }
  0x81   :  { %20 = vst.msk [vmem:[#allocation0] sm:$0x1] %vm19_vm2, %v18_v7  }
  0x82   :  { %26 = vst.msk [vmem:[#allocation0] sm:$0x1] %vm25_vm3, %v24_v6  }
  0x89   :  { %v30_v8 = vld [vmem:[#allocation0] sm:$0x1] }
  0x8a   :  { %32 = vst [vmem:[%s56_s1] sm:$0x1] %v30_v8 }

// kernel: hand_roi_forward.1
= control target key start
LH: loop header
LB: loop body
LE: loop exit
PB: predicated region body
PF: predicated region fallthrough
CT: control target
= control target key end

     0   :  { %vm90_vm0 = vcmask 523264   ;;  %s24431_s0 = inlined_call_operand.vmem [shape: f32[192,64], index: 0, kind: input, shape index: {}]   ;;  %s24432_s1 = inlined_call_operand.vmem [shape: f32[576,128], index: 1, kind: input, shape index: {}]   ;;  %s24433_s2 = inlined_call_operand.vmem [shape: f32[1,128], index: 2, kind: input, shape index: {}]   ;;  %s24434_s3 = inlined_call_operand.vmem [shape: bf16[4,256,80], index: 3, kind: input, shape index: {}]   ;;  %s24435_s4 = inlined_call_operand.vmem [shape: f32[288,64], index: 4, kind: input, shape index: {}]   ;;  %s24436_s5 = inlined_call_operand.vmem [shape: f32[1,64], index: 5, kind: input, shape index: {}]   ;;  %s24437_s6 = inlined_call_operand.vmem [shape: bf16[2,4,128,256], index: 6, kind: input, shape index: {}]   ;;  %s24438_s7 = inlined_call_operand.vmem [shape: bf16[16,64], index: 7, kind: input, shape index: {}]   ;;  %s24439_s8 = inlined_call_operand.vmem [shape: f32[1,64], index: 8, kind: input, shape index: {}]   ;;  %s24440_s9 = inlined_call_operand.hbm [shape: f32[256,64], index: 9, kind: output, shape index: {}]  }
   0x1   :  { %v82_v0 = vld [vmem:[%s24432_s1 + $0x40] sm:$0xff]  ;;  %v83_v1 = vld [vmem:[%s24432_s1 + $0x48] sm:$0xff]  ;;  %v84_v2 = vld [vmem:[%s24432_s1 + $0x50] sm:$0xff] }
   0x2   :  { %v18951_v3 = vpack.c.bf16 %v83_v1, %v82_v0  ;;  %v85_v4 = vld [vmem:[%s24432_s1 + $0x58] sm:$0xff]  ;;  %v86_v6 = vld [vmem:[%s24432_s1 + $0x60] sm:$0xff]  ;;  %v87_v7 = vld [vmem:[%s24432_s1 + $0x68] sm:$0xff] }
   0x3   :  { %v18955_v5 = vpack.c.bf16 %v85_v4, %v84_v2  ;;  %v62_v8 = vld [vmem:[%s24431_s0 + $0x8] sm:$0xff]  ;;  %v18959_v9 = vpack.c.bf16 %v87_v7, %v86_v6  ;;  %v88_v10 = vld [vmem:[%s24432_s1 + $0x70] sm:$0xff]  ;;  %v89_v11 = vld [vmem:[%s24432_s1 + $0x78] sm:$0xff] }
   0x4   :  { %18952 = vmatprep.subr.bf16.mxu0 %v18951_v3  ;;  %17245 = vmatprep.mubr.msk.f32.mxu0 %vm90_vm0, %v62_v8  ;;  %v18963_v12 = vpack.c.bf16 %v89_v11, %v88_v10  ;;  %v54_v13 = vld [vmem:[%s24432_s1] sm:$0xff]  ;;  %v55_v14 = vld [vmem:[%s24432_s1 + $0x8] sm:$0xff]  ;;  %v56_v16 = vld [vmem:[%s24432_s1 + $0x10] sm:$0xff] }
   0x5   :  { %18954 = vmatpush3.bf16.msra.mxu0 %v18951_v3  ;;  %v18967_v15 = vpack.c.bf16 %v55_v14, %v54_v13  ;;  %v57_v17 = vld [vmem:[%s24432_s1 + $0x18] sm:$0xff]  ;;  %v63_v18 = vld [vmem:[%s24431_s0 + $0x10] sm:$0xff]  ;;  %v58_v21 = vld [vmem:[%s24432_s1 + $0x20] sm:$0xff] }
   0x6   :  { %18956 = vmatprep.subr.bf16.mxu0 %v18955_v5  ;;  %v64_v19 = vld [vmem:[%s24431_s0 + $0x18] sm:$0xff]  ;;  %v18971_v20 = vpack.c.bf16 %v57_v17, %v56_v16  ;;  %v59_v22 = vld [vmem:[%s24432_s1 + $0x28] sm:$0xff]  ;;  %v65_v23 = vld [vmem:[%s24431_s0 + $0x20] sm:$0xff] }
   0x7   :  { %v66_v24 = vld [vmem:[%s24431_s0 + $0x28] sm:$0xff]  ;;  %v18975_v25 = vpack.c.bf16 %v59_v22, %v58_v21  ;;  %v60_v26 = vld [vmem:[%s24432_s1 + $0x30] sm:$0xff]  ;;  %v61_v27 = vld [vmem:[%s24432_s1 + $0x38] sm:$0xff] }
   0x8   :  { %v67_v28 = vld [vmem:[%s24431_s0 + $0x30] sm:$0xff]  ;;  %v68_v29 = vld [vmem:[%s24431_s0 + $0x38] sm:$0xff]  ;;  %v18979_v30 = vpack.c.bf16 %v61_v27, %v60_v26  ;;  %v561_v31 = vld [vmem:[%s24432_s1 + $0x80] sm:$0xff] }
   0x9   :  { %18958 = vmatpush3.bf16.msra.mxu0 %v18955_v5  ;;  %v562_v32 = vld [vmem:[%s24432_s1 + $0x88] sm:$0xff]  ;;  %v69_v33 = vld [vmem:[%s24431_s0 + $0x40] sm:$0xff]  ;;  %v71_v36 = vld [vmem:[%s24431_s0 + $0x50] sm:$0xff] }
   0xa   :  { %18960 = vmatprep.subr.bf16.mxu0 %v18959_v9  ;;  %v70_v34 = vld [vmem:[%s24431_s0 + $0x48] sm:$0xff]  ;;  %v18983_v35 = vpack.c.bf16 %v562_v32, %v561_v31  ;;  %v72_v37 = vld [vmem:[%s24431_s0 + $0x58] sm:$0xff]  ;;  %v73_v38 = vld [vmem:[%s24431_s0 + $0x60] sm:$0xff] }
   0xb   :  { %v74_v39 = vld [vmem:[%s24431_s0 + $0x68] sm:$0xff]  ;;  %v75_v40 = vld [vmem:[%s24431_s0 + $0x70] sm:$0xff]  ;;  %v76_v41 = vld [vmem:[%s24431_s0 + $0x78] sm:$0xff] }
   0xc   :  { %v77_v42 = vld [vmem:[%s24431_s0 + $0x80] sm:$0xff]  ;;  %v78_v43 = vld [vmem:[%s24431_s0 + $0x88] sm:$0xff]  ;;  %v79_v44 = vld [vmem:[%s24431_s0 + $0x90] sm:$0xff] }
   0xd   :  { %18962 = vmatpush3.bf16.msra.mxu0 %v18959_v9  ;;  %v80_v45 = vld [vmem:[%s24431_s0 + $0x98] sm:$0xff]  ;;  %v81_v46 = vld [vmem:[%s24431_s0 + $0xa0] sm:$0xff]  ;;  %v563_v48 = vld [vmem:[%s24432_s1 + $0x90] sm:$0xff] }
   0xe   :  { %18964 = vmatprep.subr.bf16.mxu0 %v18963_v12  ;;  %v34_v47 = vld [vmem:[%s24431_s0 + $0x7] sm:$0xff]  ;;  %v564_v49 = vld [vmem:[%s24432_s1 + $0x98] sm:$0xff]  ;;  %v20636_v50 = vld [vmem:[%s24431_s0 + $0xf] sm:$0xff] }
   0xf   :  { %v20642_v51 = vld [vmem:[%s24431_s0 + $0x17] sm:$0xff]  ;;  %v565_v52 = vld [vmem:[%s24432_s1 + $0xa0] sm:$0xff]  ;;  %v566_v53 = vld [vmem:[%s24432_s1 + $0xa8] sm:$0xff]  ;;  %v18987_v54 = vpack.c.bf16 %v564_v49, %v563_v48 }
  0x10   :  { %v20654_v55 = vld [vmem:[%s24431_s0 + $0x1f] sm:$0xff]  ;;  %v20661_v56 = vld [vmem:[%s24431_s0 + $0x27] sm:$0xff]  ;;  %v567_v57 = vld [vmem:[%s24432_s1 + $0xb0] sm:$0xff]  ;;  %v18991_v59 = vpack.c.bf16 %v566_v53, %v565_v52 }
  0x11   :  { %18966 = vmatpush3.bf16.msra.mxu0 %v18963_v12  ;;  %v568_v58 = vld [vmem:[%s24432_s1 + $0xb8] sm:$0xff]  ;;  %v20674_v60 = vld [vmem:[%s24431_s0 + $0x2f] sm:$0xff]  ;;  %v834_v62 = vld [vmem:[%s24432_s1 + $0xc0] sm:$0xff] }
  0x12   :  { %18968 = vmatprep.subr.bf16.mxu0 %v18967_v15  ;;  %v20681_v61 = vld [vmem:[%s24431_s0 + $0x37] sm:$0xff]  ;;  %v835_v63 = vld [vmem:[%s24432_s1 + $0xc8] sm:$0xff]  ;;  %v18995_v0 = vpack.c.bf16 %v568_v58, %v567_v57  ;;  %v20694_v1 = vld [vmem:[%s24431_s0 + $0x3f] sm:$0xff] }
  0x13   :  { %v20701_v2 = vld [vmem:[%s24431_s0 + $0x47] sm:$0xff]  ;;  %v18999_v3 = vpack.c.bf16 %v835_v63, %v834_v62  ;;  %v20712_v4 = vld [vmem:[%s24431_s0 + $0x4f] sm:$0xff]  ;;  %v20717_v5 = vld [vmem:[%s24431_s0 + $0x57] sm:$0xff] }
  0x14   :  { %17246 = vmatmul.mubr.msk.f32.vlgmr.msra.gmra.mrb[0].mxu0 %vm90_vm0, %v63_v18  ;;  %v20726_v6 = vld [vmem:[%s24431_s0 + $0x5f] sm:$0xff]  ;;  %v20731_v7 = vld [vmem:[%s24431_s0 + $0x67] sm:$0xff]  ;;  %v20740_v8 = vld [vmem:[%s24431_s0 + $0x6f] sm:$0xff] }
  0x15   :  { %17248 = vmatprep.mubr.msk.f32.mxu0 %vm90_vm0, %v64_v19  ;;  %18970 = vmatpush3.bf16.msra.mxu0 %v18967_v15  ;;  %v20745_v9 = vld [vmem:[%s24431_s0 + $0x77] sm:$0xff]  ;;  %v20754_v10 = vld [vmem:[%s24431_s0 + $0x7f] sm:$0xff]  ;;  %v20759_v11 = vld [vmem:[%s24431_s0 + $0x87] sm:$0xff] }
  0x16   :  { %18972 = vmatprep.subr.bf16.mxu0 %v18971_v20  ;;  %v20764_v12 = vld [vmem:[%s24431_s0 + $0x8f] sm:$0xff]  ;;  %v20771_v13 = vld [vmem:[%s24431_s0 + $0x97] sm:$0xff]  ;;  %v20778_v14 = vld [vmem:[%s24431_s0 + $0x9f] sm:$0xff] }
  0x17   :  { %v541_v15 = vld [vmem:[%s24431_s0 + $0x9] sm:$0xff]  ;;  %v837_v17 = vld [vmem:[%s24432_s1 + $0xd8] sm:$0xff]  ;;  %v1111_v49 = vld [vmem:[%s24432_s1 + $0x120] sm:$0xff] }
  0x18   :  { %17249 = vmatmul.mubr.msk.f32.gmra.mrb[2].mxu0 %vm90_vm0, %v65_v23  ;;  %v836_v16 = vld [vmem:[%s24432_s1 + $0xd0] sm:$0xff]  ;;  %v20803_v19 = vld [vmem:[%s24431_s0 + $0x19] sm:$0xff]  ;;  %v839_v21 = vld [vmem:[%s24432_s1 + $0xe8] sm:$0xff] }
  0x19   :  { %17251 = vmatprep.mubr.msk.f32.mxu0 %vm90_vm0, %v66_v24  ;;  %18974 = vmatpush3.bf16.msra.mxu0 %v18971_v20  ;;  %v20796_v18 = vld [vmem:[%s24431_s0 + $0x11] sm:$0xff]  ;;  %v838_v20 = vld [vmem:[%s24432_s1 + $0xe0] sm:$0xff]  ;;  %v19003_v22 = vpack.c.bf16 %v837_v17, %v836_v16  ;;  %v20822_v24 = vld [vmem:[%s24431_s0 + $0x29] sm:$0xff] }
  0x1a   :  { %18976 = vmatprep.subr.bf16.mxu0 %v18975_v25  ;;  %v20815_v23 = vld [vmem:[%s24431_s0 + $0x21] sm:$0xff]  ;;  %v841_v26 = vld [vmem:[%s24432_s1 + $0xf8] sm:$0xff]  ;;  %v19007_v27 = vpack.c.bf16 %v839_v21, %v838_v20 }
  0x1b   :  { %v1108_v31 = vld [vmem:[%s24432_s1 + $0x108] sm:$0xff]  ;;  %v1110_v48 = vld [vmem:[%s24432_s1 + $0x118] sm:$0xff] }
  0x1c   :  { %17252 = vmatmul.mubr.msk.f32.gmra.mrb[4].mxu0 %vm90_vm0, %v67_v28  ;;  %v20835_v28 = vld [vmem:[%s24431_s0 + $0x31] sm:$0xff]  ;;  %v1112_v52 = vld [vmem:[%s24432_s1 + $0x128] sm:$0xff] }
  0x1d   :  { %17254 = vmatprep.mubr.msk.f32.mxu0 %vm90_vm0, %v68_v29  ;;  %18978 = vmatpush3.bf16.msra.mxu0 %v18975_v25  ;;  %v840_v25 = vld [vmem:[%s24432_s1 + $0xf0] sm:$0xff]  ;;  %v20842_v29 = vld [vmem:[%s24431_s0 + $0x39] sm:$0xff]  ;;  %v19023_v57 = vpack.c.bf16 %v1112_v52, %v1111_v49 }
  0x1e   :  { %18980 = vmatprep.subr.bf16.mxu0 %v18979_v30  ;;  %v19011_v32 = vpack.c.bf16 %v841_v26, %v840_v25 }
  0x20   :  { %17255 = vmatmul.mubr.msk.f32.gmra.mrb[6].mxu0 %vm90_vm0, %v69_v33  ;;  %v20855_v33 = vld [vmem:[%s24431_s0 + $0x41] sm:$0xff] }
  0x21   :  { %17257 = vmatprep.mubr.msk.f32.mxu0 %vm90_vm0, %v70_v34  ;;  %18982 = vmatpush3.bf16.msra.mxu0 %v18979_v30  ;;  %v1107_v30 = vld [vmem:[%s24432_s1 + $0x100] sm:$0xff]  ;;  %v20862_v34 = vld [vmem:[%s24431_s0 + $0x49] sm:$0xff] }
  0x22   :  { %18984 = vmatprep.subr.bf16.mxu0 %v18983_v35 }
  0x24   :  { %17258 = vmatmul.mubr.msk.f32.gmra.mrb[8].mxu0 %vm90_vm0, %v71_v36  ;;  %v20873_v36 = vld [vmem:[%s24431_s0 + $0x51] sm:$0xff] }
  0x25   :  { %17260 = vmatprep.mubr.msk.f32.mxu0 %vm90_vm0, %v72_v37  ;;  %v20878_v37 = vld [vmem:[%s24431_s0 + $0x59] sm:$0xff] }
  0x28   :  { %17261 = vmatmul.mubr.msk.f32.gmra.mrb[10].mxu0 %vm90_vm0, %v73_v38  ;;  %v20887_v38 = vld [vmem:[%s24431_s0 + $0x61] sm:$0xff] }
  0x29   :  { %17263 = vmatprep.mubr.msk.f32.mxu0 %vm90_vm0, %v74_v39  ;;  %v20892_v39 = vld [vmem:[%s24431_s0 + $0x69] sm:$0xff] }
  0x2c   :  { %17264 = vmatmul.mubr.msk.f32.gmra.mrb[12].mxu0 %vm90_vm0, %v75_v40  ;;  %v20901_v40 = vld [vmem:[%s24431_s0 + $0x71] sm:$0xff] }
  0x2d   :  { %17266 = vmatprep.mubr.msk.f32.mxu0 %vm90_vm0, %v76_v41  ;;  %v20906_v41 = vld [vmem:[%s24431_s0 + $0x79] sm:$0xff] }
  0x30   :  { %17267 = vmatmul.mubr.msk.f32.gmra.mrb[14].mxu0 %vm90_vm0, %v77_v42  ;;  %v20915_v42 = vld [vmem:[%s24431_s0 + $0x81] sm:$0xff] }
  0x31   :  { %17269 = vmatprep.mubr.msk.f32.mxu0 %vm90_vm0, %v78_v43  ;;  %v20920_v43 = vld [vmem:[%s24431_s0 + $0x89] sm:$0xff] }
  0x34   :  { %17270 = vmatmul.mubr.msk.f32.gmra.mrb[16].mxu0 %vm90_vm0, %v79_v44  ;;  %v20925_v44 = vld [vmem:[%s24431_s0 + $0x91] sm:$0xff] }
  0x35   :  { %17272 = vmatprep.mubr.msk.f32.mxu0 %vm90_vm0, %v80_v45  ;;  %v20932_v45 = vld [vmem:[%s24431_s0 + $0x99] sm:$0xff] }
  0x38   :  { %17273 = vmatmul.mubr.msk.f32.gmra.mrb[18].mxu0 %vm90_vm0, %v81_v46  ;;  %v20939_v46 = vld [vmem:[%s24431_s0 + $0xa1] sm:$0xff] }
  0x39   :  { %17291 = vmatprep.mubr.msk.f32.mxu0 %vm90_vm0, %v34_v47  ;;  %v1109_v47 = vld [vmem:[%s24432_s1 + $0x110] sm:$0xff] }
  0x3a   :  { %v19019_v53 = vpack.c.bf16 %v1110_v48, %v1109_v47 }
  0x3c   :  { %17292 = vmatmul.mubr.msk.f32.vlgmr.msra.gmra.mrb[0].mxu0 %vm90_vm0, %v20636_v50 }
  0x3d   :  { %17294 = vmatprep.mubr.msk.f32.mxu0 %vm90_vm0, %v20642_v51  ;;  %18986 = vmatpush3.bf16.msra.mxu0 %v18983_v35  ;;  %v19015_v35 = vpack.c.bf16 %v1108_v31, %v1107_v30 }
  0x3e   :  { %18988 = vmatprep.subr.bf16.mxu0 %v18987_v54 }
  0x40   :  { %17295 = vmatmul.mubr.msk.f32.gmra.mrb[2].mxu0 %vm90_vm0, %v20654_v55 }
  0x41   :  { %17297 = vmatprep.mubr.msk.f32.mxu0 %vm90_vm0, %v20661_v56  ;;  %18990 = vmatpush3.bf16.msra.mxu0 %v18987_v54  ;;  %v1114_v54 = vld [vmem:[%s24432_s1 + $0x138] sm:$0xff] }
  0x42   :  { %18992 = vmatprep.subr.bf16.mxu0 %v18991_v59 }
  0x44   :  { %17298 = vmatmul.mubr.msk.f32.gmra.mrb[4].mxu0 %vm90_vm0, %v20674_v60 }
  0x45   :  { %17300 = vmatprep.mubr.msk.f32.mxu0 %vm90_vm0, %v20681_v61  ;;  %18994 = vmatpush3.bf16.msra.mxu0 %v18991_v59 }
  0x46   :  { %18996 = vmatprep.subr.bf16.mxu0 %v18995_v0 }
  0x48   :  { %17301 = vmatmul.mubr.msk.f32.gmra.mrb[6].mxu0 %vm90_vm0, %v20694_v1 }
  0x49   :  { %17303 = vmatprep.mubr.msk.f32.mxu0 %vm90_vm0, %v20701_v2  ;;  %18998 = vmatpush3.bf16.msra.mxu0 %v18995_v0 }
  0x4a   :  { %19000 = vmatprep.subr.bf16.mxu0 %v18999_v3 }
  0x4c   :  { %17304 = vmatmul.mubr.msk.f32.gmra.mrb[8].mxu0 %vm90_vm0, %v20712_v4 }
  0x4d   :  { %17306 = vmatprep.mubr.msk.f32.mxu0 %vm90_vm0, %v20717_v5 }
  0x50   :  { %17307 = vmatmul.mubr.msk.f32.gmra.mrb[10].mxu0 %vm90_vm0, %v20726_v6 }
  0x51   :  { %17309 = vmatprep.mubr.msk.f32.mxu0 %vm90_vm0, %v20731_v7 }
  0x54   :  { %17310 = vmatmul.mubr.msk.f32.gmra.mrb[12].mxu0 %vm90_vm0, %v20740_v8 }
  0x55   :  { %17312 = vmatprep.mubr.msk.f32.mxu0 %vm90_vm0, %v20745_v9 }
  0x58   :  { %17313 = vmatmul.mubr.msk.f32.gmra.mrb[14].mxu0 %vm90_vm0, %v20754_v10 }
  0x59   :  { %17315 = vmatprep.mubr.msk.f32.mxu0 %vm90_vm0, %v20759_v11 }
  0x5c   :  { %17316 = vmatmul.mubr.msk.f32.gmra.mrb[16].mxu0 %vm90_vm0, %v20764_v12 }
  0x5d   :  { %17318 = vmatprep.mubr.msk.f32.mxu0 %vm90_vm0, %v20771_v13 }
  0x60   :  { %17319 = vmatmul.mubr.msk.f32.gmra.mrb[18].mxu0 %vm90_vm0, %v20778_v14 }
  0x61   :  { %17337 = vmatprep.mubr.msk.f32.mxu0 %vm90_vm0, %v541_v15 }
  0x64   :  { %17338 = vmatmul.mubr.msk.f32.vlgmr.msra.gmra.mrb[0].mxu0 %vm90_vm0, %v20796_v18 }
  0x65   :  { %17340 = vmatprep.mubr.msk.f32.mxu0 %vm90_vm0, %v20803_v19  ;;  %19002 = vmatpush3.bf16.msra.mxu0 %v18999_v3 }
  0x66   :  { %19004 = vmatprep.subr.bf16.mxu0 %v19003_v22 }
  0x68   :  { %17341 = vmatmul.mubr.msk.f32.gmra.mrb[2].mxu0 %vm90_vm0, %v20815_v23 }
  0x69   :  { %17343 = vmatprep.mubr.msk.f32.mxu0 %vm90_vm0, %v20822_v24  ;;  %19006 = vmatpush3.bf16.msra.mxu0 %v19003_v22 }
  0x6a   :  { %19008 = vmatprep.subr.bf16.mxu0 %v19007_v27 }
  0x6c   :  { %17344 = vmatmul.mubr.msk.f32.gmra.mrb[4].mxu0 %vm90_vm0, %v20835_v28 }
  0x6d   :  { %17346 = vmatprep.mubr.msk.f32.mxu0 %vm90_vm0, %v20842_v29  ;;  %19010 = vmatpush3.bf16.msra.mxu0 %v19007_v27 }
  0x6e   :  { %19012 = vmatprep.subr.bf16.mxu0 %v19011_v32 }
  0x70   :  { %17347 = vmatmul.mubr.msk.f32.gmra.mrb[6].mxu0 %vm90_vm0, %v20855_v33 }
  0x71   :  { %17349 = vmatprep.mubr.msk.f32.mxu0 %vm90_vm0, %v20862_v34  ;;  %19014 = vmatpush3.bf16.msra.mxu0 %v19011_v32 }
  0x72   :  { %19016 = vmatprep.subr.bf16.mxu0 %v19015_v35 }
  0x74   :  { %17350 = vmatmul.mubr.msk.f32.gmra.mrb[8].mxu0 %vm90_vm0, %v20873_v36 }
  0x75   :  { %17352 = vmatprep.mubr.msk.f32.mxu0 %vm90_vm0, %v20878_v37 }
  0x78   :  { %17353 = vmatmul.mubr.msk.f32.gmra.mrb[10].mxu0 %vm90_vm0, %v20887_v38 }
  0x79   :  { %17355 = vmatprep.mubr.msk.f32.mxu0 %vm90_vm0, %v20892_v39 }
  0x7c   :  { %17356 = vmatmul.mubr.msk.f32.gmra.mrb[12].mxu0 %vm90_vm0, %v20901_v40 }
  0x7d   :  { %17358 = vmatprep.mubr.msk.f32.mxu0 %vm90_vm0, %v20906_v41 }
  0x80   :  { %17359 = vmatmul.mubr.msk.f32.gmra.mrb[14].mxu0 %vm90_vm0, %v20915_v42 }
  0x81   :  { %17361 = vmatprep.mubr.msk.f32.mxu0 %vm90_vm0, %v20920_v43 }
  0x84   :  { %17362 = vmatmul.mubr.msk.f32.gmra.mrb[16].mxu0 %vm90_vm0, %v20925_v44 }
  0x85   :  { %17364 = vmatprep.mubr.msk.f32.mxu0 %vm90_vm0, %v20932_v45 }
  0x88   :  { %17365 = vmatmul.mubr.msk.f32.gmra.mrb[18].mxu0 %vm90_vm0, %v20939_v46 }
  0x89   :  { %17383 = vmatprep.mubr.msk.f32.mxu0 %vm90_vm0, %v20636_v50  ;;  %v1113_v50 = vld [vmem:[%s24432_s1 + $0x130] sm:$0xff] }
  0x8a   :  { %v19027_v58 = vpack.c.bf16 %v1114_v54, %v1113_v50 }
  0x8c   :  { %17384 = vmatmul.mubr.msk.f32.vlgmr.msra.gmra.mrb[0].mxu0 %vm90_vm0, %v20642_v51  ;;  %v1380_v51 = vld [vmem:[%s24432_s1 + $0x140] sm:$0xff] }
  0x8d   :  { %17386 = vmatprep.mubr.msk.f32.mxu0 %vm90_vm0, %v20654_v55  ;;  %19018 = vmatpush3.bf16.msra.mxu0 %v19015_v35  ;;  %v1381_v55 = vld [vmem:[%s24432_s1 + $0x148] sm:$0xff] }
  0x8e   :  { %19020 = vmatprep.subr.bf16.mxu0 %v19019_v53 }
  0x90   :  { %17387 = vmatmul.mubr.msk.f32.gmra.mrb[2].mxu0 %vm90_vm0, %v20661_v56  ;;  %v19031_v56 = vpack.c.bf16 %v1381_v55, %v1380_v51 }
  0x91   :  { %17389 = vmatprep.mubr.msk.f32.mxu0 %vm90_vm0, %v20674_v60  ;;  %19022 = vmatpush3.bf16.msra.mxu0 %v19019_v53 }
  0x92   :  { %19024 = vmatprep.subr.bf16.mxu0 %v19023_v57 }
  0x94   :  { %17390 = vmatmul.mubr.msk.f32.gmra.mrb[4].mxu0 %vm90_vm0, %v20681_v61 }
  0x95   :  { %17392 = vmatprep.mubr.msk.f32.mxu0 %vm90_vm0, %v20694_v1  ;;  %19026 = vmatpush3.bf16.msra.mxu0 %v19023_v57 }
  0x96   :  { %19028 = vmatprep.subr.bf16.mxu0 %v19027_v58 }
  0x98   :  { %17393 = vmatmul.mubr.msk.f32.gmra.mrb[6].mxu0 %vm90_vm0, %v20701_v2 }
  0x99   :  { %17395 = vmatprep.mubr.msk.f32.mxu0 %vm90_vm0, %v20712_v4  ;;  %19030 = vmatpush3.bf16.msra.mxu0 %v19027_v58 }
  0x9a   :  { %19032 = vmatprep.subr.bf16.mxu0 %v19031_v56 }
  0x9c   :  { %17396 = vmatmul.mubr.msk.f32.gmra.mrb[8].mxu0 %vm90_vm0, %v20717_v5 }
  0x9d   :  { %17398 = vmatprep.mubr.msk.f32.mxu0 %vm90_vm0, %v20726_v6 }
  0xa0   :  { %17399 = vmatmul.mubr.msk.f32.gmra.mrb[10].mxu0 %vm90_vm0, %v20731_v7 }
  0xa1   :  { %17401 = vmatprep.mubr.msk.f32.mxu0 %vm90_vm0, %v20740_v8 }
  0xa4   :  { %17402 = vmatmul.mubr.msk.f32.gmra.mrb[12].mxu0 %vm90_vm0, %v20745_v9 }
  0xa5   :  { %17404 = vmatprep.mubr.msk.f32.mxu0 %vm90_vm0, %v20754_v10 }
  0xa8   :  { %17405 = vmatmul.mubr.msk.f32.gmra.mrb[14].mxu0 %vm90_vm0, %v20759_v11 }
  0xa9   :  { %17407 = vmatprep.mubr.msk.f32.mxu0 %vm90_vm0, %v20764_v12 }
  0xac   :  { %17408 = vmatmul.mubr.msk.f32.gmra.mrb[16].mxu0 %vm90_vm0, %v20771_v13 }
  0xad   :  { %14 = vsyncpa [#allocation6], 0  ;;  %17410 = vmatprep.mubr.msk.f32.mxu0 %vm90_vm0, %v20778_v14  ;;  %v21012_v59 = vld [vmem:[%s24431_s0 + $0xa7] sm:$0xff]  ;;  %v1382_v60 = vld [vmem:[%s24432_s1 + $0x150] sm:$0xff]  ;;  %vm2758_vm1 = vcmask 654336   ;;  %s20433_s24 = smov 64  }
  0xae   :  { %v1383_v61 = vld [vmem:[%s24432_s1 + $0x158] sm:$0xff]  ;;  %v20365_v62 = vld [vmem:[%s24431_s0 + $0x10] sm:$0xff]  ;;  %v1384_v0 = vld [vmem:[%s24432_s1 + $0x160] sm:$0xff]  ;;  %s20434_s25 = smov 32   ;;  %vm2519_vm2 = vcmask 261120   ;;  %s20437_s10 = smov 80  }
  0xaf   :  { %v19035_v63 = vpack.c.bf16 %v1383_v61, %v1382_v60  ;;  %v1385_v1 = vld [vmem:[%s24432_s1 + $0x168] sm:$0xff]  ;;  %v21035_v2 = vld [vmem:[%s24431_s0 + $0x18] sm:$0xff]  ;;  %v21042_v3 = vld [vmem:[%s24431_s0 + $0x20] sm:$0xff]  ;;  %vm12920_vm3 = vcmask 130048  }
  0xb0   :  { %17411 = vmatmul.mubr.msk.f32.gmra.mrb[18].mxu0 %vm90_vm0, %v21012_v59  ;;  %v19039_v15 = vpack.c.bf16 %v1385_v1, %v1384_v0  ;;  %v1386_v16 = vld [vmem:[%s24432_s1 + $0x170] sm:$0xff]  ;;  %v1387_v17 = vld [vmem:[%s24432_s1 + $0x178] sm:$0xff]  ;;  %v21055_v20 = vld [vmem:[%s24431_s0 + $0x28] sm:$0xff] }
  0xb1   :  { %17429 = vmatprep.mubr.msk.f32.mxu0 %vm90_vm0, %v20365_v62  ;;  %v21062_v21 = vld [vmem:[%s24431_s0 + $0x30] sm:$0xff]  ;;  %v19043_v22 = vpack.c.bf16 %v1387_v17, %v1386_v16  ;;  %v1653_v25 = vld [vmem:[%s24432_s1 + $0x180] sm:$0xff]  ;;  %v1654_v26 = vld [vmem:[%s24432_s1 + $0x188] sm:$0xff] }
  0xb2   :  { %v21075_v27 = vld [vmem:[%s24431_s0 + $0x38] sm:$0xff]  ;;  %v21082_v30 = vld [vmem:[%s24431_s0 + $0x40] sm:$0xff]  ;;  %v19047_v31 = vpack.c.bf16 %v1654_v26, %v1653_v25  ;;  %v21089_v32 = vld [vmem:[%s24431_s0 + $0x48] sm:$0xff] }
  0xb3   :  { %v21096_v35 = vld [vmem:[%s24431_s0 + $0x50] sm:$0xff]  ;;  %v21103_v47 = vld [vmem:[%s24431_s0 + $0x58] sm:$0xff]  ;;  %v21110_v48 = vld [vmem:[%s24431_s0 + $0x60] sm:$0xff] }
  0xb4   :  { %17430 = vmatmul.mubr.msk.f32.vlgmr.msra.gmra.mrb[0].mxu0 %vm90_vm0, %v21035_v2  ;;  %v21117_v49 = vld [vmem:[%s24431_s0 + $0x68] sm:$0xff]  ;;  %v21124_v52 = vld [vmem:[%s24431_s0 + $0x70] sm:$0xff]  ;;  %v21131_v53 = vld [vmem:[%s24431_s0 + $0x78] sm:$0xff] }
  0xb5   :  { %17432 = vmatprep.mubr.msk.f32.mxu0 %vm90_vm0, %v21042_v3  ;;  %19034 = vmatpush3.bf16.msra.mxu0 %v19031_v56  ;;  %v21138_v50 = vld [vmem:[%s24431_s0 + $0x80] sm:$0xff]  ;;  %v21145_v54 = vld [vmem:[%s24431_s0 + $0x88] sm:$0xff]  ;;  %v21152_v57 = vld [vmem:[%s24431_s0 + $0x90] sm:$0xff] }
  0xb6   :  { %19036 = vmatprep.subr.bf16.mxu0 %v19035_v63  ;;  %v21159_v51 = vld [vmem:[%s24431_s0 + $0x98] sm:$0xff]  ;;  %v21166_v55 = vld [vmem:[%s24431_s0 + $0xa0] sm:$0xff]  ;;  %v21173_v58 = vld [vmem:[%s24431_s0 + $0xa8] sm:$0xff] }
  0xb7   :  { %v1655_v56 = vld [vmem:[%s24432_s1 + $0x190] sm:$0xff]  ;;  %v1656_v60 = vld [vmem:[%s24432_s1 + $0x198] sm:$0xff]  ;;  %v1657_v62 = vld [vmem:[%s24432_s1 + $0x1a0] sm:$0xff] }
  0xb8   :  { %17433 = vmatmul.mubr.msk.f32.gmra.mrb[2].mxu0 %vm90_vm0, %v21055_v20  ;;  %v19051_v61 = vpack.c.bf16 %v1656_v60, %v1655_v56  ;;  %v1660_v1 = vld [vmem:[%s24432_s1 + $0x1b8] sm:$0xff]  ;;  %v1926_v16 = vld [vmem:[%s24432_s1 + $0x1c0] sm:$0xff]  ;;  %v1927_v17 = vld [vmem:[%s24432_s1 + $0x1c8] sm:$0xff] }
  0xb9   :  { %17435 = vmatprep.mubr.msk.f32.mxu0 %vm90_vm0, %v21062_v21  ;;  %19038 = vmatpush3.bf16.msra.mxu0 %v19035_v63  ;;  %v1658_v63 = vld [vmem:[%s24432_s1 + $0x1a8] sm:$0xff]  ;;  %v1928_v26 = vld [vmem:[%s24432_s1 + $0x1d0] sm:$0xff] }
  0xba   :  { %19040 = vmatprep.subr.bf16.mxu0 %v19039_v15  ;;  %v19055_v0 = vpack.c.bf16 %v1658_v63, %v1657_v62  ;;  %v21242_v25 = vld [vmem:[%s24431_s0 + $0xa9] sm:$0xff]  ;;  %v20384_v56 = vld [vmem:[%s24431_s0 + $0x17] sm:$0xff]  ;;  %v20385_v63 = vld [vmem:[%s24431_s0 + $0x1f] sm:$0xff] }
  0xbb   :  { %v1931_v62 = vld [vmem:[%s24432_s1 + $0x1e8] sm:$0xff] }
  0xbc   :  { %17436 = vmatmul.mubr.msk.f32.gmra.mrb[4].mxu0 %vm90_vm0, %v21075_v27 }
  0xbd   :  { %17438 = vmatprep.mubr.msk.f32.mxu0 %vm90_vm0, %v21082_v30  ;;  %19042 = vmatpush3.bf16.msra.mxu0 %v19039_v15 }
  0xbe   :  { %19044 = vmatprep.subr.bf16.mxu0 %v19043_v22 }
  0xc0   :  { %17439 = vmatmul.mubr.msk.f32.gmra.mrb[6].mxu0 %vm90_vm0, %v21089_v32 }
  0xc1   :  { %17441 = vmatprep.mubr.msk.f32.mxu0 %vm90_vm0, %v21096_v35  ;;  %19046 = vmatpush3.bf16.msra.mxu0 %v19043_v22  ;;  %v19063_v22 = vpack.c.bf16 %v1927_v17, %v1926_v16  ;;  %v20387_v16 = vld [vmem:[%s24431_s0 + $0x2f] sm:$0xff]  ;;  %v20388_v17 = vld [vmem:[%s24431_s0 + $0x37] sm:$0xff] }
  0xc2   :  { %19048 = vmatprep.subr.bf16.mxu0 %v19047_v31 }
  0xc4   :  { %17442 = vmatmul.mubr.msk.f32.gmra.mrb[8].mxu0 %vm90_vm0, %v21103_v47 }
  0xc5   :  { %17444 = vmatprep.mubr.msk.f32.mxu0 %vm90_vm0, %v21110_v48 }
  0xc8   :  { %17445 = vmatmul.mubr.msk.f32.gmra.mrb[10].mxu0 %vm90_vm0, %v21117_v49 }
  0xc9   :  { %17447 = vmatprep.mubr.msk.f32.mxu0 %vm90_vm0, %v21124_v52 }
  0xcc   :  { %17448 = vmatmul.mubr.msk.f32.gmra.mrb[12].mxu0 %vm90_vm0, %v21131_v53 }
  0xcd   :  { %17450 = vmatprep.mubr.msk.f32.mxu0 %vm90_vm0, %v21138_v50 }
  0xd0   :  { %17451 = vmatmul.mubr.msk.f32.gmra.mrb[14].mxu0 %vm90_vm0, %v21145_v54 }
  0xd1   :  { %17453 = vmatprep.mubr.msk.f32.mxu0 %vm90_vm0, %v21152_v57 }
  0xd4   :  { %17454 = vmatmul.mubr.msk.f32.gmra.mrb[16].mxu0 %vm90_vm0, %v21159_v51 }
  0xd5   :  { %17456 = vmatprep.mubr.msk.f32.mxu0 %vm90_vm0, %v21166_v55 }
  0xd8   :  { %17457 = vmatmul.mubr.msk.f32.gmra.mrb[18].mxu0 %vm90_vm0, %v21173_v58 }
  0xd9   :  { %17475 = vmatprep.mubr.msk.f32.mxu0 %vm90_vm0, %v20796_v18  ;;  %v1659_v18 = vld [vmem:[%s24432_s1 + $0x1b0] sm:$0xff] }
  0xda   :  { %v19059_v15 = vpack.c.bf16 %v1660_v1, %v1659_v18  ;;  %v1932_v1 = vld [vmem:[%s24432_s1 + $0x1f0] sm:$0xff] }
  0xdc   :  { %17476 = vmatmul.mubr.msk.f32.vlgmr.msra.gmra.mrb[0].mxu0 %vm90_vm0, %v20803_v19 }
  0xdd   :  { %17478 = vmatprep.mubr.msk.f32.mxu0 %vm90_vm0, %v20815_v23  ;;  %19050 = vmatpush3.bf16.msra.mxu0 %v19047_v31  ;;  %v1929_v31 = vld [vmem:[%s24432_s1 + $0x1d8] sm:$0xff] }
  0xde   :  { %19052 = vmatprep.subr.bf16.mxu0 %v19051_v61  ;;  %v19067_v60 = vpack.c.bf16 %v1929_v31, %v1928_v26  ;;  %v2199_v26 = vld [vmem:[%s24432_s1 + $0x200] sm:$0xff]  ;;  %v2200_v31 = vld [vmem:[%s24432_s1 + $0x208] sm:$0xff] }
  0xe0   :  { %17479 = vmatmul.mubr.msk.f32.gmra.mrb[2].mxu0 %vm90_vm0, %v20822_v24 }
  0xe1   :  { %17481 = vmatprep.mubr.msk.f32.mxu0 %vm90_vm0, %v20835_v28  ;;  %19054 = vmatpush3.bf16.msra.mxu0 %v19051_v61  ;;  %v1930_v61 = vld [vmem:[%s24432_s1 + $0x1e0] sm:$0xff] }
  0xe2   :  { %19056 = vmatprep.subr.bf16.mxu0 %v19055_v0  ;;  %v19071_v18 = vpack.c.bf16 %v1931_v62, %v1930_v61  ;;  %v19079_v61 = vpack.c.bf16 %v2200_v31, %v2199_v26 }
  0xe4   :  { %17482 = vmatmul.mubr.msk.f32.gmra.mrb[4].mxu0 %vm90_vm0, %v20842_v29 }
  0xe5   :  { %17484 = vmatprep.mubr.msk.f32.mxu0 %vm90_vm0, %v20855_v33  ;;  %19058 = vmatpush3.bf16.msra.mxu0 %v19055_v0  ;;  %v20386_v0 = vld [vmem:[%s24431_s0 + $0x27] sm:$0xff] }
  0xe6   :  { %19060 = vmatprep.subr.bf16.mxu0 %v19059_v15 }
  0xe8   :  { %17485 = vmatmul.mubr.msk.f32.gmra.mrb[6].mxu0 %vm90_vm0, %v20862_v34 }
  0xe9   :  { %17487 = vmatprep.mubr.msk.f32.mxu0 %vm90_vm0, %v20873_v36  ;;  %19062 = vmatpush3.bf16.msra.mxu0 %v19059_v15  ;;  %v1933_v15 = vld [vmem:[%s24432_s1 + $0x1f8] sm:$0xff] }
  0xea   :  { %19064 = vmatprep.subr.bf16.mxu0 %v19063_v22 }
  0xec   :  { %17488 = vmatmul.mubr.msk.f32.gmra.mrb[8].mxu0 %vm90_vm0, %v20878_v37 }
  0xed   :  { %17490 = vmatprep.mubr.msk.f32.mxu0 %vm90_vm0, %v20887_v38 }
  0xf0   :  { %17491 = vmatmul.mubr.msk.f32.gmra.mrb[10].mxu0 %vm90_vm0, %v20892_v39 }
  0xf1   :  { %17493 = vmatprep.mubr.msk.f32.mxu0 %vm90_vm0, %v20901_v40 }
  0xf4   :  { %17494 = vmatmul.mubr.msk.f32.gmra.mrb[12].mxu0 %vm90_vm0, %v20906_v41 }
  0xf5   :  { %17496 = vmatprep.mubr.msk.f32.mxu0 %vm90_vm0, %v20915_v42 }
  0xf8   :  { %17497 = vmatmul.mubr.msk.f32.gmra.mrb[14].mxu0 %vm90_vm0, %v20920_v43 }
  0xf9   :  { %17499 = vmatprep.mubr.msk.f32.mxu0 %vm90_vm0, %v20925_v44 }
  0xfc   :  { %17500 = vmatmul.mubr.msk.f32.gmra.mrb[16].mxu0 %vm90_vm0, %v20932_v45 }
  0xfd   :  { %17502 = vmatprep.mubr.msk.f32.mxu0 %vm90_vm0, %v20939_v46 }
 0x100   :  { %17503 = vmatmul.mubr.msk.f32.gmra.mrb[18].mxu0 %vm90_vm0, %v21242_v25 }
 0x101   :  { %17521 = vmatprep.mubr.msk.f32.mxu0 %vm90_vm0, %v20384_v56  ;;  %v20389_v56 = vld [vmem:[%s24431_s0 + $0x3f] sm:$0xff] }
 0x104   :  { %17522 = vmatmul.mubr.msk.f32.vlgmr.msra.gmra.mrb[0].mxu0 %vm90_vm0, %v20385_v63 }
 0x105   :  { %17524 = vmatprep.mubr.msk.f32.mxu0 %vm90_vm0, %v20386_v0  ;;  %19066 = vmatpush3.bf16.msra.mxu0 %v19063_v22  ;;  %v19075_v22 = vpack.c.bf16 %v1933_v15, %v1932_v1 }
 0x106   :  { %19068 = vmatprep.subr.bf16.mxu0 %v19067_v60 }
 0x108   :  { %17525 = vmatmul.mubr.msk.f32.gmra.mrb[2].mxu0 %vm90_vm0, %v20387_v16 }
 0x109   :  { %17527 = vmatprep.mubr.msk.f32.mxu0 %vm90_vm0, %v20388_v17  ;;  %19070 = vmatpush3.bf16.msra.mxu0 %v19067_v60  ;;  %v20390_v60 = vld [vmem:[%s24431_s0 + $0x47] sm:$0xff] }
 0x10a   :  { %19072 = vmatprep.subr.bf16.mxu0 %v19071_v18 }
 0x10c   :  { %17528 = vmatmul.mubr.msk.f32.gmra.mrb[4].mxu0 %vm90_vm0, %v20389_v56 }
 0x10d   :  { %17530 = vmatprep.mubr.msk.f32.mxu0 %vm90_vm0, %v20390_v60  ;;  %19074 = vmatpush3.bf16.msra.mxu0 %v19071_v18 }
 0x10e   :  { %19076 = vmatprep.subr.bf16.mxu0 %v19075_v22 }
 0x110   :  { %17531 = vmatmul.mubr.msk.f32.gmra.mrb[6].mxu0 %vm90_vm0, %v20712_v4  ;;  %v1652_v4 = vld [vmem:[%s24431_s0 + $0xaf] sm:$0xff] }
 0x111   :  { %17533 = vmatprep.mubr.msk.f32.mxu0 %vm90_vm0, %v20717_v5  ;;  %19078 = vmatpush3.bf16.msra.mxu0 %v19075_v22  ;;  %v2201_v5 = vld [vmem:[%s24432_s1 + $0x210] sm:$0xff] }
 0x112   :  { %19080 = vmatprep.subr.bf16.mxu0 %v19079_v61 }
 0x114   :  { %17534 = vmatmul.mubr.msk.f32.gmra.mrb[8].mxu0 %vm90_vm0, %v20726_v6  ;;  %v2202_v6 = vld [vmem:[%s24432_s1 + $0x218] sm:$0xff] }
 0x115   :  { %17536 = vmatprep.mubr.msk.f32.mxu0 %vm90_vm0, %v20731_v7  ;;  %v19083_v7 = vpack.c.bf16 %v2202_v6, %v2201_v5 }
 0x118   :  { %17537 = vmatmul.mubr.msk.f32.gmra.mrb[10].mxu0 %vm90_vm0, %v20740_v8  ;;  %v2203_v8 = vld [vmem:[%s24432_s1 + $0x220] sm:$0xff] }
 0x119   :  { %17539 = vmatprep.mubr.msk.f32.mxu0 %vm90_vm0, %v20745_v9  ;;  %v2204_v9 = vld [vmem:[%s24432_s1 + $0x228] sm:$0xff] }
 0x11c   :  { %17540 = vmatmul.mubr.msk.f32.gmra.mrb[12].mxu0 %vm90_vm0, %v20754_v10  ;;  %v19087_v10 = vpack.c.bf16 %v2204_v9, %v2203_v8 }
 0x11d   :  { %17542 = vmatprep.mubr.msk.f32.mxu0 %vm90_vm0, %v20759_v11  ;;  %v2205_v11 = vld [vmem:[%s24432_s1 + $0x230] sm:$0xff] }
 0x120   :  { %17543 = vmatmul.mubr.msk.f32.gmra.mrb[14].mxu0 %vm90_vm0, %v20764_v12  ;;  %v2206_v12 = vld [vmem:[%s24432_s1 + $0x238] sm:$0xff] }
 0x121   :  { %17545 = vmatprep.mubr.msk.f32.mxu0 %vm90_vm0, %v20771_v13  ;;  %v19091_v13 = vpack.c.bf16 %v2206_v12, %v2205_v11 }
 0x124   :  { %17546 = vmatmul.mubr.msk.f32.gmra.mrb[16].mxu0 %vm90_vm0, %v20778_v14  ;;  %v1925_v14 = vld [vmem:[%s24431_s0 + $0xb0] sm:$0xff] }
 0x125   :  { %17548 = vmatprep.mubr.msk.f32.mxu0 %vm90_vm0, %v21012_v59 }
 0x128   :  { %17549 = vmatmul.mubr.msk.f32.gmra.mrb[18].mxu0 %vm90_vm0, %v1652_v4 }
 0x129   :  { %17567 = vmatprep.mubr.msk.f32.mxu0 %vm90_vm0, %v21035_v2 }
 0x12c   :  { %17568 = vmatmul.mubr.msk.f32.vlgmr.msra.gmra.mrb[0].mxu0 %vm90_vm0, %v21042_v3 }
 0x12d   :  { %17570 = vmatprep.mubr.msk.f32.mxu0 %vm90_vm0, %v21055_v20  ;;  %19082 = vmatpush3.bf16.msra.mxu0 %v19079_v61 }
 0x12e   :  { %19084 = vmatprep.subr.bf16.mxu0 %v19083_v7 }
 0x130   :  { %17571 = vmatmul.mubr.msk.f32.gmra.mrb[2].mxu0 %vm90_vm0, %v21062_v21 }
 0x131   :  { %17573 = vmatprep.mubr.msk.f32.mxu0 %vm90_vm0, %v21075_v27  ;;  %19086 = vmatpush3.bf16.msra.mxu0 %v19083_v7  ;;  %v20044_v27 = vld [vmem:[%s24434_s3 + $0x80] sm:$0xff]  }
 0x132   :  { %19088 = vmatprep.subr.bf16.mxu0 %v19087_v10  ;;  %17653 = vmatprep.mubr.msk.bf16.mxu1 %vm2758_vm1, %v20044_v27  ;;  %v20053_v27 = vld [vmem:[%s24434_s3 + $0xc8] sm:$0xff]  }
 0x134   :  { %17574 = vmatmul.mubr.msk.f32.gmra.mrb[4].mxu0 %vm90_vm0, %v21082_v30 }
 0x135   :  { %17576 = vmatprep.mubr.msk.f32.mxu0 %vm90_vm0, %v21089_v32  ;;  %19090 = vmatpush3.bf16.msra.mxu0 %v19087_v10 }
 0x136   :  { %19092 = vmatprep.subr.bf16.mxu0 %v19091_v13 }
 0x138   :  { %17577 = vmatmul.mubr.msk.f32.gmra.mrb[6].mxu0 %vm90_vm0, %v21096_v35 }
 0x139   :  { %17579 = vmatprep.mubr.msk.f32.mxu0 %vm90_vm0, %v21103_v47  ;;  %19094 = vmatpush3.bf16.msra.mxu0 %v19091_v13 }
 0x13c   :  { %17580 = vmatmul.mubr.msk.f32.gmra.mrb[8].mxu0 %vm90_vm0, %v21110_v48 }
 0x13d   :  { %17582 = vmatprep.mubr.msk.f32.mxu0 %vm90_vm0, %v21117_v49 }
 0x140   :  { %17583 = vmatmul.mubr.msk.f32.gmra.mrb[10].mxu0 %vm90_vm0, %v21124_v52 }
 0x141   :  { %17585 = vmatprep.mubr.msk.f32.mxu0 %vm90_vm0, %v21131_v53 }
 0x144   :  { %17586 = vmatmul.mubr.msk.f32.gmra.mrb[12].mxu0 %vm90_vm0, %v21138_v50 }
 0x145   :  { %17588 = vmatprep.mubr.msk.f32.mxu0 %vm90_vm0, %v21145_v54 }
 0x148   :  { %17589 = vmatmul.mubr.msk.f32.gmra.mrb[14].mxu0 %vm90_vm0, %v21152_v57 }
 0x149   :  { %17591 = vmatprep.mubr.msk.f32.mxu0 %vm90_vm0, %v21159_v51 }
 0x14c   :  { %17592 = vmatmul.mubr.msk.f32.gmra.mrb[16].mxu0 %vm90_vm0, %v21166_v55 }
 0x14d   :  { %17594 = vmatprep.mubr.msk.f32.mxu0 %vm90_vm0, %v21173_v58 }
 0x150   :  { %17595 = vmatmul.mubr.msk.f32.gmra.mrb[18].mxu0 %vm90_vm0, %v1925_v14 }
 0x151   :  { %17613 = vmatprep.mubr.msk.f32.mxu0 %vm90_vm0, %v20803_v19  ;;  %v2198_v19 = vld [vmem:[%s24431_s0 + $0xb1] sm:$0xff]  ;;  %s20432_s0 = smov 96  }
 0x154   :  { %17614 = vmatmul.mubr.msk.f32.vlgmr.msra.gmra.mrb[0].mxu0 %vm90_vm0, %v20815_v23  ;;  %v21431_v23 = vld [vmem:[%s24433_s2] ss:$0 sm:$0xff] }
 0x155   :  { %17616 = vmatprep.mubr.msk.f32.mxu0 %vm90_vm0, %v20822_v24 }
 0x158   :  { %17617 = vmatmul.mubr.msk.f32.gmra.mrb[2].mxu0 %vm90_vm0, %v20835_v28 }
 0x159   :  { %17619 = vmatprep.mubr.msk.f32.mxu0 %vm90_vm0, %v20842_v29 }
 0x15c   :  { %17620 = vmatmul.mubr.msk.f32.gmra.mrb[4].mxu0 %vm90_vm0, %v20855_v33 }
 0x15d   :  { %17622 = vmatprep.mubr.msk.f32.mxu0 %vm90_vm0, %v20862_v34 }
 0x160   :  { %17623 = vmatmul.mubr.msk.f32.gmra.mrb[6].mxu0 %vm90_vm0, %v20873_v36 }
 0x161   :  { %17625 = vmatprep.mubr.msk.f32.mxu0 %vm90_vm0, %v20878_v37 }
 0x164   :  { %17626 = vmatmul.mubr.msk.f32.gmra.mrb[8].mxu0 %vm90_vm0, %v20887_v38 }
 0x165   :  { %17628 = vmatprep.mubr.msk.f32.mxu0 %vm90_vm0, %v20892_v39 }
 0x168   :  { %17629 = vmatmul.mubr.msk.f32.gmra.mrb[10].mxu0 %vm90_vm0, %v20901_v40 }
 0x169   :  { %17631 = vmatprep.mubr.msk.f32.mxu0 %vm90_vm0, %v20906_v41 }
 0x16c   :  { %17632 = vmatmul.mubr.msk.f32.gmra.mrb[12].mxu0 %vm90_vm0, %v20915_v42 }
 0x16d   :  { %17634 = vmatprep.mubr.msk.f32.mxu0 %vm90_vm0, %v20920_v43 }
 0x170   :  { %17635 = vmatmul.mubr.msk.f32.gmra.mrb[14].mxu0 %vm90_vm0, %v20925_v44 }
 0x171   :  { %17637 = vmatprep.mubr.msk.f32.mxu0 %vm90_vm0, %v20932_v45 }
 0x174   :  { %17638 = vmatmul.mubr.msk.f32.gmra.mrb[16].mxu0 %vm90_vm0, %v20939_v46 }
 0x175   :  { %17640 = vmatprep.mubr.msk.f32.mxu0 %vm90_vm0, %v21242_v25 }
 0x178   :  { %17641 = vmatmul.mubr.msk.f32.gmra.mrb[18].mxu0 %vm90_vm0, %v2198_v19 }
 0x227   :  { %v17615_v24 = vpop.f32.mrb[0].mxu0 }
 0x228   :  { %v2460_v28 = vadd.f32 %v17615_v24, %v21431_v23  ;;  %v2333_v29 = vpop.f32.mrb[1].mxu0 }
 0x229   :  { %v2459_v33 = vadd.f32 %v21431_v23, %v2333_v29 }
 0x22a   :  { %v2480_v34 = vmax.f32 %v2460_v28, 0.0 }
 0x22b   :  { %v2479_v36 = vmax.f32 %v2459_v33, 0.0  ;;  %v17618_v37 = vpop.f32.mrb[2].mxu0 }
 0x22c   :  { %v2462_v38 = vadd.f32 %v17618_v37, %v21431_v23  ;;  %v2343_v39 = vpop.f32.mrb[3].mxu0 }
 0x22d   :  { %v21436_v40 = vpack.c.bf16 %v2480_v34, %v2479_v36  ;;  %v2461_v41 = vadd.f32 %v21431_v23, %v2343_v39 }
 0x22e   :  { %v2482_v42 = vmax.f32 %v2462_v38, 0.0 }
 0x22f   :  { %v2481_v43 = vmax.f32 %v2461_v41, 0.0  ;;  %2743 = vrot.lane.b32.xlu0 %v21436_v40, %s20432_s0  ;;  %v17621_v44 = vpop.f32.mrb[4].mxu0 }
 0x230   :  { %v2464_v45 = vadd.f32 %v17621_v44, %v21431_v23  ;;  %v2353_v46 = vpop.f32.mrb[5].mxu0  ;;  %v20045_v44 = vld [vmem:[%s24434_s3 + $0x88] sm:$0xff]  }
 0x231   :  { %v21442_v59 = vpack.c.bf16 %v2482_v42, %v2481_v43  ;;  %v2463_v2 = vadd.f32 %v21431_v23, %v2353_v46  ;;  %v20047_v46 = vld [vmem:[%s24434_s3 + $0x98] sm:$0xff]  }
 0x232   :  { %v2484_v3 = vmax.f32 %v2464_v45, 0.0  ;;  %v20046_v45 = vld [vmem:[%s24434_s3 + $0x90] sm:$0xff]  }
 0x233   :  { %v2483_v20 = vmax.f32 %v2463_v2, 0.0  ;;  %2745 = vrot.lane.b32.xlu0 %v21442_v59, %s20432_s0  ;;  %v17624_v21 = vpop.f32.mrb[6].mxu0  ;;  %v20048_v2 = vld [vmem:[%s24434_s3 + $0xa0] sm:$0xff]  }
 0x234   :  { %v2466_v30 = vadd.f32 %v17624_v21, %v21431_v23  ;;  %v2363_v32 = vpop.f32.mrb[7].mxu0  ;;  %v20052_v21 = vld [vmem:[%s24434_s3 + $0xc0] sm:$0xff]  }
 0x235   :  { %v21451_v35 = vpack.c.bf16 %v2484_v3, %v2483_v20  ;;  %v2465_v47 = vadd.f32 %v21431_v23, %v2363_v32  ;;  %v20051_v20 = vld [vmem:[%s24434_s3 + $0xb8] sm:$0xff]  }
 0x236   :  { %v2486_v48 = vmax.f32 %v2466_v30, 0.0  ;;  %v20054_v30 = vld [vmem:[%s24434_s3 + $0xd0] sm:$0xff]   ;;  %v20055_v32 = vld [vmem:[%s24434_s3 + $0xd8] sm:$0xff]  }
 0x237   :  { %v2485_v49 = vmax.f32 %v2465_v47, 0.0  ;;  %2747 = vrot.lane.b32.xlu1 %v21451_v35, %s20432_s0  ;;  %v17627_v52 = vpop.f32.mrb[8].mxu0  ;;  %v20057_v47 = vld [vmem:[%s24434_s3 + $0xe8] sm:$0xff]  }
 0x238   :  { %v2468_v53 = vadd.f32 %v17627_v52, %v21431_v23  ;;  %v2373_v50 = vpop.f32.mrb[9].mxu0  ;;  %v20060_v52 = vld [vmem:[%s24434_s3] sm:$0xff]  }
 0x239   :  { %v21458_v54 = vpack.c.bf16 %v2486_v48, %v2485_v49  ;;  %v2467_v57 = vadd.f32 %v21431_v23, %v2373_v50  ;;  %v20058_v48 = vld [vmem:[%s24434_s3 + $0xf0] sm:$0xff]   ;;  %v20059_v49 = vld [vmem:[%s24434_s3 + $0xf8] sm:$0xff]  }
 0x23a   :  { %v2488_v51 = vmax.f32 %v2468_v53, 0.0  ;;  %v20061_v53 = vld [vmem:[%s24434_s3 + $0x8] sm:$0xff]   ;;  %v20062_v50 = vld [vmem:[%s24434_s3 + $0x10] sm:$0xff]  }
 0x23b   :  { %v2487_v55 = vmax.f32 %v2467_v57, 0.0  ;;  %2749 = vrot.lane.b32.xlu1 %v21458_v54, %s20432_s0  ;;  %v17630_v58 = vpop.f32.mrb[10].mxu0  ;;  %v20063_v57 = vld [vmem:[%s24434_s3 + $0x18] sm:$0xff]  }
 0x23c   :  { %v2470_v25 = vadd.f32 %v17630_v58, %v21431_v23  ;;  %v2383_v62 = vpop.f32.mrb[11].mxu0 }
 0x23d   :  { %v21464_v63 = vpack.c.bf16 %v2488_v51, %v2487_v55  ;;  %v2469_v0 = vadd.f32 %v21431_v23, %v2383_v62  ;;  %v20064_v55 = vld [vmem:[%s24434_s3 + $0x20] sm:$0xff]  }
 0x23e   :  { %v2490_v18 = vmax.f32 %v2470_v25, 0.0  ;;  %v20065_v25 = vld [vmem:[%s24434_s3 + $0x28] sm:$0xff]  }
 0x23f   :  { %v2489_v1 = vmax.f32 %v2469_v0, 0.0  ;;  %3370 = vrot.lane.b32.xlu1 %v21436_v40, %s20433_s24  ;;  %2751 = vrot.lane.b32.xlu0 %v21464_v63, %s20432_s0  ;;  %v17633_v15 = vpop.f32.mrb[12].mxu0 }
 0x240   :  { %v2472_v16 = vadd.f32 %v17633_v15, %v21431_v23  ;;  %v2393_v17 = vpop.f32.mrb[13].mxu0  ;;  %v20069_v15 = vld [vmem:[%s24434_s3 + $0x48] sm:$0xff]  }
 0x241   :  { %v21472_v22 = vpack.c.bf16 %v2490_v18, %v2489_v1  ;;  %v2471_v26 = vadd.f32 %v21431_v23, %v2393_v17  ;;  %v20067_v18 = vld [vmem:[%s24434_s3 + $0x38] sm:$0xff]   ;;  %v20068_v1 = vld [vmem:[%s24434_s3 + $0x40] sm:$0xff]  }
 0x242   :  { %v2492_v31 = vmax.f32 %v2472_v16, 0.0  ;;  %v20070_v16 = vld [vmem:[%s24434_s3 + $0x50] sm:$0xff]   ;;  %v20071_v17 = vld [vmem:[%s24434_s3 + $0x58] sm:$0xff]  }
 0x243   :  { %v2491_v56 = vmax.f32 %v2471_v26, 0.0  ;;  %3374 = vrot.lane.b32.xlu1 %v21451_v35, %s20433_s24  ;;  %3372 = vrot.lane.b32.xlu0 %v21442_v59, %s20433_s24  ;;  %v17636_v60 = vpop.f32.mrb[14].mxu0  ;;  %v20072_v26 = vld [vmem:[%s24434_s3 + $0x60] sm:$0xff]  }
 0x244   :  { %v2474_v61 = vadd.f32 %v17636_v60, %v21431_v23  ;;  %v2403_v4 = vpop.f32.mrb[15].mxu0  ;;  %v20075_v60 = vld [vmem:[%s24434_s3 + $0x78] sm:$0xff]  }
 0x245   :  { %v21480_v5 = vpack.c.bf16 %v2492_v31, %v2491_v56  ;;  %v2473_v6 = vadd.f32 %v21431_v23, %v2403_v4  ;;  %v20073_v31 = vld [vmem:[%s24434_s3 + $0x68] sm:$0xff]   ;;  %v20074_v56 = vld [vmem:[%s24434_s3 + $0x70] sm:$0xff]  }
 0x246   :  { %v2494_v7 = vmax.f32 %v2474_v61, 0.0  ;;  %v20076_v61 = vld [vmem:[%s24434_s3 + $0x100] sm:$0xff]   ;;  %v20077_v4 = vld [vmem:[%s24434_s3 + $0x108] sm:$0xff]  }
 0x247   :  { %v2493_v8 = vmax.f32 %v2473_v6, 0.0  ;;  %3378 = vrot.lane.b32.xlu1 %v21464_v63, %s20433_s24  ;;  %3376 = vrot.lane.b32.xlu0 %v21458_v54, %s20433_s24  ;;  %v17639_v9 = vpop.f32.mrb[16].mxu0  ;;  %v20078_v6 = vld [vmem:[%s24434_s3 + $0x110] sm:$0xff]  }
 0x248   :  { %v2476_v10 = vadd.f32 %v17639_v9, %v21431_v23  ;;  %v2413_v11 = vpop.f32.mrb[17].mxu0 }
 0x249   :  { %v21488_v12 = vpack.c.bf16 %v2494_v7, %v2493_v8  ;;  %v2475_v13 = vadd.f32 %v21431_v23, %v2413_v11  ;;  %v20079_v8 = vld [vmem:[%s24434_s3 + $0x118] sm:$0xff]  }
 0x24a   :  { %v2496_v14 = vmax.f32 %v2476_v10, 0.0  ;;  %v20080_v10 = vld [vmem:[%s24434_s3 + $0x120] sm:$0xff]  }
 0x24b   :  { %v2495_v19 = vmax.f32 %v2475_v13, 0.0  ;;  %3741 = vrot.lane.b32.xlu1 %v21442_v59, %s20434_s25  ;;  %3739 = vrot.lane.b32.xlu0 %v21436_v40, %s20434_s25  ;;  %v17642_v24 = vpop.f32.mrb[18].mxu0  ;;  %v20081_v13 = vld [vmem:[%s24434_s3 + $0x128] sm:$0xff]  }
 0x24c   :  { %v2478_v28 = vadd.f32 %v17642_v24, %v21431_v23  ;;  %v2423_v29 = vpop.f32.mrb[19].mxu0 }
 0x24d   :  { %v21494_v33 = vpack.c.bf16 %v2496_v14, %v2495_v19  ;;  %v2477_v34 = vadd.f32 %v21431_v23, %v2423_v29  ;;  %v20082_v19 = vld [vmem:[%s24434_s3 + $0x130] sm:$0xff]   ;;  %v20084_v29 = vld [vmem:[%s24434_s3 + $0x140] sm:$0xff]  }
 0x24e   :  { %v2498_v36 = vmax.f32 %v2478_v28, 0.0  ;;  %v20083_v28 = vld [vmem:[%s24434_s3 + $0x138] sm:$0xff]  }
 0x24f   :  { %v2497_v37 = vmax.f32 %v2477_v34, 0.0  ;;  %3745 = vrot.lane.b32.xlu1 %v21458_v54, %s20434_s25  ;;  %3743 = vrot.lane.b32.xlu0 %v21451_v35, %s20434_s25  ;;  %v20085_v34 = vld [vmem:[%s24434_s3 + $0x148] sm:$0xff]  }
 0x251   :  { %v21499_v38 = vpack.c.bf16 %v2498_v36, %v2497_v37  ;;  %v20086_v36 = vld [vmem:[%s24434_s3 + $0x150] sm:$0xff]   ;;  %v20087_v37 = vld [vmem:[%s24434_s3 + $0x158] sm:$0xff]  }
 0x253   :  { %3747 = vrot.lane.b32.xlu0 %v21464_v63, %s20434_s25  ;;  %4181 = vrot.lane.b32.xlu1 %v21472_v22, %s20432_s0 }
 0x257   :  { %4183 = vrot.lane.b32.xlu0 %v21480_v5, %s20432_s0  ;;  %4185 = vrot.lane.b32.xlu1 %v21488_v12, %s20432_s0 }
 0x25b   :  { %4187 = vrot.lane.b32.xlu0 %v21494_v33, %s20432_s0  ;;  %4189 = vrot.lane.b32.xlu1 %v21499_v38, %s20432_s0 }
 0x25f   :  { %4806 = vrot.lane.b32.xlu0 %v21472_v22, %s20433_s24  ;;  %4808 = vrot.lane.b32.xlu1 %v21480_v5, %s20433_s24 }
 0x263   :  { %4810 = vrot.lane.b32.xlu0 %v21488_v12, %s20433_s24  ;;  %4812 = vrot.lane.b32.xlu1 %v21494_v33, %s20433_s24 }
 0x267   :  { %4814 = vrot.lane.b32.xlu0 %v21499_v38, %s20433_s24  ;;  %5174 = vrot.lane.b32.xlu1 %v21472_v22, %s20434_s25 }
 0x26b   :  { %5176 = vrot.lane.b32.xlu0 %v21480_v5, %s20434_s25  ;;  %5178 = vrot.lane.b32.xlu1 %v21488_v12, %s20434_s25 }
 0x26f   :  { %5180 = vrot.lane.b32.xlu0 %v21494_v33, %s20434_s25  ;;  %5182 = vrot.lane.b32.xlu1 %v21499_v38, %s20434_s25 }
 0x2a1   :  { %v2744_v23 = vpop.permute.xlu0 %2743 }
 0x2a2   :  { %17643 = vmatprep.subr.bf16.mxu1 %v2744_v23 }
 0x2a3   :  { %17644 = vmatpush3.bf16.msra.mxu1 %v2744_v23  ;;  %v20088_v23 = vld [vmem:[%s24434_s3 + $0x160] sm:$0xff]  }
 0x2a5   :  { %v2746_v39 = vpop.permute.xlu0 %2745 }
 0x2a6   :  { %17645 = vmatprep.subr.bf16.mxu1 %v2746_v39 }
 0x2a7   :  { %17646 = vmatpush3.bf16.msra.mxu1 %v2746_v39  ;;  %v20089_v39 = vld [vmem:[%s24434_s3 + $0x168] sm:$0xff]  }
 0x2a9   :  { %v2748_v41 = vpop.permute.xlu1 %2747 }
 0x2aa   :  { %17647 = vmatprep.subr.bf16.mxu1 %v2748_v41 }
 0x2ab   :  { %17648 = vmatpush3.bf16.msra.mxu1 %v2748_v41  ;;  %v20090_v41 = vld [vmem:[%s24434_s3 + $0x170] sm:$0xff]  }
 0x2ad   :  { %v2750_v42 = vpop.permute.xlu1 %2749 }
 0x2ae   :  { %17649 = vmatprep.subr.bf16.mxu1 %v2750_v42 }
 0x2af   :  { %17650 = vmatpush3.bf16.msra.mxu1 %v2750_v42  ;;  %v20091_v42 = vld [vmem:[%s24434_s3 + $0x178] sm:$0xff]  }
 0x2b1   :  { %v2752_v43 = vpop.permute.xlu0 %2751  ;;  %v3371_v3 = vpop.permute.xlu1 %3370 }
 0x2b2   :  { %17651 = vmatprep.subr.bf16.mxu1 %v2752_v43 }
 0x2b3   :  { %17652 = vmatpush3.bf16.msra.mxu1 %v2752_v43  ;;  %v20092_v43 = vld [vmem:[%s24434_s3 + $0x180] sm:$0xff]  }
 0x2b4   :  { %17685 = vmatprep.subr.bf16.mxu1 %v21436_v40 }
 0x2b5   :  { %v3375_v51 = vpop.permute.xlu1 %3374 }
 0x2b6   :  { %17654 = vmatmul.mubr.msk.bf16.vlgmr.msra.gmra.mrb[0].mxu1 %vm2758_vm1, %v20045_v44  ;;  %v20093_v44 = vld [vmem:[%s24434_s3 + $0x188] sm:$0xff]  }
 0x2b7   :  { %17686 = vmatpush3.bf16.msra.mxu1 %v21436_v40  ;;  %17657 = vmatprep.mubr.msk.bf16.mxu1 %vm2758_vm1, %v20046_v45  ;;  %v20049_v40 = vld [vmem:[%s24434_s3 + $0xa8] sm:$0xff]   ;;  %v20094_v45 = vld [vmem:[%s24434_s3 + $0x190] sm:$0xff]  }
 0x2b8   :  { %17687 = vmatprep.subr.bf16.mxu1 %v21442_v59 }
 0x2b9   :  { %v3379_v62 = vpop.permute.xlu1 %3378 }
 0x2bb   :  { %17688 = vmatpush3.bf16.msra.mxu1 %v21442_v59  ;;  %v20050_v59 = vld [vmem:[%s24434_s3 + $0xb0] sm:$0xff]  }
 0x2bc   :  { %17689 = vmatprep.subr.bf16.mxu1 %v21451_v35 }
 0x2bd   :  { %v3742_v7 = vpop.permute.xlu1 %3741 }
 0x2be   :  { %17658 = vmatmul.mubr.msk.bf16.gmra.mrb[4].mxu1 %vm2758_vm1, %v20047_v46 }
 0x2bf   :  { %17690 = vmatpush3.bf16.msra.mxu1 %v21451_v35  ;;  %17661 = vmatprep.mubr.msk.bf16.mxu1 %vm2758_vm1, %v20048_v2  ;;  %v20056_v35 = vld [vmem:[%s24434_s3 + $0xe0] sm:$0xff]   ;;  %v20095_v2 = vld [vmem:[%s24434_s3 + $0x198] sm:$0xff]  }
 0x2c0   :  { %17691 = vmatprep.subr.bf16.mxu1 %v21458_v54 }
 0x2c1   :  { %v3746_v11 = vpop.permute.xlu1 %3745 }
 0x2c3   :  { %17692 = vmatpush3.bf16.msra.mxu1 %v21458_v54  ;;  %v3373_v54 = vpop.permute.xlu0 %3372 }
 0x2c4   :  { %17693 = vmatprep.subr.bf16.mxu1 %v21464_v63 }
 0x2c5   :  { %v4182_v24 = vpop.permute.xlu1 %4181 }
 0x2c6   :  { %17662 = vmatmul.mubr.msk.bf16.gmra.mrb[8].mxu1 %vm2758_vm1, %v20049_v40 }
 0x2c7   :  { %17694 = vmatpush3.bf16.msra.mxu1 %v21464_v63  ;;  %17665 = vmatprep.mubr.msk.bf16.mxu1 %vm2758_vm1, %v20050_v59  ;;  %v3377_v58 = vpop.permute.xlu0 %3376  ;;  %v20066_v63 = vld [vmem:[%s24434_s3 + $0x30] sm:$0xff]   ;;  %v20096_v59 = vld [vmem:[%s24434_s3 + $0x1a0] sm:$0xff]  }
 0x2c8   :  { %17727 = vmatprep.subr.bf16.mxu1 %v3371_v3 }
 0x2c9   :  { %v4186_v40 = vpop.permute.xlu1 %4185 }
 0x2cb   :  { %v3740_v0 = vpop.permute.xlu0 %3739 }
 0x2ce   :  { %17666 = vmatmul.mubr.msk.bf16.gmra.mrb[12].mxu1 %vm2758_vm1, %v20051_v20  ;;  %v20097_v20 = vld [vmem:[%s24434_s3 + $0x1a8] sm:$0xff]  }
 0x2cf   :  { %17669 = vmatprep.mubr.msk.bf16.mxu1 %vm2758_vm1, %v20052_v21  ;;  %v3744_v9 = vpop.permute.xlu0 %3743  ;;  %v4190_v21 = vpop.permute.xlu1 %4189 }
 0x2d3   :  { %v3748_v14 = vpop.permute.xlu0 %3747 }
 0x2d6   :  { %17670 = vmatmul.mubr.msk.bf16.gmra.mrb[16].mxu1 %vm2758_vm1, %v20053_v27  ;;  %v20098_v27 = vld [vmem:[%s24434_s3 + $0x1b0] sm:$0xff]  }
 0x2d7   :  { %17673 = vmatprep.mubr.msk.bf16.mxu1 %vm2758_vm1, %v20054_v30  ;;  %v4184_v46 = vpop.permute.xlu0 %4183  ;;  %v20099_v30 = vld [vmem:[%s24434_s3 + $0x1b8] sm:$0xff]  }
 0x2de   :  { %17674 = vmatmul.mubr.msk.bf16.gmra.mrb[20].mxu1 %vm2758_vm1, %v20055_v32  ;;  %v20100_v32 = vld [vmem:[%s24434_s3 + $0x1c0] sm:$0xff]  }
 0x2df   :  { %17677 = vmatprep.mubr.msk.bf16.mxu1 %vm2758_vm1, %v20056_v35  ;;  %v20101_v35 = vld [vmem:[%s24434_s3 + $0x1c8] sm:$0xff]  }
 0x2e6   :  { %17678 = vmatmul.mubr.msk.bf16.gmra.mrb[24].mxu1 %vm2758_vm1, %v20057_v47  ;;  %v20102_v47 = vld [vmem:[%s24434_s3 + $0x1d0] sm:$0xff]  }
 0x2e7   :  { %17681 = vmatprep.mubr.msk.bf16.mxu1 %vm2758_vm1, %v20058_v48  ;;  %v20103_v48 = vld [vmem:[%s24434_s3 + $0x1d8] sm:$0xff]  }
 0x2ee   :  { %17682 = vmatmul.mubr.msk.bf16.gmra.mrb[28].mxu1 %vm2758_vm1, %v20059_v49  ;;  %v20104_v49 = vld [vmem:[%s24434_s3 + $0x1e0] sm:$0xff]  }
 0x2ef   :  { %17695 = vmatprep.mubr.msk.bf16.mxu1 %vm2758_vm1, %v20060_v52  ;;  %v20105_v52 = vld [vmem:[%s24434_s3 + $0x1e8] sm:$0xff]  }
 0x2f6   :  { %17696 = vmatmul.mubr.msk.bf16.vlgmr.msra.gmra.mrb[0].mxu1 %vm2758_vm1, %v20061_v53  ;;  %v20106_v53 = vld [vmem:[%s24434_s3 + $0x1f0] sm:$0xff]  }
 0x2f7   :  { %17728 = vmatpush3.bf16.msra.mxu1 %v3371_v3  ;;  %17699 = vmatprep.mubr.msk.bf16.mxu1 %vm2758_vm1, %v20062_v50  ;;  %v4188_v3 = vpop.permute.xlu0 %4187  ;;  %v20107_v50 = vld [vmem:[%s24434_s3 + $0x1f8] sm:$0xff]  }
 0x2f8   :  { %17729 = vmatprep.subr.bf16.mxu1 %v3373_v54 }
 0x2fb   :  { %17730 = vmatpush3.bf16.msra.mxu1 %v3373_v54  ;;  %v20108_v54 = vld [vmem:[%s24434_s3 + $0x80] sm:$0xff]  }
 0x2fc   :  { %17731 = vmatprep.subr.bf16.mxu1 %v3375_v51 }
 0x2fe   :  { %17700 = vmatmul.mubr.msk.bf16.gmra.mrb[4].mxu1 %vm2758_vm1, %v20063_v57  ;;  %v20109_v57 = vld [vmem:[%s24434_s3 + $0x88] sm:$0xff]  }
 0x2ff   :  { %17732 = vmatpush3.bf16.msra.mxu1 %v3375_v51  ;;  %17703 = vmatprep.mubr.msk.bf16.mxu1 %vm2758_vm1, %v20064_v55  ;;  %v20110_v51 = vld [vmem:[%s24434_s3 + $0x90] sm:$0xff]   ;;  %v20111_v55 = vld [vmem:[%s24434_s3 + $0x98] sm:$0xff]  }
 0x300   :  { %17733 = vmatprep.subr.bf16.mxu1 %v3377_v58 }
 0x303   :  { %17734 = vmatpush3.bf16.msra.mxu1 %v3377_v58  ;;  %v20112_v58 = vld [vmem:[%s24434_s3 + $0xa0] sm:$0xff]  }
 0x304   :  { %17735 = vmatprep.subr.bf16.mxu1 %v3379_v62 }
 0x306   :  { %17704 = vmatmul.mubr.msk.bf16.gmra.mrb[8].mxu1 %vm2758_vm1, %v20065_v25  ;;  %v21825_v25 = vpop.permute.xlu0 %4806 }
 0x307   :  { %17736 = vmatpush3.bf16.msra.mxu1 %v3379_v62  ;;  %17707 = vmatprep.mubr.msk.bf16.mxu1 %vm2758_vm1, %v20066_v63  ;;  %v20115_v62 = vld [vmem:[%s24434_s3 + $0xb8] sm:$0xff]  }
 0x308   :  { %17769 = vmatprep.subr.bf16.mxu1 %v3740_v0 }
 0x30e   :  { %17708 = vmatmul.mubr.msk.bf16.gmra.mrb[12].mxu1 %vm2758_vm1, %v20067_v18  ;;  %v5528_v18 = vld [vmem:[%s24435_s4 + $0x10] sm:$0xff] }
 0x30f   :  { %17711 = vmatprep.mubr.msk.bf16.mxu1 %vm2758_vm1, %v20068_v1  ;;  %v5529_v1 = vld [vmem:[%s24435_s4 + $0x18] sm:$0xff] }
 0x316   :  { %17712 = vmatmul.mubr.msk.bf16.gmra.mrb[16].mxu1 %vm2758_vm1, %v20069_v15  ;;  %v21989_v15 = vpack.c.bf16 %v5529_v1, %v5528_v18  ;;  %v20150_v18 = vld [vmem:[%s24434_s3 + $0x150] sm:$0xff]  }
 0x317   :  { %17715 = vmatprep.mubr.msk.bf16.mxu1 %vm2758_vm1, %v20070_v16  ;;  %v20117_v16 = vld [vmem:[%s24434_s3 + $0xc8] sm:$0xff]  }
 0x31e   :  { %17716 = vmatmul.mubr.msk.bf16.gmra.mrb[20].mxu1 %vm2758_vm1, %v20071_v17 }
 0x31f   :  { %17719 = vmatprep.mubr.msk.bf16.mxu1 %vm2758_vm1, %v20072_v26  ;;  %v20118_v26 = vld [vmem:[%s24434_s3 + $0xd0] sm:$0xff]  }
 0x326   :  { %17720 = vmatmul.mubr.msk.bf16.gmra.mrb[24].mxu1 %vm2758_vm1, %v20073_v31  ;;  %v20119_v31 = vld [vmem:[%s24434_s3 + $0xd8] sm:$0xff]  }
 0x327   :  { %17723 = vmatprep.mubr.msk.bf16.mxu1 %vm2758_vm1, %v20074_v56  ;;  %v20120_v56 = vld [vmem:[%s24434_s3 + $0xe0] sm:$0xff]  }
 0x32e   :  { %17724 = vmatmul.mubr.msk.bf16.gmra.mrb[28].mxu1 %vm2758_vm1, %v20075_v60  ;;  %v20121_v60 = vld [vmem:[%s24434_s3 + $0xe8] sm:$0xff]  }
 0x32f   :  { %17737 = vmatprep.mubr.msk.bf16.mxu1 %vm2758_vm1, %v20076_v61  ;;  %v20122_v61 = vld [vmem:[%s24434_s3 + $0xf0] sm:$0xff]  }
 0x336   :  { %17738 = vmatmul.mubr.msk.bf16.vlgmr.msra.gmra.mrb[0].mxu1 %vm2758_vm1, %v20077_v4  ;;  %v20123_v4 = vld [vmem:[%s24434_s3 + $0xf8] sm:$0xff]  }
 0x337   :  { %17770 = vmatpush3.bf16.msra.mxu1 %v3740_v0  ;;  %17741 = vmatprep.mubr.msk.bf16.mxu1 %vm2758_vm1, %v20078_v6  ;;  %v20116_v0 = vld [vmem:[%s24434_s3 + $0xc0] sm:$0xff]  }
 0x338   :  { %17771 = vmatprep.subr.bf16.mxu1 %v3742_v7  ;;  %v20124_v6 = vld [vmem:[%s24434_s3] sm:$0xff]  }
 0x33b   :  { %17772 = vmatpush3.bf16.msra.mxu1 %v3742_v7  ;;  %v20125_v7 = vld [vmem:[%s24434_s3 + $0x8] sm:$0xff]  }
 0x33c   :  { %17773 = vmatprep.subr.bf16.mxu1 %v3744_v9 }
 0x33e   :  { %17742 = vmatmul.mubr.msk.bf16.gmra.mrb[4].mxu1 %vm2758_vm1, %v20079_v8  ;;  %v20126_v8 = vld [vmem:[%s24434_s3 + $0x10] sm:$0xff]  }
 0x33f   :  { %17774 = vmatpush3.bf16.msra.mxu1 %v3744_v9  ;;  %17745 = vmatprep.mubr.msk.bf16.mxu1 %vm2758_vm1, %v20080_v10  ;;  %v4809_v9 = vpop.permute.xlu1 %4808  ;;  %v6816_v10 = vld [vmem:[%s24435_s4 + $0x40] sm:$0xff] }
 0x340   :  { %17775 = vmatprep.subr.bf16.mxu1 %v3746_v11 }
 0x343   :  { %17776 = vmatpush3.bf16.msra.mxu1 %v3746_v11  ;;  %v6817_v11 = vld [vmem:[%s24435_s4 + $0x48] sm:$0xff] }
 0x344   :  { %17777 = vmatprep.subr.bf16.mxu1 %v3748_v14 }
 0x346   :  { %17746 = vmatmul.mubr.msk.bf16.gmra.mrb[8].mxu1 %vm2758_vm1, %v20081_v13  ;;  %v20127_v13 = vld [vmem:[%s24434_s3 + $0x18] sm:$0xff]  }
 0x347   :  { %17778 = vmatpush3.bf16.msra.mxu1 %v3748_v14  ;;  %17749 = vmatprep.mubr.msk.bf16.mxu1 %vm2758_vm1, %v20082_v19  ;;  %v22045_v14 = vpack.c.bf16 %v6817_v11, %v6816_v10  ;;  %v4811_v19 = vpop.permute.xlu0 %4810 }
 0x348   :  { %17811 = vmatprep.subr.bf16.mxu1 %v4182_v24 }
 0x34e   :  { %17750 = vmatmul.mubr.msk.bf16.gmra.mrb[12].mxu1 %vm2758_vm1, %v20083_v28  ;;  %v4813_v28 = vpop.permute.xlu1 %4812 }
 0x34f   :  { %17753 = vmatprep.mubr.msk.bf16.mxu1 %vm2758_vm1, %v20084_v29  ;;  %v20129_v29 = vld [vmem:[%s24434_s3 + $0x28] sm:$0xff]  }
 0x356   :  { %17754 = vmatmul.mubr.msk.bf16.gmra.mrb[16].mxu1 %vm2758_vm1, %v20085_v34  ;;  %v4815_v34 = vpop.permute.xlu0 %4814 }
 0x357   :  { %17757 = vmatprep.mubr.msk.bf16.mxu1 %vm2758_vm1, %v20086_v36  ;;  %v20130_v36 = vld [vmem:[%s24434_s3 + $0x30] sm:$0xff]  }
 0x35e   :  { %17758 = vmatmul.mubr.msk.bf16.gmra.mrb[20].mxu1 %vm2758_vm1, %v20087_v37  ;;  %v5175_v37 = vpop.permute.xlu1 %5174 }
 0x35f   :  { %17761 = vmatprep.mubr.msk.bf16.mxu1 %vm2758_vm1, %v20088_v23  ;;  %v20131_v23 = vld [vmem:[%s24434_s3 + $0x38] sm:$0xff]  }
 0x366   :  { %17762 = vmatmul.mubr.msk.bf16.gmra.mrb[24].mxu1 %vm2758_vm1, %v20089_v39  ;;  %v20132_v39 = vld [vmem:[%s24434_s3 + $0x40] sm:$0xff]  }
 0x367   :  { %17765 = vmatprep.mubr.msk.bf16.mxu1 %vm2758_vm1, %v20090_v41  ;;  %v20133_v41 = vld [vmem:[%s24434_s3 + $0x48] sm:$0xff]  }
 0x36e   :  { %17766 = vmatmul.mubr.msk.bf16.gmra.mrb[28].mxu1 %vm2758_vm1, %v20091_v42  ;;  %v20134_v42 = vld [vmem:[%s24434_s3 + $0x50] sm:$0xff]  }
 0x36f   :  { %17779 = vmatprep.mubr.msk.bf16.mxu1 %vm2758_vm1, %v20092_v43  ;;  %v20135_v43 = vld [vmem:[%s24434_s3 + $0x58] sm:$0xff]  }
 0x376   :  { %17780 = vmatmul.mubr.msk.bf16.vlgmr.msra.gmra.mrb[0].mxu1 %vm2758_vm1, %v20093_v44  ;;  %v20136_v44 = vld [vmem:[%s24434_s3 + $0x60] sm:$0xff]  }
 0x377   :  { %17812 = vmatpush3.bf16.msra.mxu1 %v4182_v24  ;;  %17783 = vmatprep.mubr.msk.bf16.mxu1 %vm2758_vm1, %v20094_v45  ;;  %v20128_v24 = vld [vmem:[%s24434_s3 + $0x20] sm:$0xff]   ;;  %v20137_v45 = vld [vmem:[%s24434_s3 + $0x68] sm:$0xff]  }
 0x378   :  { %17813 = vmatprep.subr.bf16.mxu1 %v4184_v46 }
 0x37b   :  { %17814 = vmatpush3.bf16.msra.mxu1 %v4184_v46  ;;  %v20138_v46 = vld [vmem:[%s24434_s3 + $0x70] sm:$0xff]  }
 0x37c   :  { %17815 = vmatprep.subr.bf16.mxu1 %v4186_v40 }
 0x37e   :  { %17784 = vmatmul.mubr.msk.bf16.gmra.mrb[4].mxu1 %vm2758_vm1, %v20095_v2  ;;  %v20139_v2 = vld [vmem:[%s24434_s3 + $0x78] sm:$0xff]  }
 0x37f   :  { %17816 = vmatpush3.bf16.msra.mxu1 %v4186_v40  ;;  %17787 = vmatprep.mubr.msk.bf16.mxu1 %vm2758_vm1, %v20096_v59  ;;  %v20140_v40 = vld [vmem:[%s24434_s3 + $0x100] sm:$0xff]   ;;  %v20141_v59 = vld [vmem:[%s24434_s3 + $0x108] sm:$0xff]  }
 0x380   :  { %17817 = vmatprep.subr.bf16.mxu1 %v4188_v3 }
 0x383   :  { %17818 = vmatpush3.bf16.msra.mxu1 %v4188_v3  ;;  %v20142_v3 = vld [vmem:[%s24434_s3 + $0x110] sm:$0xff]  }
 0x384   :  { %17819 = vmatprep.subr.bf16.mxu1 %v4190_v21 }
 0x386   :  { %17788 = vmatmul.mubr.msk.bf16.gmra.mrb[8].mxu1 %vm2758_vm1, %v20097_v20  ;;  %v5177_v20 = vpop.permute.xlu0 %5176 }
 0x387   :  { %17820 = vmatpush3.bf16.msra.mxu1 %v4190_v21  ;;  %17791 = vmatprep.mubr.msk.bf16.mxu1 %vm2758_vm1, %v20098_v27  ;;  %v20143_v21 = vld [vmem:[%s24434_s3 + $0x118] sm:$0xff]   ;;  %v5179_v27 = vpop.permute.xlu1 %5178 }
 0x388   :  { %17853 = vmatprep.subr.bf16.mxu1 %v21472_v22 }
 0x38e   :  { %17792 = vmatmul.mubr.msk.bf16.gmra.mrb[12].mxu1 %vm2758_vm1, %v20099_v30  ;;  %v20144_v30 = vld [vmem:[%s24434_s3 + $0x120] sm:$0xff]  }
 0x38f   :  { %17795 = vmatprep.mubr.msk.bf16.mxu1 %vm2758_vm1, %v20100_v32  ;;  %v5181_v32 = vpop.permute.xlu0 %5180 }
 0x396   :  { %17796 = vmatmul.mubr.msk.bf16.gmra.mrb[16].mxu1 %vm2758_vm1, %v20101_v35  ;;  %v5594_v35 = vld [vmem:[%s24435_s4 + $0x20] sm:$0xff] }
 0x397   :  { %17799 = vmatprep.mubr.msk.bf16.mxu1 %vm2758_vm1, %v20102_v47  ;;  %v5595_v47 = vld [vmem:[%s24435_s4 + $0x28] sm:$0xff] }
 0x39e   :  { %17800 = vmatmul.mubr.msk.bf16.gmra.mrb[20].mxu1 %vm2758_vm1, %v20103_v48  ;;  %v20145_v48 = vld [vmem:[%s24434_s3 + $0x128] sm:$0xff]  }
 0x39f   :  { %17803 = vmatprep.mubr.msk.bf16.mxu1 %vm2758_vm1, %v20104_v49  ;;  %v5183_v49 = vpop.permute.xlu1 %5182 }
 0x3a6   :  { %17804 = vmatmul.mubr.msk.bf16.gmra.mrb[24].mxu1 %vm2758_vm1, %v20105_v52  ;;  %v20146_v52 = vld [vmem:[%s24434_s3 + $0x130] sm:$0xff]  }
 0x3a7   :  { %17807 = vmatprep.mubr.msk.bf16.mxu1 %vm2758_vm1, %v20106_v53  ;;  %v22129_v53 = vpack.c.bf16 %v5595_v47, %v5594_v35  ;;  %v20158_v35 = vld [vmem:[%s24434_s3 + $0x190] sm:$0xff]  }
 0x3ae   :  { %17808 = vmatmul.mubr.msk.bf16.gmra.mrb[28].mxu1 %vm2758_vm1, %v20107_v50 }
 0x3af   :  { %17821 = vmatprep.mubr.msk.bf16.mxu1 %vm2758_vm1, %v20108_v54 }
 0x3b6   :  { %17822 = vmatmul.mubr.msk.bf16.vlgmr.msra.gmra.mrb[32].mxu1 %vm2758_vm1, %v20109_v57  ;;  %v20147_v57 = vld [vmem:[%s24434_s3 + $0x138] sm:$0xff]  }
 0x3b7   :  { %17854 = vmatpush3.bf16.msra.mxu1 %v21472_v22  ;;  %17825 = vmatprep.mubr.msk.bf16.mxu1 %vm2758_vm1, %v20110_v51  ;;  %v20113_v22 = vld [vmem:[%s24434_s3 + $0xa8] sm:$0xff]  }
 0x3b8   :  { %17855 = vmatprep.subr.bf16.mxu1 %v21480_v5 }
 0x3bb   :  { %17856 = vmatpush3.bf16.msra.mxu1 %v21480_v5  ;;  %v20114_v5 = vld [vmem:[%s24434_s3 + $0xb0] sm:$0xff]  }
 0x3bc   :  { %17857 = vmatprep.subr.bf16.mxu1 %v21488_v12 }
 0x3be   :  { %17826 = vmatmul.mubr.msk.bf16.gmra.mrb[36].mxu1 %vm2758_vm1, %v20111_v55  ;;  %v20148_v55 = vld [vmem:[%s24434_s3 + $0x140] sm:$0xff]  }
 0x3bf   :  { %17858 = vmatpush3.bf16.msra.mxu1 %v21488_v12  ;;  %17829 = vmatprep.mubr.msk.bf16.mxu1 %vm2758_vm1, %v20112_v58  ;;  %v20435_v12 = vmov 0.0  }
 0x3c0   :  { %17859 = vmatprep.subr.bf16.mxu1 %v21494_v33  ;;  %2524 = vst.msk [vmem:[#allocation3 + $0x20] sm:$0xff] %vm2519_vm2, %v20435_v12  ;;  %2520 = vst.msk [vmem:[#allocation3] sm:$0xff] %vm2519_vm2, %v20435_v12 }
 0x3c1   :  { %2521 = vst.msk [vmem:[#allocation3 + $0x8] sm:$0xff] %vm2519_vm2, %v20435_v12  ;;  %2522 = vst.msk [vmem:[#allocation3 + $0x10] sm:$0xff] %vm2519_vm2, %v20435_v12 }
 0x3c2   :  { %2523 = vst.msk [vmem:[#allocation3 + $0x18] sm:$0xff] %vm2519_vm2, %v20435_v12  ;;  %2525 = vst.msk [vmem:[#allocation3 + $0x28] sm:$0xff] %vm2519_vm2, %v20435_v12 }
 0x3c3   :  { %17860 = vmatpush3.bf16.msra.mxu1 %v21494_v33  ;;  %2526 = vst.msk [vmem:[#allocation3 + $0x30] sm:$0xff] %vm2519_vm2, %v20435_v12  ;;  %2527 = vst.msk [vmem:[#allocation3 + $0x38] sm:$0xff] %vm2519_vm2, %v20435_v12  ;;  %v5526_v33 = vld [vmem:[%s24435_s4] sm:$0xff] }
 0x3c4   :  { %17861 = vmatprep.subr.bf16.mxu1 %v21499_v38  ;;  %2528 = vst.msk [vmem:[#allocation3 + $0x40] sm:$0xff] %vm2519_vm2, %v20435_v12  ;;  %2529 = vst.msk [vmem:[#allocation3 + $0x48] sm:$0xff] %vm2519_vm2, %v20435_v12 }
 0x3c5   :  { %2530 = vst.msk [vmem:[#allocation3 + $0x50] sm:$0xff] %vm2519_vm2, %v20435_v12  ;;  %2531 = vst.msk [vmem:[#allocation3 + $0x58] sm:$0xff] %vm2519_vm2, %v20435_v12 }
 0x3c6   :  { %17830 = vmatmul.mubr.msk.bf16.gmra.mrb[40].mxu1 %vm2758_vm1, %v20113_v22  ;;  %2532 = vst.msk [vmem:[#allocation3 + $0x60] sm:$0xff] %vm2519_vm2, %v20435_v12  ;;  %2533 = vst.msk [vmem:[#allocation3 + $0x68] sm:$0xff] %vm2519_vm2, %v20435_v12  ;;  %v6818_v22 = vld [vmem:[%s24435_s4 + $0x50] sm:$0xff] }
 0x3c7   :  { %17862 = vmatpush3.bf16.msra.mxu1 %v21499_v38  ;;  %17833 = vmatprep.mubr.msk.bf16.mxu1 %vm2758_vm1, %v20114_v5  ;;  %2534 = vst.msk [vmem:[#allocation3 + $0x70] sm:$0xff] %vm2519_vm2, %v20435_v12  ;;  %2535 = vst.msk [vmem:[#allocation3 + $0x78] sm:$0xff] %vm2519_vm2, %v20435_v12  ;;  %v5527_v38 = vld [vmem:[%s24435_s4 + $0x8] sm:$0xff]  ;;  %v6819_v5 = vld [vmem:[%s24435_s4 + $0x58] sm:$0xff] }
 0x3c8   :  { %17895 = vmatprep.subr.bf16.mxu1 %v21825_v25  ;;  %2536 = vst.msk [vmem:[#allocation3 + $0x80] sm:$0xff] %vm2519_vm2, %v20435_v12  ;;  %2537 = vst.msk [vmem:[#allocation3 + $0x88] sm:$0xff] %vm2519_vm2, %v20435_v12  ;;  %v21975_v63 = vpack.c.bf16 %v5527_v38, %v5526_v33  ;;  %v5462_v17 = vld [vmem:[#allocation3 + $0x1] sm:$0xff] }
 0x3c9   :  { %2538 = vst.msk [vmem:[#allocation3 + $0x90] sm:$0xff] %vm2519_vm2, %v20435_v12  ;;  %2539 = vst.msk [vmem:[#allocation3 + $0x98] sm:$0xff] %vm2519_vm2, %v20435_v12  ;;  %18091 = vmatprep.mubr.msk.f32.mxu0 %vm2519_vm2, %v5462_v17 }
 0x3ca   :  { %2540 = vst.msk [vmem:[#allocation3 + $0xa0] sm:$0xff] %vm2519_vm2, %v20435_v12  ;;  %2541 = vst.msk [vmem:[#allocation3 + $0xa8] sm:$0xff] %vm2519_vm2, %v20435_v12  ;;  %19104 = vmatprep.subr.bf16.mxu0 %v21975_v63 }
 0x3cb   :  { %2542 = vst.msk [vmem:[#allocation3 + $0xb0] sm:$0xff] %vm2519_vm2, %v20435_v12  ;;  %2543 = vst.msk [vmem:[#allocation3 + $0xb8] sm:$0xff] %vm2519_vm2, %v20435_v12  ;;  %19106 = vmatpush3.bf16.msra.mxu0 %v21975_v63 }
 0x3cc   :  { %2544 = vst.msk [vmem:[#allocation3 + $0xc0] sm:$0xff] %vm2519_vm2, %v20435_v12  ;;  %2545 = vst.msk [vmem:[#allocation3 + $0xc8] sm:$0xff] %vm2519_vm2, %v20435_v12  ;;  %19108 = vmatprep.subr.bf16.mxu0 %v21989_v15 }
 0x3cd   :  { %2546 = vst.msk [vmem:[#allocation3 + $0xd0] sm:$0xff] %vm2519_vm2, %v20435_v12  ;;  %2547 = vst.msk [vmem:[#allocation3 + $0xd8] sm:$0xff] %vm2519_vm2, %v20435_v12 }
 0x3ce   :  { %2548 = vst.msk [vmem:[#allocation3 + $0xe0] sm:$0xff] %vm2519_vm2, %v20435_v12  ;;  %2549 = vst.msk [vmem:[#allocation3 + $0xe8] sm:$0xff] %vm2519_vm2, %v20435_v12  ;;  %17834 = vmatmul.mubr.msk.bf16.gmra.mrb[44].mxu1 %vm2758_vm1, %v20115_v62  ;;  %v20149_v62 = vld [vmem:[%s24434_s3 + $0x148] sm:$0xff]  }
 0x3cf   :  { %2550 = vst.msk [vmem:[#allocation3 + $0xf0] sm:$0xff] %vm2519_vm2, %v20435_v12  ;;  %2551 = vst.msk [vmem:[#allocation3 + $0xf8] sm:$0xff] %vm2519_vm2, %v20435_v12  ;;  %17837 = vmatprep.mubr.msk.bf16.mxu1 %vm2758_vm1, %v20116_v0  ;;  %19110 = vmatpush3.bf16.msra.mxu0 %v21989_v15 }
 0x3d0   :  { %2552 = vst.msk [vmem:[#allocation3 + $0x100] sm:$0xff] %vm2519_vm2, %v20435_v12  ;;  %2553 = vst.msk [vmem:[#allocation3 + $0x108] sm:$0xff] %vm2519_vm2, %v20435_v12  ;;  %19112 = vmatprep.subr.bf16.mxu0 %v22045_v14 }
 0x3d1   :  { %2554 = vst.msk [vmem:[#allocation3 + $0x110] sm:$0xff] %vm2519_vm2, %v20435_v12  ;;  %2555 = vst.msk [vmem:[#allocation3 + $0x118] sm:$0xff] %vm2519_vm2, %v20435_v12 }
 0x3d2   :  { %2556 = vst.msk [vmem:[#allocation3 + $0x120] sm:$0xff] %vm2519_vm2, %v20435_v12  ;;  %2557 = vst.msk [vmem:[#allocation3 + $0x128] sm:$0xff] %vm2519_vm2, %v20435_v12 }
 0x3d3   :  { %2558 = vst.msk [vmem:[#allocation3 + $0x130] sm:$0xff] %vm2519_vm2, %v20435_v12  ;;  %2559 = vst.msk [vmem:[#allocation3 + $0x138] sm:$0xff] %vm2519_vm2, %v20435_v12 }
 0x3d4   :  { %2560 = vst.msk [vmem:[#allocation3 + $0x140] sm:$0xff] %vm2519_vm2, %v20435_v12  ;;  %2561 = vst.msk [vmem:[#allocation3 + $0x148] sm:$0xff] %vm2519_vm2, %v20435_v12 }
 0x3d5   :  { %2562 = vst.msk [vmem:[#allocation3 + $0x150] sm:$0xff] %vm2519_vm2, %v20435_v12  ;;  %2563 = vst.msk [vmem:[#allocation3 + $0x158] sm:$0xff] %vm2519_vm2, %v20435_v12 }
 0x3d6   :  { %2564 = vst.msk [vmem:[#allocation3 + $0x160] sm:$0xff] %vm2519_vm2, %v20435_v12  ;;  %2565 = vst.msk [vmem:[#allocation3 + $0x168] sm:$0xff] %vm2519_vm2, %v20435_v12  ;;  %17838 = vmatmul.mubr.msk.bf16.gmra.mrb[48].mxu1 %vm2758_vm1, %v20117_v16 }
 0x3d7   :  { %2566 = vst.msk [vmem:[#allocation3 + $0x170] sm:$0xff] %vm2519_vm2, %v20435_v12  ;;  %2567 = vst.msk [vmem:[#allocation3 + $0x178] sm:$0xff] %vm2519_vm2, %v20435_v12  ;;  %17841 = vmatprep.mubr.msk.bf16.mxu1 %vm2758_vm1, %v20118_v26 }
 0x3d8   :  { %2568 = vst.msk [vmem:[#allocation3 + $0x180] sm:$0xff] %vm2519_vm2, %v20435_v12  ;;  %2569 = vst.msk [vmem:[#allocation3 + $0x188] sm:$0xff] %vm2519_vm2, %v20435_v12 }
 0x3d9   :  { %2570 = vst.msk [vmem:[#allocation3 + $0x190] sm:$0xff] %vm2519_vm2, %v20435_v12  ;;  %2571 = vst.msk [vmem:[#allocation3 + $0x198] sm:$0xff] %vm2519_vm2, %v20435_v12 }
 0x3da   :  { %2572 = vst.msk [vmem:[#allocation3 + $0x1a0] sm:$0xff] %vm2519_vm2, %v20435_v12  ;;  %2573 = vst.msk [vmem:[#allocation3 + $0x1a8] sm:$0xff] %vm2519_vm2, %v20435_v12 }
 0x3db   :  { %2574 = vst.msk [vmem:[#allocation3 + $0x1b0] sm:$0xff] %vm2519_vm2, %v20435_v12  ;;  %2575 = vst.msk [vmem:[#allocation3 + $0x1b8] sm:$0xff] %vm2519_vm2, %v20435_v12 }
 0x3dc   :  { %2576 = vst.msk [vmem:[#allocation3 + $0x1c0] sm:$0xff] %vm2519_vm2, %v20435_v12  ;;  %2577 = vst.msk [vmem:[#allocation3 + $0x1c8] sm:$0xff] %vm2519_vm2, %v20435_v12 }
 0x3dd   :  { %2578 = vst.msk [vmem:[#allocation3 + $0x1d0] sm:$0xff] %vm2519_vm2, %v20435_v12  ;;  %2579 = vst.msk [vmem:[#allocation3 + $0x1d8] sm:$0xff] %vm2519_vm2, %v20435_v12 }
 0x3de   :  { %2580 = vst.msk [vmem:[#allocation3 + $0x1e0] sm:$0xff] %vm2519_vm2, %v20435_v12  ;;  %2581 = vst.msk [vmem:[#allocation3 + $0x1e8] sm:$0xff] %vm2519_vm2, %v20435_v12  ;;  %17842 = vmatmul.mubr.msk.bf16.gmra.mrb[52].mxu1 %vm2758_vm1, %v20119_v31 }
 0x3df   :  { %2582 = vst.msk [vmem:[#allocation3 + $0x1f0] sm:$0xff] %vm2519_vm2, %v20435_v12  ;;  %2583 = vst.msk [vmem:[#allocation3 + $0x1f8] sm:$0xff] %vm2519_vm2, %v20435_v12  ;;  %17845 = vmatprep.mubr.msk.bf16.mxu1 %vm2758_vm1, %v20120_v56 }
 0x3e0   :  { %2584 = vst.msk [vmem:[#allocation3 + $0x200] sm:$0xff] %vm2519_vm2, %v20435_v12  ;;  %2585 = vst.msk [vmem:[#allocation3 + $0x208] sm:$0xff] %vm2519_vm2, %v20435_v12 }
 0x3e1   :  { %2586 = vst.msk [vmem:[#allocation3 + $0x210] sm:$0xff] %vm2519_vm2, %v20435_v12  ;;  %2587 = vst.msk [vmem:[#allocation3 + $0x218] sm:$0xff] %vm2519_vm2, %v20435_v12  ;;  %v19115_v12 = vpack.c.bf16 %v6819_v5, %v6818_v22  ;;  %v20159_v5 = vld [vmem:[%s24434_s3 + $0x198] sm:$0xff]  }
 0x3e6   :  { %17846 = vmatmul.mubr.msk.bf16.gmra.mrb[56].mxu1 %vm2758_vm1, %v20121_v60 }
 0x3e7   :  { %17849 = vmatprep.mubr.msk.bf16.mxu1 %vm2758_vm1, %v20122_v61  ;;  %v20151_v61 = vld [vmem:[%s24434_s3 + $0x158] sm:$0xff]  }
 0x3ee   :  { %17850 = vmatmul.mubr.msk.bf16.gmra.mrb[60].mxu1 %vm2758_vm1, %v20123_v4 }
 0x3ef   :  { %17863 = vmatprep.mubr.msk.bf16.mxu1 %vm2758_vm1, %v20124_v6  ;;  %v20152_v6 = vld [vmem:[%s24434_s3 + $0x160] sm:$0xff]  }
 0x3f6   :  { %17864 = vmatmul.mubr.msk.bf16.vlgmr.msra.gmra.mrb[32].mxu1 %vm2758_vm1, %v20125_v7 }
 0x3f7   :  { %17896 = vmatpush3.bf16.msra.mxu1 %v21825_v25  ;;  %17867 = vmatprep.mubr.msk.bf16.mxu1 %vm2758_vm1, %v20126_v8 }
 0x3f8   :  { %17897 = vmatprep.subr.bf16.mxu1 %v4809_v9 }
 0x3fb   :  { %17898 = vmatpush3.bf16.msra.mxu1 %v4809_v9 }
 0x3fc   :  { %17899 = vmatprep.subr.bf16.mxu1 %v4811_v19 }
 0x3fe   :  { %17868 = vmatmul.mubr.msk.bf16.gmra.mrb[36].mxu1 %vm2758_vm1, %v20127_v13 }
 0x3ff   :  { %17900 = vmatpush3.bf16.msra.mxu1 %v4811_v19  ;;  %17871 = vmatprep.mubr.msk.bf16.mxu1 %vm2758_vm1, %v20128_v24  ;;  %v20153_v19 = vld [vmem:[%s24434_s3 + $0x168] sm:$0xff]  }
 0x400   :  { %17901 = vmatprep.subr.bf16.mxu1 %v4813_v28 }
 0x403   :  { %17902 = vmatpush3.bf16.msra.mxu1 %v4813_v28  ;;  %v20154_v28 = vld [vmem:[%s24434_s3 + $0x170] sm:$0xff]  }
 0x404   :  { %17903 = vmatprep.subr.bf16.mxu1 %v4815_v34 }
 0x406   :  { %17872 = vmatmul.mubr.msk.bf16.gmra.mrb[40].mxu1 %vm2758_vm1, %v20129_v29 }
 0x407   :  { %17904 = vmatpush3.bf16.msra.mxu1 %v4815_v34  ;;  %17875 = vmatprep.mubr.msk.bf16.mxu1 %vm2758_vm1, %v20130_v36 }
 0x408   :  { %17937 = vmatprep.subr.bf16.mxu1 %v5175_v37 }
 0x40e   :  { %17876 = vmatmul.mubr.msk.bf16.gmra.mrb[44].mxu1 %vm2758_vm1, %v20131_v23 }
 0x40f   :  { %17879 = vmatprep.mubr.msk.bf16.mxu1 %vm2758_vm1, %v20132_v39 }
 0x416   :  { %17880 = vmatmul.mubr.msk.bf16.gmra.mrb[48].mxu1 %vm2758_vm1, %v20133_v41 }
 0x417   :  { %17883 = vmatprep.mubr.msk.bf16.mxu1 %vm2758_vm1, %v20134_v42  ;;  %v20155_v42 = vld [vmem:[%s24434_s3 + $0x178] sm:$0xff]  }
 0x41e   :  { %17884 = vmatmul.mubr.msk.bf16.gmra.mrb[52].mxu1 %vm2758_vm1, %v20135_v43 }
 0x41f   :  { %17887 = vmatprep.mubr.msk.bf16.mxu1 %vm2758_vm1, %v20136_v44  ;;  %v20156_v44 = vld [vmem:[%s24434_s3 + $0x180] sm:$0xff]  }
 0x426   :  { %17888 = vmatmul.mubr.msk.bf16.gmra.mrb[56].mxu1 %vm2758_vm1, %v20137_v45 }
 0x427   :  { %17891 = vmatprep.mubr.msk.bf16.mxu1 %vm2758_vm1, %v20138_v46 }
 0x42e   :  { %17892 = vmatmul.mubr.msk.bf16.gmra.mrb[60].mxu1 %vm2758_vm1, %v20139_v2 }
 0x42f   :  { %17905 = vmatprep.mubr.msk.bf16.mxu1 %vm2758_vm1, %v20140_v40 }
 0x436   :  { %17906 = vmatmul.mubr.msk.bf16.vlgmr.msra.gmra.mrb[32].mxu1 %vm2758_vm1, %v20141_v59 }
 0x437   :  { %17938 = vmatpush3.bf16.msra.mxu1 %v5175_v37  ;;  %17909 = vmatprep.mubr.msk.bf16.mxu1 %vm2758_vm1, %v20142_v3  ;;  %v20157_v3 = vld [vmem:[%s24434_s3 + $0x188] sm:$0xff]  }
 0x438   :  { %17939 = vmatprep.subr.bf16.mxu1 %v5177_v20 }
 0x43b   :  { %17940 = vmatpush3.bf16.msra.mxu1 %v5177_v20 }
 0x43c   :  { %17941 = vmatprep.subr.bf16.mxu1 %v5179_v27 }
 0x43e   :  { %17910 = vmatmul.mubr.msk.bf16.gmra.mrb[36].mxu1 %vm2758_vm1, %v20143_v21 }
 0x43f   :  { %17942 = vmatpush3.bf16.msra.mxu1 %v5179_v27  ;;  %17913 = vmatprep.mubr.msk.bf16.mxu1 %vm2758_vm1, %v20144_v30  ;;  %v5596_v27 = vld [vmem:[%s24435_s4 + $0x30] sm:$0xff]  ;;  %v5597_v30 = vld [vmem:[%s24435_s4 + $0x38] sm:$0xff] }
 0x440   :  { %17943 = vmatprep.subr.bf16.mxu1 %v5181_v32 }
 0x443   :  { %17944 = vmatpush3.bf16.msra.mxu1 %v5181_v32 }
 0x444   :  { %17945 = vmatprep.subr.bf16.mxu1 %v5183_v49 }
 0x446   :  { %17914 = vmatmul.mubr.msk.bf16.gmra.mrb[40].mxu1 %vm2758_vm1, %v20145_v48 }
 0x447   :  { %17946 = vmatpush3.bf16.msra.mxu1 %v5183_v49  ;;  %17917 = vmatprep.mubr.msk.bf16.mxu1 %vm2758_vm1, %v20146_v52  ;;  %v19099_v49 = vpack.c.bf16 %v5597_v30, %v5596_v27 }
 0x448   :  { %19096 = vmatprep.subr.bf16.mxu1 %v22129_v53 }
 0x449   :  { %v17781_v50 = vpop.f32.mrb[0].mxu1 }
 0x44a   :  { %3997 = vst.msk [vmem:[#allocation3 + $0x20] sm:$0xff] %vm2519_vm2, %v17781_v50  ;;  %v3836_v54 = vpop.f32.mrb[1].mxu1  ;;  %v7525_v50 = vld [vmem:[%s24435_s4 + $0x60] sm:$0xff] }
 0x44b   :  { %3995 = vst.msk [vmem:[#allocation3 + $0x10] sm:$0xff] %vm2519_vm2, %v3836_v54  ;;  %v17782_v51 = vpop.f32.mrb[2].mxu1  ;;  %v7526_v54 = vld [vmem:[%s24435_s4 + $0x68] sm:$0xff] }
 0x44c   :  { %3998 = vst.msk [vmem:[#allocation3 + $0x28] sm:$0xff] %vm2519_vm2, %v17782_v51  ;;  %v3839_v58 = vpop.f32.mrb[3].mxu1  ;;  %v19119_v51 = vpack.c.bf16 %v7526_v54, %v7525_v50 }
 0x44d   :  { %3996 = vst.msk [vmem:[#allocation3 + $0x18] sm:$0xff] %vm2519_vm2, %v3839_v58 }
 0x44e   :  { %17918 = vmatmul.mubr.msk.bf16.gmra.mrb[44].mxu1 %vm2758_vm1, %v20147_v57 }
 0x44f   :  { %17921 = vmatprep.mubr.msk.bf16.mxu1 %vm2758_vm1, %v20148_v55 }
 0x451   :  { %v17785_v25 = vpop.f32.mrb[4].mxu1 }
 0x452   :  { %4001 = vst.msk [vmem:[#allocation3 + $0x40] sm:$0xff] %vm2519_vm2, %v17785_v25  ;;  %v3852_v33 = vpop.f32.mrb[5].mxu1  ;;  %v5463_v38 = vld [vmem:[#allocation3 + $0x9] sm:$0xff] }
 0x453   :  { %3999 = vst.msk [vmem:[#allocation3 + $0x30] sm:$0xff] %vm2519_vm2, %v3852_v33  ;;  %v17786_v0 = vpop.f32.mrb[6].mxu1  ;;  %18092 = vmatmul.mubr.msk.f32.vlgmr.msra.gmra.mrb[20].mxu0 %vm2519_vm2, %v5463_v38  ;;  %v5466_v26 = vld [vmem:[#allocation3 + $0x21] sm:$0xff] }
 0x454   :  { %4002 = vst.msk [vmem:[#allocation3 + $0x48] sm:$0xff] %vm2519_vm2, %v17786_v0  ;;  %v3855_v1 = vpop.f32.mrb[7].mxu1  ;;  %v5464_v16 = vld [vmem:[#allocation3 + $0x11] sm:$0xff]  ;;  %19114 = vmatpush3.bf16.msra.mxu0 %v22045_v14  ;;  %v5465_v17 = vld [vmem:[#allocation3 + $0x19] sm:$0xff]  ;;  %v6752_v38 = vld [vmem:[#allocation3 + $0x3] sm:$0xff] }
 0x455   :  { %4000 = vst.msk [vmem:[#allocation3 + $0x38] sm:$0xff] %vm2519_vm2, %v3855_v1  ;;  %18094 = vmatprep.mubr.msk.f32.mxu0 %vm2519_vm2, %v5464_v16  ;;  %19116 = vmatprep.subr.bf16.mxu0 %v19115_v12  ;;  %v6753_v1 = vld [vmem:[#allocation3 + $0xb] sm:$0xff] }
 0x456   :  { %17922 = vmatmul.mubr.msk.bf16.gmra.mrb[48].mxu1 %vm2758_vm1, %v20149_v62  ;;  %v20161_v16 = vld [vmem:[%s24434_s3 + $0x1a8] sm:$0xff]  }
 0x457   :  { %18095 = vmatmul.mubr.msk.f32.gmra.mrb[22].mxu0 %vm2519_vm2, %v5465_v17  ;;  %17925 = vmatprep.mubr.msk.bf16.mxu1 %vm2758_vm1, %v20150_v18 }
 0x458   :  { %18097 = vmatprep.mubr.msk.f32.mxu0 %vm2519_vm2, %v5466_v26  ;;  %19118 = vmatpush3.bf16.msra.mxu0 %v19115_v12  ;;  %v6754_v26 = vld [vmem:[#allocation3 + $0x13] sm:$0xff] }
 0x459   :  { %v17789_v31 = vpop.f32.mrb[8].mxu1  ;;  %19120 = vmatprep.subr.bf16.mxu0 %v19119_v51 }
 0x45a   :  { %4005 = vst.msk [vmem:[#allocation3 + $0x60] sm:$0xff] %vm2519_vm2, %v17789_v31  ;;  %v3868_v56 = vpop.f32.mrb[9].mxu1  ;;  %v5467_v60 = vld [vmem:[#allocation3 + $0x29] sm:$0xff] }
 0x45b   :  { %4003 = vst.msk [vmem:[#allocation3 + $0x50] sm:$0xff] %vm2519_vm2, %v3868_v56  ;;  %v17790_v4 = vpop.f32.mrb[10].mxu1  ;;  %18098 = vmatmul.mubr.msk.f32.gmra.mrb[24].mxu0 %vm2519_vm2, %v5467_v60  ;;  %v5470_v10 = vld [vmem:[#allocation3 + $0x41] sm:$0xff]  ;;  %v20162_v31 = vld [vmem:[%s24434_s3 + $0x1b0] sm:$0xff]  }
 0x45c   :  { %4006 = vst.msk [vmem:[#allocation3 + $0x68] sm:$0xff] %vm2519_vm2, %v17790_v4  ;;  %v3871_v7 = vpop.f32.mrb[11].mxu1  ;;  %v5468_v8 = vld [vmem:[#allocation3 + $0x31] sm:$0xff]  ;;  %v5469_v9 = vld [vmem:[#allocation3 + $0x39] sm:$0xff] }
 0x45d   :  { %4004 = vst.msk [vmem:[#allocation3 + $0x58] sm:$0xff] %vm2519_vm2, %v3871_v7  ;;  %18100 = vmatprep.mubr.msk.f32.mxu0 %vm2519_vm2, %v5468_v8  ;;  %v6755_v60 = vld [vmem:[#allocation3 + $0x1b] sm:$0xff]  ;;  %v6757_v4 = vld [vmem:[#allocation3 + $0x2b] sm:$0xff]  ;;  %v6758_v7 = vld [vmem:[#allocation3 + $0x33] sm:$0xff] }
 0x45e   :  { %17926 = vmatmul.mubr.msk.bf16.gmra.mrb[52].mxu1 %vm2758_vm1, %v20151_v61  ;;  %v6756_v61 = vld [vmem:[#allocation3 + $0x23] sm:$0xff] }
 0x45f   :  { %18101 = vmatmul.mubr.msk.f32.gmra.mrb[26].mxu0 %vm2519_vm2, %v5469_v9  ;;  %17929 = vmatprep.mubr.msk.bf16.mxu1 %vm2758_vm1, %v20152_v6  ;;  %v20163_v6 = vld [vmem:[%s24434_s3 + $0x1b8] sm:$0xff]   ;;  %v20164_v8 = vld [vmem:[%s24434_s3 + $0x1c0] sm:$0xff]  }
 0x460   :  { %18103 = vmatprep.mubr.msk.f32.mxu0 %vm2519_vm2, %v5470_v10  ;;  %v6759_v9 = vld [vmem:[#allocation3 + $0x3b] sm:$0xff]  ;;  %v6760_v10 = vld [vmem:[#allocation3 + $0x43] sm:$0xff] }
 0x461   :  { %v17793_v11 = vpop.f32.mrb[12].mxu1 }
 0x462   :  { %4009 = vst.msk [vmem:[#allocation3 + $0x80] sm:$0xff] %vm2519_vm2, %v17793_v11  ;;  %v3884_v13 = vpop.f32.mrb[13].mxu1  ;;  %v5471_v14 = vld [vmem:[#allocation3 + $0x49] sm:$0xff] }
 0x463   :  { %4007 = vst.msk [vmem:[#allocation3 + $0x70] sm:$0xff] %vm2519_vm2, %v3884_v13  ;;  %v17794_v24 = vpop.f32.mrb[14].mxu1  ;;  %18104 = vmatmul.mubr.msk.f32.gmra.mrb[28].mxu0 %vm2519_vm2, %v5471_v14  ;;  %v5474_v37 = vld [vmem:[#allocation3 + $0x61] sm:$0xff]  ;;  %v6761_v11 = vld [vmem:[#allocation3 + $0x4b] sm:$0xff] }
 0x464   :  { %4010 = vst.msk [vmem:[#allocation3 + $0x88] sm:$0xff] %vm2519_vm2, %v17794_v24  ;;  %v3887_v29 = vpop.f32.mrb[15].mxu1  ;;  %v5472_v34 = vld [vmem:[#allocation3 + $0x51] sm:$0xff]  ;;  %v5473_v36 = vld [vmem:[#allocation3 + $0x59] sm:$0xff]  ;;  %v20165_v13 = vld [vmem:[%s24434_s3 + $0x1c8] sm:$0xff]  }
 0x465   :  { %4008 = vst.msk [vmem:[#allocation3 + $0x78] sm:$0xff] %vm2519_vm2, %v3887_v29  ;;  %18106 = vmatprep.mubr.msk.f32.mxu0 %vm2519_vm2, %v5472_v34  ;;  %v6762_v14 = vld [vmem:[#allocation3 + $0x53] sm:$0xff]  ;;  %v6763_v24 = vld [vmem:[#allocation3 + $0x5b] sm:$0xff] }
 0x466   :  { %17930 = vmatmul.mubr.msk.bf16.gmra.mrb[56].mxu1 %vm2758_vm1, %v20153_v19  ;;  %v20166_v19 = vld [vmem:[%s24434_s3 + $0x1d0] sm:$0xff]   ;;  %v20167_v34 = vld [vmem:[%s24434_s3 + $0x1d8] sm:$0xff]  }
 0x467   :  { %18107 = vmatmul.mubr.msk.f32.gmra.mrb[30].mxu0 %vm2519_vm2, %v5473_v36  ;;  %17933 = vmatprep.mubr.msk.bf16.mxu1 %vm2758_vm1, %v20154_v28  ;;  %v6764_v28 = vld [vmem:[#allocation3 + $0x63] sm:$0xff] }
 0x468   :  { %18109 = vmatprep.mubr.msk.f32.mxu0 %vm2519_vm2, %v5474_v37  ;;  %v20168_v37 = vld [vmem:[%s24434_s3 + $0x1e0] sm:$0xff]  }
 0x469   :  { %v17797_v23 = vpop.f32.mrb[16].mxu1 }
 0x46a   :  { %4013 = vst.msk [vmem:[#allocation3 + $0xa0] sm:$0xff] %vm2519_vm2, %v17797_v23  ;;  %v3900_v39 = vpop.f32.mrb[17].mxu1  ;;  %v5475_v41 = vld [vmem:[#allocation3 + $0x69] sm:$0xff] }
 0x46b   :  { %4011 = vst.msk [vmem:[#allocation3 + $0x90] sm:$0xff] %vm2519_vm2, %v3900_v39  ;;  %v17798_v43 = vpop.f32.mrb[18].mxu1  ;;  %18110 = vmatmul.mubr.msk.f32.gmra.mrb[32].mxu0 %vm2519_vm2, %v5475_v41  ;;  %v5478_v40 = vld [vmem:[#allocation3 + $0x81] sm:$0xff]  ;;  %v6765_v29 = vld [vmem:[#allocation3 + $0x6b] sm:$0xff] }
 0x46c   :  { %4014 = vst.msk [vmem:[#allocation3 + $0xa8] sm:$0xff] %vm2519_vm2, %v17798_v43  ;;  %v3903_v45 = vpop.f32.mrb[19].mxu1  ;;  %v5476_v46 = vld [vmem:[#allocation3 + $0x71] sm:$0xff]  ;;  %v5477_v2 = vld [vmem:[#allocation3 + $0x79] sm:$0xff]  ;;  %v6768_v39 = vld [vmem:[#allocation3 + $0x83] sm:$0xff] }
 0x46d   :  { %4012 = vst.msk [vmem:[#allocation3 + $0x98] sm:$0xff] %vm2519_vm2, %v3903_v45  ;;  %18112 = vmatprep.mubr.msk.f32.mxu0 %vm2519_vm2, %v5476_v46  ;;  %v6766_v36 = vld [vmem:[#allocation3 + $0x73] sm:$0xff]  ;;  %v6767_v23 = vld [vmem:[#allocation3 + $0x7b] sm:$0xff] }
 0x46e   :  { %17934 = vmatmul.mubr.msk.bf16.gmra.mrb[60].mxu1 %vm2758_vm1, %v20155_v42  ;;  %v20169_v42 = vld [vmem:[%s24434_s3 + $0x1e8] sm:$0xff]  }
 0x46f   :  { %18113 = vmatmul.mubr.msk.f32.gmra.mrb[34].mxu0 %vm2519_vm2, %v5477_v2  ;;  %17947 = vmatprep.mubr.msk.bf16.mxu1 %vm2758_vm1, %v20156_v44  ;;  %v20170_v44 = vld [vmem:[%s24434_s3 + $0x1f0] sm:$0xff]  }
 0x470   :  { %18115 = vmatprep.mubr.msk.f32.mxu0 %vm2519_vm2, %v5478_v40  ;;  %v20171_v40 = vld [vmem:[%s24434_s3 + $0x1f8] sm:$0xff]  }
 0x471   :  { %v17801_v59 = vpop.f32.mrb[20].mxu1 }
 0x472   :  { %4017 = vst.msk [vmem:[#allocation3 + $0xc0] sm:$0xff] %vm2519_vm2, %v17801_v59  ;;  %v3916_v20 = vpop.f32.mrb[21].mxu1  ;;  %v5479_v21 = vld [vmem:[#allocation3 + $0x89] sm:$0xff] }
 0x473   :  { %4015 = vst.msk [vmem:[#allocation3 + $0xb0] sm:$0xff] %vm2519_vm2, %v3916_v20  ;;  %v17802_v32 = vpop.f32.mrb[22].mxu1  ;;  %18116 = vmatmul.mubr.msk.f32.gmra.mrb[36].mxu0 %vm2519_vm2, %v5479_v21  ;;  %v5482_v57 = vld [vmem:[#allocation3 + $0xa1] sm:$0xff]  ;;  %v6769_v41 = vld [vmem:[#allocation3 + $0x8b] sm:$0xff] }
 0x474   :  { %4018 = vst.msk [vmem:[#allocation3 + $0xc8] sm:$0xff] %vm2519_vm2, %v17802_v32  ;;  %v3919_v47 = vpop.f32.mrb[23].mxu1  ;;  %v5480_v48 = vld [vmem:[#allocation3 + $0x91] sm:$0xff]  ;;  %v5481_v52 = vld [vmem:[#allocation3 + $0x99] sm:$0xff]  ;;  %v6772_v46 = vld [vmem:[#allocation3 + $0xa3] sm:$0xff] }
 0x475   :  { %4016 = vst.msk [vmem:[#allocation3 + $0xb8] sm:$0xff] %vm2519_vm2, %v3919_v47  ;;  %18118 = vmatprep.mubr.msk.f32.mxu0 %vm2519_vm2, %v5480_v48  ;;  %v6770_v43 = vld [vmem:[#allocation3 + $0x93] sm:$0xff]  ;;  %v6771_v45 = vld [vmem:[#allocation3 + $0x9b] sm:$0xff]  ;;  %v5531_v32 = vld [vmem:[#allocation3 + $0xa] sm:$0xff] }
 0x476   :  { %17948 = vmatmul.mubr.msk.bf16.vlgmr.msra.gmra.mrb[32].mxu1 %vm2758_vm1, %v20157_v3  ;;  %v5530_v3 = vld [vmem:[#allocation3 + $0x2] sm:$0xff] }
 0x477   :  { %18119 = vmatmul.mubr.msk.f32.gmra.mrb[38].mxu0 %vm2519_vm2, %v5481_v52  ;;  %17951 = vmatprep.mubr.msk.bf16.mxu1 %vm2758_vm1, %v20158_v35  ;;  %v5532_v35 = vld [vmem:[#allocation3 + $0x12] sm:$0xff]  ;;  %v5534_v52 = vld [vmem:[#allocation3 + $0x22] sm:$0xff] }
 0x478   :  { %18121 = vmatprep.mubr.msk.f32.mxu0 %vm2519_vm2, %v5482_v57  ;;  %19098 = vmatpush3.bf16.msra.mxu1 %v22129_v53  ;;  %v20160_v53 = vld [vmem:[%s24434_s3 + $0x1a0] sm:$0xff]   ;;  %v5535_v57 = vld [vmem:[#allocation3 + $0x2a] sm:$0xff] }
 0x479   :  { %v17805_v55 = vpop.f32.mrb[24].mxu1  ;;  %19100 = vmatprep.subr.bf16.mxu1 %v19099_v49 }
 0x47a   :  { %4021 = vst.msk [vmem:[#allocation3 + $0xe0] sm:$0xff] %vm2519_vm2, %v17805_v55  ;;  %v3932_v58 = vpop.f32.mrb[25].mxu1  ;;  %v5483_v22 = vld [vmem:[#allocation3 + $0xa9] sm:$0xff] }
 0x47b   :  { %4019 = vst.msk [vmem:[#allocation3 + $0xd0] sm:$0xff] %vm2519_vm2, %v3932_v58  ;;  %v17806_v25 = vpop.f32.mrb[26].mxu1  ;;  %18122 = vmatmul.mubr.msk.f32.gmra.mrb[40].mxu0 %vm2519_vm2, %v5483_v22  ;;  %v6773_v2 = vld [vmem:[#allocation3 + $0xab] sm:$0xff]  ;;  %v6776_v21 = vld [vmem:[#allocation3 + $0xc3] sm:$0xff]  ;;  %v5537_v58 = vld [vmem:[#allocation3 + $0x3a] sm:$0xff] }
 0x47c   :  { %4022 = vst.msk [vmem:[#allocation3 + $0xe8] sm:$0xff] %vm2519_vm2, %v17806_v25  ;;  %v3935_v12 = vpop.f32.mrb[27].mxu1  ;;  %v5484_v33 = vld [vmem:[#allocation3 + $0xb1] sm:$0xff]  ;;  %19102 = vmatpush3.bf16.msra.mxu1 %v19099_v49  ;;  %v5485_v62 = vld [vmem:[#allocation3 + $0xb9] sm:$0xff]  ;;  %v5538_v22 = vld [vmem:[#allocation3 + $0x42] sm:$0xff] }
 0x47d   :  { %4020 = vst.msk [vmem:[#allocation3 + $0xd8] sm:$0xff] %vm2519_vm2, %v3935_v12  ;;  %18124 = vmatprep.mubr.msk.f32.mxu0 %vm2519_vm2, %v5484_v33  ;;  %19167 = vmatprep.subr.bf16.mxu1 %v21975_v63  ;;  %v6774_v59 = vld [vmem:[#allocation3 + $0xb3] sm:$0xff]  ;;  %v6775_v20 = vld [vmem:[#allocation3 + $0xbb] sm:$0xff]  ;;  %v5543_v12 = vld [vmem:[#allocation3 + $0x6a] sm:$0xff] }
 0x47e   :  { %17952 = vmatmul.mubr.msk.bf16.gmra.mrb[36].mxu1 %vm2758_vm1, %v20159_v5  ;;  %v5533_v49 = vld [vmem:[#allocation3 + $0x1a] sm:$0xff]  ;;  %v5539_v5 = vld [vmem:[#allocation3 + $0x4a] sm:$0xff]  ;;  %v5544_v33 = vld [vmem:[#allocation3 + $0x72] sm:$0xff] }
 0x47f   :  { %18125 = vmatmul.mubr.msk.f32.gmra.mrb[42].mxu0 %vm2519_vm2, %v5485_v62  ;;  %17955 = vmatprep.mubr.msk.bf16.mxu1 %vm2758_vm1, %v20160_v53  ;;  %v5541_v25 = vld [vmem:[#allocation3 + $0x5a] sm:$0xff]  ;;  %v5542_v53 = vld [vmem:[#allocation3 + $0x62] sm:$0xff] }
 0x480   :  { %18195 = vmatprep.mubr.msk.f32.mxu0 %vm2519_vm2, %v6752_v38  ;;  %v5545_v38 = vld [vmem:[#allocation3 + $0x7a] sm:$0xff]  ;;  %v5546_v62 = vld [vmem:[#allocation3 + $0x82] sm:$0xff] }
 0x481   :  { %v17809_v0 = vpop.f32.mrb[28].mxu1 }
 0x482   :  { %4025 = vst.msk [vmem:[#allocation3 + $0x100] sm:$0xff] %vm2519_vm2, %v17809_v0  ;;  %v3948_v18 = vpop.f32.mrb[29].mxu1  ;;  %v6777_v27 = vld [vmem:[#allocation3 + $0xcb] sm:$0xff] }
 0x483   :  { %4023 = vst.msk [vmem:[#allocation3 + $0xf0] sm:$0xff] %vm2519_vm2, %v3948_v18  ;;  %v17810_v17 = vpop.f32.mrb[30].mxu1  ;;  %18196 = vmatmul.mubr.msk.f32.vlgmr.msra.gmra.mrb[20].mxu0 %vm2519_vm2, %v6753_v1  ;;  %v6780_v48 = vld [vmem:[#allocation3 + $0xe3] sm:$0xff]  ;;  %v5548_v18 = vld [vmem:[#allocation3 + $0x92] sm:$0xff]  ;;  %v5549_v1 = vld [vmem:[#allocation3 + $0x9a] sm:$0xff] }
 0x484   :  { %4026 = vst.msk [vmem:[#allocation3 + $0x108] sm:$0xff] %vm2519_vm2, %v17810_v17  ;;  %v3951_v56 = vpop.f32.mrb[31].mxu1  ;;  %18198 = vmatprep.mubr.msk.f32.mxu0 %vm2519_vm2, %v6754_v26  ;;  %19122 = vmatpush3.bf16.msra.mxu0 %v19119_v51  ;;  %v6778_v30 = vld [vmem:[#allocation3 + $0xd3] sm:$0xff]  ;;  %v6779_v47 = vld [vmem:[#allocation3 + $0xdb] sm:$0xff]  ;;  %v5547_v0 = vld [vmem:[#allocation3 + $0x8a] sm:$0xff] }
 0x485   :  { %4024 = vst.msk [vmem:[#allocation3 + $0xf8] sm:$0xff] %vm2519_vm2, %v3951_v56  ;;  %v5551_v17 = vld [vmem:[#allocation3 + $0xaa] sm:$0xff]  ;;  %v5552_v26 = vld [vmem:[#allocation3 + $0xb2] sm:$0xff]  ;;  %v5554_v56 = vld [vmem:[#allocation3 + $0xc2] sm:$0xff] }
 0x486   :  { %17956 = vmatmul.mubr.msk.bf16.gmra.mrb[40].mxu1 %vm2758_vm1, %v20161_v16  ;;  %v5550_v16 = vld [vmem:[#allocation3 + $0xa2] sm:$0xff] }
 0x487   :  { %18199 = vmatmul.mubr.msk.f32.gmra.mrb[22].mxu0 %vm2519_vm2, %v6755_v60  ;;  %17959 = vmatprep.mubr.msk.bf16.mxu1 %vm2758_vm1, %v20162_v31  ;;  %v5553_v31 = vld [vmem:[#allocation3 + $0xba] sm:$0xff]  ;;  %v5555_v60 = vld [vmem:[#allocation3 + $0xca] sm:$0xff] }
 0x488   :  { %18201 = vmatprep.mubr.msk.f32.mxu0 %vm2519_vm2, %v6756_v61  ;;  %v5556_v61 = vld [vmem:[#allocation3 + $0xd2] sm:$0xff] }
 0x48a   :  { %v6781_v50 = vld [vmem:[#allocation3 + $0xeb] sm:$0xff] }
 0x48b   :  { %18202 = vmatmul.mubr.msk.f32.gmra.mrb[24].mxu0 %vm2519_vm2, %v6757_v4  ;;  %v6784_v55 = vld [vmem:[#allocation3 + $0x103] sm:$0xff]  ;;  %v5557_v4 = vld [vmem:[#allocation3 + $0xda] sm:$0xff] }
 0x48c   :  { %18204 = vmatprep.mubr.msk.f32.mxu0 %vm2519_vm2, %v6758_v7  ;;  %v6782_v54 = vld [vmem:[#allocation3 + $0xf3] sm:$0xff]  ;;  %v6783_v51 = vld [vmem:[#allocation3 + $0xfb] sm:$0xff]  ;;  %v5559_v7 = vld [vmem:[#allocation3 + $0xea] sm:$0xff] }
 0x48e   :  { %17960 = vmatmul.mubr.msk.bf16.gmra.mrb[44].mxu1 %vm2758_vm1, %v20163_v6  ;;  %v5558_v6 = vld [vmem:[#allocation3 + $0xe2] sm:$0xff] }
 0x48f   :  { %18205 = vmatmul.mubr.msk.f32.gmra.mrb[26].mxu0 %vm2519_vm2, %v6759_v9  ;;  %17963 = vmatprep.mubr.msk.bf16.mxu1 %vm2758_vm1, %v20164_v8  ;;  %v5560_v8 = vld [vmem:[#allocation3 + $0xf2] sm:$0xff]  ;;  %v5561_v9 = vld [vmem:[#allocation3 + $0xfa] sm:$0xff] }
 0x490   :  { %18207 = vmatprep.mubr.msk.f32.mxu0 %vm2519_vm2, %v6760_v10  ;;  %v5562_v10 = vld [vmem:[#allocation3 + $0x102] sm:$0xff] }
 0x493   :  { %18208 = vmatmul.mubr.msk.f32.gmra.mrb[28].mxu0 %vm2519_vm2, %v6761_v11  ;;  %v7527_v11 = vld [vmem:[%s24435_s4 + $0x70] sm:$0xff] }
 0x494   :  { %18210 = vmatprep.mubr.msk.f32.mxu0 %vm2519_vm2, %v6762_v14 }
 0x496   :  { %17964 = vmatmul.mubr.msk.bf16.gmra.mrb[48].mxu1 %vm2758_vm1, %v20165_v13  ;;  %v7528_v13 = vld [vmem:[%s24435_s4 + $0x78] sm:$0xff] }
 0x497   :  { %18211 = vmatmul.mubr.msk.f32.gmra.mrb[30].mxu0 %vm2519_vm2, %v6763_v24  ;;  %17967 = vmatprep.mubr.msk.bf16.mxu1 %vm2758_vm1, %v20166_v19  ;;  %v19123_v14 = vpack.c.bf16 %v7528_v13, %v7527_v11  ;;  %v8234_v19 = vld [vmem:[%s24435_s4 + $0x80] sm:$0xff]  ;;  %v8235_v24 = vld [vmem:[%s24435_s4 + $0x88] sm:$0xff] }
 0x498   :  { %18213 = vmatprep.mubr.msk.f32.mxu0 %vm2519_vm2, %v6764_v28  ;;  %v22391_v28 = vpack.c.bf16 %v8235_v24, %v8234_v19 }
 0x499   :  { %19124 = vmatprep.subr.bf16.mxu0 %v19123_v14 }
 0x49a   :  { %19126 = vmatpush3.bf16.msra.mxu0 %v19123_v14 }
 0x49b   :  { %18214 = vmatmul.mubr.msk.f32.gmra.mrb[32].mxu0 %vm2519_vm2, %v6765_v29  ;;  %19128 = vmatprep.subr.bf16.mxu0 %v22391_v28 }
 0x49c   :  { %18216 = vmatprep.mubr.msk.f32.mxu0 %vm2519_vm2, %v6766_v36 }
 0x49e   :  { %17968 = vmatmul.mubr.msk.bf16.gmra.mrb[52].mxu1 %vm2758_vm1, %v20167_v34 }
 0x49f   :  { %18217 = vmatmul.mubr.msk.f32.gmra.mrb[34].mxu0 %vm2519_vm2, %v6767_v23  ;;  %17971 = vmatprep.mubr.msk.bf16.mxu1 %vm2758_vm1, %v20168_v37 }
 0x4a0   :  { %18219 = vmatprep.mubr.msk.f32.mxu0 %vm2519_vm2, %v6768_v39 }
 0x4a3   :  { %18220 = vmatmul.mubr.msk.f32.gmra.mrb[36].mxu0 %vm2519_vm2, %v6769_v41 }
 0x4a4   :  { %18222 = vmatprep.mubr.msk.f32.mxu0 %vm2519_vm2, %v6770_v43 }
 0x4a6   :  { %17972 = vmatmul.mubr.msk.bf16.gmra.mrb[56].mxu1 %vm2758_vm1, %v20169_v42 }
 0x4a7   :  { %18223 = vmatmul.mubr.msk.f32.gmra.mrb[38].mxu0 %vm2519_vm2, %v6771_v45  ;;  %17975 = vmatprep.mubr.msk.bf16.mxu1 %vm2758_vm1, %v20170_v44 }
 0x4a8   :  { %18225 = vmatprep.mubr.msk.f32.mxu0 %vm2519_vm2, %v6772_v46 }
 0x4ab   :  { %18226 = vmatmul.mubr.msk.f32.gmra.mrb[40].mxu0 %vm2519_vm2, %v6773_v2 }
 0x4ac   :  { %18228 = vmatprep.mubr.msk.f32.mxu0 %vm2519_vm2, %v6774_v59 }
 0x4ae   :  { %17976 = vmatmul.mubr.msk.bf16.gmra.mrb[60].mxu1 %vm2758_vm1, %v20171_v40 }
 0x4af   :  { %18229 = vmatmul.mubr.msk.f32.gmra.mrb[42].mxu0 %vm2519_vm2, %v6775_v20  ;;  %17987 = vmatprep.mubr.msk.f32.mxu1 %vm2519_vm2, %v5530_v3 }
 0x4b0   :  { %18231 = vmatprep.mubr.msk.f32.mxu0 %vm2519_vm2, %v6776_v21 }
 0x4b3   :  { %18232 = vmatmul.mubr.msk.f32.gmra.mrb[44].mxu0 %vm2519_vm2, %v6777_v27 }
 0x4b4   :  { %18234 = vmatprep.mubr.msk.f32.mxu0 %vm2519_vm2, %v6778_v30 }
 0x4b6   :  { %17988 = vmatmul.mubr.msk.f32.vlgmr.msra.gmra.mrb[64].mxu1 %vm2519_vm2, %v5531_v32 }
 0x4b7   :  { %17990 = vmatprep.mubr.msk.f32.mxu1 %vm2519_vm2, %v5532_v35  ;;  %18235 = vmatmul.mubr.msk.f32.gmra.mrb[46].mxu0 %vm2519_vm2, %v6779_v47 }
 0x4b8   :  { %18237 = vmatprep.mubr.msk.f32.mxu0 %vm2519_vm2, %v6780_v48  ;;  %19169 = vmatpush3.bf16.msra.mxu1 %v21975_v63  ;;  %v5536_v63 = vld [vmem:[#allocation3 + $0x32] sm:$0xff] }
 0x4b9   :  { %19168 = vmatprep.subr.bf16.mxu1 %v21989_v15 }
 0x4ba   :  { %17991 = vmatmul.mubr.msk.f32.gmra.mrb[66].mxu1 %vm2519_vm2, %v5533_v49 }
 0x4bb   :  { %17993 = vmatprep.mubr.msk.f32.mxu1 %vm2519_vm2, %v5534_v52  ;;  %18238 = vmatmul.mubr.msk.f32.gmra.mrb[48].mxu0 %vm2519_vm2, %v6781_v50 }
 0x4bc   :  { %18240 = vmatprep.mubr.msk.f32.mxu0 %vm2519_vm2, %v6782_v54  ;;  %19170 = vmatpush3.bf16.msra.mxu1 %v21989_v15  ;;  %v5540_v15 = vld [vmem:[#allocation3 + $0x52] sm:$0xff] }
 0x4be   :  { %17994 = vmatmul.mubr.msk.f32.gmra.mrb[68].mxu1 %vm2519_vm2, %v5535_v57 }
 0x4bf   :  { %17996 = vmatprep.mubr.msk.f32.mxu1 %vm2519_vm2, %v5536_v63  ;;  %18241 = vmatmul.mubr.msk.f32.gmra.mrb[50].mxu0 %vm2519_vm2, %v6783_v51 }
 0x4c0   :  { %18243 = vmatprep.mubr.msk.f32.mxu0 %vm2519_vm2, %v6784_v55 }
 0x4c2   :  { %17997 = vmatmul.mubr.msk.f32.gmra.mrb[70].mxu1 %vm2519_vm2, %v5537_v58 }
 0x4c3   :  { %17999 = vmatprep.mubr.msk.f32.mxu1 %vm2519_vm2, %v5538_v22 }
 0x4c6   :  { %18000 = vmatmul.mubr.msk.f32.gmra.mrb[72].mxu1 %vm2519_vm2, %v5539_v5 }
 0x4c7   :  { %18002 = vmatprep.mubr.msk.f32.mxu1 %vm2519_vm2, %v5540_v15 }
 0x4ca   :  { %18003 = vmatmul.mubr.msk.f32.gmra.mrb[74].mxu1 %vm2519_vm2, %v5541_v25 }
 0x4cb   :  { %18005 = vmatprep.mubr.msk.f32.mxu1 %vm2519_vm2, %v5542_v53 }
 0x4ce   :  { %18006 = vmatmul.mubr.msk.f32.gmra.mrb[76].mxu1 %vm2519_vm2, %v5543_v12 }
 0x4cf   :  { %18008 = vmatprep.mubr.msk.f32.mxu1 %vm2519_vm2, %v5544_v33 }
 0x4d2   :  { %18009 = vmatmul.mubr.msk.f32.gmra.mrb[78].mxu1 %vm2519_vm2, %v5545_v38 }
 0x4d3   :  { %18011 = vmatprep.mubr.msk.f32.mxu1 %vm2519_vm2, %v5546_v62 }
 0x4d6   :  { %18012 = vmatmul.mubr.msk.f32.gmra.mrb[80].mxu1 %vm2519_vm2, %v5547_v0 }
 0x4d7   :  { %18014 = vmatprep.mubr.msk.f32.mxu1 %vm2519_vm2, %v5548_v18 }
 0x4da   :  { %18015 = vmatmul.mubr.msk.f32.gmra.mrb[82].mxu1 %vm2519_vm2, %v5549_v1 }
 0x4db   :  { %18017 = vmatprep.mubr.msk.f32.mxu1 %vm2519_vm2, %v5550_v16 }
 0x4de   :  { %18018 = vmatmul.mubr.msk.f32.gmra.mrb[84].mxu1 %vm2519_vm2, %v5551_v17 }
 0x4df   :  { %18020 = vmatprep.mubr.msk.f32.mxu1 %vm2519_vm2, %v5552_v26 }
 0x4e2   :  { %18021 = vmatmul.mubr.msk.f32.gmra.mrb[86].mxu1 %vm2519_vm2, %v5553_v31 }
 0x4e3   :  { %18023 = vmatprep.mubr.msk.f32.mxu1 %vm2519_vm2, %v5554_v56 }
 0x4e6   :  { %18024 = vmatmul.mubr.msk.f32.gmra.mrb[88].mxu1 %vm2519_vm2, %v5555_v60 }
 0x4e7   :  { %18026 = vmatprep.mubr.msk.f32.mxu1 %vm2519_vm2, %v5556_v61 }
 0x4ea   :  { %18027 = vmatmul.mubr.msk.f32.gmra.mrb[90].mxu1 %vm2519_vm2, %v5557_v4 }
 0x4eb   :  { %18029 = vmatprep.mubr.msk.f32.mxu1 %vm2519_vm2, %v5558_v6 }
 0x4ee   :  { %18030 = vmatmul.mubr.msk.f32.gmra.mrb[92].mxu1 %vm2519_vm2, %v5559_v7 }
 0x4ef   :  { %18032 = vmatprep.mubr.msk.f32.mxu1 %vm2519_vm2, %v5560_v8 }
 0x4f2   :  { %18033 = vmatmul.mubr.msk.f32.gmra.mrb[94].mxu1 %vm2519_vm2, %v5561_v9 }
 0x4f3   :  { %18035 = vmatprep.mubr.msk.f32.mxu1 %vm2519_vm2, %v5562_v10 }
 0x549   :  { %v17949_v29 = vpop.f32.mrb[32].mxu1 }
 0x54a   :  { %5432 = vst.msk [vmem:[#allocation3 + $0x120] sm:$0xff] %vm2519_vm2, %v17949_v29  ;;  %v5271_v34 = vpop.f32.mrb[33].mxu1 }
 0x54b   :  { %5430 = vst.msk [vmem:[#allocation3 + $0x110] sm:$0xff] %vm2519_vm2, %v5271_v34  ;;  %v17950_v36 = vpop.f32.mrb[34].mxu1 }
 0x54c   :  { %5433 = vst.msk [vmem:[#allocation3 + $0x128] sm:$0xff] %vm2519_vm2, %v17950_v36  ;;  %v5274_v37 = vpop.f32.mrb[35].mxu1 }
 0x54d   :  { %5431 = vst.msk [vmem:[#allocation3 + $0x118] sm:$0xff] %vm2519_vm2, %v5274_v37 }
 0x551   :  { %v17953_v23 = vpop.f32.mrb[36].mxu1 }
 0x552   :  { %5436 = vst.msk [vmem:[#allocation3 + $0x140] sm:$0xff] %vm2519_vm2, %v17953_v23  ;;  %v5287_v39 = vpop.f32.mrb[37].mxu1  ;;  %v5563_v41 = vld [vmem:[#allocation3 + $0x10a] sm:$0xff] }
 0x553   :  { %v6785_v42 = vld [vmem:[#allocation3 + $0x10b] sm:$0xff]  ;;  %5434 = vst.msk [vmem:[#allocation3 + $0x130] sm:$0xff] %vm2519_vm2, %v5287_v39  ;;  %v17954_v43 = vpop.f32.mrb[38].mxu1  ;;  %18036 = vmatmul.mubr.msk.f32.gmra.mrb[96].mxu1 %vm2519_vm2, %v5563_v41  ;;  %v5566_v59 = vld [vmem:[#allocation3 + $0x122] sm:$0xff] }
 0x554   :  { %18244 = vmatmul.mubr.msk.f32.gmra.mrb[52].mxu0 %vm2519_vm2, %v6785_v42  ;;  %5437 = vst.msk [vmem:[#allocation3 + $0x148] sm:$0xff] %vm2519_vm2, %v17954_v43  ;;  %v5290_v44 = vpop.f32.mrb[39].mxu1  ;;  %v5564_v45 = vld [vmem:[#allocation3 + $0x112] sm:$0xff]  ;;  %v5565_v2 = vld [vmem:[#allocation3 + $0x11a] sm:$0xff]  ;;  %v6788_v3 = vld [vmem:[#allocation3 + $0x123] sm:$0xff] }
 0x555   :  { %v6786_v46 = vld [vmem:[#allocation3 + $0x113] sm:$0xff]  ;;  %5435 = vst.msk [vmem:[#allocation3 + $0x138] sm:$0xff] %vm2519_vm2, %v5290_v44  ;;  %18038 = vmatprep.mubr.msk.f32.mxu1 %vm2519_vm2, %v5564_v45  ;;  %v6787_v40 = vld [vmem:[#allocation3 + $0x11b] sm:$0xff] }
 0x556   :  { %18246 = vmatprep.mubr.msk.f32.mxu0 %vm2519_vm2, %v6786_v46 }
 0x557   :  { %18039 = vmatmul.mubr.msk.f32.gmra.mrb[98].mxu1 %vm2519_vm2, %v5565_v2 }
 0x558   :  { %18247 = vmatmul.mubr.msk.f32.gmra.mrb[54].mxu0 %vm2519_vm2, %v6787_v40  ;;  %18041 = vmatprep.mubr.msk.f32.mxu1 %vm2519_vm2, %v5566_v59 }
 0x559   :  { %18249 = vmatprep.mubr.msk.f32.mxu0 %vm2519_vm2, %v6788_v3  ;;  %v17957_v20 = vpop.f32.mrb[40].mxu1 }
 0x55a   :  { %5440 = vst.msk [vmem:[#allocation3 + $0x160] sm:$0xff] %vm2519_vm2, %v17957_v20  ;;  %v5303_v21 = vpop.f32.mrb[41].mxu1  ;;  %v5567_v27 = vld [vmem:[#allocation3 + $0x12a] sm:$0xff] }
 0x55b   :  { %v6789_v30 = vld [vmem:[#allocation3 + $0x12b] sm:$0xff]  ;;  %5438 = vst.msk [vmem:[#allocation3 + $0x150] sm:$0xff] %vm2519_vm2, %v5303_v21  ;;  %v17958_v32 = vpop.f32.mrb[42].mxu1  ;;  %18042 = vmatmul.mubr.msk.f32.gmra.mrb[100].mxu1 %vm2519_vm2, %v5567_v27  ;;  %v5570_v50 = vld [vmem:[#allocation3 + $0x142] sm:$0xff] }
 0x55c   :  { %18250 = vmatmul.mubr.msk.f32.gmra.mrb[56].mxu0 %vm2519_vm2, %v6789_v30  ;;  %5441 = vst.msk [vmem:[#allocation3 + $0x168] sm:$0xff] %vm2519_vm2, %v17958_v32  ;;  %v5306_v35 = vpop.f32.mrb[43].mxu1  ;;  %v5568_v47 = vld [vmem:[#allocation3 + $0x132] sm:$0xff]  ;;  %v5569_v49 = vld [vmem:[#allocation3 + $0x13a] sm:$0xff]  ;;  %v6792_v54 = vld [vmem:[#allocation3 + $0x143] sm:$0xff] }
 0x55d   :  { %v6790_v48 = vld [vmem:[#allocation3 + $0x133] sm:$0xff]  ;;  %5439 = vst.msk [vmem:[#allocation3 + $0x158] sm:$0xff] %vm2519_vm2, %v5306_v35  ;;  %18044 = vmatprep.mubr.msk.f32.mxu1 %vm2519_vm2, %v5568_v47  ;;  %v6791_v52 = vld [vmem:[#allocation3 + $0x13b] sm:$0xff] }
 0x55e   :  { %18252 = vmatprep.mubr.msk.f32.mxu0 %vm2519_vm2, %v6790_v48 }
 0x55f   :  { %18045 = vmatmul.mubr.msk.f32.gmra.mrb[102].mxu1 %vm2519_vm2, %v5569_v49 }
 0x560   :  { %18253 = vmatmul.mubr.msk.f32.gmra.mrb[58].mxu0 %vm2519_vm2, %v6791_v52  ;;  %18047 = vmatprep.mubr.msk.f32.mxu1 %vm2519_vm2, %v5570_v50 }
 0x561   :  { %18255 = vmatprep.mubr.msk.f32.mxu0 %vm2519_vm2, %v6792_v54  ;;  %v17961_v57 = vpop.f32.mrb[44].mxu1 }
 0x562   :  { %5444 = vst.msk [vmem:[#allocation3 + $0x180] sm:$0xff] %vm2519_vm2, %v17961_v57  ;;  %v5319_v63 = vpop.f32.mrb[45].mxu1  ;;  %v5571_v51 = vld [vmem:[#allocation3 + $0x14a] sm:$0xff] }
 0x563   :  { %v6793_v55 = vld [vmem:[#allocation3 + $0x14b] sm:$0xff]  ;;  %5442 = vst.msk [vmem:[#allocation3 + $0x170] sm:$0xff] %vm2519_vm2, %v5319_v63  ;;  %v17962_v58 = vpop.f32.mrb[46].mxu1  ;;  %18048 = vmatmul.mubr.msk.f32.gmra.mrb[104].mxu1 %vm2519_vm2, %v5571_v51  ;;  %v5574_v12 = vld [vmem:[#allocation3 + $0x162] sm:$0xff] }
 0x564   :  { %18256 = vmatmul.mubr.msk.f32.gmra.mrb[60].mxu0 %vm2519_vm2, %v6793_v55  ;;  %5445 = vst.msk [vmem:[#allocation3 + $0x188] sm:$0xff] %vm2519_vm2, %v17962_v58  ;;  %v5322_v22 = vpop.f32.mrb[47].mxu1  ;;  %v5572_v5 = vld [vmem:[#allocation3 + $0x152] sm:$0xff]  ;;  %v5573_v25 = vld [vmem:[#allocation3 + $0x15a] sm:$0xff]  ;;  %v6796_v33 = vld [vmem:[#allocation3 + $0x163] sm:$0xff] }
 0x565   :  { %v6794_v15 = vld [vmem:[#allocation3 + $0x153] sm:$0xff]  ;;  %5443 = vst.msk [vmem:[#allocation3 + $0x178] sm:$0xff] %vm2519_vm2, %v5322_v22  ;;  %18050 = vmatprep.mubr.msk.f32.mxu1 %vm2519_vm2, %v5572_v5  ;;  %v6795_v53 = vld [vmem:[#allocation3 + $0x15b] sm:$0xff] }
 0x566   :  { %18258 = vmatprep.mubr.msk.f32.mxu0 %vm2519_vm2, %v6794_v15  ;;  %v7461_v15 = vld [vmem:[#allocation3 + $0xf] sm:$0xff] }
 0x567   :  { %18051 = vmatmul.mubr.msk.f32.gmra.mrb[106].mxu1 %vm2519_vm2, %v5573_v25  ;;  %v22496_v25 = vld [vmem:[#allocation3 + $0xc1] sm:$0xff] }
 0x568   :  { %18259 = vmatmul.mubr.msk.f32.gmra.mrb[62].mxu0 %vm2519_vm2, %v6795_v53  ;;  %18053 = vmatprep.mubr.msk.f32.mxu1 %vm2519_vm2, %v5574_v12  ;;  %v8236_v53 = vld [vmem:[%s24435_s4 + $0x90] sm:$0xff]  ;;  %v8237_v12 = vld [vmem:[%s24435_s4 + $0x98] sm:$0xff] }
 0x569   :  { %18261 = vmatprep.mubr.msk.f32.mxu0 %vm2519_vm2, %v6796_v33  ;;  %v17965_v38 = vpop.f32.mrb[48].mxu1 }
 0x56a   :  { %5448 = vst.msk [vmem:[#allocation3 + $0x1a0] sm:$0xff] %vm2519_vm2, %v17965_v38  ;;  %v5335_v62 = vpop.f32.mrb[49].mxu1  ;;  %v5575_v0 = vld [vmem:[#allocation3 + $0x16a] sm:$0xff] }
 0x56b   :  { %v6797_v18 = vld [vmem:[#allocation3 + $0x16b] sm:$0xff]  ;;  %5446 = vst.msk [vmem:[#allocation3 + $0x190] sm:$0xff] %vm2519_vm2, %v5335_v62  ;;  %v17966_v1 = vpop.f32.mrb[50].mxu1  ;;  %18054 = vmatmul.mubr.msk.f32.gmra.mrb[108].mxu1 %vm2519_vm2, %v5575_v0  ;;  %v5578_v60 = vld [vmem:[#allocation3 + $0x182] sm:$0xff]  ;;  %v7462_v0 = vld [vmem:[#allocation3 + $0x17] sm:$0xff] }
 0x56c   :  { %18262 = vmatmul.mubr.msk.f32.gmra.mrb[64].mxu0 %vm2519_vm2, %v6797_v18  ;;  %5449 = vst.msk [vmem:[#allocation3 + $0x1a8] sm:$0xff] %vm2519_vm2, %v17966_v1  ;;  %v5338_v16 = vpop.f32.mrb[51].mxu1  ;;  %v5576_v17 = vld [vmem:[#allocation3 + $0x172] sm:$0xff]  ;;  %v5577_v31 = vld [vmem:[#allocation3 + $0x17a] sm:$0xff]  ;;  %v6800_v61 = vld [vmem:[#allocation3 + $0x183] sm:$0xff]  ;;  %v19131_v18 = vpack.c.bf16 %v8237_v12, %v8236_v53 }
 0x56d   :  { %v6798_v26 = vld [vmem:[#allocation3 + $0x173] sm:$0xff]  ;;  %5447 = vst.msk [vmem:[#allocation3 + $0x198] sm:$0xff] %vm2519_vm2, %v5338_v16  ;;  %18056 = vmatprep.mubr.msk.f32.mxu1 %vm2519_vm2, %v5576_v17  ;;  %v6799_v56 = vld [vmem:[#allocation3 + $0x17b] sm:$0xff]  ;;  %v22511_v62 = vld [vmem:[#allocation3 + $0xc9] sm:$0xff] }
 0x56e   :  { %18264 = vmatprep.mubr.msk.f32.mxu0 %vm2519_vm2, %v6798_v26  ;;  %v22516_v1 = vld [vmem:[#allocation3 + $0xd1] sm:$0xff]  ;;  %v7463_v16 = vld [vmem:[#allocation3 + $0x1f] sm:$0xff]  ;;  %v7480_v12 = vld [vmem:[#allocation3 + $0xa7] sm:$0xff] }
 0x56f   :  { %18057 = vmatmul.mubr.msk.f32.gmra.mrb[110].mxu1 %vm2519_vm2, %v5577_v31  ;;  %v22526_v31 = vld [vmem:[#allocation3 + $0xd9] sm:$0xff] }
 0x570   :  { %18265 = vmatmul.mubr.msk.f32.gmra.mrb[66].mxu0 %vm2519_vm2, %v6799_v56  ;;  %18059 = vmatprep.mubr.msk.f32.mxu1 %vm2519_vm2, %v5578_v60  ;;  %v7464_v56 = vld [vmem:[#allocation3 + $0x27] sm:$0xff]  ;;  %v22638_v53 = vld [vmem:[#allocation3 + $0x159] sm:$0xff] }
 0x571   :  { %18267 = vmatprep.mubr.msk.f32.mxu0 %vm2519_vm2, %v6800_v61  ;;  %v17969_v4 = vpop.f32.mrb[52].mxu1  ;;  %v22531_v60 = vld [vmem:[#allocation3 + $0xe1] sm:$0xff]  ;;  %v7465_v61 = vld [vmem:[#allocation3 + $0x2f] sm:$0xff] }
 0x572   :  { %5452 = vst.msk [vmem:[#allocation3 + $0x1c0] sm:$0xff] %vm2519_vm2, %v17969_v4  ;;  %v5351_v6 = vpop.f32.mrb[53].mxu1  ;;  %v5579_v7 = vld [vmem:[#allocation3 + $0x18a] sm:$0xff] }
 0x573   :  { %v6801_v8 = vld [vmem:[#allocation3 + $0x18b] sm:$0xff]  ;;  %5450 = vst.msk [vmem:[#allocation3 + $0x1b0] sm:$0xff] %vm2519_vm2, %v5351_v6  ;;  %v17970_v9 = vpop.f32.mrb[54].mxu1  ;;  %18060 = vmatmul.mubr.msk.f32.gmra.mrb[112].mxu1 %vm2519_vm2, %v5579_v7  ;;  %v5582_v24 = vld [vmem:[#allocation3 + $0x1a2] sm:$0xff]  ;;  %v7466_v7 = vld [vmem:[#allocation3 + $0x37] sm:$0xff] }
 0x574   :  { %18268 = vmatmul.mubr.msk.f32.gmra.mrb[68].mxu0 %vm2519_vm2, %v6801_v8  ;;  %5453 = vst.msk [vmem:[#allocation3 + $0x1c8] sm:$0xff] %vm2519_vm2, %v17970_v9  ;;  %v5354_v10 = vpop.f32.mrb[55].mxu1  ;;  %v5580_v11 = vld [vmem:[#allocation3 + $0x192] sm:$0xff]  ;;  %v5581_v14 = vld [vmem:[#allocation3 + $0x19a] sm:$0xff]  ;;  %v6804_v29 = vld [vmem:[#allocation3 + $0x1a3] sm:$0xff] }
 0x575   :  { %v6802_v13 = vld [vmem:[#allocation3 + $0x193] sm:$0xff]  ;;  %5451 = vst.msk [vmem:[#allocation3 + $0x1b8] sm:$0xff] %vm2519_vm2, %v5354_v10  ;;  %18062 = vmatprep.mubr.msk.f32.mxu1 %vm2519_vm2, %v5580_v11  ;;  %v6803_v19 = vld [vmem:[#allocation3 + $0x19b] sm:$0xff]  ;;  %v22540_v6 = vld [vmem:[#allocation3 + $0xe9] sm:$0xff] }
 0x576   :  { %18270 = vmatprep.mubr.msk.f32.mxu0 %vm2519_vm2, %v6802_v13  ;;  %v22545_v8 = vld [vmem:[#allocation3 + $0xf1] sm:$0xff]  ;;  %v7467_v9 = vld [vmem:[#allocation3 + $0x3f] sm:$0xff] }
 0x577   :  { %18063 = vmatmul.mubr.msk.f32.gmra.mrb[114].mxu1 %vm2519_vm2, %v5581_v14  ;;  %v22554_v13 = vld [vmem:[#allocation3 + $0xf9] sm:$0xff]  ;;  %v7468_v14 = vld [vmem:[#allocation3 + $0x47] sm:$0xff] }
 0x578   :  { %18271 = vmatmul.mubr.msk.f32.gmra.mrb[70].mxu0 %vm2519_vm2, %v6803_v19  ;;  %18065 = vmatprep.mubr.msk.f32.mxu1 %vm2519_vm2, %v5582_v24  ;;  %v22559_v19 = vld [vmem:[#allocation3 + $0x101] sm:$0xff]  ;;  %v7469_v24 = vld [vmem:[#allocation3 + $0x4f] sm:$0xff] }
 0x579   :  { %18273 = vmatprep.mubr.msk.f32.mxu0 %vm2519_vm2, %v6804_v29  ;;  %v17973_v34 = vpop.f32.mrb[56].mxu1 }
 0x57a   :  { %5456 = vst.msk [vmem:[#allocation3 + $0x1e0] sm:$0xff] %vm2519_vm2, %v17973_v34  ;;  %v5367_v36 = vpop.f32.mrb[57].mxu1  ;;  %v5583_v37 = vld [vmem:[#allocation3 + $0x1aa] sm:$0xff] }
 0x57b   :  { %v6805_v23 = vld [vmem:[#allocation3 + $0x1ab] sm:$0xff]  ;;  %5454 = vst.msk [vmem:[#allocation3 + $0x1d0] sm:$0xff] %vm2519_vm2, %v5367_v36  ;;  %v17974_v39 = vpop.f32.mrb[58].mxu1  ;;  %18066 = vmatmul.mubr.msk.f32.gmra.mrb[116].mxu1 %vm2519_vm2, %v5583_v37  ;;  %v5586_v46 = vld [vmem:[#allocation3 + $0x1c2] sm:$0xff]  ;;  %v7470_v37 = vld [vmem:[#allocation3 + $0x57] sm:$0xff] }
 0x57c   :  { %18274 = vmatmul.mubr.msk.f32.gmra.mrb[72].mxu0 %vm2519_vm2, %v6805_v23  ;;  %5457 = vst.msk [vmem:[#allocation3 + $0x1e8] sm:$0xff] %vm2519_vm2, %v17974_v39  ;;  %v5370_v41 = vpop.f32.mrb[59].mxu1  ;;  %v5584_v42 = vld [vmem:[#allocation3 + $0x1b2] sm:$0xff]  ;;  %v5585_v44 = vld [vmem:[#allocation3 + $0x1ba] sm:$0xff]  ;;  %v6808_v2 = vld [vmem:[#allocation3 + $0x1c3] sm:$0xff] }
 0x57d   :  { %v6806_v43 = vld [vmem:[#allocation3 + $0x1b3] sm:$0xff]  ;;  %5455 = vst.msk [vmem:[#allocation3 + $0x1d8] sm:$0xff] %vm2519_vm2, %v5370_v41  ;;  %18068 = vmatprep.mubr.msk.f32.mxu1 %vm2519_vm2, %v5584_v42  ;;  %v6807_v45 = vld [vmem:[#allocation3 + $0x1bb] sm:$0xff]  ;;  %v22568_v36 = vld [vmem:[#allocation3 + $0x109] sm:$0xff] }
 0x57e   :  { %18276 = vmatprep.mubr.msk.f32.mxu0 %vm2519_vm2, %v6806_v43  ;;  %v22573_v23 = vld [vmem:[#allocation3 + $0x111] sm:$0xff]  ;;  %v7471_v39 = vld [vmem:[#allocation3 + $0x5f] sm:$0xff] }
 0x57f   :  { %18069 = vmatmul.mubr.msk.f32.gmra.mrb[118].mxu1 %vm2519_vm2, %v5585_v44  ;;  %v22582_v43 = vld [vmem:[#allocation3 + $0x119] sm:$0xff]  ;;  %v7472_v44 = vld [vmem:[#allocation3 + $0x67] sm:$0xff] }
 0x580   :  { %18277 = vmatmul.mubr.msk.f32.gmra.mrb[74].mxu0 %vm2519_vm2, %v6807_v45  ;;  %18071 = vmatprep.mubr.msk.f32.mxu1 %vm2519_vm2, %v5586_v46  ;;  %v22587_v45 = vld [vmem:[#allocation3 + $0x121] sm:$0xff]  ;;  %v7473_v46 = vld [vmem:[#allocation3 + $0x6f] sm:$0xff] }
 0x581   :  { %18279 = vmatprep.mubr.msk.f32.mxu0 %vm2519_vm2, %v6808_v2  ;;  %v17977_v40 = vpop.f32.mrb[60].mxu1 }
 0x582   :  { %5460 = vst.msk [vmem:[#allocation3 + $0x200] sm:$0xff] %vm2519_vm2, %v17977_v40  ;;  %v5383_v59 = vpop.f32.mrb[61].mxu1  ;;  %v5587_v3 = vld [vmem:[#allocation3 + $0x1ca] sm:$0xff] }
 0x583   :  { %v6809_v20 = vld [vmem:[#allocation3 + $0x1cb] sm:$0xff]  ;;  %5458 = vst.msk [vmem:[#allocation3 + $0x1f0] sm:$0xff] %vm2519_vm2, %v5383_v59  ;;  %v17978_v21 = vpop.f32.mrb[62].mxu1  ;;  %18072 = vmatmul.mubr.msk.f32.gmra.mrb[120].mxu1 %vm2519_vm2, %v5587_v3  ;;  %v5590_v48 = vld [vmem:[#allocation3 + $0x1e2] sm:$0xff]  ;;  %v7474_v3 = vld [vmem:[#allocation3 + $0x77] sm:$0xff] }
 0x584   :  { %18280 = vmatmul.mubr.msk.f32.gmra.mrb[76].mxu0 %vm2519_vm2, %v6809_v20  ;;  %5461 = vst.msk [vmem:[#allocation3 + $0x208] sm:$0xff] %vm2519_vm2, %v17978_v21  ;;  %v5386_v27 = vpop.f32.mrb[63].mxu1  ;;  %v5588_v30 = vld [vmem:[#allocation3 + $0x1d2] sm:$0xff]  ;;  %v5589_v35 = vld [vmem:[#allocation3 + $0x1da] sm:$0xff]  ;;  %v6812_v49 = vld [vmem:[#allocation3 + $0x1e3] sm:$0xff] }
 0x585   :  { %v6810_v32 = vld [vmem:[#allocation3 + $0x1d3] sm:$0xff]  ;;  %5459 = vst.msk [vmem:[#allocation3 + $0x1f8] sm:$0xff] %vm2519_vm2, %v5386_v27  ;;  %18074 = vmatprep.mubr.msk.f32.mxu1 %vm2519_vm2, %v5588_v30  ;;  %v6811_v47 = vld [vmem:[#allocation3 + $0x1db] sm:$0xff]  ;;  %v22596_v59 = vld [vmem:[#allocation3 + $0x129] sm:$0xff] }
 0x586   :  { %18282 = vmatprep.mubr.msk.f32.mxu0 %vm2519_vm2, %v6810_v32  ;;  %v22601_v20 = vld [vmem:[#allocation3 + $0x131] sm:$0xff]  ;;  %v7475_v21 = vld [vmem:[#allocation3 + $0x7f] sm:$0xff] }
 0x587   :  { %18075 = vmatmul.mubr.msk.f32.gmra.mrb[122].mxu1 %vm2519_vm2, %v5589_v35  ;;  %v22610_v32 = vld [vmem:[#allocation3 + $0x139] sm:$0xff]  ;;  %v7476_v35 = vld [vmem:[#allocation3 + $0x87] sm:$0xff] }
 0x588   :  { %18283 = vmatmul.mubr.msk.f32.gmra.mrb[78].mxu0 %vm2519_vm2, %v6811_v47  ;;  %18077 = vmatprep.mubr.msk.f32.mxu1 %vm2519_vm2, %v5590_v48  ;;  %v22615_v47 = vld [vmem:[#allocation3 + $0x141] sm:$0xff]  ;;  %v7477_v48 = vld [vmem:[#allocation3 + $0x8f] sm:$0xff] }
 0x589   :  { %18285 = vmatprep.mubr.msk.f32.mxu0 %vm2519_vm2, %v6812_v49  ;;  %v22482_v52 = vpop.f32.mrb[64].mxu1 }
 0x58a   :  { %v22484_v50 = vpop.f32.mrb[65].mxu1  ;;  %v5591_v54 = vld [vmem:[#allocation3 + $0x1ea] sm:$0xff] }
 0x58b   :  { %v6813_v57 = vld [vmem:[#allocation3 + $0x1eb] sm:$0xff]  ;;  %18078 = vmatmul.mubr.msk.f32.gmra.mrb[124].mxu1 %vm2519_vm2, %v5591_v54 }
 0x58c   :  { %18286 = vmatmul.mubr.msk.f32.gmra.mrb[80].mxu0 %vm2519_vm2, %v6813_v57  ;;  %v5592_v63 = vld [vmem:[#allocation3 + $0x1f2] sm:$0xff]  ;;  %v5593_v22 = vld [vmem:[#allocation3 + $0x1fa] sm:$0xff]  ;;  %v22624_v57 = vld [vmem:[#allocation3 + $0x149] sm:$0xff] }
 0x58d   :  { %v6814_v51 = vld [vmem:[#allocation3 + $0x1f3] sm:$0xff]  ;;  %v22488_v55 = vpop.f32.mrb[66].mxu1  ;;  %18080 = vmatprep.mubr.msk.f32.mxu1 %vm2519_vm2, %v5592_v63  ;;  %v6815_v5 = vld [vmem:[#allocation3 + $0x1fb] sm:$0xff] }
 0x58e   :  { %18288 = vmatprep.mubr.msk.f32.mxu0 %vm2519_vm2, %v6814_v51  ;;  %v22492_v58 = vpop.f32.mrb[67].mxu1  ;;  %v7478_v63 = vld [vmem:[#allocation3 + $0x97] sm:$0xff] }
 0x58f   :  { %18081 = vmatmul.mubr.msk.f32.gmra.mrb[126].mxu1 %vm2519_vm2, %v5593_v22  ;;  %v22629_v51 = vld [vmem:[#allocation3 + $0x151] sm:$0xff]  ;;  %v7479_v22 = vld [vmem:[#allocation3 + $0x9f] sm:$0xff] }
 0x590   :  { %18289 = vmatmul.mubr.msk.f32.gmra.mrb[82].mxu0 %vm2519_vm2, %v6815_v5  ;;  %18127 = vmatprep.mubr.msk.f32.mxu1 %vm2519_vm2, %v22496_v25 }
 0x591   :  { %18299 = vmatprep.mubr.msk.f32.mxu0 %vm2519_vm2, %v7461_v15  ;;  %v22507_v33 = vpop.f32.mrb[68].mxu1 }
 0x592   :  { %v22509_v38 = vpop.f32.mrb[69].mxu1 }
 0x593   :  { %18128 = vmatmul.mubr.msk.f32.vlgmr.msra.gmra.mrb[88].mxu1 %vm2519_vm2, %v22511_v62 }
 0x594   :  { %18300 = vmatmul.mubr.msk.f32.vlgmr.msra.gmra.mrb[20].mxu0 %vm2519_vm2, %v7462_v0  ;;  %18130 = vmatprep.mubr.msk.f32.mxu1 %vm2519_vm2, %v22516_v1  ;;  %v22643_v0 = vld [vmem:[#allocation3 + $0x161] sm:$0xff] }
 0x595   :  { %18302 = vmatprep.mubr.msk.f32.mxu0 %vm2519_vm2, %v7463_v16  ;;  %v22521_v17 = vpop.f32.mrb[70].mxu1  ;;  %19130 = vmatpush3.bf16.msra.mxu0 %v22391_v28  ;;  %v22648_v16 = vld [vmem:[#allocation3 + $0x169] sm:$0xff] }
 0x596   :  { %v22524_v26 = vpop.f32.mrb[71].mxu1  ;;  %19132 = vmatprep.subr.bf16.mxu0 %v19131_v18 }
 0x597   :  { %18131 = vmatmul.mubr.msk.f32.gmra.mrb[90].mxu1 %vm2519_vm2, %v22526_v31 }
 0x598   :  { %18303 = vmatmul.mubr.msk.f32.gmra.mrb[22].mxu0 %vm2519_vm2, %v7464_v56  ;;  %18133 = vmatprep.mubr.msk.f32.mxu1 %vm2519_vm2, %v22531_v60  ;;  %v7482_v56 = vld [vmem:[#allocation3 + $0xb7] sm:$0xff] }
 0x599   :  { %18305 = vmatprep.mubr.msk.f32.mxu0 %vm2519_vm2, %v7465_v61  ;;  %v22536_v28 = vpop.f32.mrb[72].mxu1  ;;  %19134 = vmatpush3.bf16.msra.mxu0 %v19131_v18  ;;  %v7481_v18 = vld [vmem:[#allocation3 + $0xaf] sm:$0xff] }
 0x59a   :  { %v22538_v4 = vpop.f32.mrb[73].mxu1  ;;  %v22653_v61 = vld [vmem:[#allocation3 + $0x171] sm:$0xff] }
 0x59b   :  { %18134 = vmatmul.mubr.msk.f32.gmra.mrb[92].mxu1 %vm2519_vm2, %v22540_v6 }
 0x59c   :  { %18306 = vmatmul.mubr.msk.f32.gmra.mrb[24].mxu0 %vm2519_vm2, %v7466_v7  ;;  %18136 = vmatprep.mubr.msk.f32.mxu1 %vm2519_vm2, %v22545_v8  ;;  %v7483_v7 = vld [vmem:[#allocation3 + $0xbf] sm:$0xff] }
 0x59d   :  { %18308 = vmatprep.mubr.msk.f32.mxu0 %vm2519_vm2, %v7467_v9  ;;  %v22550_v10 = vpop.f32.mrb[74].mxu1  ;;  %v22658_v9 = vld [vmem:[#allocation3 + $0x179] sm:$0xff] }
 0x59e   :  { %v22552_v11 = vpop.f32.mrb[75].mxu1 }
 0x59f   :  { %18137 = vmatmul.mubr.msk.f32.gmra.mrb[94].mxu1 %vm2519_vm2, %v22554_v13 }
 0x5a0   :  { %18309 = vmatmul.mubr.msk.f32.gmra.mrb[26].mxu0 %vm2519_vm2, %v7468_v14  ;;  %18139 = vmatprep.mubr.msk.f32.mxu1 %vm2519_vm2, %v22559_v19  ;;  %v7484_v14 = vld [vmem:[#allocation3 + $0xc7] sm:$0xff] }
 0x5a1   :  { %18311 = vmatprep.mubr.msk.f32.mxu0 %vm2519_vm2, %v7469_v24  ;;  %v22564_v29 = vpop.f32.mrb[76].mxu1  ;;  %v22663_v24 = vld [vmem:[#allocation3 + $0x181] sm:$0xff] }
 0x5a2   :  { %24441 = vst [vmem:[#allocation8_spill] sm:$0xff] %v22564_v29  ;;  %v22566_v34 = vpop.f32.mrb[77].mxu1 }
 0x5a3   :  { %24442 = vst [vmem:[#allocation9_spill] sm:$0xff] %v22566_v34  ;;  %18140 = vmatmul.mubr.msk.f32.gmra.mrb[96].mxu1 %vm2519_vm2, %v22568_v36 }
 0x5a4   :  { %18312 = vmatmul.mubr.msk.f32.gmra.mrb[28].mxu0 %vm2519_vm2, %v7470_v37  ;;  %18142 = vmatprep.mubr.msk.f32.mxu1 %vm2519_vm2, %v22573_v23  ;;  %v7485_v37 = vld [vmem:[#allocation3 + $0xcf] sm:$0xff] }
 0x5a5   :  { %18314 = vmatprep.mubr.msk.f32.mxu0 %vm2519_vm2, %v7471_v39  ;;  %v22578_v41 = vpop.f32.mrb[78].mxu1  ;;  %v22668_v39 = vld [vmem:[#allocation3 + $0x189] sm:$0xff] }
 0x5a6   :  { %24443 = vst [vmem:[#allocation10_spill] sm:$0xff] %v22578_v41  ;;  %v22580_v42 = vpop.f32.mrb[79].mxu1  ;;  %v8174_v41 = vld [vmem:[#allocation3 + $0x30] sm:$0xff] }
 0x5a7   :  { %24444 = vst [vmem:[#allocation11_spill] sm:$0xff] %v22580_v42  ;;  %18143 = vmatmul.mubr.msk.f32.gmra.mrb[98].mxu1 %vm2519_vm2, %v22582_v43  ;;  %v7507_v42 = vld [vmem:[#allocation3 + $0x17f] sm:$0xff] }
 0x5a8   :  { %18315 = vmatmul.mubr.msk.f32.gmra.mrb[30].mxu0 %vm2519_vm2, %v7472_v44  ;;  %18145 = vmatprep.mubr.msk.f32.mxu1 %vm2519_vm2, %v22587_v45  ;;  %v7486_v44 = vld [vmem:[#allocation3 + $0xd7] sm:$0xff] }
 0x5a9   :  { %18317 = vmatprep.mubr.msk.f32.mxu0 %vm2519_vm2, %v7473_v46  ;;  %v22592_v2 = vpop.f32.mrb[80].mxu1  ;;  %v7487_v46 = vld [vmem:[#allocation3 + $0xdf] sm:$0xff] }
 0x5aa   :  { %24445 = vst [vmem:[#allocation12_spill] sm:$0xff] %v22592_v2  ;;  %v22594_v40 = vpop.f32.mrb[81].mxu1  ;;  %v7506_v2 = vld [vmem:[#allocation3 + $0x177] sm:$0xff] }
 0x5ab   :  { %24446 = vst [vmem:[#allocation13_spill] sm:$0xff] %v22594_v40  ;;  %18146 = vmatmul.mubr.msk.f32.gmra.mrb[100].mxu1 %vm2519_vm2, %v22596_v59  ;;  %v7504_v40 = vld [vmem:[#allocation3 + $0x167] sm:$0xff] }
 0x5ac   :  { %18318 = vmatmul.mubr.msk.f32.gmra.mrb[32].mxu0 %vm2519_vm2, %v7474_v3  ;;  %18148 = vmatprep.mubr.msk.f32.mxu1 %vm2519_vm2, %v22601_v20  ;;  %v22673_v3 = vld [vmem:[#allocation3 + $0x191] sm:$0xff] }
 0x5ad   :  { %18320 = vmatprep.mubr.msk.f32.mxu0 %vm2519_vm2, %v7475_v21  ;;  %v22606_v27 = vpop.f32.mrb[82].mxu1  ;;  %v8943_v21 = vld [vmem:[%s24435_s4 + $0xa0] sm:$0xff] }
 0x5ae   :  { %24447 = vst [vmem:[#allocation14_spill] sm:$0xff] %v22606_v27  ;;  %v22608_v30 = vpop.f32.mrb[83].mxu1  ;;  %v7503_v27 = vld [vmem:[#allocation3 + $0x15f] sm:$0xff] }
 0x5af   :  { %24448 = vst [vmem:[#allocation15_spill] sm:$0xff] %v22608_v30  ;;  %18149 = vmatmul.mubr.msk.f32.gmra.mrb[102].mxu1 %vm2519_vm2, %v22610_v32  ;;  %v7500_v30 = vld [vmem:[#allocation3 + $0x147] sm:$0xff] }
 0x5b0   :  { %18321 = vmatmul.mubr.msk.f32.gmra.mrb[34].mxu0 %vm2519_vm2, %v7476_v35  ;;  %18151 = vmatprep.mubr.msk.f32.mxu1 %vm2519_vm2, %v22615_v47  ;;  %v8944_v35 = vld [vmem:[%s24435_s4 + $0xa8] sm:$0xff] }
 0x5b1   :  { %18323 = vmatprep.mubr.msk.f32.mxu0 %vm2519_vm2, %v7477_v48  ;;  %v22620_v49 = vpop.f32.mrb[84].mxu1  ;;  %v22684_v48 = vpack.c.bf16 %v8944_v35, %v8943_v21  ;;  %v22712_v21 = vld [vmem:[#allocation3 + $0x1c1] sm:$0xff]  ;;  %v7493_v35 = vld [vmem:[#allocation3 + $0x10f] sm:$0xff] }
 0x5b2   :  { %24449 = vst [vmem:[#allocation16_spill] sm:$0xff] %v22620_v49  ;;  %v22622_v54 = vpop.f32.mrb[85].mxu1  ;;  %v7499_v49 = vld [vmem:[#allocation3 + $0x13f] sm:$0xff] }
 0x5b3   :  { %24450 = vst [vmem:[#allocation17_spill] sm:$0xff] %v22622_v54  ;;  %18152 = vmatmul.mubr.msk.f32.gmra.mrb[104].mxu1 %vm2519_vm2, %v22624_v57  ;;  %19136 = vmatprep.subr.bf16.mxu0 %v22684_v48  ;;  %v7498_v54 = vld [vmem:[#allocation3 + $0x137] sm:$0xff] }
 0x5b4   :  { %18324 = vmatmul.mubr.msk.f32.gmra.mrb[36].mxu0 %vm2519_vm2, %v7478_v63  ;;  %18154 = vmatprep.mubr.msk.f32.mxu1 %vm2519_vm2, %v22629_v51  ;;  %v22686_v63 = vld [vmem:[#allocation3 + $0x199] sm:$0xff] }
 0x5b5   :  { %18326 = vmatprep.mubr.msk.f32.mxu0 %vm2519_vm2, %v7479_v22  ;;  %v22634_v5 = vpop.f32.mrb[86].mxu1  ;;  %v7488_v22 = vld [vmem:[#allocation3 + $0xe7] sm:$0xff] }
 0x5b6   :  { %24451 = vst [vmem:[#allocation18_spill] sm:$0xff] %v22634_v5  ;;  %v22636_v15 = vpop.f32.mrb[87].mxu1  ;;  %v7497_v5 = vld [vmem:[#allocation3 + $0x12f] sm:$0xff] }
 0x5b7   :  { %24452 = vst [vmem:[#allocation19_spill] sm:$0xff] %v22636_v15  ;;  %18155 = vmatmul.mubr.msk.f32.gmra.mrb[106].mxu1 %vm2519_vm2, %v22638_v53  ;;  %v7496_v15 = vld [vmem:[#allocation3 + $0x127] sm:$0xff] }
 0x5b8   :  { %18327 = vmatmul.mubr.msk.f32.gmra.mrb[38].mxu0 %vm2519_vm2, %v7480_v12  ;;  %18157 = vmatprep.mubr.msk.f32.mxu1 %vm2519_vm2, %v22643_v0  ;;  %v22692_v12 = vld [vmem:[#allocation3 + $0x1a1] sm:$0xff] }
 0x5b9   :  { %18329 = vmatprep.mubr.msk.f32.mxu0 %vm2519_vm2, %v7481_v18  ;;  %v7489_v18 = vld [vmem:[#allocation3 + $0xef] sm:$0xff] }
 0x5bb   :  { %18158 = vmatmul.mubr.msk.f32.gmra.mrb[108].mxu1 %vm2519_vm2, %v22648_v16 }
 0x5bc   :  { %18330 = vmatmul.mubr.msk.f32.gmra.mrb[40].mxu0 %vm2519_vm2, %v7482_v56  ;;  %18160 = vmatprep.mubr.msk.f32.mxu1 %vm2519_vm2, %v22653_v61  ;;  %v22697_v56 = vld [vmem:[#allocation3 + $0x1a9] sm:$0xff] }
 0x5bd   :  { %18332 = vmatprep.mubr.msk.f32.mxu0 %vm2519_vm2, %v7483_v7  ;;  %v7490_v7 = vld [vmem:[#allocation3 + $0xf7] sm:$0xff] }
 0x5bf   :  { %18161 = vmatmul.mubr.msk.f32.gmra.mrb[110].mxu1 %vm2519_vm2, %v22658_v9 }
 0x5c0   :  { %18333 = vmatmul.mubr.msk.f32.gmra.mrb[42].mxu0 %vm2519_vm2, %v7484_v14  ;;  %18163 = vmatprep.mubr.msk.f32.mxu1 %vm2519_vm2, %v22663_v24  ;;  %v22702_v14 = vld [vmem:[#allocation3 + $0x1b1] sm:$0xff] }
 0x5c1   :  { %18335 = vmatprep.mubr.msk.f32.mxu0 %vm2519_vm2, %v7485_v37  ;;  %v7491_v37 = vld [vmem:[#allocation3 + $0xff] sm:$0xff] }
 0x5c3   :  { %18164 = vmatmul.mubr.msk.f32.gmra.mrb[112].mxu1 %vm2519_vm2, %v22668_v39 }
 0x5c4   :  { %18336 = vmatmul.mubr.msk.f32.gmra.mrb[44].mxu0 %vm2519_vm2, %v7486_v44  ;;  %18166 = vmatprep.mubr.msk.f32.mxu1 %vm2519_vm2, %v22673_v3  ;;  %v22707_v44 = vld [vmem:[#allocation3 + $0x1b9] sm:$0xff] }
 0x5c5   :  { %18338 = vmatprep.mubr.msk.f32.mxu0 %vm2519_vm2, %v7487_v46  ;;  %v7492_v46 = vld [vmem:[#allocation3 + $0x107] sm:$0xff] }
 0x5c7   :  { %18167 = vmatmul.mubr.msk.f32.gmra.mrb[114].mxu1 %vm2519_vm2, %v22686_v63 }
 0x5c8   :  { %18339 = vmatmul.mubr.msk.f32.gmra.mrb[46].mxu0 %vm2519_vm2, %v7488_v22  ;;  %18169 = vmatprep.mubr.msk.f32.mxu1 %vm2519_vm2, %v22692_v12  ;;  %v22717_v22 = vld [vmem:[#allocation3 + $0x1c9] sm:$0xff] }
 0x5c9   :  { %18341 = vmatprep.mubr.msk.f32.mxu0 %vm2519_vm2, %v7489_v18  ;;  %v7494_v18 = vld [vmem:[#allocation3 + $0x117] sm:$0xff] }
 0x5cb   :  { %18170 = vmatmul.mubr.msk.f32.gmra.mrb[116].mxu1 %vm2519_vm2, %v22697_v56 }
 0x5cc   :  { %18342 = vmatmul.mubr.msk.f32.gmra.mrb[48].mxu0 %vm2519_vm2, %v7490_v7  ;;  %18172 = vmatprep.mubr.msk.f32.mxu1 %vm2519_vm2, %v22702_v14  ;;  %v22722_v7 = vld [vmem:[#allocation3 + $0x1d1] sm:$0xff] }
 0x5cd   :  { %18344 = vmatprep.mubr.msk.f32.mxu0 %vm2519_vm2, %v7491_v37  ;;  %v7495_v37 = vld [vmem:[#allocation3 + $0x11f] sm:$0xff] }
 0x5cf   :  { %18173 = vmatmul.mubr.msk.f32.gmra.mrb[118].mxu1 %vm2519_vm2, %v22707_v44 }
 0x5d0   :  { %18345 = vmatmul.mubr.msk.f32.gmra.mrb[50].mxu0 %vm2519_vm2, %v7492_v46  ;;  %18175 = vmatprep.mubr.msk.f32.mxu1 %vm2519_vm2, %v22712_v21  ;;  %v22727_v46 = vld [vmem:[#allocation3 + $0x1d9] sm:$0xff] }
 0x5d1   :  { %18347 = vmatprep.mubr.msk.f32.mxu0 %vm2519_vm2, %v7493_v35  ;;  %v22732_v35 = vld [vmem:[#allocation3 + $0x1e1] sm:$0xff] }
 0x5d3   :  { %18176 = vmatmul.mubr.msk.f32.gmra.mrb[120].mxu1 %vm2519_vm2, %v22717_v22 }
 0x5d4   :  { %18348 = vmatmul.mubr.msk.f32.gmra.mrb[52].mxu0 %vm2519_vm2, %v7494_v18  ;;  %18178 = vmatprep.mubr.msk.f32.mxu1 %vm2519_vm2, %v22722_v7  ;;  %v22737_v18 = vld [vmem:[#allocation3 + $0x1e9] sm:$0xff] }
 0x5d5   :  { %18350 = vmatprep.mubr.msk.f32.mxu0 %vm2519_vm2, %v7495_v37  ;;  %v22742_v37 = vld [vmem:[#allocation3 + $0x1f1] sm:$0xff] }
 0x5d7   :  { %18179 = vmatmul.mubr.msk.f32.gmra.mrb[122].mxu1 %vm2519_vm2, %v22727_v46 }
 0x5d8   :  { %18351 = vmatmul.mubr.msk.f32.gmra.mrb[54].mxu0 %vm2519_vm2, %v7496_v15  ;;  %18181 = vmatprep.mubr.msk.f32.mxu1 %vm2519_vm2, %v22732_v35  ;;  %v22747_v15 = vld [vmem:[#allocation3 + $0x1f9] sm:$0xff] }
 0x5d9   :  { %18353 = vmatprep.mubr.msk.f32.mxu0 %vm2519_vm2, %v7497_v5  ;;  %v7501_v5 = vld [vmem:[#allocation3 + $0x14f] sm:$0xff] }
 0x5db   :  { %18182 = vmatmul.mubr.msk.f32.gmra.mrb[124].mxu1 %vm2519_vm2, %v22737_v18 }
 0x5dc   :  { %18354 = vmatmul.mubr.msk.f32.gmra.mrb[56].mxu0 %vm2519_vm2, %v7498_v54  ;;  %18184 = vmatprep.mubr.msk.f32.mxu1 %vm2519_vm2, %v22742_v37  ;;  %v7502_v54 = vld [vmem:[#allocation3 + $0x157] sm:$0xff] }
 0x5dd   :  { %18356 = vmatprep.mubr.msk.f32.mxu0 %vm2519_vm2, %v7499_v49  ;;  %v7505_v49 = vld [vmem:[#allocation3 + $0x16f] sm:$0xff] }
 0x5df   :  { %18185 = vmatmul.mubr.msk.f32.gmra.mrb[126].mxu1 %vm2519_vm2, %v22747_v15 }
 0x5e0   :  { %18357 = vmatmul.mubr.msk.f32.gmra.mrb[58].mxu0 %vm2519_vm2, %v7500_v30  ;;  %v7508_v30 = vld [vmem:[#allocation3 + $0x187] sm:$0xff] }
 0x5e1   :  { %18359 = vmatprep.mubr.msk.f32.mxu0 %vm2519_vm2, %v7501_v5  ;;  %v7509_v5 = vld [vmem:[#allocation3 + $0x18f] sm:$0xff] }
 0x5e4   :  { %18360 = vmatmul.mubr.msk.f32.gmra.mrb[60].mxu0 %vm2519_vm2, %v7502_v54  ;;  %v7510_v54 = vld [vmem:[#allocation3 + $0x197] sm:$0xff] }
 0x5e5   :  { %18362 = vmatprep.mubr.msk.f32.mxu0 %vm2519_vm2, %v7503_v27  ;;  %v7511_v27 = vld [vmem:[#allocation3 + $0x19f] sm:$0xff] }
 0x5e8   :  { %18363 = vmatmul.mubr.msk.f32.gmra.mrb[62].mxu0 %vm2519_vm2, %v7504_v40  ;;  %v7512_v40 = vld [vmem:[#allocation3 + $0x1a7] sm:$0xff] }
 0x5e9   :  { %18365 = vmatprep.mubr.msk.f32.mxu0 %vm2519_vm2, %v7505_v49  ;;  %v7513_v49 = vld [vmem:[#allocation3 + $0x1af] sm:$0xff] }
 0x5ec   :  { %18366 = vmatmul.mubr.msk.f32.gmra.mrb[64].mxu0 %vm2519_vm2, %v7506_v2  ;;  %v7514_v2 = vld [vmem:[#allocation3 + $0x1b7] sm:$0xff] }
 0x5ed   :  { %18368 = vmatprep.mubr.msk.f32.mxu0 %vm2519_vm2, %v7507_v42  ;;  %v7515_v42 = vld [vmem:[#allocation3 + $0x1bf] sm:$0xff] }
 0x5f0   :  { %18369 = vmatmul.mubr.msk.f32.gmra.mrb[66].mxu0 %vm2519_vm2, %v7508_v30  ;;  %v7516_v30 = vld [vmem:[#allocation3 + $0x1c7] sm:$0xff] }
 0x5f1   :  { %18371 = vmatprep.mubr.msk.f32.mxu0 %vm2519_vm2, %v7509_v5  ;;  %v7517_v5 = vld [vmem:[#allocation3 + $0x1cf] sm:$0xff] }
 0x5f4   :  { %18372 = vmatmul.mubr.msk.f32.gmra.mrb[68].mxu0 %vm2519_vm2, %v7510_v54  ;;  %v7518_v54 = vld [vmem:[#allocation3 + $0x1d7] sm:$0xff] }
 0x5f5   :  { %18374 = vmatprep.mubr.msk.f32.mxu0 %vm2519_vm2, %v7511_v27  ;;  %v7519_v27 = vld [vmem:[#allocation3 + $0x1df] sm:$0xff] }
 0x5f8   :  { %18375 = vmatmul.mubr.msk.f32.gmra.mrb[70].mxu0 %vm2519_vm2, %v7512_v40  ;;  %v7520_v40 = vld [vmem:[#allocation3 + $0x1e7] sm:$0xff] }
 0x5f9   :  { %18377 = vmatprep.mubr.msk.f32.mxu0 %vm2519_vm2, %v7513_v49  ;;  %v7521_v49 = vld [vmem:[#allocation3 + $0x1ef] sm:$0xff] }
 0x5fc   :  { %18378 = vmatmul.mubr.msk.f32.gmra.mrb[72].mxu0 %vm2519_vm2, %v7514_v2  ;;  %v7522_v2 = vld [vmem:[#allocation3 + $0x1f7] sm:$0xff] }
 0x5fd   :  { %18380 = vmatprep.mubr.msk.f32.mxu0 %vm2519_vm2, %v7515_v42  ;;  %v7523_v42 = vld [vmem:[#allocation3 + $0x1ff] sm:$0xff] }
 0x600   :  { %18381 = vmatmul.mubr.msk.f32.gmra.mrb[74].mxu0 %vm2519_vm2, %v7516_v30  ;;  %v7524_v30 = vld [vmem:[#allocation3 + $0x207] sm:$0xff] }
 0x601   :  { %18383 = vmatprep.mubr.msk.f32.mxu0 %vm2519_vm2, %v7517_v5  ;;  %v8945_v5 = vld [vmem:[%s24435_s4 + $0xb0] sm:$0xff] }
 0x604   :  { %18384 = vmatmul.mubr.msk.f32.gmra.mrb[76].mxu0 %vm2519_vm2, %v7518_v54  ;;  %v8946_v54 = vld [vmem:[%s24435_s4 + $0xb8] sm:$0xff] }
 0x605   :  { %18386 = vmatprep.mubr.msk.f32.mxu0 %vm2519_vm2, %v7519_v27  ;;  %v8170_v27 = vld [vmem:[#allocation3 + $0x10] sm:$0xff] }
 0x608   :  { %18387 = vmatmul.mubr.msk.f32.gmra.mrb[78].mxu0 %vm2519_vm2, %v7520_v40  ;;  %v19139_v40 = vpack.c.bf16 %v8946_v54, %v8945_v5  ;;  %v8176_v5 = vld [vmem:[#allocation3 + $0x40] sm:$0xff]  ;;  %v8177_v54 = vld [vmem:[#allocation3 + $0x48] sm:$0xff] }
 0x609   :  { %18389 = vmatprep.mubr.msk.f32.mxu0 %vm2519_vm2, %v7521_v49  ;;  %v8171_v49 = vld [vmem:[#allocation3 + $0x18] sm:$0xff] }
 0x60c   :  { %18390 = vmatmul.mubr.msk.f32.gmra.mrb[80].mxu0 %vm2519_vm2, %v7522_v2  ;;  %v8172_v2 = vld [vmem:[#allocation3 + $0x20] sm:$0xff] }
 0x60d   :  { %18392 = vmatprep.mubr.msk.f32.mxu0 %vm2519_vm2, %v7523_v42  ;;  %v8173_v42 = vld [vmem:[#allocation3 + $0x28] sm:$0xff] }
 0x610   :  { %18393 = vmatmul.mubr.msk.f32.gmra.mrb[82].mxu0 %vm2519_vm2, %v7524_v30  ;;  %v8175_v30 = vld [vmem:[#allocation3 + $0x38] sm:$0xff] }
 0x611   :  { %18403 = vmatprep.mubr.msk.f32.mxu0 %vm2519_vm2, %v8170_v27  ;;  %v8178_v27 = vld [vmem:[#allocation3 + $0x50] sm:$0xff] }
 0x614   :  { %18404 = vmatmul.mubr.msk.f32.vlgmr.msra.gmra.mrb[20].mxu0 %vm2519_vm2, %v8171_v49  ;;  %v8180_v49 = vld [vmem:[#allocation3 + $0x60] sm:$0xff] }
 0x615   :  { %18406 = vmatprep.mubr.msk.f32.mxu0 %vm2519_vm2, %v8172_v2  ;;  %19138 = vmatpush3.bf16.msra.mxu0 %v22684_v48  ;;  %v8179_v48 = vld [vmem:[#allocation3 + $0x58] sm:$0xff] }
 0x616   :  { %19140 = vmatprep.subr.bf16.mxu0 %v19139_v40  ;;  %v8183_v2 = vld [vmem:[#allocation3 + $0x78] sm:$0xff] }
 0x618   :  { %18407 = vmatmul.mubr.msk.f32.gmra.mrb[22].mxu0 %vm2519_vm2, %v8173_v42  ;;  %v8184_v42 = vld [vmem:[#allocation3 + $0x80] sm:$0xff] }
 0x619   :  { %18409 = vmatprep.mubr.msk.f32.mxu0 %vm2519_vm2, %v8174_v41  ;;  %19142 = vmatpush3.bf16.msra.mxu0 %v19139_v40  ;;  %v8181_v41 = vld [vmem:[#allocation3 + $0x68] sm:$0xff]  ;;  %v8182_v40 = vld [vmem:[#allocation3 + $0x70] sm:$0xff] }
 0x61c   :  { %18410 = vmatmul.mubr.msk.f32.gmra.mrb[24].mxu0 %vm2519_vm2, %v8175_v30  ;;  %v8185_v30 = vld [vmem:[#allocation3 + $0x88] sm:$0xff] }
 0x61d   :  { %18412 = vmatprep.mubr.msk.f32.mxu0 %vm2519_vm2, %v8176_v5  ;;  %v8186_v5 = vld [vmem:[#allocation3 + $0x90] sm:$0xff] }
 0x620   :  { %18413 = vmatmul.mubr.msk.f32.gmra.mrb[26].mxu0 %vm2519_vm2, %v8177_v54  ;;  %v8187_v54 = vld [vmem:[#allocation3 + $0x98] sm:$0xff] }
 0x621   :  { %18415 = vmatprep.mubr.msk.f32.mxu0 %vm2519_vm2, %v8178_v27  ;;  %v8188_v27 = vld [vmem:[#allocation3 + $0xa0] sm:$0xff] }
 0x624   :  { %18416 = vmatmul.mubr.msk.f32.gmra.mrb[28].mxu0 %vm2519_vm2, %v8179_v48  ;;  %v8189_v48 = vld [vmem:[#allocation3 + $0xa8] sm:$0xff] }
 0x625   :  { %18418 = vmatprep.mubr.msk.f32.mxu0 %vm2519_vm2, %v8180_v49  ;;  %v8190_v49 = vld [vmem:[#allocation3 + $0xb0] sm:$0xff] }
 0x628   :  { %18419 = vmatmul.mubr.msk.f32.gmra.mrb[30].mxu0 %vm2519_vm2, %v8181_v41  ;;  %v8191_v41 = vld [vmem:[#allocation3 + $0xb8] sm:$0xff] }
 0x629   :  { %18421 = vmatprep.mubr.msk.f32.mxu0 %vm2519_vm2, %v8182_v40  ;;  %v8192_v40 = vld [vmem:[#allocation3 + $0xc0] sm:$0xff] }
 0x62c   :  { %18422 = vmatmul.mubr.msk.f32.gmra.mrb[32].mxu0 %vm2519_vm2, %v8183_v2  ;;  %v8193_v2 = vld [vmem:[#allocation3 + $0xc8] sm:$0xff] }
 0x62d   :  { %18424 = vmatprep.mubr.msk.f32.mxu0 %vm2519_vm2, %v8184_v42  ;;  %v8194_v42 = vld [vmem:[#allocation3 + $0xd0] sm:$0xff] }
 0x630   :  { %18425 = vmatmul.mubr.msk.f32.gmra.mrb[34].mxu0 %vm2519_vm2, %v8185_v30  ;;  %v8195_v30 = vld [vmem:[#allocation3 + $0xd8] sm:$0xff] }
 0x631   :  { %18427 = vmatprep.mubr.msk.f32.mxu0 %vm2519_vm2, %v8186_v5  ;;  %v8196_v5 = vld [vmem:[#allocation3 + $0xe0] sm:$0xff] }
 0x634   :  { %18428 = vmatmul.mubr.msk.f32.gmra.mrb[36].mxu0 %vm2519_vm2, %v8187_v54  ;;  %v9652_v54 = vld [vmem:[%s24435_s4 + $0xc0] sm:$0xff] }
 0x635   :  { %18430 = vmatprep.mubr.msk.f32.mxu0 %vm2519_vm2, %v8188_v27  ;;  %v9653_v27 = vld [vmem:[%s24435_s4 + $0xc8] sm:$0xff] }
 0x638   :  { %18431 = vmatmul.mubr.msk.f32.gmra.mrb[38].mxu0 %vm2519_vm2, %v8189_v48  ;;  %v22816_v48 = vpack.c.bf16 %v9653_v27, %v9652_v54  ;;  %v8204_v54 = vld [vmem:[#allocation3 + $0x120] sm:$0xff]  ;;  %v8205_v27 = vld [vmem:[#allocation3 + $0x128] sm:$0xff] }
 0x639   :  { %18433 = vmatprep.mubr.msk.f32.mxu0 %vm2519_vm2, %v8190_v49  ;;  %v8197_v49 = vld [vmem:[#allocation3 + $0xe8] sm:$0xff] }
 0x63a   :  { %19144 = vmatprep.subr.bf16.mxu0 %v22816_v48 }
 0x63c   :  { %18434 = vmatmul.mubr.msk.f32.gmra.mrb[40].mxu0 %vm2519_vm2, %v8191_v41  ;;  %v8198_v41 = vld [vmem:[#allocation3 + $0xf0] sm:$0xff] }
 0x63d   :  { %18436 = vmatprep.mubr.msk.f32.mxu0 %vm2519_vm2, %v8192_v40  ;;  %v8199_v40 = vld [vmem:[#allocation3 + $0xf8] sm:$0xff] }
 0x640   :  { %18437 = vmatmul.mubr.msk.f32.gmra.mrb[42].mxu0 %vm2519_vm2, %v8193_v2  ;;  %v8200_v2 = vld [vmem:[#allocation3 + $0x100] sm:$0xff] }
 0x641   :  { %18439 = vmatprep.mubr.msk.f32.mxu0 %vm2519_vm2, %v8194_v42  ;;  %v8201_v42 = vld [vmem:[#allocation3 + $0x108] sm:$0xff] }
 0x644   :  { %18440 = vmatmul.mubr.msk.f32.gmra.mrb[44].mxu0 %vm2519_vm2, %v8195_v30  ;;  %v8202_v30 = vld [vmem:[#allocation3 + $0x110] sm:$0xff] }
 0x645   :  { %18442 = vmatprep.mubr.msk.f32.mxu0 %vm2519_vm2, %v8196_v5  ;;  %v8203_v5 = vld [vmem:[#allocation3 + $0x118] sm:$0xff] }
 0x648   :  { %18443 = vmatmul.mubr.msk.f32.gmra.mrb[46].mxu0 %vm2519_vm2, %v8197_v49  ;;  %v8206_v49 = vld [vmem:[#allocation3 + $0x130] sm:$0xff] }
 0x649   :  { %18445 = vmatprep.mubr.msk.f32.mxu0 %vm2519_vm2, %v8198_v41  ;;  %v8207_v41 = vld [vmem:[#allocation3 + $0x138] sm:$0xff] }
 0x64c   :  { %18446 = vmatmul.mubr.msk.f32.gmra.mrb[48].mxu0 %vm2519_vm2, %v8199_v40  ;;  %v8208_v40 = vld [vmem:[#allocation3 + $0x140] sm:$0xff] }
 0x64d   :  { %18448 = vmatprep.mubr.msk.f32.mxu0 %vm2519_vm2, %v8200_v2  ;;  %v8209_v2 = vld [vmem:[#allocation3 + $0x148] sm:$0xff] }
 0x650   :  { %18449 = vmatmul.mubr.msk.f32.gmra.mrb[50].mxu0 %vm2519_vm2, %v8201_v42  ;;  %v8210_v42 = vld [vmem:[#allocation3 + $0x150] sm:$0xff] }
 0x651   :  { %18451 = vmatprep.mubr.msk.f32.mxu0 %vm2519_vm2, %v8202_v30  ;;  %v8211_v30 = vld [vmem:[#allocation3 + $0x158] sm:$0xff] }
 0x654   :  { %18452 = vmatmul.mubr.msk.f32.gmra.mrb[52].mxu0 %vm2519_vm2, %v8203_v5  ;;  %v8212_v5 = vld [vmem:[#allocation3 + $0x160] sm:$0xff] }
 0x655   :  { %18454 = vmatprep.mubr.msk.f32.mxu0 %vm2519_vm2, %v8204_v54 }
 0x658   :  { %18455 = vmatmul.mubr.msk.f32.gmra.mrb[54].mxu0 %vm2519_vm2, %v8205_v27  ;;  %v8213_v27 = vld [vmem:[#allocation3 + $0x168] sm:$0xff] }
 0x659   :  { %18457 = vmatprep.mubr.msk.f32.mxu0 %vm2519_vm2, %v8206_v49 }
 0x65c   :  { %18458 = vmatmul.mubr.msk.f32.gmra.mrb[56].mxu0 %vm2519_vm2, %v8207_v41  ;;  %v8214_v41 = vld [vmem:[#allocation3 + $0x170] sm:$0xff] }
 0x65d   :  { %18460 = vmatprep.mubr.msk.f32.mxu0 %vm2519_vm2, %v8208_v40 }
 0x660   :  { %18461 = vmatmul.mubr.msk.f32.gmra.mrb[58].mxu0 %vm2519_vm2, %v8209_v2  ;;  %v8215_v2 = vld [vmem:[#allocation3 + $0x178] sm:$0xff] }
 0x661   :  { %18463 = vmatprep.mubr.msk.f32.mxu0 %vm2519_vm2, %v8210_v42 }
 0x664   :  { %18464 = vmatmul.mubr.msk.f32.gmra.mrb[60].mxu0 %vm2519_vm2, %v8211_v30  ;;  %v8216_v30 = vld [vmem:[#allocation3 + $0x180] sm:$0xff] }
 0x665   :  { %18466 = vmatprep.mubr.msk.f32.mxu0 %vm2519_vm2, %v8212_v5 }
 0x666   :  { %v22835_v54 = vpop.f32.mrb[88].mxu1 }
 0x667   :  { %24453 = vst [vmem:[#allocation20_spill] sm:$0xff] %v22835_v54  ;;  %v22837_v49 = vpop.f32.mrb[89].mxu1  ;;  %v8217_v54 = vld [vmem:[#allocation3 + $0x188] sm:$0xff] }
 0x668   :  { %24454 = vst [vmem:[#allocation21_spill] sm:$0xff] %v22837_v49  ;;  %18467 = vmatmul.mubr.msk.f32.gmra.mrb[62].mxu0 %vm2519_vm2, %v8213_v27  ;;  %v8218_v27 = vld [vmem:[#allocation3 + $0x190] sm:$0xff] }
 0x669   :  { %18469 = vmatprep.mubr.msk.f32.mxu0 %vm2519_vm2, %v8214_v41 }
 0x66a   :  { %v22841_v40 = vpop.f32.mrb[90].mxu1 }
 0x66b   :  { %24455 = vst [vmem:[#allocation22_spill] sm:$0xff] %v22841_v40  ;;  %v22843_v42 = vpop.f32.mrb[91].mxu1  ;;  %v8219_v40 = vld [vmem:[#allocation3 + $0x198] sm:$0xff] }
 0x66c   :  { %24456 = vst [vmem:[#allocation23_spill] sm:$0xff] %v22843_v42  ;;  %18470 = vmatmul.mubr.msk.f32.gmra.mrb[64].mxu0 %vm2519_vm2, %v8215_v2  ;;  %v8220_v2 = vld [vmem:[#allocation3 + $0x1a0] sm:$0xff] }
 0x66d   :  { %18472 = vmatprep.mubr.msk.f32.mxu0 %vm2519_vm2, %v8216_v30 }
 0x66e   :  { %v22847_v5 = vpop.f32.mrb[92].mxu1 }
 0x66f   :  { %24457 = vst [vmem:[#allocation24_spill] sm:$0xff] %v22847_v5  ;;  %v22849_v34 = vpop.f32.mrb[93].mxu1  ;;  %v8221_v5 = vld [vmem:[#allocation3 + $0x1a8] sm:$0xff] }
 0x670   :  { %24458 = vst [vmem:[#allocation25_spill] sm:$0xff] %v22849_v34  ;;  %18473 = vmatmul.mubr.msk.f32.gmra.mrb[66].mxu0 %vm2519_vm2, %v8217_v54  ;;  %v8222_v54 = vld [vmem:[#allocation3 + $0x1b0] sm:$0xff] }
 0x671   :  { %18475 = vmatprep.mubr.msk.f32.mxu0 %vm2519_vm2, %v8218_v27 }
 0x672   :  { %v22853_v41 = vpop.f32.mrb[94].mxu1 }
 0x673   :  { %24459 = vst [vmem:[#allocation26_spill] sm:$0xff] %v22853_v41  ;;  %v22855_v49 = vpop.f32.mrb[95].mxu1  ;;  %v8223_v41 = vld [vmem:[#allocation3 + $0x1b8] sm:$0xff] }
 0x674   :  { %24460 = vst [vmem:[#allocation27_spill] sm:$0xff] %v22855_v49  ;;  %18476 = vmatmul.mubr.msk.f32.gmra.mrb[68].mxu0 %vm2519_vm2, %v8219_v40  ;;  %v8224_v40 = vld [vmem:[#allocation3 + $0x1c0] sm:$0xff] }
 0x675   :  { %18478 = vmatprep.mubr.msk.f32.mxu0 %vm2519_vm2, %v8220_v2 }
 0x676   :  { %v22859_v30 = vpop.f32.mrb[96].mxu1 }
 0x677   :  { %24461 = vst [vmem:[#allocation28_spill] sm:$0xff] %v22859_v30  ;;  %v22861_v42 = vpop.f32.mrb[97].mxu1  ;;  %v8225_v30 = vld [vmem:[#allocation3 + $0x1c8] sm:$0xff] }
 0x678   :  { %24462 = vst [vmem:[#allocation29_spill] sm:$0xff] %v22861_v42  ;;  %18479 = vmatmul.mubr.msk.f32.gmra.mrb[70].mxu0 %vm2519_vm2, %v8221_v5  ;;  %v8226_v5 = vld [vmem:[#allocation3 + $0x1d0] sm:$0xff] }
 0x679   :  { %18481 = vmatprep.mubr.msk.f32.mxu0 %vm2519_vm2, %v8222_v54 }
 0x67a   :  { %v22865_v27 = vpop.f32.mrb[98].mxu1 }
 0x67b   :  { %24463 = vst [vmem:[#allocation30_spill] sm:$0xff] %v22865_v27  ;;  %v22867_v34 = vpop.f32.mrb[99].mxu1  ;;  %v8227_v27 = vld [vmem:[#allocation3 + $0x1d8] sm:$0xff] }
 0x67c   :  { %24464 = vst [vmem:[#allocation31_spill] sm:$0xff] %v22867_v34  ;;  %18482 = vmatmul.mubr.msk.f32.gmra.mrb[72].mxu0 %vm2519_vm2, %v8223_v41  ;;  %v8228_v41 = vld [vmem:[#allocation3 + $0x1e0] sm:$0xff] }
 0x67d   :  { %18484 = vmatprep.mubr.msk.f32.mxu0 %vm2519_vm2, %v8224_v40 }
 0x67e   :  { %v22871_v2 = vpop.f32.mrb[100].mxu1 }
 0x67f   :  { %24465 = vst [vmem:[#allocation32_spill] sm:$0xff] %v22871_v2  ;;  %v22873_v49 = vpop.f32.mrb[101].mxu1  ;;  %v8229_v2 = vld [vmem:[#allocation3 + $0x1e8] sm:$0xff] }
 0x680   :  { %24466 = vst [vmem:[#allocation33_spill] sm:$0xff] %v22873_v49  ;;  %18485 = vmatmul.mubr.msk.f32.gmra.mrb[74].mxu0 %vm2519_vm2, %v8225_v30  ;;  %v8230_v30 = vld [vmem:[#allocation3 + $0x1f0] sm:$0xff] }
 0x681   :  { %18487 = vmatprep.mubr.msk.f32.mxu0 %vm2519_vm2, %v8226_v5 }
 0x682   :  { %v22877_v54 = vpop.f32.mrb[102].mxu1 }
 0x683   :  { %24467 = vst [vmem:[#allocation34_spill] sm:$0xff] %v22877_v54  ;;  %v22879_v42 = vpop.f32.mrb[103].mxu1  ;;  %v8231_v54 = vld [vmem:[#allocation3 + $0x1f8] sm:$0xff] }
 0x684   :  { %24468 = vst [vmem:[#allocation35_spill] sm:$0xff] %v22879_v42  ;;  %18488 = vmatmul.mubr.msk.f32.gmra.mrb[76].mxu0 %vm2519_vm2, %v8227_v27  ;;  %v8232_v27 = vld [vmem:[#allocation3 + $0x200] sm:$0xff] }
 0x685   :  { %18490 = vmatprep.mubr.msk.f32.mxu0 %vm2519_vm2, %v8228_v41  ;;  %v8881_v42 = vld [vmem:[#allocation3 + $0x21] sm:$0xff] }
 0x686   :  { %v22883_v40 = vpop.f32.mrb[104].mxu1 }
 0x687   :  { %24469 = vst [vmem:[#allocation36_spill] sm:$0xff] %v22883_v40  ;;  %v22885_v34 = vpop.f32.mrb[105].mxu1  ;;  %v8233_v40 = vld [vmem:[#allocation3 + $0x208] sm:$0xff] }
 0x688   :  { %24470 = vst [vmem:[#allocation37_spill] sm:$0xff] %v22885_v34  ;;  %18491 = vmatmul.mubr.msk.f32.gmra.mrb[78].mxu0 %vm2519_vm2, %v8229_v2  ;;  %v9654_v2 = vld [vmem:[%s24435_s4 + $0xd0] sm:$0xff] }
 0x689   :  { %18493 = vmatprep.mubr.msk.f32.mxu0 %vm2519_vm2, %v8230_v30  ;;  %v9655_v30 = vld [vmem:[%s24435_s4 + $0xd8] sm:$0xff] }
 0x68a   :  { %v22889_v5 = vpop.f32.mrb[106].mxu1 }
 0x68b   :  { %24471 = vst [vmem:[#allocation38_spill] sm:$0xff] %v22889_v5  ;;  %v22891_v49 = vpop.f32.mrb[107].mxu1 }
 0x68c   :  { %24472 = vst [vmem:[#allocation39_spill] sm:$0xff] %v22891_v49  ;;  %18494 = vmatmul.mubr.msk.f32.gmra.mrb[80].mxu0 %vm2519_vm2, %v8231_v54  ;;  %v8879_v49 = vld [vmem:[#allocation3 + $0x11] sm:$0xff]  ;;  %v19147_v54 = vpack.c.bf16 %v9655_v30, %v9654_v2 }
 0x68d   :  { %18496 = vmatprep.mubr.msk.f32.mxu0 %vm2519_vm2, %v8232_v27 }
 0x68e   :  { %v22895_v41 = vpop.f32.mrb[108].mxu1 }
 0x68f   :  { %24473 = vst [vmem:[#allocation40_spill] sm:$0xff] %v22895_v41  ;;  %v22903_v5 = vpop.f32.mrb[109].mxu1  ;;  %v8880_v41 = vld [vmem:[#allocation3 + $0x19] sm:$0xff] }
 0x690   :  { %24474 = vst [vmem:[#allocation41_spill] sm:$0xff] %v22903_v5  ;;  %18497 = vmatmul.mubr.msk.f32.gmra.mrb[82].mxu0 %vm2519_vm2, %v8233_v40  ;;  %v8882_v40 = vld [vmem:[#allocation3 + $0x29] sm:$0xff] }
 0x691   :  { %18507 = vmatprep.mubr.msk.f32.mxu0 %vm2519_vm2, %v8879_v49  ;;  %v8883_v49 = vld [vmem:[#allocation3 + $0x31] sm:$0xff] }
 0x692   :  { %v22907_v27 = vpop.f32.mrb[110].mxu1 }
 0x693   :  { %v22909_v34 = vpop.f32.mrb[111].mxu1 }
 0x694   :  { %18508 = vmatmul.mubr.msk.f32.vlgmr.msra.gmra.mrb[20].mxu0 %vm2519_vm2, %v8880_v41  ;;  %v8884_v41 = vld [vmem:[#allocation3 + $0x39] sm:$0xff] }
 0x695   :  { %18510 = vmatprep.mubr.msk.f32.mxu0 %vm2519_vm2, %v8881_v42  ;;  %19146 = vmatpush3.bf16.msra.mxu0 %v22816_v48  ;;  %v8885_v48 = vld [vmem:[#allocation3 + $0x41] sm:$0xff] }
 0x696   :  { %19148 = vmatprep.subr.bf16.mxu0 %v19147_v54  ;;  %v22914_v5 = vpop.f32.mrb[112].mxu1 }
 0x697   :  { %24475 = vst [vmem:[#allocation42_spill] sm:$0xff] %v22914_v5  ;;  %v22916_v29 = vpop.f32.mrb[113].mxu1  ;;  %v8886_v5 = vld [vmem:[#allocation3 + $0x49] sm:$0xff] }
 0x698   :  { %24476 = vst [vmem:[#allocation43_spill] sm:$0xff] %v22916_v29  ;;  %18511 = vmatmul.mubr.msk.f32.gmra.mrb[22].mxu0 %vm2519_vm2, %v8882_v40  ;;  %v8887_v40 = vld [vmem:[#allocation3 + $0x51] sm:$0xff] }
 0x699   :  { %18513 = vmatprep.mubr.msk.f32.mxu0 %vm2519_vm2, %v8883_v49  ;;  %19150 = vmatpush3.bf16.msra.mxu0 %v19147_v54  ;;  %v8888_v49 = vld [vmem:[#allocation3 + $0x59] sm:$0xff] }
 0x69a   :  { %v22920_v2 = vpop.f32.mrb[114].mxu1 }
 0x69b   :  { %24477 = vst [vmem:[#allocation44_spill] sm:$0xff] %v22920_v2  ;;  %v22922_v30 = vpop.f32.mrb[115].mxu1 }
 0x69c   :  { %24478 = vst [vmem:[#allocation45_spill] sm:$0xff] %v22922_v30  ;;  %18514 = vmatmul.mubr.msk.f32.gmra.mrb[24].mxu0 %vm2519_vm2, %v8884_v41  ;;  %v8889_v41 = vld [vmem:[#allocation3 + $0x61] sm:$0xff] }
 0x69d   :  { %18516 = vmatprep.mubr.msk.f32.mxu0 %vm2519_vm2, %v8885_v48 }
 0x69e   :  { %v22926_v42 = vpop.f32.mrb[116].mxu1 }
 0x69f   :  { %24479 = vst [vmem:[#allocation46_spill] sm:$0xff] %v22926_v42  ;;  %v22928_v29 = vpop.f32.mrb[117].mxu1  ;;  %v8890_v42 = vld [vmem:[#allocation3 + $0x69] sm:$0xff] }
 0x6a0   :  { %24480 = vst [vmem:[#allocation47_spill] sm:$0xff] %v22928_v29  ;;  %18517 = vmatmul.mubr.msk.f32.gmra.mrb[26].mxu0 %vm2519_vm2, %v8886_v5  ;;  %v8891_v5 = vld [vmem:[#allocation3 + $0x71] sm:$0xff] }
 0x6a1   :  { %18519 = vmatprep.mubr.msk.f32.mxu0 %vm2519_vm2, %v8887_v40 }
 0x6a2   :  { %v22932_v54 = vpop.f32.mrb[118].mxu1 }
 0x6a3   :  { %24481 = vst [vmem:[#allocation48_spill] sm:$0xff] %v22932_v54  ;;  %v22934_v2 = vpop.f32.mrb[119].mxu1  ;;  %v8892_v54 = vld [vmem:[#allocation3 + $0x79] sm:$0xff] }
 0x6a4   :  { %24482 = vst [vmem:[#allocation49_spill] sm:$0xff] %v22934_v2  ;;  %18520 = vmatmul.mubr.msk.f32.gmra.mrb[28].mxu0 %vm2519_vm2, %v8888_v49  ;;  %v8893_v49 = vld [vmem:[#allocation3 + $0x81] sm:$0xff] }
 0x6a5   :  { %18522 = vmatprep.mubr.msk.f32.mxu0 %vm2519_vm2, %v8889_v41 }
 0x6a6   :  { %v22938_v48 = vpop.f32.mrb[120].mxu1 }
 0x6a7   :  { %24483 = vst [vmem:[#allocation50_spill] sm:$0xff] %v22938_v48  ;;  %v22940_v30 = vpop.f32.mrb[121].mxu1  ;;  %v8894_v48 = vld [vmem:[#allocation3 + $0x89] sm:$0xff] }
 0x6a8   :  { %24484 = vst [vmem:[#allocation51_spill] sm:$0xff] %v22940_v30  ;;  %18523 = vmatmul.mubr.msk.f32.gmra.mrb[30].mxu0 %vm2519_vm2, %v8890_v42  ;;  %v8895_v42 = vld [vmem:[#allocation3 + $0x91] sm:$0xff] }
 0x6a9   :  { %18525 = vmatprep.mubr.msk.f32.mxu0 %vm2519_vm2, %v8891_v5 }
 0x6aa   :  { %v22944_v40 = vpop.f32.mrb[122].mxu1 }
 0x6ab   :  { %24485 = vst [vmem:[#allocation52_spill] sm:$0xff] %v22944_v40  ;;  %v22946_v29 = vpop.f32.mrb[123].mxu1  ;;  %v8896_v40 = vld [vmem:[#allocation3 + $0x99] sm:$0xff] }
 0x6ac   :  { %18526 = vmatmul.mubr.msk.f32.gmra.mrb[32].mxu0 %vm2519_vm2, %v8892_v54  ;;  %v8897_v54 = vld [vmem:[#allocation3 + $0xa1] sm:$0xff] }
 0x6ad   :  { %18528 = vmatprep.mubr.msk.f32.mxu0 %vm2519_vm2, %v8893_v49  ;;  %v8898_v49 = vld [vmem:[#allocation3 + $0xa9] sm:$0xff] }
 0x6ae   :  { %v22950_v41 = vpop.f32.mrb[124].mxu1 }
 0x6af   :  { %24486 = vst [vmem:[#allocation53_spill] sm:$0xff] %v22950_v41  ;;  %v22952_v2 = vpop.f32.mrb[125].mxu1  ;;  %v8899_v41 = vld [vmem:[#allocation3 + $0xb1] sm:$0xff] }
 0x6b0   :  { %18529 = vmatmul.mubr.msk.f32.gmra.mrb[34].mxu0 %vm2519_vm2, %v8894_v48  ;;  %v8900_v48 = vld [vmem:[#allocation3 + $0xb9] sm:$0xff] }
 0x6b1   :  { %18531 = vmatprep.mubr.msk.f32.mxu0 %vm2519_vm2, %v8895_v42  ;;  %v9619_v42 = vld [vmem:[#allocation3 + $0x115] sm:$0xff] }
 0x6b2   :  { %v22956_v5 = vpop.f32.mrb[126].mxu1 }
 0x6b3   :  { %v22958_v30 = vpop.f32.mrb[127].mxu1 }
 0x6b4   :  { %18532 = vmatmul.mubr.msk.f32.gmra.mrb[36].mxu0 %vm2519_vm2, %v8896_v40  ;;  %v10361_v40 = vld [vmem:[%s24435_s4 + $0xe0] sm:$0xff] }
 0x6b5   :  { %18534 = vmatprep.mubr.msk.f32.mxu0 %vm2519_vm2, %v8897_v54  ;;  %v9620_v54 = vld [vmem:[#allocation3 + $0x11d] sm:$0xff] }
 0x6b8   :  { %18535 = vmatmul.mubr.msk.f32.gmra.mrb[38].mxu0 %vm2519_vm2, %v8898_v49  ;;  %v9621_v49 = vld [vmem:[#allocation3 + $0x125] sm:$0xff] }
 0x6b9   :  { %18537 = vmatprep.mubr.msk.f32.mxu0 %vm2519_vm2, %v8899_v41  ;;  %v10362_v41 = vld [vmem:[%s24435_s4 + $0xe8] sm:$0xff] }
 0x6bc   :  { %18538 = vmatmul.mubr.msk.f32.gmra.mrb[40].mxu0 %vm2519_vm2, %v8900_v48  ;;  %v9622_v48 = vld [vmem:[#allocation3 + $0x12d] sm:$0xff] }
 0x6bd   :  { %18540 = vmatprep.mubr.msk.f32.mxu0 %vm2519_vm2, %v22496_v25  ;;  %v19151_v25 = vpack.c.bf16 %v10362_v41, %v10361_v40  ;;  %v9623_v40 = vld [vmem:[#allocation3 + $0x135] sm:$0xff]  ;;  %v9624_v41 = vld [vmem:[#allocation3 + $0x13d] sm:$0xff] }
 0x6bf   :  { %19152 = vmatprep.subr.bf16.mxu0 %v19151_v25 }
 0x6c0   :  { %18541 = vmatmul.mubr.msk.f32.gmra.mrb[42].mxu0 %vm2519_vm2, %v22511_v62  ;;  %v8941_v62 = vld [vmem:[#allocation3 + $0x201] sm:$0xff] }
 0x6c1   :  { %18543 = vmatprep.mubr.msk.f32.mxu0 %vm2519_vm2, %v22516_v1  ;;  %v8942_v1 = vld [vmem:[#allocation3 + $0x209] sm:$0xff] }
 0x6c4   :  { %18544 = vmatmul.mubr.msk.f32.gmra.mrb[44].mxu0 %vm2519_vm2, %v22526_v31  ;;  %v10363_v31 = vld [vmem:[%s24435_s4 + $0xf0] sm:$0xff] }
 0x6c5   :  { %18546 = vmatprep.mubr.msk.f32.mxu0 %vm2519_vm2, %v22531_v60  ;;  %v10364_v60 = vld [vmem:[%s24435_s4 + $0xf8] sm:$0xff] }
 0x6c8   :  { %18547 = vmatmul.mubr.msk.f32.gmra.mrb[46].mxu0 %vm2519_vm2, %v22540_v6  ;;  %v9588_v6 = vld [vmem:[#allocation3 + $0x1d] sm:$0xff] }
 0x6c9   :  { %18549 = vmatprep.mubr.msk.f32.mxu0 %vm2519_vm2, %v22545_v8  ;;  %v19155_v8 = vpack.c.bf16 %v10364_v60, %v10363_v31  ;;  %v9628_v31 = vld [vmem:[#allocation3 + $0x15d] sm:$0xff]  ;;  %v9629_v60 = vld [vmem:[#allocation3 + $0x165] sm:$0xff] }
 0x6cc   :  { %18550 = vmatmul.mubr.msk.f32.gmra.mrb[48].mxu0 %vm2519_vm2, %v22554_v13  ;;  %v9589_v13 = vld [vmem:[#allocation3 + $0x25] sm:$0xff] }
 0x6cd   :  { %18552 = vmatprep.mubr.msk.f32.mxu0 %vm2519_vm2, %v22559_v19  ;;  %v9590_v19 = vld [vmem:[#allocation3 + $0x2d] sm:$0xff] }
 0x6d0   :  { %18553 = vmatmul.mubr.msk.f32.gmra.mrb[50].mxu0 %vm2519_vm2, %v22568_v36  ;;  %v9591_v36 = vld [vmem:[#allocation3 + $0x35] sm:$0xff] }
 0x6d1   :  { %18555 = vmatprep.mubr.msk.f32.mxu0 %vm2519_vm2, %v22573_v23  ;;  %v9592_v23 = vld [vmem:[#allocation3 + $0x3d] sm:$0xff] }
 0x6d4   :  { %18556 = vmatmul.mubr.msk.f32.gmra.mrb[52].mxu0 %vm2519_vm2, %v22582_v43  ;;  %v9593_v43 = vld [vmem:[#allocation3 + $0x45] sm:$0xff] }
 0x6d5   :  { %18558 = vmatprep.mubr.msk.f32.mxu0 %vm2519_vm2, %v22587_v45  ;;  %v9594_v45 = vld [vmem:[#allocation3 + $0x4d] sm:$0xff] }
 0x6d8   :  { %18559 = vmatmul.mubr.msk.f32.gmra.mrb[54].mxu0 %vm2519_vm2, %v22596_v59  ;;  %v9595_v59 = vld [vmem:[#allocation3 + $0x55] sm:$0xff] }
 0x6d9   :  { %18561 = vmatprep.mubr.msk.f32.mxu0 %vm2519_vm2, %v22601_v20  ;;  %v9596_v20 = vld [vmem:[#allocation3 + $0x5d] sm:$0xff] }
 0x6dc   :  { %18562 = vmatmul.mubr.msk.f32.gmra.mrb[56].mxu0 %vm2519_vm2, %v22610_v32  ;;  %v9597_v32 = vld [vmem:[#allocation3 + $0x65] sm:$0xff] }
 0x6dd   :  { %18564 = vmatprep.mubr.msk.f32.mxu0 %vm2519_vm2, %v22615_v47  ;;  %v9598_v47 = vld [vmem:[#allocation3 + $0x6d] sm:$0xff] }
 0x6e0   :  { %18565 = vmatmul.mubr.msk.f32.gmra.mrb[58].mxu0 %vm2519_vm2, %v22624_v57  ;;  %v9599_v57 = vld [vmem:[#allocation3 + $0x75] sm:$0xff] }
 0x6e1   :  { %18567 = vmatprep.mubr.msk.f32.mxu0 %vm2519_vm2, %v22629_v51  ;;  %v9600_v51 = vld [vmem:[#allocation3 + $0x7d] sm:$0xff] }
 0x6e4   :  { %18568 = vmatmul.mubr.msk.f32.gmra.mrb[60].mxu0 %vm2519_vm2, %v22638_v53  ;;  %v9601_v53 = vld [vmem:[#allocation3 + $0x85] sm:$0xff] }
 0x6e5   :  { %18570 = vmatprep.mubr.msk.f32.mxu0 %vm2519_vm2, %v22643_v0  ;;  %v9602_v0 = vld [vmem:[#allocation3 + $0x8d] sm:$0xff] }
 0x6e8   :  { %18571 = vmatmul.mubr.msk.f32.gmra.mrb[62].mxu0 %vm2519_vm2, %v22648_v16  ;;  %v9603_v16 = vld [vmem:[#allocation3 + $0x95] sm:$0xff] }
 0x6e9   :  { %18573 = vmatprep.mubr.msk.f32.mxu0 %vm2519_vm2, %v22653_v61  ;;  %v9604_v61 = vld [vmem:[#allocation3 + $0x9d] sm:$0xff] }
 0x6ec   :  { %18574 = vmatmul.mubr.msk.f32.gmra.mrb[64].mxu0 %vm2519_vm2, %v22658_v9  ;;  %v9605_v9 = vld [vmem:[#allocation3 + $0xa5] sm:$0xff] }
 0x6ed   :  { %18576 = vmatprep.mubr.msk.f32.mxu0 %vm2519_vm2, %v22663_v24  ;;  %v9606_v24 = vld [vmem:[#allocation3 + $0xad] sm:$0xff] }
 0x6f0   :  { %18577 = vmatmul.mubr.msk.f32.gmra.mrb[66].mxu0 %vm2519_vm2, %v22668_v39  ;;  %v9607_v39 = vld [vmem:[#allocation3 + $0xb5] sm:$0xff] }
 0x6f1   :  { %18579 = vmatprep.mubr.msk.f32.mxu0 %vm2519_vm2, %v22673_v3  ;;  %v9608_v3 = vld [vmem:[#allocation3 + $0xbd] sm:$0xff] }
 0x6f4   :  { %18580 = vmatmul.mubr.msk.f32.gmra.mrb[68].mxu0 %vm2519_vm2, %v22686_v63  ;;  %v9609_v63 = vld [vmem:[#allocation3 + $0xc5] sm:$0xff] }
 0x6f5   :  { %18582 = vmatprep.mubr.msk.f32.mxu0 %vm2519_vm2, %v22692_v12  ;;  %v9610_v12 = vld [vmem:[#allocation3 + $0xcd] sm:$0xff] }
 0x6f8   :  { %18583 = vmatmul.mubr.msk.f32.gmra.mrb[70].mxu0 %vm2519_vm2, %v22697_v56  ;;  %v9611_v56 = vld [vmem:[#allocation3 + $0xd5] sm:$0xff] }
 0x6f9   :  { %18585 = vmatprep.mubr.msk.f32.mxu0 %vm2519_vm2, %v22702_v14  ;;  %v9612_v14 = vld [vmem:[#allocation3 + $0xdd] sm:$0xff] }
 0x6fc   :  { %18586 = vmatmul.mubr.msk.f32.gmra.mrb[72].mxu0 %vm2519_vm2, %v22707_v44  ;;  %v9613_v44 = vld [vmem:[#allocation3 + $0xe5] sm:$0xff] }
 0x6fd   :  { %18588 = vmatprep.mubr.msk.f32.mxu0 %vm2519_vm2, %v22712_v21  ;;  %v9614_v21 = vld [vmem:[#allocation3 + $0xed] sm:$0xff] }
 0x700   :  { %18589 = vmatmul.mubr.msk.f32.gmra.mrb[74].mxu0 %vm2519_vm2, %v22717_v22  ;;  %v11070_v22 = vld [vmem:[%s24435_s4 + $0x100] sm:$0xff] }
 0x701   :  { %18591 = vmatprep.mubr.msk.f32.mxu0 %vm2519_vm2, %v22722_v7  ;;  %v11071_v7 = vld [vmem:[%s24435_s4 + $0x108] sm:$0xff] }
 0x704   :  { %18592 = vmatmul.mubr.msk.f32.gmra.mrb[76].mxu0 %vm2519_vm2, %v22727_v46  ;;  %v23092_v46 = vpack.c.bf16 %v11071_v7, %v11070_v22  ;;  %v10300_v22 = vld [vmem:[#allocation3 + $0x36] sm:$0xff]  ;;  %v10301_v7 = vld [vmem:[#allocation3 + $0x3e] sm:$0xff] }
 0x705   :  { %18594 = vmatprep.mubr.msk.f32.mxu0 %vm2519_vm2, %v22732_v35  ;;  %v9615_v35 = vld [vmem:[#allocation3 + $0xf5] sm:$0xff] }
 0x708   :  { %18595 = vmatmul.mubr.msk.f32.gmra.mrb[78].mxu0 %vm2519_vm2, %v22737_v18  ;;  %v9616_v18 = vld [vmem:[#allocation3 + $0xfd] sm:$0xff] }
 0x709   :  { %18597 = vmatprep.mubr.msk.f32.mxu0 %vm2519_vm2, %v22742_v37  ;;  %v9617_v37 = vld [vmem:[#allocation3 + $0x105] sm:$0xff] }
 0x70c   :  { %18598 = vmatmul.mubr.msk.f32.gmra.mrb[80].mxu0 %vm2519_vm2, %v22747_v15  ;;  %v9618_v15 = vld [vmem:[#allocation3 + $0x10d] sm:$0xff] }
 0x70d   :  { %18600 = vmatprep.mubr.msk.f32.mxu0 %vm2519_vm2, %v8941_v62  ;;  %v9626_v62 = vld [vmem:[#allocation3 + $0x14d] sm:$0xff] }
 0x710   :  { %18601 = vmatmul.mubr.msk.f32.gmra.mrb[82].mxu0 %vm2519_vm2, %v8942_v1  ;;  %v9627_v1 = vld [vmem:[#allocation3 + $0x155] sm:$0xff] }
 0x711   :  { %18611 = vmatprep.mubr.msk.f32.mxu0 %vm2519_vm2, %v9588_v6  ;;  %v9630_v6 = vld [vmem:[#allocation3 + $0x16d] sm:$0xff] }
 0x714   :  { %18612 = vmatmul.mubr.msk.f32.vlgmr.msra.gmra.mrb[20].mxu0 %vm2519_vm2, %v9589_v13  ;;  %v9632_v13 = vld [vmem:[#allocation3 + $0x17d] sm:$0xff] }
 0x715   :  { %18614 = vmatprep.mubr.msk.f32.mxu0 %vm2519_vm2, %v9590_v19  ;;  %19154 = vmatpush3.bf16.msra.mxu0 %v19151_v25  ;;  %v9625_v25 = vld [vmem:[#allocation3 + $0x145] sm:$0xff] }
 0x716   :  { %19156 = vmatprep.subr.bf16.mxu0 %v19155_v8  ;;  %v9633_v19 = vld [vmem:[#allocation3 + $0x185] sm:$0xff] }
 0x718   :  { %18615 = vmatmul.mubr.msk.f32.gmra.mrb[22].mxu0 %vm2519_vm2, %v9591_v36  ;;  %v9634_v36 = vld [vmem:[#allocation3 + $0x18d] sm:$0xff] }
 0x719   :  { %18617 = vmatprep.mubr.msk.f32.mxu0 %vm2519_vm2, %v9592_v23  ;;  %19158 = vmatpush3.bf16.msra.mxu0 %v19155_v8  ;;  %v9631_v8 = vld [vmem:[#allocation3 + $0x175] sm:$0xff] }
 0x71a   :  { %19160 = vmatprep.subr.bf16.mxu0 %v23092_v46  ;;  %v9635_v23 = vld [vmem:[#allocation3 + $0x195] sm:$0xff] }
 0x71c   :  { %18618 = vmatmul.mubr.msk.f32.gmra.mrb[24].mxu0 %vm2519_vm2, %v9593_v43  ;;  %v9636_v43 = vld [vmem:[#allocation3 + $0x19d] sm:$0xff] }
 0x71d   :  { %18620 = vmatprep.mubr.msk.f32.mxu0 %vm2519_vm2, %v9594_v45  ;;  %v9637_v45 = vld [vmem:[#allocation3 + $0x1a5] sm:$0xff] }
 0x720   :  { %18621 = vmatmul.mubr.msk.f32.gmra.mrb[26].mxu0 %vm2519_vm2, %v9595_v59  ;;  %v9638_v59 = vld [vmem:[#allocation3 + $0x1ad] sm:$0xff] }
 0x721   :  { %18623 = vmatprep.mubr.msk.f32.mxu0 %vm2519_vm2, %v9596_v20  ;;  %v9639_v20 = vld [vmem:[#allocation3 + $0x1b5] sm:$0xff] }
 0x724   :  { %18624 = vmatmul.mubr.msk.f32.gmra.mrb[28].mxu0 %vm2519_vm2, %v9597_v32  ;;  %v9640_v32 = vld [vmem:[#allocation3 + $0x1bd] sm:$0xff] }
 0x725   :  { %18626 = vmatprep.mubr.msk.f32.mxu0 %vm2519_vm2, %v9598_v47  ;;  %v9641_v47 = vld [vmem:[#allocation3 + $0x1c5] sm:$0xff] }
 0x728   :  { %18627 = vmatmul.mubr.msk.f32.gmra.mrb[30].mxu0 %vm2519_vm2, %v9599_v57  ;;  %v9642_v57 = vld [vmem:[#allocation3 + $0x1cd] sm:$0xff] }
 0x729   :  { %18629 = vmatprep.mubr.msk.f32.mxu0 %vm2519_vm2, %v9600_v51  ;;  %v9643_v51 = vld [vmem:[#allocation3 + $0x1d5] sm:$0xff] }
 0x72c   :  { %18630 = vmatmul.mubr.msk.f32.gmra.mrb[32].mxu0 %vm2519_vm2, %v9601_v53  ;;  %v9644_v53 = vld [vmem:[#allocation3 + $0x1dd] sm:$0xff] }
 0x72d   :  { %18632 = vmatprep.mubr.msk.f32.mxu0 %vm2519_vm2, %v9602_v0  ;;  %v9645_v0 = vld [vmem:[#allocation3 + $0x1e5] sm:$0xff] }
 0x730   :  { %18633 = vmatmul.mubr.msk.f32.gmra.mrb[34].mxu0 %vm2519_vm2, %v9603_v16  ;;  %v9646_v16 = vld [vmem:[#allocation3 + $0x1ed] sm:$0xff] }
 0x731   :  { %18635 = vmatprep.mubr.msk.f32.mxu0 %vm2519_vm2, %v9604_v61  ;;  %v9647_v61 = vld [vmem:[#allocation3 + $0x1f5] sm:$0xff] }
 0x734   :  { %18636 = vmatmul.mubr.msk.f32.gmra.mrb[36].mxu0 %vm2519_vm2, %v9605_v9  ;;  %v9648_v9 = vld [vmem:[#allocation3 + $0x1fd] sm:$0xff] }
 0x735   :  { %18638 = vmatprep.mubr.msk.f32.mxu0 %vm2519_vm2, %v9606_v24  ;;  %v9649_v24 = vld [vmem:[#allocation3 + $0x205] sm:$0xff] }
 0x738   :  { %18639 = vmatmul.mubr.msk.f32.gmra.mrb[38].mxu0 %vm2519_vm2, %v9607_v39  ;;  %v9650_v39 = vld [vmem:[#allocation3 + $0x20d] sm:$0xff] }
 0x739   :  { %18641 = vmatprep.mubr.msk.f32.mxu0 %vm2519_vm2, %v9608_v3  ;;  %v9651_v3 = vld [vmem:[#allocation3 + $0x215] sm:$0xff] }
 0x73c   :  { %18642 = vmatmul.mubr.msk.f32.gmra.mrb[40].mxu0 %vm2519_vm2, %v9609_v63  ;;  %v11072_v63 = vld [vmem:[%s24435_s4 + $0x110] sm:$0xff] }
 0x73d   :  { %18644 = vmatprep.mubr.msk.f32.mxu0 %vm2519_vm2, %v9610_v12  ;;  %v11073_v12 = vld [vmem:[%s24435_s4 + $0x118] sm:$0xff] }
 0x740   :  { %18645 = vmatmul.mubr.msk.f32.gmra.mrb[42].mxu0 %vm2519_vm2, %v9611_v56  ;;  %v10297_v56 = vld [vmem:[#allocation3 + $0x1e] sm:$0xff] }
 0x741   :  { %18647 = vmatprep.mubr.msk.f32.mxu0 %vm2519_vm2, %v9612_v14  ;;  %v19163_v14 = vpack.c.bf16 %v11073_v12, %v11072_v63  ;;  %v10340_v63 = vld [vmem:[#allocation3 + $0x176] sm:$0xff]  ;;  %v10341_v12 = vld [vmem:[#allocation3 + $0x17e] sm:$0xff] }
 0x744   :  { %18648 = vmatmul.mubr.msk.f32.gmra.mrb[44].mxu0 %vm2519_vm2, %v9613_v44  ;;  %v10298_v44 = vld [vmem:[#allocation3 + $0x26] sm:$0xff] }
 0x745   :  { %18650 = vmatprep.mubr.msk.f32.mxu0 %vm2519_vm2, %v9614_v21  ;;  %v10299_v21 = vld [vmem:[#allocation3 + $0x2e] sm:$0xff] }
 0x748   :  { %18651 = vmatmul.mubr.msk.f32.gmra.mrb[46].mxu0 %vm2519_vm2, %v9615_v35  ;;  %v10302_v35 = vld [vmem:[#allocation3 + $0x46] sm:$0xff] }
 0x749   :  { %18653 = vmatprep.mubr.msk.f32.mxu0 %vm2519_vm2, %v9616_v18  ;;  %v10303_v18 = vld [vmem:[#allocation3 + $0x4e] sm:$0xff] }
 0x74c   :  { %18654 = vmatmul.mubr.msk.f32.gmra.mrb[48].mxu0 %vm2519_vm2, %v9617_v37  ;;  %v10304_v37 = vld [vmem:[#allocation3 + $0x56] sm:$0xff] }
 0x74d   :  { %18656 = vmatprep.mubr.msk.f32.mxu0 %vm2519_vm2, %v9618_v15  ;;  %v10305_v15 = vld [vmem:[#allocation3 + $0x5e] sm:$0xff] }
 0x750   :  { %18657 = vmatmul.mubr.msk.f32.gmra.mrb[50].mxu0 %vm2519_vm2, %v9619_v42  ;;  %v10307_v42 = vld [vmem:[#allocation3 + $0x6e] sm:$0xff] }
 0x751   :  { %18659 = vmatprep.mubr.msk.f32.mxu0 %vm2519_vm2, %v9620_v54  ;;  %v10308_v54 = vld [vmem:[#allocation3 + $0x76] sm:$0xff] }
 0x754   :  { %18660 = vmatmul.mubr.msk.f32.gmra.mrb[52].mxu0 %vm2519_vm2, %v9621_v49  ;;  %v10309_v49 = vld [vmem:[#allocation3 + $0x7e] sm:$0xff] }
 0x755   :  { %18662 = vmatprep.mubr.msk.f32.mxu0 %vm2519_vm2, %v9622_v48  ;;  %v10310_v48 = vld [vmem:[#allocation3 + $0x86] sm:$0xff] }
 0x758   :  { %18663 = vmatmul.mubr.msk.f32.gmra.mrb[54].mxu0 %vm2519_vm2, %v9623_v40  ;;  %v10311_v40 = vld [vmem:[#allocation3 + $0x8e] sm:$0xff] }
 0x759   :  { %18665 = vmatprep.mubr.msk.f32.mxu0 %vm2519_vm2, %v9624_v41  ;;  %v10312_v41 = vld [vmem:[#allocation3 + $0x96] sm:$0xff] }
 0x75c   :  { %18666 = vmatmul.mubr.msk.f32.gmra.mrb[56].mxu0 %vm2519_vm2, %v9625_v25  ;;  %v10313_v25 = vld [vmem:[#allocation3 + $0x9e] sm:$0xff] }
 0x75d   :  { %18668 = vmatprep.mubr.msk.f32.mxu0 %vm2519_vm2, %v9626_v62  ;;  %v10314_v62 = vld [vmem:[#allocation3 + $0xa6] sm:$0xff] }
 0x760   :  { %18669 = vmatmul.mubr.msk.f32.gmra.mrb[58].mxu0 %vm2519_vm2, %v9627_v1  ;;  %v10315_v1 = vld [vmem:[#allocation3 + $0xae] sm:$0xff] }
 0x761   :  { %18671 = vmatprep.mubr.msk.f32.mxu0 %vm2519_vm2, %v9628_v31  ;;  %v10316_v31 = vld [vmem:[#allocation3 + $0xb6] sm:$0xff] }
 0x764   :  { %18672 = vmatmul.mubr.msk.f32.gmra.mrb[60].mxu0 %vm2519_vm2, %v9629_v60  ;;  %v10317_v60 = vld [vmem:[#allocation3 + $0xbe] sm:$0xff] }
 0x765   :  { %18674 = vmatprep.mubr.msk.f32.mxu0 %vm2519_vm2, %v9630_v6  ;;  %v10318_v6 = vld [vmem:[#allocation3 + $0xc6] sm:$0xff] }
 0x768   :  { %18675 = vmatmul.mubr.msk.f32.gmra.mrb[62].mxu0 %vm2519_vm2, %v9631_v8  ;;  %v10319_v8 = vld [vmem:[#allocation3 + $0xce] sm:$0xff] }
 0x769   :  { %18677 = vmatprep.mubr.msk.f32.mxu0 %vm2519_vm2, %v9632_v13  ;;  %v10320_v13 = vld [vmem:[#allocation3 + $0xd6] sm:$0xff] }
 0x76c   :  { %18678 = vmatmul.mubr.msk.f32.gmra.mrb[64].mxu0 %vm2519_vm2, %v9633_v19  ;;  %v10321_v19 = vld [vmem:[#allocation3 + $0xde] sm:$0xff] }
 0x76d   :  { %18680 = vmatprep.mubr.msk.f32.mxu0 %vm2519_vm2, %v9634_v36  ;;  %v10322_v36 = vld [vmem:[#allocation3 + $0xe6] sm:$0xff] }
 0x770   :  { %18681 = vmatmul.mubr.msk.f32.gmra.mrb[66].mxu0 %vm2519_vm2, %v9635_v23  ;;  %v10323_v23 = vld [vmem:[#allocation3 + $0xee] sm:$0xff] }
 0x771   :  { %18683 = vmatprep.mubr.msk.f32.mxu0 %vm2519_vm2, %v9636_v43  ;;  %v10324_v43 = vld [vmem:[#allocation3 + $0xf6] sm:$0xff] }
 0x774   :  { %18684 = vmatmul.mubr.msk.f32.gmra.mrb[68].mxu0 %vm2519_vm2, %v9637_v45  ;;  %v10325_v45 = vld [vmem:[#allocation3 + $0xfe] sm:$0xff] }
 0x775   :  { %18686 = vmatprep.mubr.msk.f32.mxu0 %vm2519_vm2, %v9638_v59  ;;  %v10326_v59 = vld [vmem:[#allocation3 + $0x106] sm:$0xff] }
 0x778   :  { %18687 = vmatmul.mubr.msk.f32.gmra.mrb[70].mxu0 %vm2519_vm2, %v9639_v20  ;;  %v10327_v20 = vld [vmem:[#allocation3 + $0x10e] sm:$0xff] }
 0x779   :  { %18689 = vmatprep.mubr.msk.f32.mxu0 %vm2519_vm2, %v9640_v32  ;;  %v10328_v32 = vld [vmem:[#allocation3 + $0x116] sm:$0xff] }
 0x77c   :  { %18690 = vmatmul.mubr.msk.f32.gmra.mrb[72].mxu0 %vm2519_vm2, %v9641_v47  ;;  %v10329_v47 = vld [vmem:[#allocation3 + $0x11e] sm:$0xff] }
 0x77d   :  { %18692 = vmatprep.mubr.msk.f32.mxu0 %vm2519_vm2, %v9642_v57  ;;  %v10330_v57 = vld [vmem:[#allocation3 + $0x126] sm:$0xff] }
 0x780   :  { %18693 = vmatmul.mubr.msk.f32.gmra.mrb[74].mxu0 %vm2519_vm2, %v9643_v51  ;;  %v10331_v51 = vld [vmem:[#allocation3 + $0x12e] sm:$0xff] }
 0x781   :  { %18695 = vmatprep.mubr.msk.f32.mxu0 %vm2519_vm2, %v9644_v53  ;;  %v10332_v53 = vld [vmem:[#allocation3 + $0x136] sm:$0xff] }
 0x784   :  { %18696 = vmatmul.mubr.msk.f32.gmra.mrb[76].mxu0 %vm2519_vm2, %v9645_v0  ;;  %v10333_v0 = vld [vmem:[#allocation3 + $0x13e] sm:$0xff] }
 0x785   :  { %18698 = vmatprep.mubr.msk.f32.mxu0 %vm2519_vm2, %v9646_v16  ;;  %v10334_v16 = vld [vmem:[#allocation3 + $0x146] sm:$0xff] }
 0x788   :  { %18699 = vmatmul.mubr.msk.f32.gmra.mrb[78].mxu0 %vm2519_vm2, %v9647_v61  ;;  %v10335_v61 = vld [vmem:[#allocation3 + $0x14e] sm:$0xff] }
 0x789   :  { %18701 = vmatprep.mubr.msk.f32.mxu0 %vm2519_vm2, %v9648_v9  ;;  %v10336_v9 = vld [vmem:[#allocation3 + $0x156] sm:$0xff] }
 0x78c   :  { %18702 = vmatmul.mubr.msk.f32.gmra.mrb[80].mxu0 %vm2519_vm2, %v9649_v24  ;;  %v10337_v24 = vld [vmem:[#allocation3 + $0x15e] sm:$0xff] }
 0x78d   :  { %18704 = vmatprep.mubr.msk.f32.mxu0 %vm2519_vm2, %v9650_v39  ;;  %v10338_v39 = vld [vmem:[#allocation3 + $0x166] sm:$0xff] }
 0x790   :  { %18705 = vmatmul.mubr.msk.f32.gmra.mrb[82].mxu0 %vm2519_vm2, %v9651_v3  ;;  %v10339_v3 = vld [vmem:[#allocation3 + $0x16e] sm:$0xff] }
 0x791   :  { %18715 = vmatprep.mubr.msk.f32.mxu0 %vm2519_vm2, %v10297_v56  ;;  %v10342_v56 = vld [vmem:[#allocation3 + $0x186] sm:$0xff] }
 0x794   :  { %18716 = vmatmul.mubr.msk.f32.vlgmr.msra.gmra.mrb[20].mxu0 %vm2519_vm2, %v10298_v44  ;;  %v10344_v44 = vld [vmem:[#allocation3 + $0x196] sm:$0xff] }
 0x795   :  { %18718 = vmatprep.mubr.msk.f32.mxu0 %vm2519_vm2, %v10299_v21  ;;  %19162 = vmatpush3.bf16.msra.mxu0 %v23092_v46  ;;  %v10306_v46 = vld [vmem:[#allocation3 + $0x66] sm:$0xff]  ;;  %v10345_v21 = vld [vmem:[#allocation3 + $0x19e] sm:$0xff] }
 0x796   :  { %19164 = vmatprep.subr.bf16.mxu0 %v19163_v14 }
 0x798   :  { %18719 = vmatmul.mubr.msk.f32.gmra.mrb[22].mxu0 %vm2519_vm2, %v10300_v22  ;;  %v10346_v22 = vld [vmem:[#allocation3 + $0x1a6] sm:$0xff] }
 0x799   :  { %18721 = vmatprep.mubr.msk.f32.mxu0 %vm2519_vm2, %v10301_v7  ;;  %19166 = vmatpush3.bf16.msra.mxu0 %v19163_v14  ;;  %v10343_v14 = vld [vmem:[#allocation3 + $0x18e] sm:$0xff] }
 0x79a   :  { %v10347_v7 = vld [vmem:[#allocation3 + $0x1ae] sm:$0xff] }
 0x79c   :  { %18722 = vmatmul.mubr.msk.f32.gmra.mrb[24].mxu0 %vm2519_vm2, %v10302_v35  ;;  %v10348_v35 = vld [vmem:[#allocation3 + $0x1b6] sm:$0xff] }
 0x79d   :  { %18724 = vmatprep.mubr.msk.f32.mxu0 %vm2519_vm2, %v10303_v18  ;;  %v10349_v18 = vld [vmem:[#allocation3 + $0x1be] sm:$0xff] }
 0x7a0   :  { %18725 = vmatmul.mubr.msk.f32.gmra.mrb[26].mxu0 %vm2519_vm2, %v10304_v37  ;;  %v10350_v37 = vld [vmem:[#allocation3 + $0x1c6] sm:$0xff] }
 0x7a1   :  { %18727 = vmatprep.mubr.msk.f32.mxu0 %vm2519_vm2, %v10305_v15  ;;  %v10351_v15 = vld [vmem:[#allocation3 + $0x1ce] sm:$0xff] }
 0x7a4   :  { %18728 = vmatmul.mubr.msk.f32.gmra.mrb[28].mxu0 %vm2519_vm2, %v10306_v46  ;;  %v10352_v46 = vld [vmem:[#allocation3 + $0x1d6] sm:$0xff] }
 0x7a5   :  { %18730 = vmatprep.mubr.msk.f32.mxu0 %vm2519_vm2, %v10307_v42  ;;  %v10353_v42 = vld [vmem:[#allocation3 + $0x1de] sm:$0xff] }
 0x7a8   :  { %18731 = vmatmul.mubr.msk.f32.gmra.mrb[30].mxu0 %vm2519_vm2, %v10308_v54  ;;  %v10354_v54 = vld [vmem:[#allocation3 + $0x1e6] sm:$0xff] }
 0x7a9   :  { %18733 = vmatprep.mubr.msk.f32.mxu0 %vm2519_vm2, %v10309_v49  ;;  %v10355_v49 = vld [vmem:[#allocation3 + $0x1ee] sm:$0xff] }
 0x7ac   :  { %18734 = vmatmul.mubr.msk.f32.gmra.mrb[32].mxu0 %vm2519_vm2, %v10310_v48  ;;  %v10356_v48 = vld [vmem:[#allocation3 + $0x1f6] sm:$0xff] }
 0x7ad   :  { %18736 = vmatprep.mubr.msk.f32.mxu0 %vm2519_vm2, %v10311_v40  ;;  %v10357_v40 = vld [vmem:[#allocation3 + $0x1fe] sm:$0xff] }
 0x7b0   :  { %18737 = vmatmul.mubr.msk.f32.gmra.mrb[34].mxu0 %vm2519_vm2, %v10312_v41  ;;  %v10358_v41 = vld [vmem:[#allocation3 + $0x206] sm:$0xff] }
 0x7b1   :  { %18739 = vmatprep.mubr.msk.f32.mxu0 %vm2519_vm2, %v10313_v25  ;;  %v10359_v25 = vld [vmem:[#allocation3 + $0x20e] sm:$0xff] }
 0x7b4   :  { %18740 = vmatmul.mubr.msk.f32.gmra.mrb[36].mxu0 %vm2519_vm2, %v10314_v62  ;;  %v10360_v62 = vld [vmem:[#allocation3 + $0x216] sm:$0xff] }
 0x7b5   :  { %18742 = vmatprep.mubr.msk.f32.mxu0 %vm2519_vm2, %v10315_v1  ;;  %v11006_v1 = vld [vmem:[#allocation3 + $0x1f] sm:$0xff] }
 0x7b8   :  { %18743 = vmatmul.mubr.msk.f32.gmra.mrb[38].mxu0 %vm2519_vm2, %v10316_v31  ;;  %v11007_v31 = vld [vmem:[#allocation3 + $0x27] sm:$0xff] }
 0x7b9   :  { %18745 = vmatprep.mubr.msk.f32.mxu0 %vm2519_vm2, %v10317_v60  ;;  %v11008_v60 = vld [vmem:[#allocation3 + $0x2f] sm:$0xff] }
 0x7bc   :  { %18746 = vmatmul.mubr.msk.f32.gmra.mrb[40].mxu0 %vm2519_vm2, %v10318_v6  ;;  %v11009_v6 = vld [vmem:[#allocation3 + $0x37] sm:$0xff] }
 0x7bd   :  { %18748 = vmatprep.mubr.msk.f32.mxu0 %vm2519_vm2, %v10319_v8  ;;  %v11010_v8 = vld [vmem:[#allocation3 + $0x3f] sm:$0xff] }
 0x7c0   :  { %18749 = vmatmul.mubr.msk.f32.gmra.mrb[42].mxu0 %vm2519_vm2, %v10320_v13  ;;  %v11011_v13 = vld [vmem:[#allocation3 + $0x47] sm:$0xff] }
 0x7c1   :  { %18751 = vmatprep.mubr.msk.f32.mxu0 %vm2519_vm2, %v10321_v19  ;;  %v11012_v19 = vld [vmem:[#allocation3 + $0x4f] sm:$0xff] }
 0x7c4   :  { %18752 = vmatmul.mubr.msk.f32.gmra.mrb[44].mxu0 %vm2519_vm2, %v10322_v36  ;;  %v11013_v36 = vld [vmem:[#allocation3 + $0x57] sm:$0xff] }
 0x7c5   :  { %18754 = vmatprep.mubr.msk.f32.mxu0 %vm2519_vm2, %v10323_v23  ;;  %v11014_v23 = vld [vmem:[#allocation3 + $0x5f] sm:$0xff] }
 0x7c8   :  { %18755 = vmatmul.mubr.msk.f32.gmra.mrb[46].mxu0 %vm2519_vm2, %v10324_v43  ;;  %v11015_v43 = vld [vmem:[#allocation3 + $0x67] sm:$0xff] }
 0x7c9   :  { %18757 = vmatprep.mubr.msk.f32.mxu0 %vm2519_vm2, %v10325_v45  ;;  %v11016_v45 = vld [vmem:[#allocation3 + $0x6f] sm:$0xff] }
 0x7cc   :  { %18758 = vmatmul.mubr.msk.f32.gmra.mrb[48].mxu0 %vm2519_vm2, %v10326_v59  ;;  %v11017_v59 = vld [vmem:[#allocation3 + $0x77] sm:$0xff] }
 0x7cd   :  { %18760 = vmatprep.mubr.msk.f32.mxu0 %vm2519_vm2, %v10327_v20  ;;  %v11018_v20 = vld [vmem:[#allocation3 + $0x7f] sm:$0xff] }
 0x7d0   :  { %18761 = vmatmul.mubr.msk.f32.gmra.mrb[50].mxu0 %vm2519_vm2, %v10328_v32  ;;  %v11019_v32 = vld [vmem:[#allocation3 + $0x87] sm:$0xff] }
 0x7d1   :  { %18763 = vmatprep.mubr.msk.f32.mxu0 %vm2519_vm2, %v10329_v47  ;;  %v11020_v47 = vld [vmem:[#allocation3 + $0x8f] sm:$0xff] }
 0x7d4   :  { %18764 = vmatmul.mubr.msk.f32.gmra.mrb[52].mxu0 %vm2519_vm2, %v10330_v57  ;;  %v11021_v57 = vld [vmem:[#allocation3 + $0x97] sm:$0xff] }
 0x7d5   :  { %18766 = vmatprep.mubr.msk.f32.mxu0 %vm2519_vm2, %v10331_v51  ;;  %v11022_v51 = vld [vmem:[#allocation3 + $0x9f] sm:$0xff] }
 0x7d8   :  { %18767 = vmatmul.mubr.msk.f32.gmra.mrb[54].mxu0 %vm2519_vm2, %v10332_v53  ;;  %v11023_v53 = vld [vmem:[#allocation3 + $0xa7] sm:$0xff] }
 0x7d9   :  { %18769 = vmatprep.mubr.msk.f32.mxu0 %vm2519_vm2, %v10333_v0  ;;  %v11024_v0 = vld [vmem:[#allocation3 + $0xaf] sm:$0xff] }
 0x7dc   :  { %18770 = vmatmul.mubr.msk.f32.gmra.mrb[56].mxu0 %vm2519_vm2, %v10334_v16  ;;  %v11025_v16 = vld [vmem:[#allocation3 + $0xb7] sm:$0xff] }
 0x7dd   :  { %18772 = vmatprep.mubr.msk.f32.mxu0 %vm2519_vm2, %v10335_v61  ;;  %v11026_v61 = vld [vmem:[#allocation3 + $0xbf] sm:$0xff] }
 0x7e0   :  { %18773 = vmatmul.mubr.msk.f32.gmra.mrb[58].mxu0 %vm2519_vm2, %v10336_v9  ;;  %v11027_v9 = vld [vmem:[#allocation3 + $0xc7] sm:$0xff] }
 0x7e1   :  { %18775 = vmatprep.mubr.msk.f32.mxu0 %vm2519_vm2, %v10337_v24  ;;  %v11028_v24 = vld [vmem:[#allocation3 + $0xcf] sm:$0xff] }
 0x7e4   :  { %18776 = vmatmul.mubr.msk.f32.gmra.mrb[60].mxu0 %vm2519_vm2, %v10338_v39  ;;  %v11029_v39 = vld [vmem:[#allocation3 + $0xd7] sm:$0xff] }
 0x7e5   :  { %18778 = vmatprep.mubr.msk.f32.mxu0 %vm2519_vm2, %v10339_v3  ;;  %v11030_v3 = vld [vmem:[#allocation3 + $0xdf] sm:$0xff] }
 0x7e8   :  { %18779 = vmatmul.mubr.msk.f32.gmra.mrb[62].mxu0 %vm2519_vm2, %v10340_v63  ;;  %v11031_v63 = vld [vmem:[#allocation3 + $0xe7] sm:$0xff] }
 0x7e9   :  { %18781 = vmatprep.mubr.msk.f32.mxu0 %vm2519_vm2, %v10341_v12  ;;  %v11032_v12 = vld [vmem:[#allocation3 + $0xef] sm:$0xff] }
 0x7ec   :  { %18782 = vmatmul.mubr.msk.f32.gmra.mrb[64].mxu0 %vm2519_vm2, %v10342_v56  ;;  %v11033_v56 = vld [vmem:[#allocation3 + $0xf7] sm:$0xff] }
 0x7ed   :  { %18784 = vmatprep.mubr.msk.f32.mxu0 %vm2519_vm2, %v10343_v14  ;;  %v11034_v14 = vld [vmem:[#allocation3 + $0xff] sm:$0xff] }
 0x7f0   :  { %18785 = vmatmul.mubr.msk.f32.gmra.mrb[66].mxu0 %vm2519_vm2, %v10344_v44  ;;  %v11035_v44 = vld [vmem:[#allocation3 + $0x107] sm:$0xff] }
 0x7f1   :  { %18787 = vmatprep.mubr.msk.f32.mxu0 %vm2519_vm2, %v10345_v21  ;;  %v11036_v21 = vld [vmem:[#allocation3 + $0x10f] sm:$0xff] }
 0x7f4   :  { %18788 = vmatmul.mubr.msk.f32.gmra.mrb[68].mxu0 %vm2519_vm2, %v10346_v22  ;;  %v11037_v22 = vld [vmem:[#allocation3 + $0x117] sm:$0xff] }
 0x7f5   :  { %18790 = vmatprep.mubr.msk.f32.mxu0 %vm2519_vm2, %v10347_v7  ;;  %v11038_v7 = vld [vmem:[#allocation3 + $0x11f] sm:$0xff] }
 0x7f8   :  { %18791 = vmatmul.mubr.msk.f32.gmra.mrb[70].mxu0 %vm2519_vm2, %v10348_v35  ;;  %v11039_v35 = vld [vmem:[#allocation3 + $0x127] sm:$0xff] }
 0x7f9   :  { %18793 = vmatprep.mubr.msk.f32.mxu0 %vm2519_vm2, %v10349_v18  ;;  %v11040_v18 = vld [vmem:[#allocation3 + $0x12f] sm:$0xff] }
 0x7fc   :  { %18794 = vmatmul.mubr.msk.f32.gmra.mrb[72].mxu0 %vm2519_vm2, %v10350_v37  ;;  %v11041_v37 = vld [vmem:[#allocation3 + $0x137] sm:$0xff] }
 0x7fd   :  { %18796 = vmatprep.mubr.msk.f32.mxu0 %vm2519_vm2, %v10351_v15  ;;  %v11042_v15 = vld [vmem:[#allocation3 + $0x13f] sm:$0xff] }
 0x800   :  { %18797 = vmatmul.mubr.msk.f32.gmra.mrb[74].mxu0 %vm2519_vm2, %v10352_v46  ;;  %v11043_v46 = vld [vmem:[#allocation3 + $0x147] sm:$0xff] }
 0x801   :  { %18799 = vmatprep.mubr.msk.f32.mxu0 %vm2519_vm2, %v10353_v42  ;;  %v11044_v42 = vld [vmem:[#allocation3 + $0x14f] sm:$0xff] }
 0x804   :  { %18800 = vmatmul.mubr.msk.f32.gmra.mrb[76].mxu0 %vm2519_vm2, %v10354_v54  ;;  %v11045_v54 = vld [vmem:[#allocation3 + $0x157] sm:$0xff] }
 0x805   :  { %18802 = vmatprep.mubr.msk.f32.mxu0 %vm2519_vm2, %v10355_v49  ;;  %v11046_v49 = vld [vmem:[#allocation3 + $0x15f] sm:$0xff] }
 0x808   :  { %18803 = vmatmul.mubr.msk.f32.gmra.mrb[78].mxu0 %vm2519_vm2, %v10356_v48  ;;  %v11047_v48 = vld [vmem:[#allocation3 + $0x167] sm:$0xff] }
 0x809   :  { %18805 = vmatprep.mubr.msk.f32.mxu0 %vm2519_vm2, %v10357_v40  ;;  %v11048_v40 = vld [vmem:[#allocation3 + $0x16f] sm:$0xff] }
 0x80c   :  { %18806 = vmatmul.mubr.msk.f32.gmra.mrb[80].mxu0 %vm2519_vm2, %v10358_v41  ;;  %v11049_v41 = vld [vmem:[#allocation3 + $0x177] sm:$0xff] }
 0x80d   :  { %18808 = vmatprep.mubr.msk.f32.mxu0 %vm2519_vm2, %v10359_v25  ;;  %v11050_v25 = vld [vmem:[#allocation3 + $0x17f] sm:$0xff] }
 0x810   :  { %18809 = vmatmul.mubr.msk.f32.gmra.mrb[82].mxu0 %vm2519_vm2, %v10360_v62  ;;  %v11051_v62 = vld [vmem:[#allocation3 + $0x187] sm:$0xff] }
 0x811   :  { %18819 = vmatprep.mubr.msk.f32.mxu0 %vm2519_vm2, %v11006_v1  ;;  %v11052_v1 = vld [vmem:[#allocation3 + $0x18f] sm:$0xff] }
 0x814   :  { %18820 = vmatmul.mubr.msk.f32.vlgmr.msra.gmra.mrb[20].mxu0 %vm2519_vm2, %v11007_v31  ;;  %v11053_v31 = vld [vmem:[#allocation3 + $0x197] sm:$0xff] }
 0x815   :  { %18822 = vmatprep.mubr.msk.f32.mxu0 %vm2519_vm2, %v11008_v60  ;;  %v11054_v60 = vld [vmem:[#allocation3 + $0x19f] sm:$0xff] }
 0x818   :  { %18823 = vmatmul.mubr.msk.f32.gmra.mrb[22].mxu0 %vm2519_vm2, %v11009_v6  ;;  %v11055_v6 = vld [vmem:[#allocation3 + $0x1a7] sm:$0xff] }
 0x819   :  { %18825 = vmatprep.mubr.msk.f32.mxu0 %vm2519_vm2, %v11010_v8  ;;  %v11056_v8 = vld [vmem:[#allocation3 + $0x1af] sm:$0xff] }
 0x81c   :  { %18826 = vmatmul.mubr.msk.f32.gmra.mrb[24].mxu0 %vm2519_vm2, %v11011_v13  ;;  %v11057_v13 = vld [vmem:[#allocation3 + $0x1b7] sm:$0xff] }
 0x81d   :  { %18828 = vmatprep.mubr.msk.f32.mxu0 %vm2519_vm2, %v11012_v19  ;;  %v11058_v19 = vld [vmem:[#allocation3 + $0x1bf] sm:$0xff] }
 0x820   :  { %18829 = vmatmul.mubr.msk.f32.gmra.mrb[26].mxu0 %vm2519_vm2, %v11013_v36  ;;  %v11059_v36 = vld [vmem:[#allocation3 + $0x1c7] sm:$0xff] }
 0x821   :  { %18831 = vmatprep.mubr.msk.f32.mxu0 %vm2519_vm2, %v11014_v23  ;;  %v11060_v23 = vld [vmem:[#allocation3 + $0x1cf] sm:$0xff] }
 0x824   :  { %18832 = vmatmul.mubr.msk.f32.gmra.mrb[28].mxu0 %vm2519_vm2, %v11015_v43  ;;  %v11061_v43 = vld [vmem:[#allocation3 + $0x1d7] sm:$0xff] }
 0x825   :  { %18834 = vmatprep.mubr.msk.f32.mxu0 %vm2519_vm2, %v11016_v45  ;;  %v11062_v45 = vld [vmem:[#allocation3 + $0x1df] sm:$0xff] }
 0x828   :  { %18835 = vmatmul.mubr.msk.f32.gmra.mrb[30].mxu0 %vm2519_vm2, %v11017_v59  ;;  %v11063_v59 = vld [vmem:[#allocation3 + $0x1e7] sm:$0xff] }
 0x829   :  { %18837 = vmatprep.mubr.msk.f32.mxu0 %vm2519_vm2, %v11018_v20  ;;  %v11064_v20 = vld [vmem:[#allocation3 + $0x1ef] sm:$0xff] }
 0x82c   :  { %18838 = vmatmul.mubr.msk.f32.gmra.mrb[32].mxu0 %vm2519_vm2, %v11019_v32  ;;  %v11065_v32 = vld [vmem:[#allocation3 + $0x1f7] sm:$0xff] }
 0x82d   :  { %18840 = vmatprep.mubr.msk.f32.mxu0 %vm2519_vm2, %v11020_v47  ;;  %v11066_v47 = vld [vmem:[#allocation3 + $0x1ff] sm:$0xff] }
 0x830   :  { %18841 = vmatmul.mubr.msk.f32.gmra.mrb[34].mxu0 %vm2519_vm2, %v11021_v57  ;;  %v11067_v57 = vld [vmem:[#allocation3 + $0x207] sm:$0xff] }
 0x831   :  { %18843 = vmatprep.mubr.msk.f32.mxu0 %vm2519_vm2, %v11022_v51  ;;  %v11068_v51 = vld [vmem:[#allocation3 + $0x20f] sm:$0xff] }
 0x834   :  { %18844 = vmatmul.mubr.msk.f32.gmra.mrb[36].mxu0 %vm2519_vm2, %v11023_v53  ;;  %v11069_v53 = vld [vmem:[#allocation3 + $0x217] sm:$0xff] }
 0x835   :  { %18846 = vmatprep.mubr.msk.f32.mxu0 %vm2519_vm2, %v11024_v0 }
 0x838   :  { %18847 = vmatmul.mubr.msk.f32.gmra.mrb[38].mxu0 %vm2519_vm2, %v11025_v16  ;;  %v23270_v16 = vld [vmem:[%s24436_s5] ss:$0 sm:$0xff]  ;;  %s20436_s5 = smov 112  }
 0x839   :  { %18849 = vmatprep.mubr.msk.f32.mxu0 %vm2519_vm2, %v11026_v61 }
 0x83c   :  { %18850 = vmatmul.mubr.msk.f32.gmra.mrb[40].mxu0 %vm2519_vm2, %v11027_v9 }
 0x83d   :  { %18852 = vmatprep.mubr.msk.f32.mxu0 %vm2519_vm2, %v11028_v24 }
 0x840   :  { %18853 = vmatmul.mubr.msk.f32.gmra.mrb[42].mxu0 %vm2519_vm2, %v11029_v39 }
 0x841   :  { %18855 = vmatprep.mubr.msk.f32.mxu0 %vm2519_vm2, %v11030_v3 }
 0x844   :  { %18856 = vmatmul.mubr.msk.f32.gmra.mrb[44].mxu0 %vm2519_vm2, %v11031_v63 }
 0x845   :  { %18858 = vmatprep.mubr.msk.f32.mxu0 %vm2519_vm2, %v11032_v12 }
 0x848   :  { %18859 = vmatmul.mubr.msk.f32.gmra.mrb[46].mxu0 %vm2519_vm2, %v11033_v56 }
 0x849   :  { %18861 = vmatprep.mubr.msk.f32.mxu0 %vm2519_vm2, %v11034_v14 }
 0x84c   :  { %18862 = vmatmul.mubr.msk.f32.gmra.mrb[48].mxu0 %vm2519_vm2, %v11035_v44 }
 0x84d   :  { %18864 = vmatprep.mubr.msk.f32.mxu0 %vm2519_vm2, %v11036_v21 }
 0x850   :  { %18865 = vmatmul.mubr.msk.f32.gmra.mrb[50].mxu0 %vm2519_vm2, %v11037_v22 }
 0x851   :  { %18867 = vmatprep.mubr.msk.f32.mxu0 %vm2519_vm2, %v11038_v7 }
 0x854   :  { %18868 = vmatmul.mubr.msk.f32.gmra.mrb[52].mxu0 %vm2519_vm2, %v11039_v35 }
 0x855   :  { %18870 = vmatprep.mubr.msk.f32.mxu0 %vm2519_vm2, %v11040_v18 }
 0x858   :  { %18871 = vmatmul.mubr.msk.f32.gmra.mrb[54].mxu0 %vm2519_vm2, %v11041_v37 }
 0x859   :  { %18873 = vmatprep.mubr.msk.f32.mxu0 %vm2519_vm2, %v11042_v15 }
 0x85c   :  { %18874 = vmatmul.mubr.msk.f32.gmra.mrb[56].mxu0 %vm2519_vm2, %v11043_v46 }
 0x85d   :  { %18876 = vmatprep.mubr.msk.f32.mxu0 %vm2519_vm2, %v11044_v42 }
 0x860   :  { %18877 = vmatmul.mubr.msk.f32.gmra.mrb[58].mxu0 %vm2519_vm2, %v11045_v54 }
 0x861   :  { %18879 = vmatprep.mubr.msk.f32.mxu0 %vm2519_vm2, %v11046_v49 }
 0x864   :  { %18880 = vmatmul.mubr.msk.f32.gmra.mrb[60].mxu0 %vm2519_vm2, %v11047_v48 }
 0x865   :  { %18882 = vmatprep.mubr.msk.f32.mxu0 %vm2519_vm2, %v11048_v40 }
 0x868   :  { %18883 = vmatmul.mubr.msk.f32.gmra.mrb[62].mxu0 %vm2519_vm2, %v11049_v41 }
 0x869   :  { %18885 = vmatprep.mubr.msk.f32.mxu0 %vm2519_vm2, %v11050_v25 }
 0x86c   :  { %18886 = vmatmul.mubr.msk.f32.gmra.mrb[64].mxu0 %vm2519_vm2, %v11051_v62 }
 0x86d   :  { %18888 = vmatprep.mubr.msk.f32.mxu0 %vm2519_vm2, %v11052_v1 }
 0x870   :  { %18889 = vmatmul.mubr.msk.f32.gmra.mrb[66].mxu0 %vm2519_vm2, %v11053_v31 }
 0x871   :  { %18891 = vmatprep.mubr.msk.f32.mxu0 %vm2519_vm2, %v11054_v60 }
 0x874   :  { %18892 = vmatmul.mubr.msk.f32.gmra.mrb[68].mxu0 %vm2519_vm2, %v11055_v6 }
 0x875   :  { %18894 = vmatprep.mubr.msk.f32.mxu0 %vm2519_vm2, %v11056_v8 }
 0x878   :  { %18895 = vmatmul.mubr.msk.f32.gmra.mrb[70].mxu0 %vm2519_vm2, %v11057_v13 }
 0x879   :  { %18897 = vmatprep.mubr.msk.f32.mxu0 %vm2519_vm2, %v11058_v19 }
 0x87c   :  { %18898 = vmatmul.mubr.msk.f32.gmra.mrb[72].mxu0 %vm2519_vm2, %v11059_v36 }
 0x87d   :  { %18900 = vmatprep.mubr.msk.f32.mxu0 %vm2519_vm2, %v11060_v23 }
 0x880   :  { %18901 = vmatmul.mubr.msk.f32.gmra.mrb[74].mxu0 %vm2519_vm2, %v11061_v43 }
 0x881   :  { %18903 = vmatprep.mubr.msk.f32.mxu0 %vm2519_vm2, %v11062_v45 }
 0x884   :  { %18904 = vmatmul.mubr.msk.f32.gmra.mrb[76].mxu0 %vm2519_vm2, %v11063_v59 }
 0x885   :  { %18906 = vmatprep.mubr.msk.f32.mxu0 %vm2519_vm2, %v11064_v20 }
 0x888   :  { %18907 = vmatmul.mubr.msk.f32.gmra.mrb[78].mxu0 %vm2519_vm2, %v11065_v32 }
 0x889   :  { %18909 = vmatprep.mubr.msk.f32.mxu0 %vm2519_vm2, %v11066_v47 }
 0x88c   :  { %18910 = vmatmul.mubr.msk.f32.gmra.mrb[80].mxu0 %vm2519_vm2, %v11067_v57 }
 0x88d   :  { %18912 = vmatprep.mubr.msk.f32.mxu0 %vm2519_vm2, %v11068_v51 }
 0x890   :  { %18913 = vmatmul.mubr.msk.f32.gmra.mrb[82].mxu0 %vm2519_vm2, %v11069_v53 }
 0x8e7   :  { %v18821_v0 = vpop.f32.mrb[20].mxu0 }
 0x8e8   :  { %v19171_v61 = vadd.f32 %v18821_v0, %v22482_v52  ;;  %v11332_v9 = vpop.f32.mrb[21].mxu0  ;;  %v24487_v0 = vld [vmem:[#allocation8_spill] sm:$0xff] }
 0x8e9   :  { %v19172_v24 = vadd.f32 %v11332_v9, %v22484_v50 }
 0x8ea   :  { %v11723_v39 = vadd.f32 %v19171_v61, %v23270_v16 }
 0x8eb   :  { %v11722_v3 = vadd.f32 %v19172_v24, %v23270_v16  ;;  %v18824_v63 = vpop.f32.mrb[22].mxu0 }
 0x8ec   :  { %v11787_v12 = vmax.f32 %v11723_v39, 0.0  ;;  %v19173_v56 = vadd.f32 %v18824_v63, %v22488_v55  ;;  %v11342_v14 = vpop.f32.mrb[23].mxu0  ;;  %v24488_v39 = vld [vmem:[#allocation9_spill] sm:$0xff] }
 0x8ed   :  { %v11786_v44 = vmax.f32 %v11722_v3, 0.0  ;;  %v19174_v21 = vadd.f32 %v11342_v14, %v22492_v58 }
 0x8ee   :  { %v11725_v22 = vadd.f32 %v19173_v56, %v23270_v16 }
 0x8ef   :  { %v11850_v7 = vpack.c.bf16 %v11787_v12, %v11786_v44  ;;  %v11724_v52 = vadd.f32 %v19174_v21, %v23270_v16  ;;  %v18827_v35 = vpop.f32.mrb[24].mxu0  ;;  %v24489_v44 = vld [vmem:[#allocation10_spill] sm:$0xff] }
 0x8f0   :  { %v11789_v18 = vmax.f32 %v11725_v22, 0.0  ;;  %v19175_v50 = vadd.f32 %v18827_v35, %v22507_v33  ;;  %v11352_v37 = vpop.f32.mrb[25].mxu0  ;;  %v24490_v35 = vld [vmem:[#allocation11_spill] sm:$0xff] }
 0x8f1   :  { %11882 = vst.msk [vmem:[#allocation4] sm:$0xff] %vm90_vm0, %v11850_v7  ;;  %v11788_v15 = vmax.f32 %v11724_v52, 0.0  ;;  %v19176_v46 = vadd.f32 %v11352_v37, %v22509_v38 }
 0x8f2   :  { %v11727_v55 = vadd.f32 %v19175_v50, %v23270_v16 }
 0x8f3   :  { %v11851_v42 = vpack.c.bf16 %v11789_v18, %v11788_v15  ;;  %v11726_v58 = vadd.f32 %v19176_v46, %v23270_v16  ;;  %v18830_v54 = vpop.f32.mrb[26].mxu0 }
 0x8f4   :  { %v11791_v49 = vmax.f32 %v11727_v55, 0.0  ;;  %v19177_v48 = vadd.f32 %v18830_v54, %v22521_v17  ;;  %v11362_v40 = vpop.f32.mrb[27].mxu0 }
 0x8f5   :  { %11883 = vst.msk [vmem:[#allocation4 + $0x8] sm:$0xff] %vm90_vm0, %v11851_v42  ;;  %v11790_v41 = vmax.f32 %v11726_v58, 0.0  ;;  %v19178_v33 = vadd.f32 %v11362_v40, %v22524_v26  ;;  %v24491_v42 = vld [vmem:[#allocation12_spill] sm:$0xff]  ;;  %v24492_v40 = vld [vmem:[#allocation13_spill] sm:$0xff] }
 0x8f6   :  { %v11729_v25 = vadd.f32 %v19177_v48, %v23270_v16 }
 0x8f7   :  { %v11852_v62 = vpack.c.bf16 %v11791_v49, %v11790_v41  ;;  %v11728_v38 = vadd.f32 %v19178_v33, %v23270_v16  ;;  %v18833_v1 = vpop.f32.mrb[28].mxu0 }
 0x8f8   :  { %v11793_v31 = vmax.f32 %v11729_v25, 0.0  ;;  %v19179_v60 = vadd.f32 %v18833_v1, %v22536_v28  ;;  %v11372_v6 = vpop.f32.mrb[29].mxu0  ;;  %v23291_v8 = vld [vmem:[#allocation4] sm:$0xff] }
 0x8f9   :  { %11884 = vst.msk [vmem:[#allocation4 + $0x10] sm:$0xff] %vm90_vm0, %v11852_v62  ;;  %v11792_v17 = vmax.f32 %v11728_v38, 0.0  ;;  %v19180_v13 = vadd.f32 %v11372_v6, %v22538_v4  ;;  %12062 = vrot.lane.b32.xlu1 %v23291_v8, %s20436_s5 }
 0x8fa   :  { %v11731_v26 = vadd.f32 %v19179_v60, %v23270_v16 }
 0x8fb   :  { %v11853_v19 = vpack.c.bf16 %v11793_v31, %v11792_v17  ;;  %v11730_v36 = vadd.f32 %v19180_v13, %v23270_v16  ;;  %v18836_v23 = vpop.f32.mrb[30].mxu0  ;;  %v24493_v31 = vld [vmem:[#allocation14_spill] sm:$0xff] }
 0x8fc   :  { %v11795_v43 = vmax.f32 %v11731_v26, 0.0  ;;  %v19181_v28 = vadd.f32 %v18836_v23, %v22550_v10  ;;  %v11382_v45 = vpop.f32.mrb[31].mxu0  ;;  %v23300_v59 = vld [vmem:[#allocation4 + $0x8] sm:$0xff]  ;;  %v24494_v26 = vld [vmem:[#allocation15_spill] sm:$0xff] }
 0x8fd   :  { %11885 = vst.msk [vmem:[#allocation4 + $0x18] sm:$0xff] %vm90_vm0, %v11853_v19  ;;  %v11794_v20 = vmax.f32 %v11730_v36, 0.0  ;;  %v19182_v4 = vadd.f32 %v11382_v45, %v22552_v11  ;;  %12064 = vrot.lane.b32.xlu1 %v23300_v59, %s20436_s5 }
 0x8fe   :  { %v11733_v32 = vadd.f32 %v19181_v28, %v23270_v16 }
 0x8ff   :  { %v11854_v47 = vpack.c.bf16 %v11795_v43, %v11794_v20  ;;  %v11732_v57 = vadd.f32 %v19182_v4, %v23270_v16  ;;  %v18839_v51 = vpop.f32.mrb[32].mxu0  ;;  %v24495_v20 = vld [vmem:[#allocation16_spill] sm:$0xff] }
 0x900   :  { %v11797_v53 = vmax.f32 %v11733_v32, 0.0  ;;  %v19183_v10 = vadd.f32 %v18839_v51, %v24487_v0  ;;  %v11392_v61 = vpop.f32.mrb[33].mxu0  ;;  %v23309_v9 = vld [vmem:[#allocation4 + $0x10] sm:$0xff]  ;;  %v24496_v51 = vld [vmem:[#allocation17_spill] sm:$0xff] }
 0x901   :  { %11886 = vst.msk [vmem:[#allocation4 + $0x20] sm:$0xff] %vm90_vm0, %v11854_v47  ;;  %v11796_v24 = vmax.f32 %v11732_v57, 0.0  ;;  %v19184_v11 = vadd.f32 %v11392_v61, %v24488_v39  ;;  %12066 = vrot.lane.b32.xlu1 %v23309_v9, %s20436_s5 }
 0x902   :  { %v11735_v3 = vadd.f32 %v19183_v10, %v23270_v16 }
 0x903   :  { %v11855_v63 = vpack.c.bf16 %v11797_v53, %v11796_v24  ;;  %v11734_v12 = vadd.f32 %v19184_v11, %v23270_v16  ;;  %v18842_v56 = vpop.f32.mrb[34].mxu0  ;;  %v24497_v11 = vld [vmem:[#allocation18_spill] sm:$0xff] }
 0x904   :  { %v11799_v14 = vmax.f32 %v11735_v3, 0.0  ;;  %v19185_v21 = vadd.f32 %v18842_v56, %v24489_v44  ;;  %v11402_v22 = vpop.f32.mrb[35].mxu0  ;;  %v23318_v7 = vld [vmem:[#allocation4 + $0x18] sm:$0xff] }
 0x905   :  { %11887 = vst.msk [vmem:[#allocation4 + $0x28] sm:$0xff] %vm90_vm0, %v11855_v63  ;;  %v11798_v52 = vmax.f32 %v11734_v12, 0.0  ;;  %v19186_v18 = vadd.f32 %v11402_v22, %v24490_v35  ;;  %12068 = vrot.lane.b32.xlu1 %v23318_v7, %s20436_s5 }
 0x906   :  { %v11737_v50 = vadd.f32 %v19185_v21, %v23270_v16 }
 0x907   :  { %v11856_v37 = vpack.c.bf16 %v11799_v14, %v11798_v52  ;;  %v11736_v15 = vadd.f32 %v19186_v18, %v23270_v16  ;;  %v18845_v46 = vpop.f32.mrb[36].mxu0  ;;  %v24498_v14 = vld [vmem:[#allocation19_spill] sm:$0xff] }
 0x908   :  { %v11801_v55 = vmax.f32 %v11737_v50, 0.0  ;;  %v19187_v58 = vadd.f32 %v18845_v46, %v24491_v42  ;;  %v11412_v54 = vpop.f32.mrb[37].mxu0  ;;  %v23327_v49 = vld [vmem:[#allocation4 + $0x20] sm:$0xff]  ;;  %v24500_v42 = vld [vmem:[#allocation21_spill] sm:$0xff] }
 0x909   :  { %11888 = vst.msk [vmem:[#allocation4 + $0x30] sm:$0xff] %vm90_vm0, %v11856_v37  ;;  %v11800_v48 = vmax.f32 %v11736_v15, 0.0  ;;  %v19188_v41 = vadd.f32 %v11412_v54, %v24492_v40  ;;  %12070 = vrot.lane.b32.xlu1 %v23327_v49, %s20436_s5  ;;  %v24499_v50 = vld [vmem:[#allocation20_spill] sm:$0xff] }
 0x90a   :  { %v11739_v33 = vadd.f32 %v19187_v58, %v23270_v16 }
 0x90b   :  { %v11857_v25 = vpack.c.bf16 %v11801_v55, %v11800_v48  ;;  %v11738_v62 = vadd.f32 %v19188_v41, %v23270_v16  ;;  %v18848_v38 = vpop.f32.mrb[38].mxu0 }
 0x90c   :  { %v11803_v1 = vmax.f32 %v11739_v33, 0.0  ;;  %v19189_v60 = vadd.f32 %v18848_v38, %v24493_v31  ;;  %v11422_v6 = vpop.f32.mrb[39].mxu0  ;;  %v23336_v17 = vld [vmem:[#allocation4 + $0x28] sm:$0xff] }
 0x90d   :  { %11889 = vst.msk [vmem:[#allocation4 + $0x38] sm:$0xff] %vm90_vm0, %v11857_v25  ;;  %v11802_v13 = vmax.f32 %v11738_v62, 0.0  ;;  %v19190_v19 = vadd.f32 %v11422_v6, %v24494_v26  ;;  %12072 = vrot.lane.b32.xlu1 %v23336_v17, %s20436_s5  ;;  %v24501_v25 = vld [vmem:[#allocation22_spill] sm:$0xff] }
 0x90e   :  { %v11741_v36 = vadd.f32 %v19189_v60, %v23270_v16  ;;  %v24502_v60 = vld [vmem:[#allocation23_spill] sm:$0xff] }
 0x90f   :  { %v11858_v23 = vpack.c.bf16 %v11803_v1, %v11802_v13  ;;  %v11740_v43 = vadd.f32 %v19190_v19, %v23270_v16  ;;  %v18851_v28 = vpop.f32.mrb[40].mxu0 }
 0x910   :  { %v11805_v45 = vmax.f32 %v11741_v36, 0.0  ;;  %v19191_v4 = vadd.f32 %v18851_v28, %v24495_v20  ;;  %v11432_v32 = vpop.f32.mrb[41].mxu0  ;;  %v23345_v47 = vld [vmem:[#allocation4 + $0x30] sm:$0xff] }
 0x911   :  { %11890 = vst.msk [vmem:[#allocation4 + $0x40] sm:$0xff] %vm90_vm0, %v11858_v23  ;;  %v11804_v57 = vmax.f32 %v11740_v43, 0.0  ;;  %v19192_v53 = vadd.f32 %v11432_v32, %v24496_v51  ;;  %12074 = vrot.lane.b32.xlu1 %v23345_v47, %s20436_s5  ;;  %v24503_v43 = vld [vmem:[#allocation24_spill] sm:$0xff]  ;;  %v24504_v32 = vld [vmem:[#allocation25_spill] sm:$0xff] }
 0x912   :  { %v11743_v0 = vadd.f32 %v19191_v4, %v23270_v16 }
 0x913   :  { %v11859_v10 = vpack.c.bf16 %v11805_v45, %v11804_v57  ;;  %v11742_v61 = vadd.f32 %v19192_v53, %v23270_v16  ;;  %v18854_v24 = vpop.f32.mrb[42].mxu0 }
 0x914   :  { %v11807_v39 = vmax.f32 %v11743_v0, 0.0  ;;  %v19193_v3 = vadd.f32 %v18854_v24, %v24497_v11  ;;  %v11442_v63 = vpop.f32.mrb[43].mxu0  ;;  %v23354_v12 = vld [vmem:[#allocation4 + $0x38] sm:$0xff]  ;;  %v24505_v24 = vld [vmem:[#allocation26_spill] sm:$0xff] }
 0x915   :  { %11891 = vst.msk [vmem:[#allocation4 + $0x48] sm:$0xff] %vm90_vm0, %v11859_v10  ;;  %v11806_v56 = vmax.f32 %v11742_v61, 0.0  ;;  %v19194_v44 = vadd.f32 %v11442_v63, %v24498_v14  ;;  %12076 = vrot.lane.b32.xlu1 %v23354_v12, %s20436_s5 }
 0x916   :  { %v11745_v21 = vadd.f32 %v19193_v3, %v23270_v16 }
 0x917   :  { %v11860_v22 = vpack.c.bf16 %v11807_v39, %v11806_v56  ;;  %v11744_v52 = vadd.f32 %v19194_v44, %v23270_v16  ;;  %v18857_v35 = vpop.f32.mrb[44].mxu0  ;;  %v24506_v56 = vld [vmem:[#allocation27_spill] sm:$0xff] }
 0x918   :  { %v11809_v18 = vmax.f32 %v11745_v21, 0.0  ;;  %v19195_v37 = vadd.f32 %v18857_v35, %v24499_v50  ;;  %v11452_v15 = vpop.f32.mrb[45].mxu0  ;;  %v23363_v46 = vld [vmem:[#allocation4 + $0x40] sm:$0xff] }
 0x919   :  { %11892 = vst.msk [vmem:[#allocation4 + $0x50] sm:$0xff] %vm90_vm0, %v11860_v22  ;;  %v11808_v55 = vmax.f32 %v11744_v52, 0.0  ;;  %v19196_v58 = vadd.f32 %v11452_v15, %v24500_v42  ;;  %12481 = vrot.lane.b32.xlu1 %v23291_v8, %s20432_s0  ;;  %12078 = vrot.lane.b32.xlu0 %v23363_v46, %s20436_s5  ;;  %v24508_v42 = vld [vmem:[#allocation29_spill] sm:$0xff] }
 0x91a   :  { %v11747_v54 = vadd.f32 %v19195_v37, %v23270_v16 }
 0x91b   :  { %v11861_v48 = vpack.c.bf16 %v11809_v18, %v11808_v55  ;;  %v11746_v40 = vadd.f32 %v19196_v58, %v23270_v16  ;;  %v18860_v41 = vpop.f32.mrb[46].mxu0  ;;  %v24507_v18 = vld [vmem:[#allocation28_spill] sm:$0xff] }
 0x91c   :  { %v11811_v33 = vmax.f32 %v11747_v54, 0.0  ;;  %v19197_v62 = vadd.f32 %v18860_v41, %v24501_v25  ;;  %v11462_v38 = vpop.f32.mrb[47].mxu0  ;;  %v23374_v1 = vld [vmem:[#allocation4 + $0x48] sm:$0xff] }
 0x91d   :  { %11893 = vst.msk [vmem:[#allocation4 + $0x58] sm:$0xff] %vm90_vm0, %v11861_v48  ;;  %v11810_v31 = vmax.f32 %v11746_v40, 0.0  ;;  %v19198_v6 = vadd.f32 %v11462_v38, %v24502_v60  ;;  %12483 = vrot.lane.b32.xlu1 %v23300_v59, %s20432_s0  ;;  %12080 = vrot.lane.b32.xlu0 %v23374_v1, %s20436_s5 }
 0x91e   :  { %v11749_v13 = vadd.f32 %v19197_v62, %v23270_v16  ;;  %v24509_v62 = vld [vmem:[#allocation30_spill] sm:$0xff] }
 0x91f   :  { %v11862_v26 = vpack.c.bf16 %v11811_v33, %v11810_v31  ;;  %v11748_v19 = vadd.f32 %v19198_v6, %v23270_v16  ;;  %v18863_v36 = vpop.f32.mrb[48].mxu0  ;;  %v20174_v33 = vld [vmem:[%s24437_s6 + $0x84] ss:$8 sps:$4 sm:$0xff]  }
 0x920   :  { %v11813_v23 = vmax.f32 %v11749_v13, 0.0  ;;  %v19199_v28 = vadd.f32 %v18863_v36, %v24503_v43  ;;  %v11472_v45 = vpop.f32.mrb[49].mxu0  ;;  %v23385_v20 = vld [vmem:[#allocation4 + $0x50] sm:$0xff]  ;;  %v24510_v13 = vld [vmem:[#allocation31_spill] sm:$0xff]  ;;  %12142 = vmatprep.mubr.bf16.mxu1 %v20174_v33 }
 0x921   :  { %11894 = vst.msk [vmem:[#allocation4 + $0x60] sm:$0xff] %vm90_vm0, %v11862_v26  ;;  %v11812_v4 = vmax.f32 %v11748_v19, 0.0  ;;  %v19200_v57 = vadd.f32 %v11472_v45, %v24504_v32  ;;  %12485 = vrot.lane.b32.xlu1 %v23309_v9, %s20432_s0  ;;  %12082 = vrot.lane.b32.xlu0 %v23385_v20, %s20436_s5  ;;  %v24511_v45 = vld [vmem:[#allocation32_spill] sm:$0xff] }
 0x922   :  { %v11751_v51 = vadd.f32 %v19199_v28, %v23270_v16 }
 0x923   :  { %v11863_v53 = vpack.c.bf16 %v11813_v23, %v11812_v4  ;;  %v11750_v0 = vadd.f32 %v19200_v57, %v23270_v16  ;;  %v18866_v10 = vpop.f32.mrb[50].mxu0 }
 0x924   :  { %v11815_v61 = vmax.f32 %v11751_v51, 0.0  ;;  %v19201_v39 = vadd.f32 %v18866_v10, %v24505_v24  ;;  %v11482_v11 = vpop.f32.mrb[51].mxu0  ;;  %v23396_v3 = vld [vmem:[#allocation4 + $0x58] sm:$0xff] }
 0x925   :  { %11895 = vst.msk [vmem:[#allocation4 + $0x68] sm:$0xff] %vm90_vm0, %v11863_v53  ;;  %v11814_v63 = vmax.f32 %v11750_v0, 0.0  ;;  %v19202_v14 = vadd.f32 %v11482_v11, %v24506_v56  ;;  %12487 = vrot.lane.b32.xlu1 %v23318_v7, %s20432_s0  ;;  %12084 = vrot.lane.b32.xlu0 %v23396_v3, %s20436_s5  ;;  %v24512_v53 = vld [vmem:[#allocation33_spill] sm:$0xff] }
 0x926   :  { %v11753_v44 = vadd.f32 %v19201_v39, %v23270_v16 }
 0x927   :  { %v11864_v21 = vpack.c.bf16 %v11815_v61, %v11814_v63  ;;  %v11752_v22 = vadd.f32 %v19202_v14, %v23270_v16  ;;  %v18869_v52 = vpop.f32.mrb[52].mxu0  ;;  %v24513_v63 = vld [vmem:[#allocation34_spill] sm:$0xff] }
 0x928   :  { %v11817_v35 = vmax.f32 %v11753_v44, 0.0  ;;  %v19203_v50 = vadd.f32 %v18869_v52, %v24507_v18  ;;  %v11492_v37 = vpop.f32.mrb[53].mxu0  ;;  %v23407_v15 = vld [vmem:[#allocation4 + $0x60] sm:$0xff] }
 0x929   :  { %11896 = vst.msk [vmem:[#allocation4 + $0x70] sm:$0xff] %vm90_vm0, %v11864_v21  ;;  %v11816_v55 = vmax.f32 %v11752_v22, 0.0  ;;  %v19204_v58 = vadd.f32 %v11492_v37, %v24508_v42  ;;  %12489 = vrot.lane.b32.xlu1 %v23327_v49, %s20432_s0  ;;  %12086 = vrot.lane.b32.xlu0 %v23407_v15, %s20436_s5  ;;  %v24514_v22 = vld [vmem:[#allocation35_spill] sm:$0xff]  ;;  %v24515_v42 = vld [vmem:[#allocation36_spill] sm:$0xff] }
 0x92a   :  { %v11755_v54 = vadd.f32 %v19203_v50, %v23270_v16 }
 0x92b   :  { %v11865_v48 = vpack.c.bf16 %v11817_v35, %v11816_v55  ;;  %v11754_v40 = vadd.f32 %v19204_v58, %v23270_v16  ;;  %v18872_v41 = vpop.f32.mrb[54].mxu0 }
 0x92c   :  { %v11819_v25 = vmax.f32 %v11755_v54, 0.0  ;;  %v19205_v38 = vadd.f32 %v18872_v41, %v24509_v62  ;;  %v11502_v31 = vpop.f32.mrb[55].mxu0  ;;  %v23421_v60 = vld [vmem:[#allocation4 + $0x68] sm:$0xff] }
 0x92d   :  { %11897 = vst.msk [vmem:[#allocation4 + $0x78] sm:$0xff] %vm90_vm0, %v11865_v48  ;;  %v11818_v6 = vmax.f32 %v11754_v40, 0.0  ;;  %v19206_v26 = vadd.f32 %v11502_v31, %v24510_v13  ;;  %12491 = vrot.lane.b32.xlu1 %v23336_v17, %s20432_s0  ;;  %12088 = vrot.lane.b32.xlu0 %v23421_v60, %s20436_s5  ;;  %v24516_v40 = vld [vmem:[#allocation37_spill] sm:$0xff] }
 0x92e   :  { %v11757_v19 = vadd.f32 %v19205_v38, %v23270_v16 }
 0x92f   :  { %v11866_v36 = vpack.c.bf16 %v11819_v25, %v11818_v6  ;;  %v11756_v23 = vadd.f32 %v19206_v26, %v23270_v16  ;;  %v18875_v43 = vpop.f32.mrb[56].mxu0  ;;  %v24517_v6 = vld [vmem:[#allocation38_spill] sm:$0xff] }
 0x930   :  { %v11821_v28 = vmax.f32 %v11757_v19, 0.0  ;;  %v19207_v4 = vadd.f32 %v18875_v43, %v24511_v45  ;;  %v11512_v32 = vpop.f32.mrb[57].mxu0  ;;  %v23432_v57 = vld [vmem:[#allocation4 + $0x70] sm:$0xff] }
 0x931   :  { %11898 = vst.msk [vmem:[#allocation4 + $0x80] sm:$0xff] %vm90_vm0, %v11866_v36  ;;  %v11820_v51 = vmax.f32 %v11756_v23, 0.0  ;;  %v19208_v0 = vadd.f32 %v11512_v32, %v24512_v53  ;;  %12493 = vrot.lane.b32.xlu1 %v23345_v47, %s20432_s0  ;;  %12090 = vrot.lane.b32.xlu0 %v23432_v57, %s20436_s5  ;;  %v24518_v36 = vld [vmem:[#allocation39_spill] sm:$0xff] }
 0x932   :  { %v11759_v10 = vadd.f32 %v19207_v4, %v23270_v16 }
 0x933   :  { %v11867_v61 = vpack.c.bf16 %v11821_v28, %v11820_v51  ;;  %v11758_v24 = vadd.f32 %v19208_v0, %v23270_v16  ;;  %v18878_v39 = vpop.f32.mrb[58].mxu0  ;;  %v24519_v51 = vld [vmem:[#allocation40_spill] sm:$0xff] }
 0x934   :  { %v11823_v11 = vmax.f32 %v11759_v10, 0.0  ;;  %v19209_v56 = vadd.f32 %v18878_v39, %v24513_v63  ;;  %v11522_v14 = vpop.f32.mrb[59].mxu0  ;;  %v23443_v44 = vld [vmem:[#allocation4 + $0x78] sm:$0xff] }
 0x935   :  { %11899 = vst.msk [vmem:[#allocation4 + $0x88] sm:$0xff] %vm90_vm0, %v11867_v61  ;;  %v11822_v21 = vmax.f32 %v11758_v24, 0.0  ;;  %v19210_v52 = vadd.f32 %v11522_v14, %v24514_v22  ;;  %12495 = vrot.lane.b32.xlu1 %v23354_v12, %s20432_s0  ;;  %12092 = vrot.lane.b32.xlu0 %v23443_v44, %s20436_s5  ;;  %v24520_v61 = vld [vmem:[#allocation41_spill] sm:$0xff] }
 0x936   :  { %v11761_v35 = vadd.f32 %v19209_v56, %v23270_v16 }
 0x937   :  { %v11868_v18 = vpack.c.bf16 %v11823_v11, %v11822_v21  ;;  %v11760_v50 = vadd.f32 %v19210_v52, %v23270_v16  ;;  %v18881_v37 = vpop.f32.mrb[60].mxu0 }
 0x938   :  { %v11825_v55 = vmax.f32 %v11761_v35, 0.0  ;;  %v19211_v58 = vadd.f32 %v18881_v37, %v24515_v42  ;;  %v11532_v54 = vpop.f32.mrb[61].mxu0 }
 0x939   :  { %11900 = vst.msk [vmem:[#allocation4 + $0x90] sm:$0xff] %vm90_vm0, %v11868_v18  ;;  %v11824_v48 = vmax.f32 %v11760_v50, 0.0  ;;  %v19212_v41 = vadd.f32 %v11532_v54, %v24516_v40  ;;  %12739 = vrot.lane.b32.xlu1 %v23291_v8, %s20437_s10  ;;  %12497 = vrot.lane.b32.xlu0 %v23363_v46, %s20432_s0 }
 0x93a   :  { %v11763_v33 = vadd.f32 %v19211_v58, %v23270_v16 }
 0x93b   :  { %v11869_v25 = vpack.c.bf16 %v11825_v55, %v11824_v48  ;;  %v11762_v62 = vadd.f32 %v19212_v41, %v23270_v16  ;;  %v18884_v38 = vpop.f32.mrb[62].mxu0 }
 0x93c   :  { %v11827_v31 = vmax.f32 %v11763_v33, 0.0  ;;  %v19213_v13 = vadd.f32 %v18884_v38, %v24517_v6  ;;  %v11542_v26 = vpop.f32.mrb[63].mxu0 }
 0x93d   :  { %11901 = vst.msk [vmem:[#allocation4 + $0x98] sm:$0xff] %vm90_vm0, %v11869_v25  ;;  %v11826_v19 = vmax.f32 %v11762_v62, 0.0  ;;  %v19214_v23 = vadd.f32 %v11542_v26, %v24518_v36  ;;  %12741 = vrot.lane.b32.xlu1 %v23300_v59, %s20437_s10  ;;  %12499 = vrot.lane.b32.xlu0 %v23374_v1, %s20432_s0 }
 0x93e   :  { %v11765_v43 = vadd.f32 %v19213_v13, %v23270_v16 }
 0x93f   :  { %v11870_v28 = vpack.c.bf16 %v11827_v31, %v11826_v19  ;;  %v11764_v45 = vadd.f32 %v19214_v23, %v23270_v16  ;;  %v18887_v4 = vpop.f32.mrb[64].mxu0  ;;  %v24523_v31 = vld [vmem:[#allocation44_spill] sm:$0xff]  ;;  %v24524_v19 = vld [vmem:[#allocation45_spill] sm:$0xff] }
 0x940   :  { %v11829_v32 = vmax.f32 %v11765_v43, 0.0  ;;  %v19215_v53 = vadd.f32 %v18887_v4, %v24519_v51  ;;  %v11552_v0 = vpop.f32.mrb[65].mxu0 }
 0x941   :  { %11902 = vst.msk [vmem:[#allocation4 + $0xa0] sm:$0xff] %vm90_vm0, %v11870_v28  ;;  %v11828_v10 = vmax.f32 %v11764_v45, 0.0  ;;  %v19216_v24 = vadd.f32 %v11552_v0, %v24520_v61  ;;  %12743 = vrot.lane.b32.xlu1 %v23309_v9, %s20437_s10  ;;  %12501 = vrot.lane.b32.xlu0 %v23385_v20, %s20432_s0 }
 0x942   :  { %v11767_v39 = vadd.f32 %v19215_v53, %v23270_v16 }
 0x943   :  { %v11871_v11 = vpack.c.bf16 %v11829_v32, %v11828_v10  ;;  %v11766_v63 = vadd.f32 %v19216_v24, %v23270_v16  ;;  %v18890_v56 = vpop.f32.mrb[66].mxu0  ;;  %v24525_v32 = vld [vmem:[#allocation46_spill] sm:$0xff]  ;;  %v24526_v10 = vld [vmem:[#allocation47_spill] sm:$0xff] }
 0x944   :  { %v11831_v14 = vmax.f32 %v11767_v39, 0.0  ;;  %v19217_v21 = vadd.f32 %v18890_v56, %v22907_v27  ;;  %v11562_v22 = vpop.f32.mrb[67].mxu0  ;;  %v24521_v27 = vld [vmem:[#allocation42_spill] sm:$0xff] }
 0x945   :  { %11903 = vst.msk [vmem:[#allocation4 + $0xa8] sm:$0xff] %vm90_vm0, %v11871_v11  ;;  %v11830_v52 = vmax.f32 %v11766_v63, 0.0  ;;  %v19218_v35 = vadd.f32 %v11562_v22, %v22909_v34  ;;  %12745 = vrot.lane.b32.xlu1 %v23318_v7, %s20437_s10  ;;  %12503 = vrot.lane.b32.xlu0 %v23396_v3, %s20432_s0  ;;  %v24522_v34 = vld [vmem:[#allocation43_spill] sm:$0xff] }
 0x946   :  { %v11769_v18 = vadd.f32 %v19217_v21, %v23270_v16 }
 0x947   :  { %v11872_v50 = vpack.c.bf16 %v11831_v14, %v11830_v52  ;;  %v11768_v37 = vadd.f32 %v19218_v35, %v23270_v16  ;;  %v18893_v55 = vpop.f32.mrb[68].mxu0  ;;  %v24527_v14 = vld [vmem:[#allocation48_spill] sm:$0xff]  ;;  %v24528_v35 = vld [vmem:[#allocation49_spill] sm:$0xff] }
 0x948   :  { %v11833_v42 = vmax.f32 %v11769_v18, 0.0  ;;  %v19219_v58 = vadd.f32 %v18893_v55, %v24521_v27  ;;  %v11572_v54 = vpop.f32.mrb[69].mxu0 }
 0x949   :  { %11904 = vst.msk [vmem:[#allocation4 + $0xb0] sm:$0xff] %vm90_vm0, %v11872_v50  ;;  %v11832_v48 = vmax.f32 %v11768_v37, 0.0  ;;  %v19220_v40 = vadd.f32 %v11572_v54, %v24522_v34  ;;  %12747 = vrot.lane.b32.xlu1 %v23327_v49, %s20437_s10  ;;  %12505 = vrot.lane.b32.xlu0 %v23407_v15, %s20432_s0  ;;  %v23526_v34 = vld [vmem:[#allocation4 + $0x80] sm:$0xff] }
 0x94a   :  { %v11771_v41 = vadd.f32 %v19219_v58, %v23270_v16  ;;  %v24529_v58 = vld [vmem:[#allocation50_spill] sm:$0xff] }
 0x94b   :  { %v11873_v33 = vpack.c.bf16 %v11833_v42, %v11832_v48  ;;  %v11770_v25 = vadd.f32 %v19220_v40, %v23270_v16  ;;  %v18896_v62 = vpop.f32.mrb[70].mxu0 }
 0x94c   :  { %v11835_v38 = vmax.f32 %v11771_v41, 0.0  ;;  %v19221_v6 = vadd.f32 %v18896_v62, %v24523_v31  ;;  %v11582_v13 = vpop.f32.mrb[71].mxu0  ;;  %v24530_v41 = vld [vmem:[#allocation51_spill] sm:$0xff] }
 0x94d   :  { %11905 = vst.msk [vmem:[#allocation4 + $0xb8] sm:$0xff] %vm90_vm0, %v11873_v33  ;;  %v11834_v26 = vmax.f32 %v11770_v25, 0.0  ;;  %v19222_v36 = vadd.f32 %v11582_v13, %v24524_v19  ;;  %12749 = vrot.lane.b32.xlu1 %v23336_v17, %s20437_s10  ;;  %12507 = vrot.lane.b32.xlu0 %v23421_v60, %s20432_s0  ;;  %v24531_v13 = vld [vmem:[#allocation52_spill] sm:$0xff] }
 0x94e   :  { %v11773_v23 = vadd.f32 %v19221_v6, %v23270_v16 }
 0x94f   :  { %v11874_v43 = vpack.c.bf16 %v11835_v38, %v11834_v26  ;;  %v11772_v28 = vadd.f32 %v19222_v36, %v23270_v16  ;;  %v18899_v45 = vpop.f32.mrb[72].mxu0  ;;  %v23537_v36 = vld [vmem:[#allocation4 + $0x88] sm:$0xff] }
 0x950   :  { %v11837_v4 = vmax.f32 %v11773_v23, 0.0  ;;  %v19223_v51 = vadd.f32 %v18899_v45, %v24525_v32  ;;  %v11592_v53 = vpop.f32.mrb[73].mxu0 }
 0x951   :  { %11906 = vst.msk [vmem:[#allocation4 + $0xc0] sm:$0xff] %vm90_vm0, %v11874_v43  ;;  %v11836_v0 = vmax.f32 %v11772_v28, 0.0  ;;  %v19224_v61 = vadd.f32 %v11592_v53, %v24526_v10  ;;  %12751 = vrot.lane.b32.xlu1 %v23345_v47, %s20437_s10  ;;  %12509 = vrot.lane.b32.xlu0 %v23432_v57, %s20432_s0  ;;  %v24532_v53 = vld [vmem:[#allocation53_spill] sm:$0xff] }
 0x952   :  { %v11775_v24 = vadd.f32 %v19223_v51, %v23270_v16 }
 0x953   :  { %v11875_v39 = vpack.c.bf16 %v11837_v4, %v11836_v0  ;;  %v11774_v11 = vadd.f32 %v19224_v61, %v23270_v16  ;;  %v18902_v63 = vpop.f32.mrb[74].mxu0  ;;  %v23548_v61 = vld [vmem:[#allocation4 + $0x90] sm:$0xff] }
 0x954   :  { %v11839_v56 = vmax.f32 %v11775_v24, 0.0  ;;  %v19225_v21 = vadd.f32 %v18902_v63, %v24527_v14  ;;  %v11602_v22 = vpop.f32.mrb[75].mxu0 }
 0x955   :  { %11907 = vst.msk [vmem:[#allocation4 + $0xc8] sm:$0xff] %vm90_vm0, %v11875_v39  ;;  %v11838_v52 = vmax.f32 %v11774_v11, 0.0  ;;  %v19226_v18 = vadd.f32 %v11602_v22, %v24528_v35  ;;  %12753 = vrot.lane.b32.xlu1 %v23354_v12, %s20437_s10  ;;  %12511 = vrot.lane.b32.xlu0 %v23443_v44, %s20432_s0 }
 0x956   :  { %v11777_v50 = vadd.f32 %v19225_v21, %v23270_v16 }
 0x957   :  { %v11876_v37 = vpack.c.bf16 %v11839_v56, %v11838_v52  ;;  %v11776_v55 = vadd.f32 %v19226_v18, %v23270_v16  ;;  %v18905_v42 = vpop.f32.mrb[76].mxu0  ;;  %v23559_v52 = vld [vmem:[#allocation4 + $0x98] sm:$0xff] }
 0x958   :  { %v11841_v27 = vmax.f32 %v11777_v50, 0.0  ;;  %v19227_v54 = vadd.f32 %v18905_v42, %v24529_v58  ;;  %v11612_v48 = vpop.f32.mrb[77].mxu0  ;;  %v23589_v58 = vld [vmem:[#allocation4 + $0xb8] sm:$0xff] }
 0x959   :  { %11908 = vst.msk [vmem:[#allocation4 + $0xd0] sm:$0xff] %vm90_vm0, %v11876_v37  ;;  %v11840_v40 = vmax.f32 %v11776_v55, 0.0  ;;  %v19228_v33 = vadd.f32 %v11612_v48, %v24530_v41  ;;  %12755 = vrot.lane.b32.xlu0 %v23363_v46, %s20437_s10  ;;  %13204 = vrot.lane.b32.xlu1 %v23526_v34, %s20436_s5  ;;  %v23569_v55 = vld [vmem:[#allocation4 + $0xa0] sm:$0xff] }
 0x95a   :  { %v11779_v25 = vadd.f32 %v19227_v54, %v23270_v16  ;;  %v23595_v54 = vld [vmem:[#allocation4 + $0xc0] sm:$0xff] }
 0x95b   :  { %v11877_v62 = vpack.c.bf16 %v11841_v27, %v11840_v40  ;;  %v11778_v38 = vadd.f32 %v19228_v33, %v23270_v16  ;;  %v18908_v31 = vpop.f32.mrb[78].mxu0  ;;  %v23576_v27 = vld [vmem:[#allocation4 + $0xa8] sm:$0xff] }
 0x95c   :  { %v11843_v6 = vmax.f32 %v11779_v25, 0.0  ;;  %v19229_v26 = vadd.f32 %v18908_v31, %v24531_v13  ;;  %v11622_v19 = vpop.f32.mrb[79].mxu0  ;;  %v23601_v48 = vld [vmem:[#allocation4 + $0xc8] sm:$0xff] }
 0x95d   :  { %11909 = vst.msk [vmem:[#allocation4 + $0xd8] sm:$0xff] %vm90_vm0, %v11877_v62  ;;  %v11842_v23 = vmax.f32 %v11778_v38, 0.0  ;;  %v19230_v43 = vadd.f32 %v11622_v19, %v22946_v29  ;;  %12757 = vrot.lane.b32.xlu0 %v23374_v1, %s20437_s10  ;;  %13206 = vrot.lane.b32.xlu1 %v23537_v36, %s20436_s5 }
 0x95e   :  { %v11781_v28 = vadd.f32 %v19229_v26, %v23270_v16 }
 0x95f   :  { %v11878_v45 = vpack.c.bf16 %v11843_v6, %v11842_v23  ;;  %v11780_v4 = vadd.f32 %v19230_v43, %v23270_v16  ;;  %v18911_v32 = vpop.f32.mrb[80].mxu0 }
 0x960   :  { %v11845_v51 = vmax.f32 %v11781_v28, 0.0  ;;  %v19231_v0 = vadd.f32 %v18911_v32, %v24532_v53  ;;  %v11632_v10 = vpop.f32.mrb[81].mxu0  ;;  %v23607_v41 = vld [vmem:[#allocation4 + $0xd0] sm:$0xff] }
 0x961   :  { %11910 = vst.msk [vmem:[#allocation4 + $0xe0] sm:$0xff] %vm90_vm0, %v11878_v45  ;;  %v11844_v29 = vmax.f32 %v11780_v4, 0.0  ;;  %v19232_v24 = vadd.f32 %v11632_v10, %v22952_v2  ;;  %12759 = vrot.lane.b32.xlu0 %v23385_v20, %s20437_s10  ;;  %13208 = vrot.lane.b32.xlu1 %v23548_v61, %s20436_s5  ;;  %v20172_v10 = vld [vmem:[%s24437_s6 + $0x80] ss:$8 sps:$4 sm:$0xff]  }
 0x962   :  { %v11783_v39 = vadd.f32 %v19231_v0, %v23270_v16 }
 0x963   :  { %v11879_v11 = vpack.c.bf16 %v11845_v51, %v11844_v29  ;;  %v11782_v63 = vadd.f32 %v19232_v24, %v23270_v16  ;;  %v18914_v56 = vpop.f32.mrb[82].mxu0  ;;  %v20198_v29 = vld [vmem:[%s24437_s6 + $0x4] ss:$8 sps:$4 sm:$0xff]  }
 0x964   :  { %v11847_v14 = vmax.f32 %v11783_v39, 0.0  ;;  %v19233_v21 = vadd.f32 %v18914_v56, %v22956_v5  ;;  %v11642_v22 = vpop.f32.mrb[83].mxu0  ;;  %v23613_v25 = vld [vmem:[#allocation4 + $0xd8] sm:$0xff] }
 0x965   :  { %11911 = vst.msk [vmem:[#allocation4 + $0xe8] sm:$0xff] %vm90_vm0, %v11879_v11  ;;  %v11846_v2 = vmax.f32 %v11782_v63, 0.0  ;;  %v19234_v35 = vadd.f32 %v11642_v22, %v22958_v30  ;;  %12761 = vrot.lane.b32.xlu0 %v23396_v3, %s20437_s10  ;;  %13210 = vrot.lane.b32.xlu1 %v23559_v52, %s20436_s5  ;;  %v20196_v11 = vld [vmem:[%s24437_s6] ss:$8 sps:$4 sm:$0xff]   ;;  %v20199_v63 = vld [vmem:[%s24437_s6 + $0x14] ss:$8 sps:$4 sm:$0xff]  }
 0x966   :  { %v11785_v18 = vadd.f32 %v19233_v21, %v23270_v16  ;;  %v20201_v22 = vld [vmem:[%s24437_s6 + $0x10] ss:$8 sps:$4 sm:$0xff]  }
 0x967   :  { %v11880_v50 = vpack.c.bf16 %v11847_v14, %v11846_v2  ;;  %v11784_v37 = vadd.f32 %v19234_v35, %v23270_v16  ;;  %v23583_v16 = vld [vmem:[#allocation4 + $0xb0] sm:$0xff]  ;;  %v20202_v2 = vld [vmem:[%s24437_s6 + $0x24] ss:$8 sps:$4 sm:$0xff]  }
 0x968   :  { %v11849_v5 = vmax.f32 %v11785_v18, 0.0  ;;  %v23619_v62 = vld [vmem:[#allocation4 + $0xe0] sm:$0xff] }
 0x969   :  { %11912 = vst.msk [vmem:[#allocation4 + $0xf0] sm:$0xff] %vm90_vm0, %v11880_v50  ;;  %v11848_v42 = vmax.f32 %v11784_v37, 0.0  ;;  %12763 = vrot.lane.b32.xlu0 %v23407_v15, %s20437_s10  ;;  %13212 = vrot.lane.b32.xlu1 %v23569_v55, %s20436_s5  ;;  %v20204_v50 = vld [vmem:[%s24437_s6 + $0x20] ss:$8 sps:$4 sm:$0xff]   ;;  %v20205_v37 = vld [vmem:[%s24437_s6 + $0x34] ss:$8 sps:$4 sm:$0xff]  }
 0x96b   :  { %v11881_v30 = vpack.c.bf16 %v11849_v5, %v11848_v42  ;;  %v12063_v40 = vpop.permute.xlu1 %12062  ;;  %v20207_v42 = vld [vmem:[%s24437_s6 + $0x30] ss:$8 sps:$4 sm:$0xff]  }
 0x96c   :  { %v23627_v6 = vld [vmem:[#allocation4 + $0xe8] sm:$0xff] }
 0x96d   :  { %11913 = vst.msk [vmem:[#allocation4 + $0xf8] sm:$0xff] %vm90_vm0, %v11881_v30  ;;  %12765 = vrot.lane.b32.xlu0 %v23421_v60, %s20437_s10  ;;  %13214 = vrot.lane.b32.xlu1 %v23576_v27, %s20436_s5  ;;  %v20208_v30 = vld [vmem:[%s24437_s6 + $0x44] ss:$8 sps:$4 sm:$0xff]  }
 0x96f   :  { %v12065_v33 = vpop.permute.xlu1 %12064 }
 0x970   :  { %v23633_v19 = vld [vmem:[#allocation4 + $0xf0] sm:$0xff] }
 0x971   :  { %12767 = vrot.lane.b32.xlu0 %v23432_v57, %s20437_s10  ;;  %13216 = vrot.lane.b32.xlu1 %v23583_v16, %s20436_s5 }
 0x973   :  { %v12067_v38 = vpop.permute.xlu1 %12066 }
 0x974   :  { %v23639_v43 = vld [vmem:[#allocation4 + $0xf8] sm:$0xff] }
 0x975   :  { %12769 = vrot.lane.b32.xlu0 %v23443_v44, %s20437_s10  ;;  %13218 = vrot.lane.b32.xlu1 %v23589_v58, %s20436_s5 }
 0x977   :  { %v12069_v26 = vpop.permute.xlu1 %12068 }
 0x979   :  { %13623 = vrot.lane.b32.xlu1 %v23526_v34, %s20432_s0  ;;  %13220 = vrot.lane.b32.xlu0 %v23595_v54, %s20436_s5 }
 0x97b   :  { %v12071_v28 = vpop.permute.xlu1 %12070 }
 0x97d   :  { %13625 = vrot.lane.b32.xlu1 %v23537_v36, %s20432_s0  ;;  %13222 = vrot.lane.b32.xlu0 %v23601_v48, %s20436_s5 }
 0x97f   :  { %v12073_v32 = vpop.permute.xlu1 %12072 }
 0x981   :  { %13627 = vrot.lane.b32.xlu1 %v23548_v61, %s20432_s0  ;;  %13224 = vrot.lane.b32.xlu0 %v23607_v41, %s20436_s5 }
 0x985   :  { %13629 = vrot.lane.b32.xlu1 %v23559_v52, %s20432_s0  ;;  %13226 = vrot.lane.b32.xlu0 %v23613_v25, %s20436_s5 }
 0x989   :  { %13631 = vrot.lane.b32.xlu1 %v23569_v55, %s20432_s0  ;;  %13228 = vrot.lane.b32.xlu0 %v23619_v62, %s20436_s5 }
 0x98b   :  { %v12079_v31 = vpop.permute.xlu0 %12078 }
 0x98c   :  { %16699 = vmatprep.subr.bf16.mxu1 %v12079_v31  ;;  %v20219_v31 = vld [vmem:[%s24437_s6 + $0x70] ss:$8 sps:$4 sm:$0xff]  }
 0x98d   :  { %16700 = vmatpush3.bf16.msra.mxu1 %v12063_v40  ;;  %13633 = vrot.lane.b32.xlu1 %v23576_v27, %s20432_s0  ;;  %v20211_v40 = vld [vmem:[%s24437_s6 + $0x54] ss:$8 sps:$4 sm:$0xff]  }
 0x98e   :  { %13230 = vrot.lane.b32.xlu0 %v23627_v6, %s20436_s5 }
 0x98f   :  { %v12081_v13 = vpop.permute.xlu0 %12080 }
 0x990   :  { %16701 = vmatprep.subr.bf16.mxu1 %v12081_v13  ;;  %v20222_v13 = vld [vmem:[%s24437_s6 + $0x104] ss:$8 sps:$4 sm:$0xff]  }
 0x991   :  { %16702 = vmatpush3.bf16.msra.mxu1 %v12065_v33  ;;  %13635 = vrot.lane.b32.xlu1 %v23583_v16, %s20432_s0  ;;  %v20214_v33 = vld [vmem:[%s24437_s6 + $0x64] ss:$8 sps:$4 sm:$0xff]  }
 0x992   :  { %13232 = vrot.lane.b32.xlu0 %v23633_v19, %s20436_s5 }
 0x993   :  { %v12083_v23 = vpop.permute.xlu0 %12082 }
 0x994   :  { %16703 = vmatprep.subr.bf16.mxu1 %v12083_v23  ;;  %v20220_v23 = vld [vmem:[%s24437_s6 + $0x100] ss:$8 sps:$4 sm:$0xff]  }
 0x995   :  { %16704 = vmatpush3.bf16.msra.mxu1 %v12067_v38  ;;  %13637 = vrot.lane.b32.xlu1 %v23589_v58, %s20432_s0 }
 0x996   :  { %13234 = vrot.lane.b32.xlu0 %v23639_v43, %s20436_s5 }
 0x997   :  { %v12085_v45 = vpop.permute.xlu0 %12084 }
 0x998   :  { %16705 = vmatprep.subr.bf16.mxu1 %v12085_v45 }
 0x999   :  { %16706 = vmatpush3.bf16.msra.mxu1 %v12069_v26  ;;  %13881 = vrot.lane.b32.xlu1 %v23526_v34, %s20437_s10  ;;  %v12075_v34 = vpop.permute.xlu1 %12074 }
 0x99a   :  { %13639 = vrot.lane.b32.xlu0 %v23595_v54, %s20432_s0 }
 0x99b   :  { %v12087_v4 = vpop.permute.xlu0 %12086 }
 0x99c   :  { %16707 = vmatprep.subr.bf16.mxu1 %v12087_v4 }
 0x99d   :  { %16708 = vmatpush3.bf16.msra.mxu1 %v12071_v28  ;;  %13883 = vrot.lane.b32.xlu1 %v23537_v36, %s20437_s10  ;;  %v12077_v0 = vpop.permute.xlu1 %12076 }
 0x99e   :  { %13641 = vrot.lane.b32.xlu0 %v23601_v48, %s20432_s0 }
 0x99f   :  { %v12089_v51 = vpop.permute.xlu0 %12088 }
 0x9a0   :  { %16709 = vmatprep.subr.bf16.mxu1 %v12089_v51  ;;  %v20226_v51 = vld [vmem:[%s24437_s6 + $0x124] ss:$8 sps:$4 sm:$0xff]  }
 0x9a1   :  { %16710 = vmatpush3.bf16.msra.mxu1 %v12073_v32  ;;  %13885 = vrot.lane.b32.xlu1 %v23548_v61, %s20437_s10  ;;  %v20175_v61 = vld [vmem:[%s24437_s6 + $0x94] ss:$8 sps:$4 sm:$0xff]   ;;  %v20225_v32 = vld [vmem:[%s24437_s6 + $0x110] ss:$8 sps:$4 sm:$0xff]  }
 0x9a2   :  { %13643 = vrot.lane.b32.xlu0 %v23607_v41, %s20432_s0 }
 0x9a3   :  { %v12091_v53 = vpop.permute.xlu0 %12090 }
 0x9a4   :  { %16711 = vmatprep.subr.bf16.mxu1 %v12091_v53 }
 0x9a5   :  { %16712 = vmatpush3.bf16.msra.mxu1 %v12075_v34  ;;  %13887 = vrot.lane.b32.xlu1 %v23559_v52, %s20437_s10 }
 0x9a6   :  { %13645 = vrot.lane.b32.xlu0 %v23613_v25, %s20432_s0 }
 0x9a7   :  { %v12093_v36 = vpop.permute.xlu0 %12092 }
 0x9a8   :  { %16713 = vmatprep.subr.bf16.mxu1 %v12093_v36  ;;  %v20228_v36 = vld [vmem:[%s24437_s6 + $0x120] ss:$8 sps:$4 sm:$0xff]  }
 0x9a9   :  { %16714 = vmatpush3.bf16.msra.mxu1 %v12077_v0  ;;  %13889 = vrot.lane.b32.xlu1 %v23569_v55, %s20437_s10 }
 0x9aa   :  { %13647 = vrot.lane.b32.xlu0 %v23619_v62, %s20432_s0  ;;  %16763 = vmatprep.subr.bf16.mxu1 %v23363_v46  ;;  %v20177_v46 = vld [vmem:[%s24437_s6 + $0x90] ss:$8 sps:$4 sm:$0xff]  }
 0x9ac   :  { %12143 = vmatmul.mubr.bf16.vlgmr.msra.gmra.mrb[128].mxu1 %v20172_v10  ;;  %v20229_v10 = vld [vmem:[%s24437_s6 + $0x134] ss:$8 sps:$4 sm:$0xff]  }
 0x9ad   :  { %13891 = vrot.lane.b32.xlu1 %v23576_v27, %s20437_s10  ;;  %16764 = vmatpush3.bf16.msra.mxu1 %v23291_v8  ;;  %v20178_v8 = vld [vmem:[%s24437_s6 + $0xa4] ss:$8 sps:$4 sm:$0xff]  }
 0x9ae   :  { %13649 = vrot.lane.b32.xlu0 %v23627_v6, %s20432_s0  ;;  %16765 = vmatprep.subr.bf16.mxu1 %v23374_v1  ;;  %v20181_v1 = vld [vmem:[%s24437_s6 + $0xb4] ss:$8 sps:$4 sm:$0xff]  }
 0x9af   :  { %12150 = vmatprep.mubr.bf16.mxu1 %v20175_v61 }
 0x9b1   :  { %13893 = vrot.lane.b32.xlu1 %v23583_v16, %s20437_s10  ;;  %16766 = vmatpush3.bf16.msra.mxu1 %v23300_v59  ;;  %v20180_v59 = vld [vmem:[%s24437_s6 + $0xa0] ss:$8 sps:$4 sm:$0xff]  }
 0x9b2   :  { %13651 = vrot.lane.b32.xlu0 %v23633_v19, %s20432_s0  ;;  %16767 = vmatprep.subr.bf16.mxu1 %v23385_v20  ;;  %v20187_v20 = vld [vmem:[%s24437_s6 + $0xd4] ss:$8 sps:$4 sm:$0xff]  }
 0x9b4   :  { %12151 = vmatmul.mubr.bf16.gmra.mrb[132].mxu1 %v20177_v46 }
 0x9b5   :  { %13895 = vrot.lane.b32.xlu1 %v23589_v58, %s20437_s10  ;;  %16768 = vmatpush3.bf16.msra.mxu1 %v23309_v9  ;;  %v20183_v9 = vld [vmem:[%s24437_s6 + $0xb0] ss:$8 sps:$4 sm:$0xff]  }
 0x9b6   :  { %13653 = vrot.lane.b32.xlu0 %v23639_v43, %s20432_s0  ;;  %16769 = vmatprep.subr.bf16.mxu1 %v23396_v3  ;;  %v20192_v3 = vld [vmem:[%s24437_s6 + $0xe0] ss:$8 sps:$4 sm:$0xff]  }
 0x9b7   :  { %12158 = vmatprep.mubr.bf16.mxu1 %v20178_v8  ;;  %v20231_v8 = vld [vmem:[%s24437_s6 + $0x130] ss:$8 sps:$4 sm:$0xff]  }
 0x9b9   :  { %16770 = vmatpush3.bf16.msra.mxu1 %v23318_v7  ;;  %v20184_v7 = vld [vmem:[%s24437_s6 + $0xc4] ss:$8 sps:$4 sm:$0xff]  }
 0x9ba   :  { %13897 = vrot.lane.b32.xlu0 %v23595_v54, %s20437_s10  ;;  %16771 = vmatprep.subr.bf16.mxu1 %v23407_v15  ;;  %v20193_v15 = vld [vmem:[%s24437_s6 + $0xf4] ss:$8 sps:$4 sm:$0xff]   ;;  %v20210_v54 = vld [vmem:[%s24437_s6 + $0x40] ss:$8 sps:$4 sm:$0xff]  }
 0x9bc   :  { %12159 = vmatmul.mubr.bf16.gmra.mrb[136].mxu1 %v20180_v59  ;;  %v20232_v59 = vld [vmem:[%s24437_s6 + $0x144] ss:$8 sps:$4 sm:$0xff]  }
 0x9bd   :  { %16772 = vmatpush3.bf16.msra.mxu1 %v23327_v49  ;;  %12166 = vmatprep.mubr.bf16.mxu1 %v20181_v1  ;;  %v20186_v49 = vld [vmem:[%s24437_s6 + $0xc0] ss:$8 sps:$4 sm:$0xff]  }
 0x9be   :  { %13899 = vrot.lane.b32.xlu0 %v23601_v48, %s20437_s10  ;;  %16773 = vmatprep.subr.bf16.mxu1 %v23421_v60  ;;  %v12482_v60 = vpop.permute.xlu1 %12481 }
 0x9c1   :  { %16774 = vmatpush3.bf16.msra.mxu1 %v23336_v17  ;;  %v12498_v17 = vpop.permute.xlu0 %12497 }
 0x9c2   :  { %13901 = vrot.lane.b32.xlu0 %v23607_v41, %s20437_s10  ;;  %16775 = vmatprep.subr.bf16.mxu1 %v23432_v57  ;;  %v12484_v24 = vpop.permute.xlu1 %12483  ;;  %v20213_v41 = vld [vmem:[%s24437_s6 + $0x50] ss:$8 sps:$4 sm:$0xff]  }
 0x9c4   :  { %12167 = vmatmul.mubr.bf16.gmra.mrb[140].mxu1 %v20183_v9 }
 0x9c5   :  { %16776 = vmatpush3.bf16.msra.mxu1 %v23345_v47  ;;  %12174 = vmatprep.mubr.bf16.mxu1 %v20184_v7  ;;  %v20189_v47 = vld [vmem:[%s24437_s6 + $0xd0] ss:$8 sps:$4 sm:$0xff]   ;;  %v12500_v57 = vpop.permute.xlu0 %12499  ;;  %v20247_v7 = vld [vmem:[%s24438_s7] sm:$0xff]  }
 0x9c6   :  { %13903 = vrot.lane.b32.xlu0 %v23613_v25, %s20437_s10  ;;  %16777 = vmatprep.subr.bf16.mxu1 %v23443_v44  ;;  %v20195_v44 = vld [vmem:[%s24437_s6 + $0xf0] ss:$8 sps:$4 sm:$0xff]   ;;  %v12486_v56 = vpop.permute.xlu1 %12485  ;;  %v20216_v25 = vld [vmem:[%s24437_s6 + $0x60] ss:$8 sps:$4 sm:$0xff]  }
 0x9c9   :  { %16778 = vmatpush3.bf16.msra.mxu1 %v23354_v12  ;;  %v20190_v12 = vld [vmem:[%s24437_s6 + $0xe4] ss:$8 sps:$4 sm:$0xff]   ;;  %v12502_v39 = vpop.permute.xlu0 %12501 }
 0x9ca   :  { %13905 = vrot.lane.b32.xlu0 %v23619_v62, %s20437_s10  ;;  %16827 = vmatprep.subr.bf16.mxu1 %v12498_v17  ;;  %v12488_v21 = vpop.permute.xlu1 %12487  ;;  %v20217_v62 = vld [vmem:[%s24437_s6 + $0x74] ss:$8 sps:$4 sm:$0xff]   ;;  %v20234_v17 = vld [vmem:[%s24437_s6 + $0x140] ss:$8 sps:$4 sm:$0xff]  }
 0x9cc   :  { %12175 = vmatmul.mubr.bf16.gmra.mrb[144].mxu1 %v20186_v49 }
 0x9cd   :  { %12182 = vmatprep.mubr.bf16.mxu1 %v20187_v20  ;;  %v12504_v14 = vpop.permute.xlu0 %12503  ;;  %v20235_v20 = vld [vmem:[%s24437_s6 + $0x154] ss:$8 sps:$4 sm:$0xff]  }
 0x9ce   :  { %13907 = vrot.lane.b32.xlu0 %v23627_v6, %s20437_s10  ;;  %v12490_v35 = vpop.permute.xlu1 %12489 }
 0x9d1   :  { %v12506_v52 = vpop.permute.xlu0 %12505 }
 0x9d2   :  { %13909 = vrot.lane.b32.xlu0 %v23633_v19, %s20437_s10  ;;  %v12492_v5 = vpop.permute.xlu1 %12491 }
 0x9d4   :  { %12183 = vmatmul.mubr.bf16.gmra.mrb[148].mxu1 %v20189_v47  ;;  %v20237_v47 = vld [vmem:[%s24437_s6 + $0x150] ss:$8 sps:$4 sm:$0xff]  }
 0x9d5   :  { %12190 = vmatprep.mubr.bf16.mxu1 %v20190_v12  ;;  %v12508_v18 = vpop.permute.xlu0 %12507  ;;  %v20238_v12 = vld [vmem:[%s24437_s6 + $0x164] ss:$8 sps:$4 sm:$0xff]  }
 0x9d6   :  { %13911 = vrot.lane.b32.xlu0 %v23639_v43, %s20437_s10  ;;  %v12494_v27 = vpop.permute.xlu1 %12493  ;;  %v20223_v43 = vld [vmem:[%s24437_s6 + $0x114] ss:$8 sps:$4 sm:$0xff]  }
 0x9d9   :  { %v12510_v55 = vpop.permute.xlu0 %12509 }
 0x9da   :  { %v12496_v58 = vpop.permute.xlu1 %12495 }
 0x9dc   :  { %12191 = vmatmul.mubr.bf16.gmra.mrb[152].mxu1 %v20192_v3  ;;  %v20240_v3 = vld [vmem:[%s24437_s6 + $0x160] ss:$8 sps:$4 sm:$0xff]  }
 0x9dd   :  { %12198 = vmatprep.mubr.bf16.mxu1 %v20193_v15  ;;  %v12512_v16 = vpop.permute.xlu0 %12511  ;;  %v20241_v15 = vld [vmem:[%s24437_s6 + $0x174] ss:$8 sps:$4 sm:$0xff]  }
 0x9de   :  { %v12740_v38 = vpop.permute.xlu1 %12739 }
 0x9e1   :  { %v12756_v48 = vpop.permute.xlu0 %12755 }
 0x9e2   :  { %v12742_v26 = vpop.permute.xlu1 %12741 }
 0x9e4   :  { %12199 = vmatmul.mubr.bf16.gmra.mrb[156].mxu1 %v20195_v44  ;;  %v20244_v44 = vld [vmem:[%s24437_s6 + $0x180] ss:$8 sps:$4 sm:$0xff]  }
 0x9e5   :  { %12319 = vmatprep.mubr.bf16.mxu1 %v20198_v29  ;;  %v12758_v6 = vpop.permute.xlu0 %12757  ;;  %v20248_v29 = vld [vmem:[%s24437_s6 + $0x194] ss:$8 sps:$4 sm:$0xff]  }
 0x9e6   :  { %v12744_v28 = vpop.permute.xlu1 %12743 }
 0x9e9   :  { %v12760_v19 = vpop.permute.xlu0 %12759 }
 0x9ea   :  { %v12746_v4 = vpop.permute.xlu1 %12745 }
 0x9ec   :  { %12320 = vmatmul.mubr.bf16.vlgmr.msra.gmra.mrb[160].mxu1 %v20196_v11  ;;  %v20251_v11 = vld [vmem:[%s24437_s6 + $0x1a4] ss:$8 sps:$4 sm:$0xff]  }
 0x9ed   :  { %16828 = vmatpush3.bf16.msra.mxu1 %v12482_v60  ;;  %12327 = vmatprep.mubr.bf16.mxu1 %v20199_v63  ;;  %v12762_v45 = vpop.permute.xlu0 %12761  ;;  %v20243_v60 = vld [vmem:[%s24437_s6 + $0x170] ss:$8 sps:$4 sm:$0xff]   ;;  %v20253_v63 = vld [vmem:[%s24437_s6 + $0x1a0] ss:$8 sps:$4 sm:$0xff]  }
 0x9ee   :  { %16829 = vmatprep.subr.bf16.mxu1 %v12500_v57  ;;  %v12748_v53 = vpop.permute.xlu1 %12747  ;;  %v20246_v57 = vld [vmem:[%s24437_s6 + $0x184] ss:$8 sps:$4 sm:$0xff]  }
 0x9f1   :  { %16830 = vmatpush3.bf16.msra.mxu1 %v12484_v24  ;;  %v12764_v34 = vpop.permute.xlu0 %12763 }
 0x9f2   :  { %16831 = vmatprep.subr.bf16.mxu1 %v12502_v39  ;;  %v12750_v61 = vpop.permute.xlu1 %12749  ;;  %v20250_v39 = vld [vmem:[%s24437_s6 + $0x190] ss:$8 sps:$4 sm:$0xff]  }
 0x9f4   :  { %12328 = vmatmul.mubr.bf16.gmra.mrb[164].mxu1 %v20201_v22 }
 0x9f5   :  { %16832 = vmatpush3.bf16.msra.mxu1 %v12486_v56  ;;  %12335 = vmatprep.mubr.bf16.mxu1 %v20202_v2  ;;  %v12766_v0 = vpop.permute.xlu0 %12765  ;;  %v20254_v56 = vld [vmem:[%s24437_s6 + $0x1b4] ss:$8 sps:$4 sm:$0xff]  }
 0x9f6   :  { %16833 = vmatprep.subr.bf16.mxu1 %v12504_v14  ;;  %v12752_v1 = vpop.permute.xlu1 %12751 }
 0x9f9   :  { %16834 = vmatpush3.bf16.msra.mxu1 %v12488_v21  ;;  %v12768_v46 = vpop.permute.xlu0 %12767  ;;  %v20256_v21 = vld [vmem:[%s24437_s6 + $0x1b0] ss:$8 sps:$4 sm:$0xff]  }
 0x9fa   :  { %16835 = vmatprep.subr.bf16.mxu1 %v12506_v52  ;;  %v12754_v49 = vpop.permute.xlu1 %12753  ;;  %v20257_v52 = vld [vmem:[%s24437_s6 + $0x1c4] ss:$8 sps:$4 sm:$0xff]  }
 0x9fc   :  { %12336 = vmatmul.mubr.bf16.gmra.mrb[168].mxu1 %v20204_v50 }
 0x9fd   :  { %16836 = vmatpush3.bf16.msra.mxu1 %v12490_v35  ;;  %12343 = vmatprep.mubr.bf16.mxu1 %v20205_v37  ;;  %v12770_v9 = vpop.permute.xlu0 %12769 }
 0x9fe   :  { %16837 = vmatprep.subr.bf16.mxu1 %v12508_v18 }
 0xa01   :  { %16838 = vmatpush3.bf16.msra.mxu1 %v12492_v5  ;;  %v13221_v24 = vpop.permute.xlu0 %13220  ;;  %v20259_v5 = vld [vmem:[%s24437_s6 + $0x1c0] ss:$8 sps:$4 sm:$0xff]  }
 0xa02   :  { %16839 = vmatprep.subr.bf16.mxu1 %v12510_v55 }
 0xa04   :  { %12344 = vmatmul.mubr.bf16.gmra.mrb[172].mxu1 %v20207_v42  ;;  %v20260_v42 = vld [vmem:[%s24437_s6 + $0x1d4] ss:$8 sps:$4 sm:$0xff]  }
 0xa05   :  { %16840 = vmatpush3.bf16.msra.mxu1 %v12494_v27  ;;  %12351 = vmatprep.mubr.bf16.mxu1 %v20208_v30 }
 0xa06   :  { %16841 = vmatprep.subr.bf16.mxu1 %v12512_v16 }
 0xa09   :  { %16842 = vmatpush3.bf16.msra.mxu1 %v12496_v58 }
 0xa0a   :  { %16891 = vmatprep.subr.bf16.mxu1 %v12756_v48  ;;  %v20262_v48 = vld [vmem:[%s24437_s6 + $0x1d0] ss:$8 sps:$4 sm:$0xff]  }
 0xa0c   :  { %12352 = vmatmul.mubr.bf16.gmra.mrb[176].mxu1 %v20210_v54 }
 0xa0d   :  { %12359 = vmatprep.mubr.bf16.mxu1 %v20211_v40 }
 0xa14   :  { %12360 = vmatmul.mubr.bf16.gmra.mrb[180].mxu1 %v20213_v41  ;;  %v20263_v41 = vld [vmem:[%s24437_s6 + $0x1e4] ss:$8 sps:$4 sm:$0xff]  }
 0xa15   :  { %12367 = vmatprep.mubr.bf16.mxu1 %v20214_v33 }
 0xa1c   :  { %12368 = vmatmul.mubr.bf16.gmra.mrb[184].mxu1 %v20216_v25 }
 0xa1d   :  { %12375 = vmatprep.mubr.bf16.mxu1 %v20217_v62 }
 0xa24   :  { %12376 = vmatmul.mubr.bf16.gmra.mrb[188].mxu1 %v20219_v31 }
 0xa25   :  { %12561 = vmatprep.mubr.bf16.mxu1 %v20222_v13 }
 0xa2c   :  { %12562 = vmatmul.mubr.bf16.vlgmr.msra.gmra.mrb[192].mxu1 %v20220_v23 }
 0xa2d   :  { %16892 = vmatpush3.bf16.msra.mxu1 %v12740_v38  ;;  %12569 = vmatprep.mubr.bf16.mxu1 %v20223_v43 }
 0xa2e   :  { %16893 = vmatprep.subr.bf16.mxu1 %v12758_v6  ;;  %v20265_v6 = vld [vmem:[%s24437_s6 + $0x1e0] ss:$8 sps:$4 sm:$0xff]  }
 0xa31   :  { %16894 = vmatpush3.bf16.msra.mxu1 %v12742_v26  ;;  %v20266_v26 = vld [vmem:[%s24437_s6 + $0x1f4] ss:$8 sps:$4 sm:$0xff]  }
 0xa32   :  { %16895 = vmatprep.subr.bf16.mxu1 %v12760_v19 }
 0xa34   :  { %12570 = vmatmul.mubr.bf16.gmra.mrb[196].mxu1 %v20225_v32 }
 0xa35   :  { %16896 = vmatpush3.bf16.msra.mxu1 %v12744_v28  ;;  %12577 = vmatprep.mubr.bf16.mxu1 %v20226_v51 }
 0xa36   :  { %16897 = vmatprep.subr.bf16.mxu1 %v12762_v45 }
 0xa39   :  { %16898 = vmatpush3.bf16.msra.mxu1 %v12746_v4  ;;  %v20268_v4 = vld [vmem:[%s24437_s6 + $0x1f0] ss:$8 sps:$4 sm:$0xff]  }
 0xa3a   :  { %16899 = vmatprep.subr.bf16.mxu1 %v12764_v34 }
 0xa3c   :  { %12578 = vmatmul.mubr.bf16.gmra.mrb[200].mxu1 %v20228_v36 }
 0xa3d   :  { %16900 = vmatpush3.bf16.msra.mxu1 %v12748_v53  ;;  %12585 = vmatprep.mubr.bf16.mxu1 %v20229_v10 }
 0xa3e   :  { %16901 = vmatprep.subr.bf16.mxu1 %v12766_v0 }
 0xa41   :  { %16902 = vmatpush3.bf16.msra.mxu1 %v12750_v61 }
 0xa42   :  { %16903 = vmatprep.subr.bf16.mxu1 %v12768_v46 }
 0xa44   :  { %12586 = vmatmul.mubr.bf16.gmra.mrb[204].mxu1 %v20231_v8 }
 0xa45   :  { %16904 = vmatpush3.bf16.msra.mxu1 %v12752_v1  ;;  %12593 = vmatprep.mubr.bf16.mxu1 %v20232_v59 }
 0xa46   :  { %16905 = vmatprep.subr.bf16.mxu1 %v12770_v9 }
 0xa49   :  { %16906 = vmatpush3.bf16.msra.mxu1 %v12754_v49 }
 0xa4a   :  { %18915 = vmatprep.subr.bf16.mxu1 %v20247_v7 }
 0xa4c   :  { %12594 = vmatmul.mubr.bf16.gmra.mrb[208].mxu1 %v20234_v17 }
 0xa4d   :  { %12601 = vmatprep.mubr.bf16.mxu1 %v20235_v20 }
 0xa54   :  { %12602 = vmatmul.mubr.bf16.gmra.mrb[212].mxu1 %v20237_v47 }
 0xa55   :  { %12609 = vmatprep.mubr.bf16.mxu1 %v20238_v12 }
 0xa5c   :  { %12610 = vmatmul.mubr.bf16.gmra.mrb[216].mxu1 %v20240_v3 }
 0xa5d   :  { %12617 = vmatprep.mubr.bf16.mxu1 %v20241_v15 }
 0xa64   :  { %12618 = vmatmul.mubr.bf16.gmra.mrb[220].mxu1 %v20243_v60 }
 0xa65   :  { %12819 = vmatprep.mubr.bf16.mxu1 %v20246_v57 }
 0xa6c   :  { %12820 = vmatmul.mubr.bf16.vlgmr.msra.gmra.mrb[224].mxu1 %v20244_v44 }
 0xa6d   :  { %18916 = vmatpush3.bf16.msra.mxu1 %v20247_v7  ;;  %12827 = vmatprep.mubr.bf16.mxu1 %v20248_v29 }
 0xa6e   :  { %16964 = vmatprep.subr.bf16.mxu1 %v13221_v24 }
 0xa74   :  { %12828 = vmatmul.mubr.bf16.gmra.mrb[228].mxu1 %v20250_v39 }
 0xa75   :  { %12835 = vmatprep.mubr.bf16.mxu1 %v20251_v11 }
 0xa7c   :  { %12836 = vmatmul.mubr.bf16.gmra.mrb[232].mxu1 %v20253_v63 }
 0xa7d   :  { %12843 = vmatprep.mubr.bf16.mxu1 %v20254_v56 }
 0xa7f   :  { %v16715_v14 = vpop.f32.mrb[128].mxu1 }
 0xa80   :  { %v16716_v22 = vpop.f32.mrb[129].mxu1 }
 0xa81   :  { %v23878_v2 = vadd.f32 %v16716_v22, %v16715_v14  ;;  %v16718_v35 = vpop.f32.mrb[130].mxu1 }
 0xa82   :  { %v16719_v18 = vpop.f32.mrb[131].mxu1 }
 0xa83   :  { %v23880_v50 = vadd.f32 %v16719_v18, %v16718_v35 }
 0xa84   :  { %12844 = vmatmul.mubr.bf16.gmra.mrb[236].mxu1 %v20256_v21 }
 0xa85   :  { %12851 = vmatprep.mubr.bf16.mxu1 %v20257_v52 }
 0xa87   :  { %v16721_v37 = vpop.f32.mrb[132].mxu1 }
 0xa88   :  { %v16722_v55 = vpop.f32.mrb[133].mxu1 }
 0xa89   :  { %v23888_v30 = vadd.f32 %v16722_v55, %v16721_v37  ;;  %v16724_v27 = vpop.f32.mrb[134].mxu1 }
 0xa8a   :  { %v16725_v16 = vpop.f32.mrb[135].mxu1 }
 0xa8b   :  { %v23890_v58 = vadd.f32 %v16725_v16, %v16724_v27 }
 0xa8c   :  { %12852 = vmatmul.mubr.bf16.gmra.mrb[240].mxu1 %v20259_v5 }
 0xa8d   :  { %12859 = vmatprep.mubr.bf16.mxu1 %v20260_v42 }
 0xa8f   :  { %v16727_v54 = vpop.f32.mrb[136].mxu1 }
 0xa90   :  { %v16728_v40 = vpop.f32.mrb[137].mxu1 }
 0xa91   :  { %v23898_v33 = vadd.f32 %v16728_v40, %v16727_v54  ;;  %v16730_v25 = vpop.f32.mrb[138].mxu1 }
 0xa92   :  { %v16731_v62 = vpop.f32.mrb[139].mxu1 }
 0xa93   :  { %v16732_v38 = vadd.f32 %v16731_v62, %v16730_v25 }
 0xa94   :  { %12860 = vmatmul.mubr.bf16.gmra.mrb[244].mxu1 %v20262_v48 }
 0xa95   :  { %12867 = vmatprep.mubr.bf16.mxu1 %v20263_v41 }
 0xa97   :  { %v16733_v31 = vpop.f32.mrb[140].mxu1 }
 0xa98   :  { %v16734_v13 = vpop.f32.mrb[141].mxu1 }
 0xa99   :  { %v16735_v19 = vadd.f32 %v16734_v13, %v16733_v31  ;;  %v16736_v23 = vpop.f32.mrb[142].mxu1 }
 0xa9a   :  { %v16737_v43 = vpop.f32.mrb[143].mxu1 }
 0xa9b   :  { %v16738_v28 = vadd.f32 %v16737_v43, %v16736_v23 }
 0xa9c   :  { %12868 = vmatmul.mubr.bf16.gmra.mrb[248].mxu1 %v20265_v6 }
 0xa9d   :  { %12875 = vmatprep.mubr.bf16.mxu1 %v20266_v26 }
 0xa9f   :  { %v16739_v45 = vpop.f32.mrb[144].mxu1 }
 0xaa0   :  { %v16740_v32 = vpop.f32.mrb[145].mxu1 }
 0xaa1   :  { %v16741_v51 = vadd.f32 %v16740_v32, %v16739_v45  ;;  %v16742_v34 = vpop.f32.mrb[146].mxu1 }
 0xaa2   :  { %v16743_v53 = vpop.f32.mrb[147].mxu1 }
 0xaa3   :  { %v16744_v36 = vadd.f32 %v16743_v53, %v16742_v34 }
 0xaa4   :  { %12876 = vmatmul.mubr.bf16.gmra.mrb[252].mxu1 %v20268_v4 }
 0xaa7   :  { %v16745_v0 = vpop.f32.mrb[148].mxu1 }
 0xaa8   :  { %v16746_v10 = vpop.f32.mrb[149].mxu1 }
 0xaa9   :  { %v16747_v61 = vadd.f32 %v16746_v10, %v16745_v0  ;;  %v16748_v46 = vpop.f32.mrb[150].mxu1 }
 0xaaa   :  { %v16749_v8 = vpop.f32.mrb[151].mxu1 }
 0xaab   :  { %v16750_v59 = vadd.f32 %v16749_v8, %v16748_v46 }
 0xaaf   :  { %v16751_v1 = vpop.f32.mrb[152].mxu1 }
 0xab0   :  { %v16752_v9 = vpop.f32.mrb[153].mxu1 }
 0xab1   :  { %v23909_v7 = vadd.f32 %v16752_v9, %v16751_v1  ;;  %v16754_v49 = vpop.f32.mrb[154].mxu1 }
 0xab2   :  { %v16755_v17 = vpop.f32.mrb[155].mxu1 }
 0xab3   :  { %v16756_v20 = vadd.f32 %v16755_v17, %v16754_v49 }
 0xab7   :  { %v16757_v47 = vpop.f32.mrb[156].mxu1 }
 0xab8   :  { %v16758_v12 = vpop.f32.mrb[157].mxu1 }
 0xab9   :  { %v23911_v3 = vadd.f32 %v16758_v12, %v16757_v47  ;;  %v16760_v15 = vpop.f32.mrb[158].mxu1 }
 0xaba   :  { %v16761_v60 = vpop.f32.mrb[159].mxu1 }
 0xabb   :  { %v23913_v57 = vadd.f32 %v16761_v60, %v16760_v15 }
 0xabf   :  { %v16779_v44 = vpop.f32.mrb[160].mxu1 }
 0xac0   :  { %v16780_v29 = vpop.f32.mrb[161].mxu1 }
 0xac1   :  { %v16781_v24 = vadd.f32 %v16780_v29, %v16779_v44  ;;  %v16782_v39 = vpop.f32.mrb[162].mxu1 }
 0xac2   :  { %v16783_v11 = vpop.f32.mrb[163].mxu1 }
 0xac3   :  { %v23916_v63 = vadd.f32 %v16781_v24, %v23878_v2  ;;  %v16784_v56 = vadd.f32 %v16783_v11, %v16782_v39 }
 0xac5   :  { %v23919_v14 = vadd.f32 %v16784_v56, %v23880_v50 }
 0xac7   :  { %v16785_v21 = vpop.f32.mrb[164].mxu1 }
 0xac8   :  { %v16786_v22 = vpop.f32.mrb[165].mxu1 }
 0xac9   :  { %v16787_v52 = vadd.f32 %v16786_v22, %v16785_v21  ;;  %v16788_v35 = vpop.f32.mrb[166].mxu1 }
 0xaca   :  { %v16789_v18 = vpop.f32.mrb[167].mxu1 }
 0xacb   :  { %v23922_v37 = vadd.f32 %v16787_v52, %v23888_v30  ;;  %v16790_v5 = vadd.f32 %v16789_v18, %v16788_v35 }
 0xacd   :  { %v23925_v55 = vadd.f32 %v16790_v5, %v23890_v58 }
 0xacf   :  { %v16791_v42 = vpop.f32.mrb[168].mxu1 }
 0xad0   :  { %v16792_v27 = vpop.f32.mrb[169].mxu1 }
 0xad1   :  { %v16793_v2 = vadd.f32 %v16792_v27, %v16791_v42  ;;  %v16794_v16 = vpop.f32.mrb[170].mxu1 }
 0xad2   :  { %v16795_v54 = vpop.f32.mrb[171].mxu1 }
 0xad3   :  { %v23928_v50 = vadd.f32 %v16793_v2, %v23898_v33  ;;  %v16796_v48 = vadd.f32 %v16795_v54, %v16794_v16 }
 0xad5   :  { %v23930_v40 = vadd.f32 %v16796_v48, %v16732_v38 }
 0xad7   :  { %v16797_v41 = vpop.f32.mrb[172].mxu1 }
 0xad8   :  { %v16798_v25 = vpop.f32.mrb[173].mxu1 }
 0xad9   :  { %v16799_v62 = vadd.f32 %v16798_v25, %v16797_v41  ;;  %v16800_v30 = vpop.f32.mrb[174].mxu1 }
 0xada   :  { %v16801_v31 = vpop.f32.mrb[175].mxu1 }
 0xadb   :  { %v23932_v6 = vadd.f32 %v16799_v62, %v16735_v19  ;;  %v16802_v58 = vadd.f32 %v16801_v31, %v16800_v30 }
 0xadd   :  { %v23934_v13 = vadd.f32 %v16802_v58, %v16738_v28 }
 0xadf   :  { %v16803_v26 = vpop.f32.mrb[176].mxu1 }
 0xae0   :  { %v16804_v23 = vpop.f32.mrb[177].mxu1 }
 0xae1   :  { %v16805_v43 = vadd.f32 %v16804_v23, %v16803_v26  ;;  %v16806_v45 = vpop.f32.mrb[178].mxu1 }
 0xae2   :  { %v16807_v4 = vpop.f32.mrb[179].mxu1 }
 0xae3   :  { %v23936_v33 = vadd.f32 %v16805_v43, %v16741_v51  ;;  %v16808_v32 = vadd.f32 %v16807_v4, %v16806_v45 }
 0xae5   :  { %v23938_v38 = vadd.f32 %v16808_v32, %v16744_v36 }
 0xae7   :  { %v16809_v34 = vpop.f32.mrb[180].mxu1 }
 0xae8   :  { %v16810_v53 = vpop.f32.mrb[181].mxu1 }
 0xae9   :  { %v16811_v0 = vadd.f32 %v16810_v53, %v16809_v34  ;;  %v16812_v10 = vpop.f32.mrb[182].mxu1 }
 0xaea   :  { %v16813_v46 = vpop.f32.mrb[183].mxu1 }
 0xaeb   :  { %v23940_v19 = vadd.f32 %v16811_v0, %v16747_v61  ;;  %v16814_v8 = vadd.f32 %v16813_v46, %v16812_v10 }
 0xaed   :  { %v23942_v28 = vadd.f32 %v16814_v8, %v16750_v59 }
 0xaef   :  { %v16815_v1 = vpop.f32.mrb[184].mxu1 }
 0xaf0   :  { %v16816_v9 = vpop.f32.mrb[185].mxu1 }
 0xaf1   :  { %v16817_v49 = vadd.f32 %v16816_v9, %v16815_v1  ;;  %v16818_v17 = vpop.f32.mrb[186].mxu1 }
 0xaf2   :  { %v16819_v47 = vpop.f32.mrb[187].mxu1 }
 0xaf3   :  { %v23945_v51 = vadd.f32 %v16817_v49, %v23909_v7  ;;  %v16820_v36 = vadd.f32 %v16819_v47, %v16818_v17 }
 0xaf5   :  { %v23947_v12 = vadd.f32 %v16820_v36, %v16756_v20 }
 0xaf7   :  { %v16821_v15 = vpop.f32.mrb[188].mxu1 }
 0xaf8   :  { %v16822_v60 = vpop.f32.mrb[189].mxu1 }
 0xaf9   :  { %v16823_v44 = vadd.f32 %v16822_v60, %v16821_v15  ;;  %v16824_v29 = vpop.f32.mrb[190].mxu1 }
 0xafa   :  { %v16825_v61 = vpop.f32.mrb[191].mxu1 }
 0xafb   :  { %v23950_v24 = vadd.f32 %v16823_v44, %v23911_v3  ;;  %v16826_v59 = vadd.f32 %v16825_v61, %v16824_v29 }
 0xafd   :  { %v23953_v39 = vadd.f32 %v16826_v59, %v23913_v57 }
 0xaff   :  { %v16843_v11 = vpop.f32.mrb[192].mxu1 }
 0xb00   :  { %v16844_v56 = vpop.f32.mrb[193].mxu1 }
 0xb01   :  { %v16845_v21 = vadd.f32 %v16844_v56, %v16843_v11  ;;  %v16846_v7 = vpop.f32.mrb[194].mxu1 }
 0xb02   :  { %v16847_v22 = vpop.f32.mrb[195].mxu1 }
 0xb03   :  { %v23956_v20 = vadd.f32 %v16845_v21, %v23916_v63  ;;  %v16848_v52 = vadd.f32 %v16847_v22, %v16846_v7 }
 0xb05   :  { %v23959_v35 = vadd.f32 %v16848_v52, %v23919_v14 }
 0xb07   :  { %v16849_v18 = vpop.f32.mrb[196].mxu1 }
 0xb08   :  { %v16850_v5 = vpop.f32.mrb[197].mxu1 }
 0xb09   :  { %v16851_v3 = vadd.f32 %v16850_v5, %v16849_v18  ;;  %v16852_v42 = vpop.f32.mrb[198].mxu1 }
 0xb0a   :  { %v16853_v27 = vpop.f32.mrb[199].mxu1 }
 0xb0b   :  { %v23962_v57 = vadd.f32 %v16851_v3, %v23922_v37  ;;  %v16854_v2 = vadd.f32 %v16853_v27, %v16852_v42  ;;  %v13205_v3 = vpop.permute.xlu1 %13204 }
 0xb0d   :  { %v23965_v16 = vadd.f32 %v16854_v2, %v23925_v55  ;;  %v13223_v2 = vpop.permute.xlu0 %13222 }
 0xb0f   :  { %v16855_v54 = vpop.f32.mrb[200].mxu1 }
 0xb10   :  { %v16856_v48 = vpop.f32.mrb[201].mxu1 }
 0xb11   :  { %v16857_v63 = vadd.f32 %v16856_v48, %v16855_v54  ;;  %v16858_v41 = vpop.f32.mrb[202].mxu1 }
 0xb12   :  { %v16859_v25 = vpop.f32.mrb[203].mxu1 }
 0xb13   :  { %v23968_v14 = vadd.f32 %v16857_v63, %v23928_v50  ;;  %v16860_v62 = vadd.f32 %v16859_v25, %v16858_v41  ;;  %v13207_v63 = vpop.permute.xlu1 %13206 }
 0xb15   :  { %v23971_v30 = vadd.f32 %v16860_v62, %v23930_v40 }
 0xb17   :  { %v16861_v31 = vpop.f32.mrb[204].mxu1 }
 0xb18   :  { %v16862_v58 = vpop.f32.mrb[205].mxu1 }
 0xb19   :  { %v16863_v37 = vadd.f32 %v16862_v58, %v16861_v31  ;;  %v16864_v26 = vpop.f32.mrb[206].mxu1  ;;  %v13225_v58 = vpop.permute.xlu0 %13224 }
 0xb1a   :  { %v16865_v23 = vpop.f32.mrb[207].mxu1 }
 0xb1b   :  { %v23974_v55 = vadd.f32 %v16863_v37, %v23932_v6  ;;  %v16866_v43 = vadd.f32 %v16865_v23, %v16864_v26  ;;  %v13209_v37 = vpop.permute.xlu1 %13208 }
 0xb1d   :  { %v23977_v45 = vadd.f32 %v16866_v43, %v23934_v13 }
 0xb1f   :  { %v16867_v4 = vpop.f32.mrb[208].mxu1 }
 0xb20   :  { %v16868_v32 = vpop.f32.mrb[209].mxu1 }
 0xb21   :  { %v16869_v50 = vadd.f32 %v16868_v32, %v16867_v4  ;;  %v16870_v34 = vpop.f32.mrb[210].mxu1  ;;  %v13227_v32 = vpop.permute.xlu0 %13226 }
 0xb22   :  { %v16871_v53 = vpop.f32.mrb[211].mxu1 }
 0xb23   :  { %v23980_v40 = vadd.f32 %v16869_v50, %v23936_v33  ;;  %v16872_v0 = vadd.f32 %v16871_v53, %v16870_v34 }
 0xb25   :  { %v23983_v10 = vadd.f32 %v16872_v0, %v23938_v38 }
 0xb27   :  { %v16873_v46 = vpop.f32.mrb[212].mxu1 }
 0xb28   :  { %v16874_v8 = vpop.f32.mrb[213].mxu1 }
 0xb29   :  { %v16875_v6 = vadd.f32 %v16874_v8, %v16873_v46  ;;  %v16876_v1 = vpop.f32.mrb[214].mxu1  ;;  %v13229_v8 = vpop.permute.xlu0 %13228 }
 0xb2a   :  { %v16877_v9 = vpop.f32.mrb[215].mxu1 }
 0xb2b   :  { %v23986_v13 = vadd.f32 %v16875_v6, %v23940_v19  ;;  %v16878_v49 = vadd.f32 %v16877_v9, %v16876_v1 }
 0xb2d   :  { %v23989_v17 = vadd.f32 %v16878_v49, %v23942_v28 }
 0xb2f   :  { %v16879_v47 = vpop.f32.mrb[216].mxu1 }
 0xb30   :  { %v16880_v36 = vpop.f32.mrb[217].mxu1 }
 0xb31   :  { %v16881_v33 = vadd.f32 %v16880_v36, %v16879_v47  ;;  %v16882_v15 = vpop.f32.mrb[218].mxu1 }
 0xb32   :  { %v16883_v60 = vpop.f32.mrb[219].mxu1 }
 0xb33   :  { %v23992_v38 = vadd.f32 %v16881_v33, %v23945_v51  ;;  %v16884_v44 = vadd.f32 %v16883_v60, %v16882_v15 }
 0xb35   :  { %v23995_v29 = vadd.f32 %v16884_v44, %v23947_v12 }
 0xb37   :  { %v16885_v61 = vpop.f32.mrb[220].mxu1 }
 0xb38   :  { %v16886_v59 = vpop.f32.mrb[221].mxu1 }
 0xb39   :  { %v16887_v19 = vadd.f32 %v16886_v59, %v16885_v61  ;;  %v16888_v11 = vpop.f32.mrb[222].mxu1 }
 0xb3a   :  { %v16889_v56 = vpop.f32.mrb[223].mxu1 }
 0xb3b   :  { %v23998_v28 = vadd.f32 %v16887_v19, %v23950_v24  ;;  %v16890_v21 = vadd.f32 %v16889_v56, %v16888_v11 }
 0xb3d   :  { %v24001_v7 = vadd.f32 %v16890_v21, %v23953_v39 }
 0xb3f   :  { %v16907_v22 = vpop.f32.mrb[224].mxu1 }
 0xb40   :  { %v16908_v52 = vpop.f32.mrb[225].mxu1 }
 0xb41   :  { %v16909_v51 = vadd.f32 %v16908_v52, %v16907_v22  ;;  %v16910_v18 = vpop.f32.mrb[226].mxu1 }
 0xb42   :  { %v16911_v5 = vpop.f32.mrb[227].mxu1 }
 0xb43   :  { %v12884_v12 = vadd.f32 %v16909_v51, %v23956_v20  ;;  %v16912_v42 = vadd.f32 %v16911_v5, %v16910_v18 }
 0xb45   :  { %v12885_v27 = vadd.f32 %v16912_v42, %v23959_v35 }
 0xb47   :  { %v12900_v54 = vpack.c.bf16 %v12885_v27, %v12884_v12  ;;  %v16913_v24 = vpop.f32.mrb[228].mxu1 }
 0xb48   :  { %v16914_v48 = vpop.f32.mrb[229].mxu1 }
 0xb49   :  { %v16915_v41 = vadd.f32 %v16914_v48, %v16913_v24  ;;  %v16916_v39 = vpop.f32.mrb[230].mxu1  ;;  %18917 = vmatprep.mubr.msk.bf16.mxu1 %vm12920_vm3, %v12900_v54  ;;  %v20391_v24 = vld [vmem:[#allocation4 + $0xc0] sm:$0xff] }
 0xb4a   :  { %v16917_v25 = vpop.f32.mrb[231].mxu1 }
 0xb4b   :  { %v12886_v62 = vadd.f32 %v16915_v41, %v23962_v57  ;;  %v16918_v31 = vadd.f32 %v16917_v25, %v16916_v39  ;;  %v13211_v57 = vpop.permute.xlu1 %13210 }
 0xb4d   :  { %v12887_v20 = vadd.f32 %v16918_v31, %v23965_v16 }
 0xb4f   :  { %v12901_v26 = vpack.c.bf16 %v12887_v20, %v12886_v62  ;;  %v16919_v35 = vpop.f32.mrb[232].mxu1  ;;  %v13213_v47 = vpop.permute.xlu1 %13212 }
 0xb50   :  { %v16920_v23 = vpop.f32.mrb[233].mxu1 }
 0xb51   :  { %v16921_v43 = vadd.f32 %v16920_v23, %v16919_v35  ;;  %v16922_v4 = vpop.f32.mrb[234].mxu1  ;;  %18918 = vmatmul.mubr.msk.bf16.vlgmr.msra.gmra.mrb[0].mxu1 %vm12920_vm3, %v12901_v26 }
 0xb52   :  { %16965 = vmatpush3.bf16.msra.mxu1 %v13205_v3  ;;  %v16923_v50 = vpop.f32.mrb[235].mxu1 }
 0xb53   :  { %v12888_v34 = vadd.f32 %v16921_v43, %v23968_v14  ;;  %v16924_v53 = vadd.f32 %v16923_v50, %v16922_v4  ;;  %16966 = vmatprep.subr.bf16.mxu1 %v13223_v2  ;;  %v13215_v61 = vpop.permute.xlu1 %13214  ;;  %v20274_v50 = vld [vmem:[%s24437_s6 + $0x294] ss:$8 sps:$4 sm:$0xff]  }
 0xb55   :  { %v12889_v0 = vadd.f32 %v16924_v53, %v23971_v30  ;;  %v13231_v30 = vpop.permute.xlu0 %13230  ;;  %v20394_v53 = vld [vmem:[#allocation4 + $0x88] sm:$0xff] }
 0xb56   :  { %16967 = vmatpush3.bf16.msra.mxu1 %v13207_v63 }
 0xb57   :  { %v12902_v16 = vpack.c.bf16 %v12889_v0, %v12888_v34  ;;  %16968 = vmatprep.subr.bf16.mxu1 %v13225_v58  ;;  %v16925_v46 = vpop.f32.mrb[236].mxu1  ;;  %v13217_v22 = vpop.permute.xlu1 %13216  ;;  %v20272_v34 = vld [vmem:[%s24437_s6 + $0x290] ss:$8 sps:$4 sm:$0xff]  }
 0xb58   :  { %v16926_v6 = vpop.f32.mrb[237].mxu1  ;;  %v20395_v0 = vld [vmem:[#allocation4 + $0xd0] sm:$0xff] }
 0xb59   :  { %v16927_v1 = vadd.f32 %v16926_v6, %v16925_v46  ;;  %v16928_v9 = vpop.f32.mrb[238].mxu1  ;;  %18921 = vmatprep.mubr.msk.bf16.mxu1 %vm12920_vm3, %v12902_v16  ;;  %v13233_v21 = vpop.permute.xlu0 %13232  ;;  %v20396_v16 = vld [vmem:[#allocation4 + $0x90] sm:$0xff]  ;;  %v20397_v46 = vld [vmem:[#allocation4 + $0xd8] sm:$0xff] }
 0xb5a   :  { %16969 = vmatpush3.bf16.msra.mxu1 %v13209_v37  ;;  %v16929_v49 = vpop.f32.mrb[239].mxu1  ;;  %v20398_v6 = vld [vmem:[#allocation4 + $0x98] sm:$0xff] }
 0xb5b   :  { %v12890_v14 = vadd.f32 %v16927_v1, %v23974_v55  ;;  %v16930_v36 = vadd.f32 %v16929_v49, %v16928_v9  ;;  %16970 = vmatprep.subr.bf16.mxu1 %v13227_v32  ;;  %v13219_v2 = vpop.permute.xlu1 %13218  ;;  %v20280_v1 = vld [vmem:[%s24437_s6 + $0x2b4] ss:$8 sps:$4 sm:$0xff]   ;;  %v20399_v9 = vld [vmem:[#allocation4 + $0xe0] sm:$0xff] }
 0xb5c   :  { %v20400_v49 = vld [vmem:[#allocation4 + $0xa0] sm:$0xff] }
 0xb5d   :  { %v12891_v33 = vadd.f32 %v16930_v36, %v23977_v45  ;;  %v13235_v12 = vpop.permute.xlu0 %13234  ;;  %v20402_v36 = vld [vmem:[#allocation4 + $0xa8] sm:$0xff] }
 0xb5e   :  { %16971 = vmatpush3.bf16.msra.mxu1 %v13211_v57  ;;  %v20277_v57 = vld [vmem:[%s24437_s6 + $0x2a4] ss:$8 sps:$4 sm:$0xff]  }
 0xb5f   :  { %v12903_v15 = vpack.c.bf16 %v12891_v33, %v12890_v14  ;;  %16972 = vmatprep.subr.bf16.mxu1 %v13229_v8  ;;  %v16931_v60 = vpop.f32.mrb[240].mxu1  ;;  %v20275_v8 = vld [vmem:[%s24437_s6 + $0x2a0] ss:$8 sps:$4 sm:$0xff]   ;;  %v20278_v14 = vld [vmem:[%s24437_s6 + $0x2b0] ss:$8 sps:$4 sm:$0xff]  }
 0xb60   :  { %v16932_v44 = vpop.f32.mrb[241].mxu1  ;;  %v20283_v33 = vld [vmem:[%s24437_s6 + $0x2c4] ss:$8 sps:$4 sm:$0xff]  }
 0xb61   :  { %v16933_v59 = vadd.f32 %v16932_v44, %v16931_v60  ;;  %v16934_v19 = vpop.f32.mrb[242].mxu1  ;;  %18922 = vmatmul.mubr.msk.bf16.gmra.mrb[4].mxu1 %vm12920_vm3, %v12903_v15  ;;  %v20404_v15 = vld [vmem:[#allocation4 + $0xb0] sm:$0xff]  ;;  %v20405_v60 = vld [vmem:[#allocation4 + $0xf8] sm:$0xff]  ;;  %v20281_v44 = vld [vmem:[%s24437_s6 + $0x2c0] ss:$8 sps:$4 sm:$0xff]  }
 0xb62   :  { %16973 = vmatpush3.bf16.msra.mxu1 %v13213_v47  ;;  %v16935_v11 = vpop.f32.mrb[243].mxu1  ;;  %v20401_v47 = vld [vmem:[#allocation4 + $0xe8] sm:$0xff] }
 0xb63   :  { %v12892_v56 = vadd.f32 %v16933_v59, %v23980_v40  ;;  %v16936_v55 = vadd.f32 %v16935_v11, %v16934_v19  ;;  %16974 = vmatprep.subr.bf16.mxu1 %v13231_v30  ;;  %v20403_v30 = vld [vmem:[#allocation4 + $0xf0] sm:$0xff]  ;;  %v20406_v59 = vld [vmem:[#allocation4 + $0xb8] sm:$0xff] }
 0xb64   :  { %v20286_v19 = vld [vmem:[%s24437_s6 + $0x2d4] ss:$8 sps:$4 sm:$0xff]   ;;  %v20284_v11 = vld [vmem:[%s24437_s6 + $0x2d0] ss:$8 sps:$4 sm:$0xff]  }
 0xb65   :  { %v12893_v45 = vadd.f32 %v16936_v55, %v23983_v10  ;;  %v20287_v55 = vld [vmem:[%s24437_s6 + $0x2e0] ss:$8 sps:$4 sm:$0xff]  }
 0xb66   :  { %16975 = vmatpush3.bf16.msra.mxu1 %v13215_v61  ;;  %v13640_v61 = vpop.permute.xlu0 %13639 }
 0xb67   :  { %v12904_v52 = vpack.c.bf16 %v12893_v45, %v12892_v56  ;;  %16976 = vmatprep.subr.bf16.mxu1 %v13233_v21  ;;  %v16937_v51 = vpop.f32.mrb[244].mxu1  ;;  %v20289_v56 = vld [vmem:[%s24437_s6 + $0x2e4] ss:$8 sps:$4 sm:$0xff]   ;;  %v20292_v21 = vld [vmem:[%s24437_s6 + $0x2f4] ss:$8 sps:$4 sm:$0xff]   ;;  %v13624_v45 = vpop.permute.xlu1 %13623 }
 0xb68   :  { %v16938_v18 = vpop.f32.mrb[245].mxu1 }
 0xb69   :  { %v16939_v5 = vadd.f32 %v16938_v18, %v16937_v51  ;;  %v16940_v3 = vpop.f32.mrb[246].mxu1  ;;  %18925 = vmatprep.mubr.msk.bf16.mxu1 %vm12920_vm3, %v12904_v52  ;;  %v20290_v52 = vld [vmem:[%s24437_s6 + $0x2f0] ss:$8 sps:$4 sm:$0xff]   ;;  %v20295_v51 = vld [vmem:[%s24437_s6 + $0x204] ss:$8 sps:$4 sm:$0xff]  }
 0xb6a   :  { %16977 = vmatpush3.bf16.msra.mxu1 %v13217_v22  ;;  %v16941_v42 = vpop.f32.mrb[247].mxu1  ;;  %v13642_v22 = vpop.permute.xlu0 %13641 }
 0xb6b   :  { %v12894_v40 = vadd.f32 %v16939_v5, %v23986_v13  ;;  %v16942_v27 = vadd.f32 %v16941_v42, %v16940_v3  ;;  %16978 = vmatprep.subr.bf16.mxu1 %v13235_v12  ;;  %v13626_v18 = vpop.permute.xlu1 %13625  ;;  %v20293_v3 = vld [vmem:[%s24437_s6 + $0x200] ss:$8 sps:$4 sm:$0xff]   ;;  %v20298_v12 = vld [vmem:[%s24437_s6 + $0x214] ss:$8 sps:$4 sm:$0xff]  }
 0xb6d   :  { %v12895_v10 = vadd.f32 %v16942_v27, %v23989_v17 }
 0xb6e   :  { %16979 = vmatpush3.bf16.msra.mxu1 %v13219_v2  ;;  %v13644_v5 = vpop.permute.xlu0 %13643  ;;  %v20296_v2 = vld [vmem:[%s24437_s6 + $0x210] ss:$8 sps:$4 sm:$0xff]  }
 0xb6f   :  { %v12905_v54 = vpack.c.bf16 %v12895_v10, %v12894_v40  ;;  %17028 = vmatprep.subr.bf16.mxu1 %v20391_v24  ;;  %v16943_v48 = vpop.f32.mrb[248].mxu1  ;;  %v13628_v42 = vpop.permute.xlu1 %13627 }
 0xb70   :  { %v16944_v63 = vpop.f32.mrb[249].mxu1 }
 0xb71   :  { %v16945_v41 = vadd.f32 %v16944_v63, %v16943_v48  ;;  %v16946_v39 = vpop.f32.mrb[250].mxu1  ;;  %18926 = vmatmul.mubr.msk.bf16.gmra.mrb[8].mxu1 %vm12920_vm3, %v12905_v54  ;;  %v20301_v54 = vld [vmem:[%s24437_s6 + $0x224] ss:$8 sps:$4 sm:$0xff]   ;;  %v20299_v63 = vld [vmem:[%s24437_s6 + $0x220] ss:$8 sps:$4 sm:$0xff]  }
 0xb72   :  { %v16947_v25 = vpop.f32.mrb[251].mxu1  ;;  %v13646_v40 = vpop.permute.xlu0 %13645 }
 0xb73   :  { %v12896_v62 = vadd.f32 %v16945_v41, %v23992_v38  ;;  %v16948_v31 = vadd.f32 %v16947_v25, %v16946_v39  ;;  %v20271_v38 = vld [vmem:[%s24437_s6 + $0x284] ss:$8 sps:$4 sm:$0xff]   ;;  %v13630_v27 = vpop.permute.xlu1 %13629  ;;  %v20304_v41 = vld [vmem:[%s24437_s6 + $0x234] ss:$8 sps:$4 sm:$0xff]  }
 0xb75   :  { %v12897_v13 = vadd.f32 %v16948_v31, %v23995_v29  ;;  %v20269_v29 = vld [vmem:[%s24437_s6 + $0x280] ss:$8 sps:$4 sm:$0xff]   ;;  %v20307_v31 = vld [vmem:[%s24437_s6 + $0x244] ss:$8 sps:$4 sm:$0xff]  }
 0xb76   :  { %v13648_v10 = vpop.permute.xlu0 %13647 }
 0xb77   :  { %v12906_v58 = vpack.c.bf16 %v12897_v13, %v12896_v62  ;;  %v16949_v20 = vpop.f32.mrb[252].mxu1  ;;  %v13632_v24 = vpop.permute.xlu1 %13631  ;;  %v20302_v62 = vld [vmem:[%s24437_s6 + $0x230] ss:$8 sps:$4 sm:$0xff]  }
 0xb78   :  { %v16950_v37 = vpop.f32.mrb[253].mxu1 }
 0xb79   :  { %v16951_v17 = vadd.f32 %v16950_v37, %v16949_v20  ;;  %v16952_v26 = vpop.f32.mrb[254].mxu1  ;;  %18929 = vmatprep.mubr.msk.bf16.mxu1 %vm12920_vm3, %v12906_v58  ;;  %v20305_v37 = vld [vmem:[%s24437_s6 + $0x240] ss:$8 sps:$4 sm:$0xff]  }
 0xb7a   :  { %v16953_v35 = vpop.f32.mrb[255].mxu1  ;;  %v13650_v48 = vpop.permute.xlu0 %13649 }
 0xb7b   :  { %v12898_v23 = vadd.f32 %v16951_v17, %v23998_v28  ;;  %v16954_v43 = vadd.f32 %v16953_v35, %v16952_v26  ;;  %v20392_v28 = vld [vmem:[#allocation4 + $0x80] sm:$0xff]  ;;  %v13634_v39 = vpop.permute.xlu1 %13633  ;;  %v20310_v26 = vld [vmem:[%s24437_s6 + $0x254] ss:$8 sps:$4 sm:$0xff]   ;;  %v20308_v35 = vld [vmem:[%s24437_s6 + $0x250] ss:$8 sps:$4 sm:$0xff]  }
 0xb7d   :  { %v12899_v4 = vadd.f32 %v16954_v43, %v24001_v7  ;;  %v20393_v7 = vld [vmem:[#allocation4 + $0xc8] sm:$0xff] }
 0xb7e   :  { %v13652_v25 = vpop.permute.xlu0 %13651  ;;  %v20311_v43 = vld [vmem:[%s24437_s6 + $0x260] ss:$8 sps:$4 sm:$0xff]  }
 0xb7f   :  { %v12907_v32 = vpack.c.bf16 %v12899_v4, %v12898_v23  ;;  %v13636_v13 = vpop.permute.xlu1 %13635  ;;  %v20313_v23 = vld [vmem:[%s24437_s6 + $0x264] ss:$8 sps:$4 sm:$0xff]   ;;  %v20316_v4 = vld [vmem:[%s24437_s6 + $0x274] ss:$8 sps:$4 sm:$0xff]  }
 0xb81   :  { %18930 = vmatmul.mubr.msk.bf16.gmra.mrb[12].mxu1 %vm12920_vm3, %v12907_v32  ;;  %v20314_v32 = vld [vmem:[%s24437_s6 + $0x270] ss:$8 sps:$4 sm:$0xff]  }
 0xb82   :  { %13284 = vmatprep.mubr.bf16.mxu1 %v20271_v38  ;;  %v13654_v58 = vpop.permute.xlu0 %13653 }
 0xb83   :  { %v13638_v20 = vpop.permute.xlu1 %13637 }
 0xb86   :  { %v13898_v17 = vpop.permute.xlu0 %13897 }
 0xb87   :  { %v13882_v38 = vpop.permute.xlu1 %13881 }
 0xb89   :  { %13285 = vmatmul.mubr.bf16.vlgmr.msra.gmra.mrb[16].mxu1 %v20269_v29 }
 0xb8a   :  { %17029 = vmatpush3.bf16.msra.mxu1 %v20392_v28  ;;  %13292 = vmatprep.mubr.bf16.mxu1 %v20274_v50  ;;  %v13900_v29 = vpop.permute.xlu0 %13899  ;;  %v20319_v50 = vld [vmem:[%s24437_s6 + $0x304] ss:$8 sps:$4 sm:$0xff]  }
 0xb8b   :  { %17030 = vmatprep.subr.bf16.mxu1 %v20393_v7  ;;  %v13884_v28 = vpop.permute.xlu1 %13883 }
 0xb8e   :  { %17031 = vmatpush3.bf16.msra.mxu1 %v20394_v53  ;;  %v13902_v7 = vpop.permute.xlu0 %13901  ;;  %v20322_v53 = vld [vmem:[%s24437_s6 + $0x314] ss:$8 sps:$4 sm:$0xff]  }
 0xb8f   :  { %17032 = vmatprep.subr.bf16.mxu1 %v20395_v0 }
 0xb91   :  { %13293 = vmatmul.mubr.bf16.gmra.mrb[20].mxu1 %v20272_v34  ;;  %v20317_v34 = vld [vmem:[%s24437_s6 + $0x300] ss:$8 sps:$4 sm:$0xff]  }
 0xb92   :  { %17033 = vmatpush3.bf16.msra.mxu1 %v20396_v16  ;;  %13300 = vmatprep.mubr.bf16.mxu1 %v20277_v57  ;;  %v13886_v57 = vpop.permute.xlu1 %13885  ;;  %v13904_v0 = vpop.permute.xlu0 %13903 }
 0xb93   :  { %17034 = vmatprep.subr.bf16.mxu1 %v20397_v46  ;;  %v20320_v46 = vld [vmem:[%s24437_s6 + $0x310] ss:$8 sps:$4 sm:$0xff]  }
 0xb96   :  { %17035 = vmatpush3.bf16.msra.mxu1 %v20398_v6  ;;  %v13888_v16 = vpop.permute.xlu1 %13887  ;;  %v13906_v6 = vpop.permute.xlu0 %13905 }
 0xb97   :  { %17036 = vmatprep.subr.bf16.mxu1 %v20399_v9  ;;  %v20323_v9 = vld [vmem:[%s24437_s6 + $0x320] ss:$8 sps:$4 sm:$0xff]  }
 0xb99   :  { %13301 = vmatmul.mubr.bf16.gmra.mrb[24].mxu1 %v20275_v8  ;;  %v20325_v8 = vld [vmem:[%s24437_s6 + $0x324] ss:$8 sps:$4 sm:$0xff]  }
 0xb9a   :  { %17037 = vmatpush3.bf16.msra.mxu1 %v20400_v49  ;;  %13308 = vmatprep.mubr.bf16.mxu1 %v20280_v1  ;;  %v13890_v1 = vpop.permute.xlu1 %13889  ;;  %v13908_v49 = vpop.permute.xlu0 %13907 }
 0xb9b   :  { %17038 = vmatprep.subr.bf16.mxu1 %v20401_v47  ;;  %v20328_v47 = vld [vmem:[%s24437_s6 + $0x334] ss:$8 sps:$4 sm:$0xff]  }
 0xb9e   :  { %17039 = vmatpush3.bf16.msra.mxu1 %v20402_v36  ;;  %v13910_v36 = vpop.permute.xlu0 %13909 }
 0xb9f   :  { %17040 = vmatprep.subr.bf16.mxu1 %v20403_v30  ;;  %v20331_v30 = vld [vmem:[%s24437_s6 + $0x344] ss:$8 sps:$4 sm:$0xff]  }
 0xba1   :  { %13309 = vmatmul.mubr.bf16.gmra.mrb[28].mxu1 %v20278_v14  ;;  %v13892_v14 = vpop.permute.xlu1 %13891 }
 0xba2   :  { %17041 = vmatpush3.bf16.msra.mxu1 %v20404_v15  ;;  %13316 = vmatprep.mubr.bf16.mxu1 %v20283_v33  ;;  %v20326_v33 = vld [vmem:[%s24437_s6 + $0x330] ss:$8 sps:$4 sm:$0xff]  }
 0xba3   :  { %17042 = vmatprep.subr.bf16.mxu1 %v20405_v60  ;;  %v13912_v60 = vpop.permute.xlu0 %13911 }
 0xba5   :  { %v13894_v15 = vpop.permute.xlu1 %13893 }
 0xba6   :  { %17043 = vmatpush3.bf16.msra.mxu1 %v20406_v59 }
 0xba7   :  { %17092 = vmatprep.subr.bf16.mxu1 %v13640_v61 }
 0xba9   :  { %13317 = vmatmul.mubr.bf16.gmra.mrb[32].mxu1 %v20281_v44  ;;  %v24153_v44 = vld [vmem:[%s24439_s8] ss:$0 sm:$0xff]  ;;  %v13896_v59 = vpop.permute.xlu1 %13895 }
 0xbaa   :  { %13324 = vmatprep.mubr.bf16.mxu1 %v20286_v19 }
 0xbb1   :  { %13325 = vmatmul.mubr.bf16.gmra.mrb[36].mxu1 %v20284_v11 }
 0xbb2   :  { %13332 = vmatprep.mubr.bf16.mxu1 %v20289_v56  ;;  %v20329_v56 = vld [vmem:[%s24437_s6 + $0x340] ss:$8 sps:$4 sm:$0xff]  }
 0xbb9   :  { %13333 = vmatmul.mubr.bf16.gmra.mrb[40].mxu1 %v20287_v55 }
 0xbba   :  { %13340 = vmatprep.mubr.bf16.mxu1 %v20292_v21 }
 0xbc1   :  { %13341 = vmatmul.mubr.bf16.gmra.mrb[44].mxu1 %v20290_v52 }
 0xbc2   :  { %13461 = vmatprep.mubr.bf16.mxu1 %v20295_v51  ;;  %v20407_v51 = vld [vmem:[%s24438_s7] sm:$0xff]  }
 0xbc9   :  { %13462 = vmatmul.mubr.bf16.vlgmr.msra.gmra.mrb[48].mxu1 %v20293_v3  ;;  %v20337_v3 = vld [vmem:[%s24437_s6 + $0x364] ss:$8 sps:$4 sm:$0xff]  }
 0xbca   :  { %17093 = vmatpush3.bf16.msra.mxu1 %v13624_v45  ;;  %13469 = vmatprep.mubr.bf16.mxu1 %v20298_v12  ;;  %v20334_v45 = vld [vmem:[%s24437_s6 + $0x354] ss:$8 sps:$4 sm:$0xff]  }
 0xbcb   :  { %17094 = vmatprep.subr.bf16.mxu1 %v13642_v22 }
 0xbce   :  { %17095 = vmatpush3.bf16.msra.mxu1 %v13626_v18 }
 0xbcf   :  { %17096 = vmatprep.subr.bf16.mxu1 %v13644_v5  ;;  %v20332_v5 = vld [vmem:[%s24437_s6 + $0x350] ss:$8 sps:$4 sm:$0xff]  }
 0xbd1   :  { %13470 = vmatmul.mubr.bf16.gmra.mrb[52].mxu1 %v20296_v2 }
 0xbd2   :  { %17097 = vmatpush3.bf16.msra.mxu1 %v13628_v42  ;;  %13477 = vmatprep.mubr.bf16.mxu1 %v20301_v54  ;;  %v20340_v54 = vld [vmem:[%s24437_s6 + $0x374] ss:$8 sps:$4 sm:$0xff]  }
 0xbd3   :  { %17098 = vmatprep.subr.bf16.mxu1 %v13646_v40 }
 0xbd6   :  { %17099 = vmatpush3.bf16.msra.mxu1 %v13630_v27  ;;  %v20335_v27 = vld [vmem:[%s24437_s6 + $0x360] ss:$8 sps:$4 sm:$0xff]  }
 0xbd7   :  { %17100 = vmatprep.subr.bf16.mxu1 %v13648_v10 }
 0xbd9   :  { %13478 = vmatmul.mubr.bf16.gmra.mrb[56].mxu1 %v20299_v63 }
 0xbda   :  { %17101 = vmatpush3.bf16.msra.mxu1 %v13632_v24  ;;  %13485 = vmatprep.mubr.bf16.mxu1 %v20304_v41  ;;  %v20338_v41 = vld [vmem:[%s24437_s6 + $0x370] ss:$8 sps:$4 sm:$0xff]  }
 0xbdb   :  { %17102 = vmatprep.subr.bf16.mxu1 %v13650_v48 }
 0xbde   :  { %17103 = vmatpush3.bf16.msra.mxu1 %v13634_v39  ;;  %v20343_v39 = vld [vmem:[%s24437_s6 + $0x384] ss:$8 sps:$4 sm:$0xff]  }
 0xbdf   :  { %17104 = vmatprep.subr.bf16.mxu1 %v13652_v25 }
 0xbe1   :  { %13486 = vmatmul.mubr.bf16.gmra.mrb[60].mxu1 %v20302_v62 }
 0xbe2   :  { %17105 = vmatpush3.bf16.msra.mxu1 %v13636_v13  ;;  %13493 = vmatprep.mubr.bf16.mxu1 %v20307_v31  ;;  %v20341_v13 = vld [vmem:[%s24437_s6 + $0x380] ss:$8 sps:$4 sm:$0xff]  }
 0xbe3   :  { %17106 = vmatprep.subr.bf16.mxu1 %v13654_v58 }
 0xbe6   :  { %17107 = vmatpush3.bf16.msra.mxu1 %v13638_v20 }
 0xbe7   :  { %17156 = vmatprep.subr.bf16.mxu1 %v13898_v17 }
 0xbe9   :  { %13494 = vmatmul.mubr.bf16.gmra.mrb[64].mxu1 %v20305_v37  ;;  %v20346_v37 = vld [vmem:[%s24437_s6 + $0x394] ss:$8 sps:$4 sm:$0xff]  }
 0xbea   :  { %13501 = vmatprep.mubr.bf16.mxu1 %v20310_v26 }
 0xbf1   :  { %13502 = vmatmul.mubr.bf16.gmra.mrb[68].mxu1 %v20308_v35 }
 0xbf2   :  { %13509 = vmatprep.mubr.bf16.mxu1 %v20313_v23  ;;  %v20344_v23 = vld [vmem:[%s24437_s6 + $0x390] ss:$8 sps:$4 sm:$0xff]  }
 0xbf9   :  { %13510 = vmatmul.mubr.bf16.gmra.mrb[72].mxu1 %v20311_v43  ;;  %v20349_v43 = vld [vmem:[%s24437_s6 + $0x3a4] ss:$8 sps:$4 sm:$0xff]  }
 0xbfa   :  { %13517 = vmatprep.mubr.bf16.mxu1 %v20316_v4 }
 0xc01   :  { %13518 = vmatmul.mubr.bf16.gmra.mrb[76].mxu1 %v20314_v32 }
 0xc02   :  { %13703 = vmatprep.mubr.bf16.mxu1 %v20319_v50 }
 0xc09   :  { %13704 = vmatmul.mubr.bf16.vlgmr.msra.gmra.mrb[80].mxu1 %v20317_v34 }
 0xc0a   :  { %17157 = vmatpush3.bf16.msra.mxu1 %v13882_v38  ;;  %13711 = vmatprep.mubr.bf16.mxu1 %v20322_v53 }
 0xc0b   :  { %17158 = vmatprep.subr.bf16.mxu1 %v13900_v29  ;;  %v20347_v29 = vld [vmem:[%s24437_s6 + $0x3a0] ss:$8 sps:$4 sm:$0xff]  }
 0xc0e   :  { %17159 = vmatpush3.bf16.msra.mxu1 %v13884_v28 }
 0xc0f   :  { %17160 = vmatprep.subr.bf16.mxu1 %v13902_v7  ;;  %v20352_v7 = vld [vmem:[%s24437_s6 + $0x3b4] ss:$8 sps:$4 sm:$0xff]  }
 0xc11   :  { %13712 = vmatmul.mubr.bf16.gmra.mrb[84].mxu1 %v20320_v46 }
 0xc12   :  { %17161 = vmatpush3.bf16.msra.mxu1 %v13886_v57  ;;  %13719 = vmatprep.mubr.bf16.mxu1 %v20325_v8  ;;  %v20355_v8 = vld [vmem:[%s24437_s6 + $0x3c4] ss:$8 sps:$4 sm:$0xff]  }
 0xc13   :  { %17162 = vmatprep.subr.bf16.mxu1 %v13904_v0 }
 0xc16   :  { %17163 = vmatpush3.bf16.msra.mxu1 %v13888_v16  ;;  %v20350_v16 = vld [vmem:[%s24437_s6 + $0x3b0] ss:$8 sps:$4 sm:$0xff]  }
 0xc17   :  { %17164 = vmatprep.subr.bf16.mxu1 %v13906_v6 }
 0xc19   :  { %13720 = vmatmul.mubr.bf16.gmra.mrb[88].mxu1 %v20323_v9 }
 0xc1a   :  { %17165 = vmatpush3.bf16.msra.mxu1 %v13890_v1  ;;  %13727 = vmatprep.mubr.bf16.mxu1 %v20328_v47 }
 0xc1b   :  { %17166 = vmatprep.subr.bf16.mxu1 %v13908_v49 }
 0xc1e   :  { %17167 = vmatpush3.bf16.msra.mxu1 %v13892_v14  ;;  %v20353_v14 = vld [vmem:[%s24437_s6 + $0x3c0] ss:$8 sps:$4 sm:$0xff]  }
 0xc1f   :  { %17168 = vmatprep.subr.bf16.mxu1 %v13910_v36 }
 0xc21   :  { %13728 = vmatmul.mubr.bf16.gmra.mrb[92].mxu1 %v20326_v33  ;;  %v20358_v33 = vld [vmem:[%s24437_s6 + $0x3d4] ss:$8 sps:$4 sm:$0xff]  }
 0xc22   :  { %17169 = vmatpush3.bf16.msra.mxu1 %v13894_v15  ;;  %13735 = vmatprep.mubr.bf16.mxu1 %v20331_v30 }
 0xc23   :  { %17170 = vmatprep.subr.bf16.mxu1 %v13912_v60 }
 0xc24   :  { %v18919_v61 = vpop.f32.mrb[0].mxu1 }
 0xc25   :  { %v12988_v19 = vadd.f32 %v18919_v61, %v24153_v44  ;;  %v12979_v11 = vpop.f32.mrb[1].mxu1 }
 0xc26   :  { %v12980_v55 = vadd.f32 %v24153_v44, %v12979_v11  ;;  %17171 = vmatpush3.bf16.msra.mxu1 %v13896_v59  ;;  %v18920_v21 = vpop.f32.mrb[2].mxu1 }
 0xc27   :  { %13044 = vst.msk [vmem:[#allocation5 + $0x10] sm:$0xff] %vm90_vm0, %v12988_v19  ;;  %v12991_v22 = vadd.f32 %v18920_v21, %v24153_v44  ;;  %v12982_v52 = vpop.f32.mrb[3].mxu1  ;;  %18933 = vmatprep.subr.bf16.mxu1 %v20407_v51  ;;  %v20356_v19 = vld [vmem:[%s24437_s6 + $0x3d0] ss:$8 sps:$4 sm:$0xff]  }
 0xc28   :  { %13042 = vst.msk [vmem:[#allocation5] sm:$0xff] %vm90_vm0, %v12980_v55  ;;  %v12983_v18 = vadd.f32 %v24153_v44, %v12982_v52 }
 0xc29   :  { %13045 = vst.msk [vmem:[#allocation5 + $0x18] sm:$0xff] %vm90_vm0, %v12991_v22  ;;  %13736 = vmatmul.mubr.bf16.gmra.mrb[96].mxu1 %v20329_v56  ;;  %v20361_v56 = vld [vmem:[%s24437_s6 + $0x3e4] ss:$8 sps:$4 sm:$0xff]  }
 0xc2a   :  { %13043 = vst.msk [vmem:[#allocation5 + $0x8] sm:$0xff] %vm90_vm0, %v12983_v18  ;;  %13743 = vmatprep.mubr.bf16.mxu1 %v20334_v45 }
 0xc31   :  { %13744 = vmatmul.mubr.bf16.gmra.mrb[100].mxu1 %v20332_v5  ;;  %v20364_v5 = vld [vmem:[%s24437_s6 + $0x3f4] ss:$8 sps:$4 sm:$0xff]  }
 0xc32   :  { %13751 = vmatprep.mubr.bf16.mxu1 %v20337_v3 }
 0xc34   :  { %v18923_v12 = vpop.f32.mrb[4].mxu1 }
 0xc35   :  { %v13004_v42 = vadd.f32 %v18923_v12, %v24153_v44  ;;  %v12995_v40 = vpop.f32.mrb[5].mxu1 }
 0xc36   :  { %v12996_v2 = vadd.f32 %v24153_v44, %v12995_v40  ;;  %v18924_v10 = vpop.f32.mrb[6].mxu1 }
 0xc37   :  { %13048 = vst.msk [vmem:[#allocation5 + $0x30] sm:$0xff] %vm90_vm0, %v13004_v42  ;;  %v13007_v24 = vadd.f32 %v18924_v10, %v24153_v44  ;;  %v12998_v48 = vpop.f32.mrb[7].mxu1 }
 0xc38   :  { %13046 = vst.msk [vmem:[#allocation5 + $0x20] sm:$0xff] %vm90_vm0, %v12996_v2  ;;  %v12999_v63 = vadd.f32 %v24153_v44, %v12998_v48  ;;  %v20362_v2 = vld [vmem:[%s24437_s6 + $0x3f0] ss:$8 sps:$4 sm:$0xff]  }
 0xc39   :  { %13049 = vst.msk [vmem:[#allocation5 + $0x38] sm:$0xff] %vm90_vm0, %v13007_v24  ;;  %13752 = vmatmul.mubr.bf16.gmra.mrb[104].mxu1 %v20335_v27 }
 0xc3a   :  { %13047 = vst.msk [vmem:[#allocation5 + $0x28] sm:$0xff] %vm90_vm0, %v12999_v63  ;;  %13759 = vmatprep.mubr.bf16.mxu1 %v20340_v54 }
 0xc41   :  { %13760 = vmatmul.mubr.bf16.gmra.mrb[108].mxu1 %v20338_v41 }
 0xc42   :  { %13961 = vmatprep.mubr.bf16.mxu1 %v20343_v39 }
 0xc44   :  { %v18927_v25 = vpop.f32.mrb[8].mxu1 }
 0xc45   :  { %v13020_v62 = vadd.f32 %v18927_v25, %v24153_v44  ;;  %v13011_v31 = vpop.f32.mrb[9].mxu1 }
 0xc46   :  { %v13012_v58 = vadd.f32 %v24153_v44, %v13011_v31  ;;  %v18928_v20 = vpop.f32.mrb[10].mxu1 }
 0xc47   :  { %13052 = vst.msk [vmem:[#allocation5 + $0x90] sm:$0xff] %vm90_vm0, %v13020_v62  ;;  %v13023_v17 = vadd.f32 %v18928_v20, %v24153_v44  ;;  %v13014_v26 = vpop.f32.mrb[11].mxu1 }
 0xc48   :  { %13050 = vst.msk [vmem:[#allocation5 + $0x80] sm:$0xff] %vm90_vm0, %v13012_v58  ;;  %v13015_v35 = vadd.f32 %v24153_v44, %v13014_v26 }
 0xc49   :  { %13053 = vst.msk [vmem:[#allocation5 + $0x98] sm:$0xff] %vm90_vm0, %v13023_v17  ;;  %13962 = vmatmul.mubr.bf16.vlgmr.msra.gmra.mrb[112].mxu1 %v20341_v13 }
 0xc4a   :  { %13051 = vst.msk [vmem:[#allocation5 + $0x88] sm:$0xff] %vm90_vm0, %v13015_v35  ;;  %13969 = vmatprep.mubr.bf16.mxu1 %v20346_v37  ;;  %18934 = vmatpush3.bf16.msra.mxu1 %v20407_v51  ;;  %v20359_v51 = vld [vmem:[%s24437_s6 + $0x3e0] ss:$8 sps:$4 sm:$0xff]   ;;  %s20438_s6 = smov [#allocation5]  }
 0xc4b   :  { %s14192_s21 = sshll.u32 %s20438_s6, 4  ;;  %s14193_s21 = int_to_ptr.vmem [resolvable:$true] %s14192_s21 }
 0xc4c   :  { %s20408_s22 = scalar_lea.vmem %s14193_s21, 4096  ;;  %p20413_p1 = scmp.lt.s32.totalorder %s14193_s21, %s14193_s21 }
 0xc4d   :  { %p20409_p0 = scmp.ne.s32.totalorder %s14193_s21, %s20408_s22  ;;  %p20414_p2 = scmp.lt.s32.totalorder %s20408_s22, %s20408_s22 }
 0xc4f   :  { %p20415_p3 = por %p20414_p2, %p20413_p1 }
 0xc51   :  { %13970 = vmatmul.mubr.bf16.gmra.mrb[116].mxu1 %v20344_v23  ;;  %p20416_p4 = pnand %p20415_p3, %p20409_p0 }
 0xc52   :  { %13977 = vmatprep.mubr.bf16.mxu1 %v20349_v43 }
 0xc54   :  { %v18931_v4 = vpop.f32.mrb[12].mxu1 }
 0xc55   :  { %v13036_v38 = vadd.f32 %v18931_v4, %v24153_v44  ;;  %v13027_v32 = vpop.f32.mrb[13].mxu1 }
 0xc56   :  { %v13028_v50 = vadd.f32 %v24153_v44, %v13027_v32  ;;  %v18932_v28 = vpop.f32.mrb[14].mxu1 }
 0xc57   :  { %13056 = vst.msk [vmem:[#allocation5 + $0xb0] sm:$0xff] %vm90_vm0, %v13036_v38  ;;  %v13039_v34 = vadd.f32 %v18932_v28, %v24153_v44  ;;  %v13030_v53 = vpop.f32.mrb[15].mxu1 }
 0xc58   :  { %13054 = vst.msk [vmem:[#allocation5 + $0xa0] sm:$0xff] %vm90_vm0, %v13028_v50  ;;  %v13031_v57 = vadd.f32 %v24153_v44, %v13030_v53 }
 0xc59   :  { %13057 = vst.msk [vmem:[#allocation5 + $0xb8] sm:$0xff] %vm90_vm0, %v13039_v34  ;;  %13978 = vmatmul.mubr.bf16.gmra.mrb[120].mxu1 %v20347_v29 }
 0xc5a   :  { %13055 = vst.msk [vmem:[#allocation5 + $0xa8] sm:$0xff] %vm90_vm0, %v13031_v57  ;;  %13985 = vmatprep.mubr.bf16.mxu1 %v20352_v7 }
 0xc5c   :  { %v16980_v0 = vpop.f32.mrb[16].mxu1 }
 0xc5d   :  { %v16981_v46 = vpop.f32.mrb[17].mxu1 }
 0xc5e   :  { %v24238_v6 = vadd.f32 %v16981_v46, %v16980_v0  ;;  %v16983_v1 = vpop.f32.mrb[18].mxu1 }
 0xc5f   :  { %v16984_v9 = vpop.f32.mrb[19].mxu1 }
 0xc60   :  { %v24240_v49 = vadd.f32 %v16984_v9, %v16983_v1 }
 0xc61   :  { %13986 = vmatmul.mubr.bf16.gmra.mrb[124].mxu1 %v20350_v16 }
 0xc62   :  { %13993 = vmatprep.mubr.bf16.mxu1 %v20355_v8 }
 0xc64   :  { %v16986_v47 = vpop.f32.mrb[20].mxu1 }
 0xc65   :  { %v16987_v36 = vpop.f32.mrb[21].mxu1 }
 0xc66   :  { %v24248_v30 = vadd.f32 %v16987_v36, %v16986_v47  ;;  %v16989_v15 = vpop.f32.mrb[22].mxu1 }
 0xc67   :  { %v16990_v60 = vpop.f32.mrb[23].mxu1 }
 0xc68   :  { %v24250_v61 = vadd.f32 %v16990_v60, %v16989_v15 }
 0xc69   :  { %13994 = vmatmul.mubr.bf16.gmra.mrb[128].mxu1 %v20353_v14 }
 0xc6a   :  { %14001 = vmatprep.mubr.bf16.mxu1 %v20358_v33 }
 0xc6c   :  { %v16992_v59 = vpop.f32.mrb[24].mxu1 }
 0xc6d   :  { %v16993_v11 = vpop.f32.mrb[25].mxu1 }
 0xc6e   :  { %v24258_v55 = vadd.f32 %v16993_v11, %v16992_v59  ;;  %v16995_v21 = vpop.f32.mrb[26].mxu1 }
 0xc6f   :  { %v16996_v45 = vpop.f32.mrb[27].mxu1 }
 0xc70   :  { %v16997_v22 = vadd.f32 %v16996_v45, %v16995_v21 }
 0xc71   :  { %14002 = vmatmul.mubr.bf16.gmra.mrb[132].mxu1 %v20356_v19 }
 0xc72   :  { %14009 = vmatprep.mubr.bf16.mxu1 %v20361_v56 }
 0xc74   :  { %v16998_v52 = vpop.f32.mrb[28].mxu1 }
 0xc75   :  { %v16999_v18 = vpop.f32.mrb[29].mxu1 }
 0xc76   :  { %v17000_v3 = vadd.f32 %v16999_v18, %v16998_v52  ;;  %v17001_v12 = vpop.f32.mrb[30].mxu1 }
 0xc77   :  { %v17002_v42 = vpop.f32.mrb[31].mxu1 }
 0xc78   :  { %v17003_v40 = vadd.f32 %v17002_v42, %v17001_v12 }
 0xc79   :  { %14010 = vmatmul.mubr.bf16.gmra.mrb[136].mxu1 %v20359_v51 }
 0xc7a   :  { %14017 = vmatprep.mubr.bf16.mxu1 %v20364_v5 }
 0xc7c   :  { %v17004_v27 = vpop.f32.mrb[32].mxu1 }
 0xc7d   :  { %v17005_v10 = vpop.f32.mrb[33].mxu1 }
 0xc7e   :  { %v17006_v54 = vadd.f32 %v17005_v10, %v17004_v27  ;;  %v17007_v24 = vpop.f32.mrb[34].mxu1 }
 0xc7f   :  { %v17008_v48 = vpop.f32.mrb[35].mxu1 }
 0xc80   :  { %v17009_v63 = vadd.f32 %v17008_v48, %v17007_v24 }
 0xc81   :  { %14018 = vmatmul.mubr.bf16.gmra.mrb[140].mxu1 %v20362_v2 }
 0xc84   :  { %v17010_v41 = vpop.f32.mrb[36].mxu1 }
 0xc85   :  { %v17011_v39 = vpop.f32.mrb[37].mxu1 }
 0xc86   :  { %v17012_v25 = vadd.f32 %v17011_v39, %v17010_v41  ;;  %v17013_v62 = vpop.f32.mrb[38].mxu1 }
 0xc87   :  { %v17014_v31 = vpop.f32.mrb[39].mxu1 }
 0xc88   :  { %v17015_v13 = vadd.f32 %v17014_v31, %v17013_v62 }
 0xc8c   :  { %v17016_v58 = vpop.f32.mrb[40].mxu1 }
 0xc8d   :  { %v17017_v20 = vpop.f32.mrb[41].mxu1 }
 0xc8e   :  { %v24269_v37 = vadd.f32 %v17017_v20, %v17016_v58  ;;  %v17019_v17 = vpop.f32.mrb[42].mxu1 }
 0xc8f   :  { %v17020_v26 = vpop.f32.mrb[43].mxu1 }
 0xc90   :  { %v17021_v35 = vadd.f32 %v17020_v26, %v17019_v17 }
 0xc94   :  { %v17022_v23 = vpop.f32.mrb[44].mxu1 }
 0xc95   :  { %v17023_v43 = vpop.f32.mrb[45].mxu1 }
 0xc96   :  { %v24271_v4 = vadd.f32 %v17023_v43, %v17022_v23  ;;  %v17025_v38 = vpop.f32.mrb[46].mxu1 }
 0xc97   :  { %v17026_v32 = vpop.f32.mrb[47].mxu1 }
 0xc98   :  { %v24273_v29 = vadd.f32 %v17026_v32, %v17025_v38 }
 0xc9c   :  { %v17044_v50 = vpop.f32.mrb[48].mxu1 }
 0xc9d   :  { %v17045_v28 = vpop.f32.mrb[49].mxu1 }
 0xc9e   :  { %v17046_v7 = vadd.f32 %v17045_v28, %v17044_v50  ;;  %v17047_v34 = vpop.f32.mrb[50].mxu1 }
 0xc9f   :  { %v17048_v53 = vpop.f32.mrb[51].mxu1 }
 0xca0   :  { %v24276_v57 = vadd.f32 %v17046_v7, %v24238_v6  ;;  %v17049_v0 = vadd.f32 %v17048_v53, %v17047_v34 }
 0xca2   :  { %v24279_v16 = vadd.f32 %v17049_v0, %v24240_v49 }
 0xca4   :  { %v17050_v46 = vpop.f32.mrb[52].mxu1 }
 0xca5   :  { %v17051_v8 = vpop.f32.mrb[53].mxu1 }
 0xca6   :  { %v17052_v1 = vadd.f32 %v17051_v8, %v17050_v46  ;;  %v17053_v9 = vpop.f32.mrb[54].mxu1 }
 0xca7   :  { %v17054_v47 = vpop.f32.mrb[55].mxu1 }
 0xca8   :  { %v24282_v14 = vadd.f32 %v17052_v1, %v24248_v30  ;;  %v17055_v36 = vadd.f32 %v17054_v47, %v17053_v9 }
 0xcaa   :  { %v24285_v33 = vadd.f32 %v17055_v36, %v24250_v61 }
 0xcac   :  { %v17056_v15 = vpop.f32.mrb[56].mxu1 }
 0xcad   :  { %v17057_v60 = vpop.f32.mrb[57].mxu1 }
 0xcae   :  { %v17058_v6 = vadd.f32 %v17057_v60, %v17056_v15  ;;  %v17059_v59 = vpop.f32.mrb[58].mxu1 }
 0xcaf   :  { %v17060_v19 = vpop.f32.mrb[59].mxu1 }
 0xcb0   :  { %v24288_v49 = vadd.f32 %v17058_v6, %v24258_v55  ;;  %v17061_v11 = vadd.f32 %v17060_v19, %v17059_v59 }
 0xcb2   :  { %v24290_v56 = vadd.f32 %v17061_v11, %v16997_v22 }
 0xcb4   :  { %v17062_v21 = vpop.f32.mrb[60].mxu1 }
 0xcb5   :  { %v17063_v45 = vpop.f32.mrb[61].mxu1 }
 0xcb6   :  { %v17064_v52 = vadd.f32 %v17063_v45, %v17062_v21  ;;  %v17065_v30 = vpop.f32.mrb[62].mxu1 }
 0xcb7   :  { %v17066_v51 = vpop.f32.mrb[63].mxu1 }
 0xcb8   :  { %v24292_v18 = vadd.f32 %v17064_v52, %v17000_v3  ;;  %v17067_v61 = vadd.f32 %v17066_v51, %v17065_v30 }
 0xcba   :  { %v24294_v5 = vadd.f32 %v17067_v61, %v17003_v40 }
 0xcbc   :  { %v17068_v12 = vpop.f32.mrb[64].mxu1 }
 0xcbd   :  { %v17069_v42 = vpop.f32.mrb[65].mxu1 }
 0xcbe   :  { %v17070_v27 = vadd.f32 %v17069_v42, %v17068_v12  ;;  %v17071_v2 = vpop.f32.mrb[66].mxu1 }
 0xcbf   :  { %v17072_v10 = vpop.f32.mrb[67].mxu1 }
 0xcc0   :  { %v24296_v55 = vadd.f32 %v17070_v27, %v17006_v54  ;;  %v17073_v24 = vadd.f32 %v17072_v10, %v17071_v2 }
 0xcc2   :  { %v24298_v22 = vadd.f32 %v17073_v24, %v17009_v63 }
 0xcc4   :  { %v17074_v48 = vpop.f32.mrb[68].mxu1 }
 0xcc5   :  { %v17075_v41 = vpop.f32.mrb[69].mxu1 }
 0xcc6   :  { %v17076_v39 = vadd.f32 %v17075_v41, %v17074_v48  ;;  %v17077_v62 = vpop.f32.mrb[70].mxu1 }
 0xcc7   :  { %v17078_v31 = vpop.f32.mrb[71].mxu1 }
 0xcc8   :  { %v24300_v3 = vadd.f32 %v17076_v39, %v17012_v25  ;;  %v17079_v58 = vadd.f32 %v17078_v31, %v17077_v62 }
 0xcca   :  { %v24302_v40 = vadd.f32 %v17079_v58, %v17015_v13 }
 0xccc   :  { %v17080_v20 = vpop.f32.mrb[72].mxu1 }
 0xccd   :  { %v17081_v17 = vpop.f32.mrb[73].mxu1 }
 0xcce   :  { %v17082_v26 = vadd.f32 %v17081_v17, %v17080_v20  ;;  %v17083_v23 = vpop.f32.mrb[74].mxu1 }
 0xccf   :  { %v17084_v43 = vpop.f32.mrb[75].mxu1 }
 0xcd0   :  { %v24305_v54 = vadd.f32 %v17082_v26, %v24269_v37  ;;  %v17085_v63 = vadd.f32 %v17084_v43, %v17083_v23 }
 0xcd2   :  { %v24307_v38 = vadd.f32 %v17085_v63, %v17021_v35 }
 0xcd4   :  { %v17086_v32 = vpop.f32.mrb[76].mxu1 }
 0xcd5   :  { %v17087_v50 = vpop.f32.mrb[77].mxu1 }
 0xcd6   :  { %v17088_v28 = vadd.f32 %v17087_v50, %v17086_v32  ;;  %v17089_v7 = vpop.f32.mrb[78].mxu1 }
 0xcd7   :  { %v17090_v25 = vpop.f32.mrb[79].mxu1 }
 0xcd8   :  { %v24310_v34 = vadd.f32 %v17088_v28, %v24271_v4  ;;  %v17091_v13 = vadd.f32 %v17090_v25, %v17089_v7 }
 0xcda   :  { %v24313_v53 = vadd.f32 %v17091_v13, %v24273_v29 }
 0xcdc   :  { %v17108_v0 = vpop.f32.mrb[80].mxu1 }
 0xcdd   :  { %v17109_v46 = vpop.f32.mrb[81].mxu1 }
 0xcde   :  { %v17110_v8 = vadd.f32 %v17109_v46, %v17108_v0  ;;  %v17111_v37 = vpop.f32.mrb[82].mxu1 }
 0xcdf   :  { %v17112_v1 = vpop.f32.mrb[83].mxu1 }
 0xce0   :  { %v24316_v35 = vadd.f32 %v17110_v8, %v24276_v57  ;;  %v17113_v9 = vadd.f32 %v17112_v1, %v17111_v37 }
 0xce2   :  { %v24319_v47 = vadd.f32 %v17113_v9, %v24279_v16 }
 0xce4   :  { %v17114_v36 = vpop.f32.mrb[84].mxu1 }
 0xce5   :  { %v17115_v15 = vpop.f32.mrb[85].mxu1 }
 0xce6   :  { %v17116_v4 = vadd.f32 %v17115_v15, %v17114_v36  ;;  %v17117_v60 = vpop.f32.mrb[86].mxu1 }
 0xce7   :  { %v17118_v6 = vpop.f32.mrb[87].mxu1 }
 0xce8   :  { %v24322_v29 = vadd.f32 %v17116_v4, %v24282_v14  ;;  %v17119_v59 = vadd.f32 %v17118_v6, %v17117_v60 }
 0xcea   :  { %v24325_v19 = vadd.f32 %v17119_v59, %v24285_v33 }
 0xcec   :  { %v17120_v11 = vpop.f32.mrb[88].mxu1 }
 0xced   :  { %v17121_v21 = vpop.f32.mrb[89].mxu1 }
 0xcee   :  { %v17122_v57 = vadd.f32 %v17121_v21, %v17120_v11  ;;  %v17123_v45 = vpop.f32.mrb[90].mxu1 }
 0xcef   :  { %v17124_v52 = vpop.f32.mrb[91].mxu1 }
 0xcf0   :  { %v24328_v16 = vadd.f32 %v17122_v57, %v24288_v49  ;;  %v17125_v30 = vadd.f32 %v17124_v52, %v17123_v45 }
 0xcf2   :  { %v24331_v51 = vadd.f32 %v17125_v30, %v24290_v56 }
 0xcf4   :  { %v17126_v61 = vpop.f32.mrb[92].mxu1 }
 0xcf5   :  { %v17127_v12 = vpop.f32.mrb[93].mxu1 }
 0xcf6   :  { %v17128_v14 = vadd.f32 %v17127_v12, %v17126_v61  ;;  %v17129_v42 = vpop.f32.mrb[94].mxu1 }
 0xcf7   :  { %v17130_v27 = vpop.f32.mrb[95].mxu1 }
 0xcf8   :  { %v24334_v33 = vadd.f32 %v17128_v14, %v24292_v18  ;;  %v17131_v2 = vadd.f32 %v17130_v27, %v17129_v42 }
 0xcfa   :  { %v24337_v10 = vadd.f32 %v17131_v2, %v24294_v5 }
 0xcfc   :  { %v17132_v24 = vpop.f32.mrb[96].mxu1 }
 0xcfd   :  { %v17133_v48 = vpop.f32.mrb[97].mxu1 }
 0xcfe   :  { %v17134_v49 = vadd.f32 %v17133_v48, %v17132_v24  ;;  %v17135_v41 = vpop.f32.mrb[98].mxu1 }
 0xcff   :  { %v17136_v39 = vpop.f32.mrb[99].mxu1 }
 0xd00   :  { %v24340_v56 = vadd.f32 %v17134_v49, %v24296_v55  ;;  %v17137_v62 = vadd.f32 %v17136_v39, %v17135_v41 }
 0xd02   :  { %v24343_v31 = vadd.f32 %v17137_v62, %v24298_v22 }
 0xd04   :  { %v17138_v58 = vpop.f32.mrb[100].mxu1 }
 0xd05   :  { %v17139_v20 = vpop.f32.mrb[101].mxu1 }
 0xd06   :  { %v17140_v18 = vadd.f32 %v17139_v20, %v17138_v58  ;;  %v17141_v17 = vpop.f32.mrb[102].mxu1 }
 0xd07   :  { %v17142_v26 = vpop.f32.mrb[103].mxu1 }
 0xd08   :  { %v24346_v5 = vadd.f32 %v17140_v18, %v24300_v3  ;;  %v17143_v23 = vadd.f32 %v17142_v26, %v17141_v17 }
 0xd0a   :  { %v24349_v43 = vadd.f32 %v17143_v23, %v24302_v40 }
 0xd0c   :  { %v17144_v63 = vpop.f32.mrb[104].mxu1 }
 0xd0d   :  { %v17145_v32 = vpop.f32.mrb[105].mxu1 }
 0xd0e   :  { %v17146_v55 = vadd.f32 %v17145_v32, %v17144_v63  ;;  %v17147_v50 = vpop.f32.mrb[106].mxu1 }
 0xd0f   :  { %v17148_v28 = vpop.f32.mrb[107].mxu1 }
 0xd10   :  { %v24352_v22 = vadd.f32 %v17146_v55, %v24305_v54  ;;  %v17149_v7 = vadd.f32 %v17148_v28, %v17147_v50 }
 0xd12   :  { %v24355_v25 = vadd.f32 %v17149_v7, %v24307_v38 }
 0xd14   :  { %v17150_v13 = vpop.f32.mrb[108].mxu1 }
 0xd15   :  { %v17151_v0 = vpop.f32.mrb[109].mxu1 }
 0xd16   :  { %v17152_v3 = vadd.f32 %v17151_v0, %v17150_v13  ;;  %v17153_v46 = vpop.f32.mrb[110].mxu1 }
 0xd17   :  { %v17154_v8 = vpop.f32.mrb[111].mxu1 }
 0xd18   :  { %v24358_v40 = vadd.f32 %v17152_v3, %v24310_v34  ;;  %v17155_v37 = vadd.f32 %v17154_v8, %v17153_v46 }
 0xd1a   :  { %v24361_v1 = vadd.f32 %v17155_v37, %v24313_v53 }
 0xd1c   :  { %v17172_v9 = vpop.f32.mrb[112].mxu1 }
 0xd1d   :  { %v17173_v36 = vpop.f32.mrb[113].mxu1 }
 0xd1e   :  { %v17174_v54 = vadd.f32 %v17173_v36, %v17172_v9  ;;  %v17175_v15 = vpop.f32.mrb[114].mxu1 }
 0xd1f   :  { %v17176_v4 = vpop.f32.mrb[115].mxu1 }
 0xd20   :  { %v14026_v38 = vadd.f32 %v17174_v54, %v24316_v35  ;;  %v17177_v60 = vadd.f32 %v17176_v4, %v17175_v15 }
 0xd22   :  { %v14027_v6 = vadd.f32 %v17177_v60, %v24319_v47 }
 0xd24   :  { %v14042_v59 = vpack.c.bf16 %v14027_v6, %v14026_v38  ;;  %v17178_v11 = vpop.f32.mrb[116].mxu1 }
 0xd25   :  { %v17179_v21 = vpop.f32.mrb[117].mxu1 }
 0xd26   :  { %v17180_v57 = vadd.f32 %v17179_v21, %v17178_v11  ;;  %v17181_v34 = vpop.f32.mrb[118].mxu1  ;;  %18935 = vmatprep.mubr.msk.bf16.mxu1 %vm12920_vm3, %v14042_v59 }
 0xd27   :  { %v17182_v45 = vpop.f32.mrb[119].mxu1 }
 0xd28   :  { %v14028_v53 = vadd.f32 %v17180_v57, %v24322_v29  ;;  %v17183_v52 = vadd.f32 %v17182_v45, %v17181_v34 }
 0xd2a   :  { %v14029_v30 = vadd.f32 %v17183_v52, %v24325_v19 }
 0xd2c   :  { %v14043_v61 = vpack.c.bf16 %v14029_v30, %v14028_v53  ;;  %v17184_v12 = vpop.f32.mrb[120].mxu1 }
 0xd2d   :  { %v17185_v14 = vpop.f32.mrb[121].mxu1 }
 0xd2e   :  { %v17186_v35 = vadd.f32 %v17185_v14, %v17184_v12  ;;  %v17187_v42 = vpop.f32.mrb[122].mxu1  ;;  %18936 = vmatmul.mubr.msk.bf16.vlgmr.msra.gmra.mrb[144].mxu1 %vm12920_vm3, %v14043_v61 }
 0xd2f   :  { %v17188_v47 = vpop.f32.mrb[123].mxu1 }
 0xd30   :  { %v14030_v27 = vadd.f32 %v17186_v35, %v24328_v16  ;;  %v17189_v2 = vadd.f32 %v17188_v47, %v17187_v42 }
 0xd32   :  { %v14031_v24 = vadd.f32 %v17189_v2, %v24331_v51 }
 0xd34   :  { %v14044_v48 = vpack.c.bf16 %v14031_v24, %v14030_v27  ;;  %v17190_v49 = vpop.f32.mrb[124].mxu1 }
 0xd35   :  { %v17191_v41 = vpop.f32.mrb[125].mxu1 }
 0xd36   :  { %v17192_v29 = vadd.f32 %v17191_v41, %v17190_v49  ;;  %v17193_v39 = vpop.f32.mrb[126].mxu1  ;;  %18939 = vmatprep.mubr.msk.bf16.mxu1 %vm12920_vm3, %v14044_v48 }
 0xd37   :  { %v17194_v19 = vpop.f32.mrb[127].mxu1 }
 0xd38   :  { %v14032_v62 = vadd.f32 %v17192_v29, %v24334_v33  ;;  %v17195_v58 = vadd.f32 %v17194_v19, %v17193_v39 }
 0xd3a   :  { %v14033_v20 = vadd.f32 %v17195_v58, %v24337_v10 }
 0xd3c   :  { %v14045_v18 = vpack.c.bf16 %v14033_v20, %v14032_v62  ;;  %v17196_v17 = vpop.f32.mrb[128].mxu1 }
 0xd3d   :  { %v17197_v26 = vpop.f32.mrb[129].mxu1 }
 0xd3e   :  { %v17198_v16 = vadd.f32 %v17197_v26, %v17196_v17  ;;  %v17199_v23 = vpop.f32.mrb[130].mxu1  ;;  %18940 = vmatmul.mubr.msk.bf16.gmra.mrb[148].mxu1 %vm12920_vm3, %v14045_v18 }
 0xd3f   :  { %v17200_v51 = vpop.f32.mrb[131].mxu1 }
 0xd40   :  { %v14034_v63 = vadd.f32 %v17198_v16, %v24340_v56  ;;  %v17201_v32 = vadd.f32 %v17200_v51, %v17199_v23 }
 0xd42   :  { %v14035_v55 = vadd.f32 %v17201_v32, %v24343_v31 }
 0xd44   :  { %v14046_v50 = vpack.c.bf16 %v14035_v55, %v14034_v63  ;;  %v17202_v28 = vpop.f32.mrb[132].mxu1 }
 0xd45   :  { %v17203_v7 = vpop.f32.mrb[133].mxu1 }
 0xd46   :  { %v17204_v33 = vadd.f32 %v17203_v7, %v17202_v28  ;;  %v17205_v13 = vpop.f32.mrb[134].mxu1  ;;  %18943 = vmatprep.mubr.msk.bf16.mxu1 %vm12920_vm3, %v14046_v50 }
 0xd47   :  { %v17206_v10 = vpop.f32.mrb[135].mxu1 }
 0xd48   :  { %v14036_v0 = vadd.f32 %v17204_v33, %v24346_v5  ;;  %v17207_v3 = vadd.f32 %v17206_v10, %v17205_v13 }
 0xd4a   :  { %v14037_v46 = vadd.f32 %v17207_v3, %v24349_v43 }
 0xd4c   :  { %v14047_v8 = vpack.c.bf16 %v14037_v46, %v14036_v0  ;;  %v17208_v37 = vpop.f32.mrb[136].mxu1 }
 0xd4d   :  { %v17209_v9 = vpop.f32.mrb[137].mxu1 }
 0xd4e   :  { %v17210_v56 = vadd.f32 %v17209_v9, %v17208_v37  ;;  %v17211_v36 = vpop.f32.mrb[138].mxu1  ;;  %18944 = vmatmul.mubr.msk.bf16.gmra.mrb[152].mxu1 %vm12920_vm3, %v14047_v8 }
 0xd4f   :  { %v17212_v31 = vpop.f32.mrb[139].mxu1 }
 0xd50   :  { %v14038_v54 = vadd.f32 %v17210_v56, %v24352_v22  ;;  %v17213_v15 = vadd.f32 %v17212_v31, %v17211_v36 }
 0xd52   :  { %v14039_v4 = vadd.f32 %v17213_v15, %v24355_v25 }
 0xd54   :  { %v14048_v38 = vpack.c.bf16 %v14039_v4, %v14038_v54  ;;  %v17214_v60 = vpop.f32.mrb[140].mxu1 }
 0xd55   :  { %v17215_v6 = vpop.f32.mrb[141].mxu1 }
 0xd56   :  { %v17216_v5 = vadd.f32 %v17215_v6, %v17214_v60  ;;  %v17217_v59 = vpop.f32.mrb[142].mxu1  ;;  %18947 = vmatprep.mubr.msk.bf16.mxu1 %vm12920_vm3, %v14048_v38 }
 0xd57   :  { %v17218_v43 = vpop.f32.mrb[143].mxu1 }
 0xd58   :  { %v14040_v11 = vadd.f32 %v17216_v5, %v24358_v40  ;;  %v17219_v21 = vadd.f32 %v17218_v43, %v17217_v59 }
 0xd5a   :  { %v14041_v57 = vadd.f32 %v17219_v21, %v24361_v1 }
 0xd5c   :  { %v14049_v34 = vpack.c.bf16 %v14041_v57, %v14040_v11 }
 0xd5e   :  { %18948 = vmatmul.mubr.msk.bf16.gmra.mrb[156].mxu1 %vm12920_vm3, %v14049_v34 }
 0xe01   :  { %v18937_v22 = vpop.f32.mrb[144].mxu1 }
 0xe02   :  { %v14117_v45 = vadd.f32 %v18937_v22, %v24153_v44  ;;  %v14108_v25 = vpop.f32.mrb[145].mxu1 }
 0xe03   :  { %v14109_v53 = vadd.f32 %v24153_v44, %v14108_v25  ;;  %v18938_v52 = vpop.f32.mrb[146].mxu1 }
 0xe04   :  { %14173 = vst.msk [vmem:[#allocation5 + $0x50] sm:$0xff] %vm90_vm0, %v14117_v45  ;;  %v14120_v30 = vadd.f32 %v18938_v52, %v24153_v44  ;;  %v14111_v61 = vpop.f32.mrb[147].mxu1 }
 0xe05   :  { %14171 = vst.msk [vmem:[#allocation5 + $0x40] sm:$0xff] %vm90_vm0, %v14109_v53  ;;  %v14112_v40 = vadd.f32 %v24153_v44, %v14111_v61 }
 0xe06   :  { %14174 = vst.msk [vmem:[#allocation5 + $0x58] sm:$0xff] %vm90_vm0, %v14120_v30 }
 0xe07   :  { %14172 = vst.msk [vmem:[#allocation5 + $0x48] sm:$0xff] %vm90_vm0, %v14112_v40 }
 0xe11   :  { %v18941_v1 = vpop.f32.mrb[148].mxu1 }
 0xe12   :  { %v14133_v12 = vadd.f32 %v18941_v1, %v24153_v44  ;;  %v14124_v14 = vpop.f32.mrb[149].mxu1 }
 0xe13   :  { %v14125_v35 = vadd.f32 %v24153_v44, %v14124_v14  ;;  %v18942_v42 = vpop.f32.mrb[150].mxu1 }
 0xe14   :  { %14177 = vst.msk [vmem:[#allocation5 + $0x70] sm:$0xff] %vm90_vm0, %v14133_v12  ;;  %v14136_v47 = vadd.f32 %v18942_v42, %v24153_v44  ;;  %v14127_v27 = vpop.f32.mrb[151].mxu1 }
 0xe15   :  { %14175 = vst.msk [vmem:[#allocation5 + $0x60] sm:$0xff] %vm90_vm0, %v14125_v35  ;;  %v14128_v2 = vadd.f32 %v24153_v44, %v14127_v27 }
 0xe16   :  { %14178 = vst.msk [vmem:[#allocation5 + $0x78] sm:$0xff] %vm90_vm0, %v14136_v47 }
 0xe17   :  { %14176 = vst.msk [vmem:[#allocation5 + $0x68] sm:$0xff] %vm90_vm0, %v14128_v2 }
 0xe21   :  { %v18945_v24 = vpop.f32.mrb[152].mxu1 }
 0xe22   :  { %v14149_v48 = vadd.f32 %v18945_v24, %v24153_v44  ;;  %v14140_v49 = vpop.f32.mrb[153].mxu1 }
 0xe23   :  { %v14141_v41 = vadd.f32 %v24153_v44, %v14140_v49  ;;  %v18946_v29 = vpop.f32.mrb[154].mxu1 }
 0xe24   :  { %14181 = vst.msk [vmem:[#allocation5 + $0xd0] sm:$0xff] %vm90_vm0, %v14149_v48  ;;  %v14152_v39 = vadd.f32 %v18946_v29, %v24153_v44  ;;  %v14143_v19 = vpop.f32.mrb[155].mxu1 }
 0xe25   :  { %14179 = vst.msk [vmem:[#allocation5 + $0xc0] sm:$0xff] %vm90_vm0, %v14141_v41  ;;  %v14144_v62 = vadd.f32 %v24153_v44, %v14143_v19 }
 0xe26   :  { %14182 = vst.msk [vmem:[#allocation5 + $0xd8] sm:$0xff] %vm90_vm0, %v14152_v39 }
 0xe27   :  { %14180 = vst.msk [vmem:[#allocation5 + $0xc8] sm:$0xff] %vm90_vm0, %v14144_v62 }
 0xe31   :  { %v18949_v58 = vpop.f32.mrb[156].mxu1 }
 0xe32   :  { %v14165_v20 = vadd.f32 %v18949_v58, %v24153_v44  ;;  %v14156_v18 = vpop.f32.mrb[157].mxu1 }
 0xe33   :  { %v14157_v17 = vadd.f32 %v24153_v44, %v14156_v18  ;;  %v18950_v26 = vpop.f32.mrb[158].mxu1 }
 0xe34   :  { %14185 = vst.msk [vmem:[#allocation5 + $0xf0] sm:$0xff] %vm90_vm0, %v14165_v20  ;;  %v14168_v16 = vadd.f32 %v18950_v26, %v24153_v44  ;;  %v14159_v23 = vpop.f32.mrb[159].mxu1 }
 0xe35   :  { %14183 = vst.msk [vmem:[#allocation5 + $0xe0] sm:$0xff] %vm90_vm0, %v14157_v17  ;;  %v14160_v51 = vadd.f32 %v24153_v44, %v14159_v23 }
 0xe36   :  { %14186 = vst.msk [vmem:[#allocation5 + $0xf8] sm:$0xff] %vm90_vm0, %v14168_v16 }
 0xe37   :  { %14184 = vst.msk [vmem:[#allocation5 + $0xe8] sm:$0xff] %vm90_vm0, %v14160_v51 }
 0xe38   :  { %20419 = shalt.err (!%p20416_p4)
}
 0xe39   :  { %s20420_s24 = scalar_lea.hbm %s24440_s9, 4096 }
 0xe3a   :  { %p20421_p5 = scmp.ne.s32.totalorder %s24440_s9, %s20420_s24  ;;  %p20424_p6 = scmp.lt.u32.totalorder %s20420_s24, %s24440_s9 }
 0xe3c   :  { %p20426_p7 = pnand %p20424_p6, %p20421_p5 }
 0xe3e   :  { %20429 = shalt.err (!%p20426_p7)
}
 0xe3f   :  { %s20439_s28 = smov 128   ;;  %s20440_s5 = smov 8  }
 0xe40   :  { %14198 = dma.vmem_to_hbm [thread:$0]  %s14193_s21, 4096, %s24440_s9, [#allocation6], %s20439_s28, %s20439_s28, %s20440_s5  }
 0xe41   :  { %20430 = dma.done.wait [#allocation6], 4096  }
 0xe42   :  { %20431 = vsyncadd [#allocation6], 4294963200 }
 0xe43   :  { %14202 = vsyncpa [#allocation6], 1 }

</bundles_post_ra>
